<compile_context>
chip_gen: v7x
topology: tpu7x:2x2x1
jax: 0.10.0
libtpu: 0.0.40
codegen_flags: <defaults>
</compile_context>

<pallas_src>
import jax
import jax.numpy as jnp
from jax import lax
from jax.experimental import pallas as pl
from jax.experimental.pallas import tpu as pltpu


def _block_kernel(x_ref, w1_ref, b1_ref, w2_ref, b2_ref, o_ref, pad_ref):
    # x_ref:   (1, H, W, Cin)   one image, f32 (unpadded; halo lives in pad_ref)
    # w1_ref:  (9, Cin,  Cout)  conv1 weights (tap-major), BN1 scale folded, bf16
    # b1_ref:  (1, Cout)        BN1 shift, f32
    # w2_ref:  (9, Cout, Cout)  conv2 weights (tap-major), BN2 scale folded, bf16
    # b2_ref:  (1, Cout)        BN2 shift, f32
    # o_ref:   (1, H, W, Cout)  f32 output
    # pad_ref: (H+2, W+2, Cout) persistent VMEM scratch, compute dtype (bf16)
    _, H, W, Cin = x_ref.shape
    Cout = o_ref.shape[3]
    cdt = pad_ref.dtype                              # MXU operand dtype (bf16)

    # Zero only the 1-pixel halo border (4 thin slabs); interior is overwritten
    # below.  Done every grid step -- see header comment on why not init-once.
    pad_ref[0:1, :, :] = jnp.zeros((1, W + 2, Cout), cdt)
    pad_ref[H + 1:H + 2, :, :] = jnp.zeros((1, W + 2, Cout), cdt)
    pad_ref[:, 0:1, :] = jnp.zeros((H + 2, 1, Cout), cdt)
    pad_ref[:, W + 1:W + 2, :] = jnp.zeros((H + 2, 1, Cout), cdt)

    def conv3x3(w_ref, C):
        # 3x3 / stride-1 conv as 9 accumulating MXU dots (bf16 x bf16 -> f32),
        # reading shifted (H, W, C) views straight out of the padded scratch.
        acc = jnp.zeros((H * W, Cout), jnp.float32)
        for t in range(9):
            dy, dx = t // 3, t % 3                   # matches HWIO tap order
            patch = pad_ref[dy:dy + H, dx:dx + W, :].reshape(H * W, C)
            acc = acc + jnp.dot(patch, w_ref[t],
                                preferred_element_type=jnp.float32)
        return acc

    x = x_ref[0]                                     # (H, W, Cin) f32, read once

    # conv1 (+ folded BN1 scale) + shift + ReLU
    pad_ref[1:H + 1, 1:W + 1, :] = x.astype(cdt)
    o1 = jnp.maximum(conv3x3(w1_ref, Cin) + b1_ref[...], 0.0)     # (H*W, Cout) f32

    # conv2 (+ folded BN2 scale) + shift -- reuse the same pad scratch (Cin == Cout)
    pad_ref[1:H + 1, 1:W + 1, :] = o1.reshape(H, W, Cout).astype(cdt)
    o2 = conv3x3(w2_ref, Cout) + b2_ref[...]

    # identity residual (ds=None, stride=1, Cin == Cout) + final ReLU, all f32
    out = jnp.maximum(o2 + x.reshape(H * W, Cin), 0.0)
    o_ref[0] = out.reshape(H, W, Cout).astype(o_ref.dtype)


def blocks_forward(x_nhwc, w1_hwio, bn1, w2_hwio, bn2, *, eps=1e-5,
                   compute_dtype=jnp.bfloat16):
    """x_nhwc: (N, H, W, Cin). Weights HWIO (3,3,Ci,Co). bn* = (gamma, beta, mean, var)."""
    N, H, W, Cin = x_nhwc.shape
    Cout = w1_hwio.shape[-1]
    # Only the module-default configuration is implemented (stride=1, ds=None).
    assert w1_hwio.shape == (3, 3, Cin, Cout), w1_hwio.shape
    assert w2_hwio.shape == (3, 3, Cout, Cout), w2_hwio.shape
    assert Cin == Cout, "identity residual (ds=None, stride=1) requires Cin == Cout"

    def fold(bn):
        gamma, beta, mean, var = bn
        scale = gamma.astype(jnp.float32) / jnp.sqrt(var.astype(jnp.float32) + eps)
        shift = beta.astype(jnp.float32) - mean.astype(jnp.float32) * scale
        return scale, shift

    s1, b1 = fold(bn1)
    s2, b2 = fold(bn2)

    # Fold BN scale into the conv weights (per output channel), pack HWIO ->
    # (9, Cin, Cout) so tap t = ky*3 + kx indexes the leading axis, and cast the
    # MXU operands to bf16 (native MXU rate on v5e/v6e/v7x, half the weight DMA
    # bytes).  BN shifts stay f32 and are added to the f32 accumulator.
    w1 = (w1_hwio.astype(jnp.float32) * s1[None, None, None, :]) \
        .reshape(9, Cin, Cout).astype(compute_dtype)
    w2 = (w2_hwio.astype(jnp.float32) * s2[None, None, None, :]) \
        .reshape(9, Cout, Cout).astype(compute_dtype)
    b1 = b1.reshape(1, Cout)
    b2 = b2.reshape(1, Cout)

    x = x_nhwc.astype(jnp.float32)   # no wrapper-side spatial padding

    # VMEM budget: double-buffered activation in/out blocks + weight/bias blocks
    # + persistent pad scratch, with generous headroom for compiler-internal
    # scratch.  Clamped below v7x's 64 MiB physical per-TensorCore VMEM.
    c_bytes = jnp.dtype(compute_dtype).itemsize
    need = (2 * H * W * (Cin + Cout) * 4                 # x/out blocks, double buffered
            + 2 * 9 * (Cin + Cout) * Cout * c_bytes      # w1/w2 (default 2-deep)
            + 2 * 2 * Cout * 4                           # b1/b2
            + (H + 2) * (W + 2) * Cout * c_bytes)        # pad scratch
    vmem_limit = int(min(max(4 * need, 32 * 1024 * 1024), 48 * 1024 * 1024))

    grid_spec = pltpu.PrefetchScalarGridSpec(
        num_scalar_prefetch=0,
        grid=(N,),                                       # one image per grid step
        in_specs=[
            pl.BlockSpec((1, H, W, Cin), lambda n: (n, 0, 0, 0)),
            # weights/shifts stay resident (constant index_map across the grid)
            pl.BlockSpec((9, Cin, Cout), lambda n: (0, 0, 0)),
            pl.BlockSpec((1, Cout), lambda n: (0, 0)),
            pl.BlockSpec((9, Cout, Cout), lambda n: (0, 0, 0)),
            pl.BlockSpec((1, Cout), lambda n: (0, 0)),
        ],
        out_specs=pl.BlockSpec((1, H, W, Cout), lambda n: (n, 0, 0, 0)),
        scratch_shapes=[pltpu.VMEM((H + 2, W + 2, Cout), compute_dtype)],
    )

    return pl.pallas_call(
        _block_kernel,
        out_shape=jax.ShapeDtypeStruct((N, H, W, Cout), jnp.float32),
        grid_spec=grid_spec,
        compiler_params=pltpu.CompilerParams(
            # batch images are independent -> shard grid steps across TensorCores
            # (2x on v7x megacore; no-op on single-TC v5e/v6e)
            dimension_semantics=("parallel",),
            vmem_limit_bytes=vmem_limit,
        ),
    )(x, w1, b1, w2, b2)


def blocks_reference(x_nhwc, w1_hwio, bn1, w2_hwio, bn2):
    eps = 1e-5
    dn = ("NHWC", "HWIO", "NHWC")

    def bn_apply(y, bn):
        gamma, beta, mean, var = bn
        return (y - mean) / jnp.sqrt(var + eps) * gamma + beta

    o = lax.conv_general_dilated(x_nhwc, w1_hwio, (1, 1), "SAME",
                                 dimension_numbers=dn)
    o = jnp.maximum(bn_apply(o, bn1), 0.0)
    o = lax.conv_general_dilated(o, w2_hwio, (1, 1), "SAME",
                                 dimension_numbers=dn)
    o = bn_apply(o, bn2)
    return jnp.maximum(o + x_nhwc, 0.0)


if __name__ == "__main__":
    N, Cin, H, W = 2, 8, 16, 16
    Cout = Cin  # identity residual requires Cin == Cout when ds is None

    key = jax.random.PRNGKey(0)
    k = jax.random.split(key, 10)

    # input (conceptually NCHW in the PyTorch module; we use NHWC here)
    x = jax.random.normal(k[0], (N, H, W, Cin), dtype=jnp.float32)

    # conv weights in HWIO
    w1 = 0.1 * jax.random.normal(k[1], (3, 3, Cin, Cout), dtype=jnp.float32)
    w2 = 0.1 * jax.random.normal(k[2], (3, 3, Cout, Cout), dtype=jnp.float32)

    # BatchNorm parameters (eval mode: running stats)
    bn1 = (1.0 + 0.1 * jax.random.normal(k[3], (Cout,), dtype=jnp.float32),   # gamma
           0.1 * jax.random.normal(k[4], (Cout,), dtype=jnp.float32),         # beta
           0.1 * jax.random.normal(k[5], (Cout,), dtype=jnp.float32),         # running mean
           0.5 + jax.random.uniform(k[6], (Cout,), dtype=jnp.float32))        # running var
    bn2 = (1.0 + 0.1 * jax.random.normal(k[7], (Cout,), dtype=jnp.float32),
           0.1 * jax.random.normal(k[8], (Cout,), dtype=jnp.float32),
           0.1 * jax.random.normal(k[9], (Cout,), dtype=jnp.float32),
           0.5 + jax.random.uniform(k[0], (Cout,), dtype=jnp.float32))

    out = blocks_forward(x, w1, bn1, w2, bn2)
    out = jax.block_until_ready(out)

    ref = blocks_reference(x, w1, bn1, w2, bn2)
    assert out.shape == (N, H, W, Cout)
    # Tolerance loosened vs the pure-f32 version because the MXU operands
    # (weights + padded activations) are bf16 (f32 accumulation / epilogue);
    # observed error is well inside this bound at these magnitudes.
    assert jnp.allclose(out, ref, atol=5e-2, rtol=5e-2), (
        float(jnp.max(jnp.abs(out - ref))))

    print("KERNEL_OK")
</pallas_src>

<mosaic_0001>
module attributes {stable_mosaic.version = 11 : i64} {
  func.func @_block_kernel(%arg0: i32, %arg1: memref<1x16x16x8xf32, #tpu.memory_space<vmem>>, %arg2: memref<9x8x8xbf16, #tpu.memory_space<vmem>>, %arg3: memref<1x8xf32, #tpu.memory_space<vmem>>, %arg4: memref<9x8x8xbf16, #tpu.memory_space<vmem>>, %arg5: memref<1x8xf32, #tpu.memory_space<vmem>>, %arg6: memref<1x16x16x8xf32, #tpu.memory_space<vmem>>, %arg7: memref<18x18x8xbf16, #tpu.memory_space<vmem>>) attributes {dimension_semantics = [#tpu.dimension_semantics<parallel>], iteration_bounds = array<i64: 2>, scalar_prefetch = 0 : i64, scratch_operands = 1 : i64, tpu.core_type = #tpu.core_type<tc>, window_params = [{transform_indices = @transform_0, window_bounds = array<i64: 1, 16, 16, 8>}, {pipeline_mode = #tpu.pipeline_mode<synchronous>, transform_indices = @transform_1, window_bounds = array<i64: 9, 8, 8>}, {pipeline_mode = #tpu.pipeline_mode<synchronous>, transform_indices = @transform_2, window_bounds = array<i64: 1, 8>}, {pipeline_mode = #tpu.pipeline_mode<synchronous>, transform_indices = @transform_3, window_bounds = array<i64: 9, 8, 8>}, {pipeline_mode = #tpu.pipeline_mode<synchronous>, transform_indices = @transform_4, window_bounds = array<i64: 1, 8>}, {transform_indices = @transform_5, window_bounds = array<i64: 1, 16, 16, 8>}]} {
    %cst = arith.constant 0.000000e+00 : bf16
    %0 = vector.broadcast %cst : bf16 to vector<1x18x8xbf16>
    %c0 = arith.constant 0 : index
    %c0_0 = arith.constant 0 : index
    %c0_1 = arith.constant 0 : index
    %1 = vector.load %arg7[%c0, %c0_0, %c0_1] : memref<18x18x8xbf16, #tpu.memory_space<vmem>>, vector<1x18x8xbf16>
    tpu.vector_store %arg7[%c0, %c0_0, %c0_1], %0 {strides = array<i32>} : memref<18x18x8xbf16, #tpu.memory_space<vmem>>, vector<1x18x8xbf16>,
    %cst_2 = arith.constant 0.000000e+00 : bf16
    %2 = vector.broadcast %cst_2 : bf16 to vector<1x18x8xbf16>
    %c17 = arith.constant 17 : index
    %c0_3 = arith.constant 0 : index
    %c0_4 = arith.constant 0 : index
    %3 = vector.load %arg7[%c17, %c0_3, %c0_4] : memref<18x18x8xbf16, #tpu.memory_space<vmem>>, vector<1x18x8xbf16>
    tpu.vector_store %arg7[%c17, %c0_3, %c0_4], %2 {strides = array<i32>} : memref<18x18x8xbf16, #tpu.memory_space<vmem>>, vector<1x18x8xbf16>,
    %cst_5 = arith.constant 0.000000e+00 : bf16
    %4 = vector.broadcast %cst_5 : bf16 to vector<18x1x8xbf16>
    %c0_6 = arith.constant 0 : index
    %c0_7 = arith.constant 0 : index
    %c0_8 = arith.constant 0 : index
    %5 = vector.load %arg7[%c0_6, %c0_7, %c0_8] : memref<18x18x8xbf16, #tpu.memory_space<vmem>>, vector<18x1x8xbf16>
    tpu.vector_store %arg7[%c0_6, %c0_7, %c0_8], %4 {strides = array<i32>} : memref<18x18x8xbf16, #tpu.memory_space<vmem>>, vector<18x1x8xbf16>,
    %cst_9 = arith.constant 0.000000e+00 : bf16
    %6 = vector.broadcast %cst_9 : bf16 to vector<18x1x8xbf16>
    %c0_10 = arith.constant 0 : index
    %c17_11 = arith.constant 17 : index
    %c0_12 = arith.constant 0 : index
    %7 = vector.load %arg7[%c0_10, %c17_11, %c0_12] : memref<18x18x8xbf16, #tpu.memory_space<vmem>>, vector<18x1x8xbf16>
    tpu.vector_store %arg7[%c0_10, %c17_11, %c0_12], %6 {strides = array<i32>} : memref<18x18x8xbf16, #tpu.memory_space<vmem>>, vector<18x1x8xbf16>,
    %c0_13 = arith.constant 0 : index
    %c0_14 = arith.constant 0 : index
    %c0_15 = arith.constant 0 : index
    %c0_16 = arith.constant 0 : index
    %8 = vector.load %arg1[%c0_13, %c0_14, %c0_15, %c0_16] : memref<1x16x16x8xf32, #tpu.memory_space<vmem>>, vector<1x16x16x8xf32>
    %9 = vector.shape_cast %8 : vector<1x16x16x8xf32> to vector<16x16x8xf32>
    %10 = arith.truncf %9 : vector<16x16x8xf32> to vector<16x16x8xbf16>
    %c1 = arith.constant 1 : index
    %c1_17 = arith.constant 1 : index
    %c0_18 = arith.constant 0 : index
    %11 = vector.load %arg7[%c1, %c1_17, %c0_18] : memref<18x18x8xbf16, #tpu.memory_space<vmem>>, vector<16x16x8xbf16>
    tpu.vector_store %arg7[%c1, %c1_17, %c0_18], %10 {strides = array<i32>} : memref<18x18x8xbf16, #tpu.memory_space<vmem>>, vector<16x16x8xbf16>,
    %cst_19 = arith.constant 0.000000e+00 : f32
    %12 = vector.broadcast %cst_19 : f32 to vector<256x8xf32>
    %c0_20 = arith.constant 0 : index
    %c0_21 = arith.constant 0 : index
    %c0_22 = arith.constant 0 : index
    %13 = vector.load %arg7[%c0_20, %c0_21, %c0_22] : memref<18x18x8xbf16, #tpu.memory_space<vmem>>, vector<16x16x8xbf16>
    %14 = vector.shape_cast %13 : vector<16x16x8xbf16> to vector<256x8xbf16>
    %c0_23 = arith.constant 0 : index
    %c0_24 = arith.constant 0 : index
    %c0_25 = arith.constant 0 : index
    %15 = vector.load %arg2[%c0_23, %c0_24, %c0_25] : memref<9x8x8xbf16, #tpu.memory_space<vmem>>, vector<1x8x8xbf16>
    %16 = vector.shape_cast %15 : vector<1x8x8xbf16> to vector<8x8xbf16>
    %cst_26 = arith.constant dense<0.000000e+00> : vector<256x8xf32>
    %17 = tpu.matmul %14, %16, %cst_26 {dimension_numbers = #tpu.dot_dimension_numbers<[1], [0], [0], [1], [0, 0, 1, 1], [], []>} : vector<256x8xbf16>, vector<8x8xbf16>, vector<256x8xf32> -> vector<256x8xf32>
    %18 = arith.addf %12, %17 : vector<256x8xf32>
    %c0_27 = arith.constant 0 : index
    %c1_28 = arith.constant 1 : index
    %c0_29 = arith.constant 0 : index
    %19 = vector.load %arg7[%c0_27, %c1_28, %c0_29] : memref<18x18x8xbf16, #tpu.memory_space<vmem>>, vector<16x16x8xbf16>
    %20 = vector.shape_cast %19 : vector<16x16x8xbf16> to vector<256x8xbf16>
    %c1_30 = arith.constant 1 : index
    %c0_31 = arith.constant 0 : index
    %c0_32 = arith.constant 0 : index
    %21 = vector.load %arg2[%c1_30, %c0_31, %c0_32] : memref<9x8x8xbf16, #tpu.memory_space<vmem>>, vector<1x8x8xbf16>
    %22 = vector.shape_cast %21 : vector<1x8x8xbf16> to vector<8x8xbf16>
    %cst_33 = arith.constant dense<0.000000e+00> : vector<256x8xf32>
    %23 = tpu.matmul %20, %22, %cst_33 {dimension_numbers = #tpu.dot_dimension_numbers<[1], [0], [0], [1], [0, 0, 1, 1], [], []>} : vector<256x8xbf16>, vector<8x8xbf16>, vector<256x8xf32> -> vector<256x8xf32>
    %24 = arith.addf %18, %23 : vector<256x8xf32>
    %c0_34 = arith.constant 0 : index
    %c2 = arith.constant 2 : index
    %c0_35 = arith.constant 0 : index
    %25 = vector.load %arg7[%c0_34, %c2, %c0_35] : memref<18x18x8xbf16, #tpu.memory_space<vmem>>, vector<16x16x8xbf16>
    %26 = vector.shape_cast %25 : vector<16x16x8xbf16> to vector<256x8xbf16>
    %c2_36 = arith.constant 2 : index
    %c0_37 = arith.constant 0 : index
    %c0_38 = arith.constant 0 : index
    %27 = vector.load %arg2[%c2_36, %c0_37, %c0_38] : memref<9x8x8xbf16, #tpu.memory_space<vmem>>, vector<1x8x8xbf16>
    %28 = vector.shape_cast %27 : vector<1x8x8xbf16> to vector<8x8xbf16>
    %cst_39 = arith.constant dense<0.000000e+00> : vector<256x8xf32>
    %29 = tpu.matmul %26, %28, %cst_39 {dimension_numbers = #tpu.dot_dimension_numbers<[1], [0], [0], [1], [0, 0, 1, 1], [], []>} : vector<256x8xbf16>, vector<8x8xbf16>, vector<256x8xf32> -> vector<256x8xf32>
    %30 = arith.addf %24, %29 : vector<256x8xf32>
    %c1_40 = arith.constant 1 : index
    %c0_41 = arith.constant 0 : index
    %c0_42 = arith.constant 0 : index
    %31 = vector.load %arg7[%c1_40, %c0_41, %c0_42] : memref<18x18x8xbf16, #tpu.memory_space<vmem>>, vector<16x16x8xbf16>
    %32 = vector.shape_cast %31 : vector<16x16x8xbf16> to vector<256x8xbf16>
    %c3 = arith.constant 3 : index
    %c0_43 = arith.constant 0 : index
    %c0_44 = arith.constant 0 : index
    %33 = vector.load %arg2[%c3, %c0_43, %c0_44] : memref<9x8x8xbf16, #tpu.memory_space<vmem>>, vector<1x8x8xbf16>
    %34 = vector.shape_cast %33 : vector<1x8x8xbf16> to vector<8x8xbf16>
    %cst_45 = arith.constant dense<0.000000e+00> : vector<256x8xf32>
    %35 = tpu.matmul %32, %34, %cst_45 {dimension_numbers = #tpu.dot_dimension_numbers<[1], [0], [0], [1], [0, 0, 1, 1], [], []>} : vector<256x8xbf16>, vector<8x8xbf16>, vector<256x8xf32> -> vector<256x8xf32>
    %36 = arith.addf %30, %35 : vector<256x8xf32>
    %c1_46 = arith.constant 1 : index
    %c1_47 = arith.constant 1 : index
    %c0_48 = arith.constant 0 : index
    %37 = vector.load %arg7[%c1_46, %c1_47, %c0_48] : memref<18x18x8xbf16, #tpu.memory_space<vmem>>, vector<16x16x8xbf16>
    %38 = vector.shape_cast %37 : vector<16x16x8xbf16> to vector<256x8xbf16>
    %c4 = arith.constant 4 : index
    %c0_49 = arith.constant 0 : index
    %c0_50 = arith.constant 0 : index
    %39 = vector.load %arg2[%c4, %c0_49, %c0_50] : memref<9x8x8xbf16, #tpu.memory_space<vmem>>, vector<1x8x8xbf16>
    %40 = vector.shape_cast %39 : vector<1x8x8xbf16> to vector<8x8xbf16>
    %cst_51 = arith.constant dense<0.000000e+00> : vector<256x8xf32>
    %41 = tpu.matmul %38, %40, %cst_51 {dimension_numbers = #tpu.dot_dimension_numbers<[1], [0], [0], [1], [0, 0, 1, 1], [], []>} : vector<256x8xbf16>, vector<8x8xbf16>, vector<256x8xf32> -> vector<256x8xf32>
    %42 = arith.addf %36, %41 : vector<256x8xf32>
    %c1_52 = arith.constant 1 : index
    %c2_53 = arith.constant 2 : index
    %c0_54 = arith.constant 0 : index
    %43 = vector.load %arg7[%c1_52, %c2_53, %c0_54] : memref<18x18x8xbf16, #tpu.memory_space<vmem>>, vector<16x16x8xbf16>
    %44 = vector.shape_cast %43 : vector<16x16x8xbf16> to vector<256x8xbf16>
    %c5 = arith.constant 5 : index
    %c0_55 = arith.constant 0 : index
    %c0_56 = arith.constant 0 : index
    %45 = vector.load %arg2[%c5, %c0_55, %c0_56] : memref<9x8x8xbf16, #tpu.memory_space<vmem>>, vector<1x8x8xbf16>
    %46 = vector.shape_cast %45 : vector<1x8x8xbf16> to vector<8x8xbf16>
    %cst_57 = arith.constant dense<0.000000e+00> : vector<256x8xf32>
    %47 = tpu.matmul %44, %46, %cst_57 {dimension_numbers = #tpu.dot_dimension_numbers<[1], [0], [0], [1], [0, 0, 1, 1], [], []>} : vector<256x8xbf16>, vector<8x8xbf16>, vector<256x8xf32> -> vector<256x8xf32>
    %48 = arith.addf %42, %47 : vector<256x8xf32>
    %c2_58 = arith.constant 2 : index
    %c0_59 = arith.constant 0 : index
    %c0_60 = arith.constant 0 : index
    %49 = vector.load %arg7[%c2_58, %c0_59, %c0_60] : memref<18x18x8xbf16, #tpu.memory_space<vmem>>, vector<16x16x8xbf16>
    %50 = vector.shape_cast %49 : vector<16x16x8xbf16> to vector<256x8xbf16>
    %c6 = arith.constant 6 : index
    %c0_61 = arith.constant 0 : index
    %c0_62 = arith.constant 0 : index
    %51 = vector.load %arg2[%c6, %c0_61, %c0_62] : memref<9x8x8xbf16, #tpu.memory_space<vmem>>, vector<1x8x8xbf16>
    %52 = vector.shape_cast %51 : vector<1x8x8xbf16> to vector<8x8xbf16>
    %cst_63 = arith.constant dense<0.000000e+00> : vector<256x8xf32>
    %53 = tpu.matmul %50, %52, %cst_63 {dimension_numbers = #tpu.dot_dimension_numbers<[1], [0], [0], [1], [0, 0, 1, 1], [], []>} : vector<256x8xbf16>, vector<8x8xbf16>, vector<256x8xf32> -> vector<256x8xf32>
    %54 = arith.addf %48, %53 : vector<256x8xf32>
    %c2_64 = arith.constant 2 : index
    %c1_65 = arith.constant 1 : index
    %c0_66 = arith.constant 0 : index
    %55 = vector.load %arg7[%c2_64, %c1_65, %c0_66] : memref<18x18x8xbf16, #tpu.memory_space<vmem>>, vector<16x16x8xbf16>
    %56 = vector.shape_cast %55 : vector<16x16x8xbf16> to vector<256x8xbf16>
    %c7 = arith.constant 7 : index
    %c0_67 = arith.constant 0 : index
    %c0_68 = arith.constant 0 : index
    %57 = vector.load %arg2[%c7, %c0_67, %c0_68] : memref<9x8x8xbf16, #tpu.memory_space<vmem>>, vector<1x8x8xbf16>
    %58 = vector.shape_cast %57 : vector<1x8x8xbf16> to vector<8x8xbf16>
    %cst_69 = arith.constant dense<0.000000e+00> : vector<256x8xf32>
    %59 = tpu.matmul %56, %58, %cst_69 {dimension_numbers = #tpu.dot_dimension_numbers<[1], [0], [0], [1], [0, 0, 1, 1], [], []>} : vector<256x8xbf16>, vector<8x8xbf16>, vector<256x8xf32> -> vector<256x8xf32>
    %60 = arith.addf %54, %59 : vector<256x8xf32>
    %c2_70 = arith.constant 2 : index
    %c2_71 = arith.constant 2 : index
    %c0_72 = arith.constant 0 : index
    %61 = vector.load %arg7[%c2_70, %c2_71, %c0_72] : memref<18x18x8xbf16, #tpu.memory_space<vmem>>, vector<16x16x8xbf16>
    %62 = vector.shape_cast %61 : vector<16x16x8xbf16> to vector<256x8xbf16>
    %c8 = arith.constant 8 : index
    %c0_73 = arith.constant 0 : index
    %c0_74 = arith.constant 0 : index
    %63 = vector.load %arg2[%c8, %c0_73, %c0_74] : memref<9x8x8xbf16, #tpu.memory_space<vmem>>, vector<1x8x8xbf16>
    %64 = vector.shape_cast %63 : vector<1x8x8xbf16> to vector<8x8xbf16>
    %cst_75 = arith.constant dense<0.000000e+00> : vector<256x8xf32>
    %65 = tpu.matmul %62, %64, %cst_75 {dimension_numbers = #tpu.dot_dimension_numbers<[1], [0], [0], [1], [0, 0, 1, 1], [], []>} : vector<256x8xbf16>, vector<8x8xbf16>, vector<256x8xf32> -> vector<256x8xf32>
    %66 = arith.addf %60, %65 : vector<256x8xf32>
    %c0_76 = arith.constant 0 : index
    %c0_77 = arith.constant 0 : index
    %67 = vector.load %arg3[%c0_76, %c0_77] : memref<1x8xf32, #tpu.memory_space<vmem>>, vector<1x8xf32>
    %68 = vector.broadcast %67 : vector<1x8xf32> to vector<256x8xf32>
    %69 = arith.addf %66, %68 : vector<256x8xf32>
    %cst_78 = arith.constant 0.000000e+00 : f32
    %70 = vector.broadcast %cst_78 : f32 to vector<256x8xf32>
    %71 = arith.maximumf %69, %70 : vector<256x8xf32>
    %72 = vector.shape_cast %71 : vector<256x8xf32> to vector<16x16x8xf32>
    %73 = arith.truncf %72 : vector<16x16x8xf32> to vector<16x16x8xbf16>
    %c1_79 = arith.constant 1 : index
    %c1_80 = arith.constant 1 : index
    %c0_81 = arith.constant 0 : index
    %74 = vector.load %arg7[%c1_79, %c1_80, %c0_81] : memref<18x18x8xbf16, #tpu.memory_space<vmem>>, vector<16x16x8xbf16>
    tpu.vector_store %arg7[%c1_79, %c1_80, %c0_81], %73 {strides = array<i32>} : memref<18x18x8xbf16, #tpu.memory_space<vmem>>, vector<16x16x8xbf16>,
    %cst_82 = arith.constant 0.000000e+00 : f32
    %75 = vector.broadcast %cst_82 : f32 to vector<256x8xf32>
    %c0_83 = arith.constant 0 : index
    %c0_84 = arith.constant 0 : index
    %c0_85 = arith.constant 0 : index
    %76 = vector.load %arg7[%c0_83, %c0_84, %c0_85] : memref<18x18x8xbf16, #tpu.memory_space<vmem>>, vector<16x16x8xbf16>
    %77 = vector.shape_cast %76 : vector<16x16x8xbf16> to vector<256x8xbf16>
    %c0_86 = arith.constant 0 : index
    %c0_87 = arith.constant 0 : index
    %c0_88 = arith.constant 0 : index
    %78 = vector.load %arg4[%c0_86, %c0_87, %c0_88] : memref<9x8x8xbf16, #tpu.memory_space<vmem>>, vector<1x8x8xbf16>
    %79 = vector.shape_cast %78 : vector<1x8x8xbf16> to vector<8x8xbf16>
    %cst_89 = arith.constant dense<0.000000e+00> : vector<256x8xf32>
    %80 = tpu.matmul %77, %79, %cst_89 {dimension_numbers = #tpu.dot_dimension_numbers<[1], [0], [0], [1], [0, 0, 1, 1], [], []>} : vector<256x8xbf16>, vector<8x8xbf16>, vector<256x8xf32> -> vector<256x8xf32>
    %81 = arith.addf %75, %80 : vector<256x8xf32>
    %c0_90 = arith.constant 0 : index
    %c1_91 = arith.constant 1 : index
    %c0_92 = arith.constant 0 : index
    %82 = vector.load %arg7[%c0_90, %c1_91, %c0_92] : memref<18x18x8xbf16, #tpu.memory_space<vmem>>, vector<16x16x8xbf16>
    %83 = vector.shape_cast %82 : vector<16x16x8xbf16> to vector<256x8xbf16>
    %c1_93 = arith.constant 1 : index
    %c0_94 = arith.constant 0 : index
    %c0_95 = arith.constant 0 : index
    %84 = vector.load %arg4[%c1_93, %c0_94, %c0_95] : memref<9x8x8xbf16, #tpu.memory_space<vmem>>, vector<1x8x8xbf16>
    %85 = vector.shape_cast %84 : vector<1x8x8xbf16> to vector<8x8xbf16>
    %cst_96 = arith.constant dense<0.000000e+00> : vector<256x8xf32>
    %86 = tpu.matmul %83, %85, %cst_96 {dimension_numbers = #tpu.dot_dimension_numbers<[1], [0], [0], [1], [0, 0, 1, 1], [], []>} : vector<256x8xbf16>, vector<8x8xbf16>, vector<256x8xf32> -> vector<256x8xf32>
    %87 = arith.addf %81, %86 : vector<256x8xf32>
    %c0_97 = arith.constant 0 : index
    %c2_98 = arith.constant 2 : index
    %c0_99 = arith.constant 0 : index
    %88 = vector.load %arg7[%c0_97, %c2_98, %c0_99] : memref<18x18x8xbf16, #tpu.memory_space<vmem>>, vector<16x16x8xbf16>
    %89 = vector.shape_cast %88 : vector<16x16x8xbf16> to vector<256x8xbf16>
    %c2_100 = arith.constant 2 : index
    %c0_101 = arith.constant 0 : index
    %c0_102 = arith.constant 0 : index
    %90 = vector.load %arg4[%c2_100, %c0_101, %c0_102] : memref<9x8x8xbf16, #tpu.memory_space<vmem>>, vector<1x8x8xbf16>
    %91 = vector.shape_cast %90 : vector<1x8x8xbf16> to vector<8x8xbf16>
    %cst_103 = arith.constant dense<0.000000e+00> : vector<256x8xf32>
    %92 = tpu.matmul %89, %91, %cst_103 {dimension_numbers = #tpu.dot_dimension_numbers<[1], [0], [0], [1], [0, 0, 1, 1], [], []>} : vector<256x8xbf16>, vector<8x8xbf16>, vector<256x8xf32> -> vector<256x8xf32>
    %93 = arith.addf %87, %92 : vector<256x8xf32>
    %c1_104 = arith.constant 1 : index
    %c0_105 = arith.constant 0 : index
    %c0_106 = arith.constant 0 : index
    %94 = vector.load %arg7[%c1_104, %c0_105, %c0_106] : memref<18x18x8xbf16, #tpu.memory_space<vmem>>, vector<16x16x8xbf16>
    %95 = vector.shape_cast %94 : vector<16x16x8xbf16> to vector<256x8xbf16>
    %c3_107 = arith.constant 3 : index
    %c0_108 = arith.constant 0 : index
    %c0_109 = arith.constant 0 : index
    %96 = vector.load %arg4[%c3_107, %c0_108, %c0_109] : memref<9x8x8xbf16, #tpu.memory_space<vmem>>, vector<1x8x8xbf16>
    %97 = vector.shape_cast %96 : vector<1x8x8xbf16> to vector<8x8xbf16>
    %cst_110 = arith.constant dense<0.000000e+00> : vector<256x8xf32>
    %98 = tpu.matmul %95, %97, %cst_110 {dimension_numbers = #tpu.dot_dimension_numbers<[1], [0], [0], [1], [0, 0, 1, 1], [], []>} : vector<256x8xbf16>, vector<8x8xbf16>, vector<256x8xf32> -> vector<256x8xf32>
    %99 = arith.addf %93, %98 : vector<256x8xf32>
    %c1_111 = arith.constant 1 : index
    %c1_112 = arith.constant 1 : index
    %c0_113 = arith.constant 0 : index
    %100 = vector.load %arg7[%c1_111, %c1_112, %c0_113] : memref<18x18x8xbf16, #tpu.memory_space<vmem>>, vector<16x16x8xbf16>
    %101 = vector.shape_cast %100 : vector<16x16x8xbf16> to vector<256x8xbf16>
    %c4_114 = arith.constant 4 : index
    %c0_115 = arith.constant 0 : index
    %c0_116 = arith.constant 0 : index
    %102 = vector.load %arg4[%c4_114, %c0_115, %c0_116] : memref<9x8x8xbf16, #tpu.memory_space<vmem>>, vector<1x8x8xbf16>
    %103 = vector.shape_cast %102 : vector<1x8x8xbf16> to vector<8x8xbf16>
    %cst_117 = arith.constant dense<0.000000e+00> : vector<256x8xf32>
    %104 = tpu.matmul %101, %103, %cst_117 {dimension_numbers = #tpu.dot_dimension_numbers<[1], [0], [0], [1], [0, 0, 1, 1], [], []>} : vector<256x8xbf16>, vector<8x8xbf16>, vector<256x8xf32> -> vector<256x8xf32>
    %105 = arith.addf %99, %104 : vector<256x8xf32>
    %c1_118 = arith.constant 1 : index
    %c2_119 = arith.constant 2 : index
    %c0_120 = arith.constant 0 : index
    %106 = vector.load %arg7[%c1_118, %c2_119, %c0_120] : memref<18x18x8xbf16, #tpu.memory_space<vmem>>, vector<16x16x8xbf16>
    %107 = vector.shape_cast %106 : vector<16x16x8xbf16> to vector<256x8xbf16>
    %c5_121 = arith.constant 5 : index
    %c0_122 = arith.constant 0 : index
    %c0_123 = arith.constant 0 : index
    %108 = vector.load %arg4[%c5_121, %c0_122, %c0_123] : memref<9x8x8xbf16, #tpu.memory_space<vmem>>, vector<1x8x8xbf16>
    %109 = vector.shape_cast %108 : vector<1x8x8xbf16> to vector<8x8xbf16>
    %cst_124 = arith.constant dense<0.000000e+00> : vector<256x8xf32>
    %110 = tpu.matmul %107, %109, %cst_124 {dimension_numbers = #tpu.dot_dimension_numbers<[1], [0], [0], [1], [0, 0, 1, 1], [], []>} : vector<256x8xbf16>, vector<8x8xbf16>, vector<256x8xf32> -> vector<256x8xf32>
    %111 = arith.addf %105, %110 : vector<256x8xf32>
    %c2_125 = arith.constant 2 : index
    %c0_126 = arith.constant 0 : index
    %c0_127 = arith.constant 0 : index
    %112 = vector.load %arg7[%c2_125, %c0_126, %c0_127] : memref<18x18x8xbf16, #tpu.memory_space<vmem>>, vector<16x16x8xbf16>
    %113 = vector.shape_cast %112 : vector<16x16x8xbf16> to vector<256x8xbf16>
    %c6_128 = arith.constant 6 : index
    %c0_129 = arith.constant 0 : index
    %c0_130 = arith.constant 0 : index
    %114 = vector.load %arg4[%c6_128, %c0_129, %c0_130] : memref<9x8x8xbf16, #tpu.memory_space<vmem>>, vector<1x8x8xbf16>
    %115 = vector.shape_cast %114 : vector<1x8x8xbf16> to vector<8x8xbf16>
    %cst_131 = arith.constant dense<0.000000e+00> : vector<256x8xf32>
    %116 = tpu.matmul %113, %115, %cst_131 {dimension_numbers = #tpu.dot_dimension_numbers<[1], [0], [0], [1], [0, 0, 1, 1], [], []>} : vector<256x8xbf16>, vector<8x8xbf16>, vector<256x8xf32> -> vector<256x8xf32>
    %117 = arith.addf %111, %116 : vector<256x8xf32>
    %c2_132 = arith.constant 2 : index
    %c1_133 = arith.constant 1 : index
    %c0_134 = arith.constant 0 : index
    %118 = vector.load %arg7[%c2_132, %c1_133, %c0_134] : memref<18x18x8xbf16, #tpu.memory_space<vmem>>, vector<16x16x8xbf16>
    %119 = vector.shape_cast %118 : vector<16x16x8xbf16> to vector<256x8xbf16>
    %c7_135 = arith.constant 7 : index
    %c0_136 = arith.constant 0 : index
    %c0_137 = arith.constant 0 : index
    %120 = vector.load %arg4[%c7_135, %c0_136, %c0_137] : memref<9x8x8xbf16, #tpu.memory_space<vmem>>, vector<1x8x8xbf16>
    %121 = vector.shape_cast %120 : vector<1x8x8xbf16> to vector<8x8xbf16>
    %cst_138 = arith.constant dense<0.000000e+00> : vector<256x8xf32>
    %122 = tpu.matmul %119, %121, %cst_138 {dimension_numbers = #tpu.dot_dimension_numbers<[1], [0], [0], [1], [0, 0, 1, 1], [], []>} : vector<256x8xbf16>, vector<8x8xbf16>, vector<256x8xf32> -> vector<256x8xf32>
    %123 = arith.addf %117, %122 : vector<256x8xf32>
    %c2_139 = arith.constant 2 : index
    %c2_140 = arith.constant 2 : index
    %c0_141 = arith.constant 0 : index
    %124 = vector.load %arg7[%c2_139, %c2_140, %c0_141] : memref<18x18x8xbf16, #tpu.memory_space<vmem>>, vector<16x16x8xbf16>
    %125 = vector.shape_cast %124 : vector<16x16x8xbf16> to vector<256x8xbf16>
    %c8_142 = arith.constant 8 : index
    %c0_143 = arith.constant 0 : index
    %c0_144 = arith.constant 0 : index
    %126 = vector.load %arg4[%c8_142, %c0_143, %c0_144] : memref<9x8x8xbf16, #tpu.memory_space<vmem>>, vector<1x8x8xbf16>
    %127 = vector.shape_cast %126 : vector<1x8x8xbf16> to vector<8x8xbf16>
    %cst_145 = arith.constant dense<0.000000e+00> : vector<256x8xf32>
    %128 = tpu.matmul %125, %127, %cst_145 {dimension_numbers = #tpu.dot_dimension_numbers<[1], [0], [0], [1], [0, 0, 1, 1], [], []>} : vector<256x8xbf16>, vector<8x8xbf16>, vector<256x8xf32> -> vector<256x8xf32>
    %129 = arith.addf %123, %128 : vector<256x8xf32>
    %c0_146 = arith.constant 0 : index
    %c0_147 = arith.constant 0 : index
    %130 = vector.load %arg5[%c0_146, %c0_147] : memref<1x8xf32, #tpu.memory_space<vmem>>, vector<1x8xf32>
    %131 = vector.broadcast %130 : vector<1x8xf32> to vector<256x8xf32>
    %132 = arith.addf %129, %131 : vector<256x8xf32>
    %133 = vector.shape_cast %9 : vector<16x16x8xf32> to vector<256x8xf32>
    %134 = arith.addf %132, %133 : vector<256x8xf32>
    %cst_148 = arith.constant 0.000000e+00 : f32
    %135 = vector.broadcast %cst_148 : f32 to vector<256x8xf32>
    %136 = arith.maximumf %134, %135 : vector<256x8xf32>
    %137 = vector.shape_cast %136 : vector<256x8xf32> to vector<16x16x8xf32>
    %c0_149 = arith.constant 0 : index
    %c0_150 = arith.constant 0 : index
    %c0_151 = arith.constant 0 : index
    %c0_152 = arith.constant 0 : index
    %138 = vector.load %arg6[%c0_149, %c0_150, %c0_151, %c0_152] : memref<1x16x16x8xf32, #tpu.memory_space<vmem>>, vector<1x16x16x8xf32>
    %139 = vector.shape_cast %138 : vector<1x16x16x8xf32> to vector<16x16x8xf32>
    %140 = vector.shape_cast %137 : vector<16x16x8xf32> to vector<1x16x16x8xf32>
    tpu.vector_store %arg6[%c0_149, %c0_150, %c0_151, %c0_152], %140 {strides = array<i32>} : memref<1x16x16x8xf32, #tpu.memory_space<vmem>>, vector<1x16x16x8xf32>,
    return
  }
  func.func @transform_0(%arg0: i32) -> (i32, i32, i32, i32) {
    %c0_i32 = arith.constant 0 : i32
    %c0_i32_0 = arith.constant 0 : i32
    %c0_i32_1 = arith.constant 0 : i32
    %c0_i32_2 = arith.constant 0 : i32
    return %arg0, %c0_i32, %c0_i32_0, %c0_i32_1 : i32, i32, i32, i32
  }
  func.func @transform_1(%arg0: i32) -> (i32, i32, i32) {
    %c0_i32 = arith.constant 0 : i32
    %c0_i32_0 = arith.constant 0 : i32
    %c0_i32_1 = arith.constant 0 : i32
    %c0_i32_2 = arith.constant 0 : i32
    return %c0_i32, %c0_i32_0, %c0_i32_1 : i32, i32, i32
  }
  func.func @transform_2(%arg0: i32) -> (i32, i32) {
    %c0_i32 = arith.constant 0 : i32
    %c0_i32_0 = arith.constant 0 : i32
    %c0_i32_1 = arith.constant 0 : i32
    return %c0_i32, %c0_i32_0 : i32, i32
  }
  func.func @transform_3(%arg0: i32) -> (i32, i32, i32) {
    %c0_i32 = arith.constant 0 : i32
    %c0_i32_0 = arith.constant 0 : i32
    %c0_i32_1 = arith.constant 0 : i32
    %c0_i32_2 = arith.constant 0 : i32
    return %c0_i32, %c0_i32_0, %c0_i32_1 : i32, i32, i32
  }
  func.func @transform_4(%arg0: i32) -> (i32, i32) {
    %c0_i32 = arith.constant 0 : i32
    %c0_i32_0 = arith.constant 0 : i32
    %c0_i32_1 = arith.constant 0 : i32
    return %c0_i32, %c0_i32_0 : i32, i32
  }
  func.func @transform_5(%arg0: i32) -> (i32, i32, i32, i32) {
    %c0_i32 = arith.constant 0 : i32
    %c0_i32_0 = arith.constant 0 : i32
    %c0_i32_1 = arith.constant 0 : i32
    %c0_i32_2 = arith.constant 0 : i32
    return %arg0, %c0_i32, %c0_i32_0, %c0_i32_1 : i32, i32, i32, i32
  }
}

</mosaic_0001>

<bundles_post_ra>
// kernel: tpu_custom_call.1
= control target key start
LH: loop header
LB: loop body
LE: loop exit
PB: predicated region body
PF: predicated region fallthrough
CT: control target
= control target key end

     0   :  { %s13283_s18 = smov 0   ;;  %s16760_s0 = inlined_call_operand.vmem [shape: f32[2,16,16,8], index: 0, kind: input, shape index: {}]   ;;  %s16761_s1 = inlined_call_operand.vmem [shape: bf16[9,8,8], index: 1, kind: input, shape index: {}]   ;;  %s16762_s2 = inlined_call_operand.vmem [shape: f32[1,8], index: 2, kind: input, shape index: {}]   ;;  %s16763_s3 = inlined_call_operand.vmem [shape: bf16[9,8,8], index: 3, kind: input, shape index: {}]   ;;  %s16764_s4 = inlined_call_operand.vmem [shape: f32[1,8], index: 4, kind: input, shape index: {}]   ;;  %s16765_s5 = inlined_call_operand.vmem [shape: f32[2,16,16,8], index: 5, kind: output, shape index: {}]  }
   0x1 LB: > { %s10808_s19 = sadd.s32 4294967295, %s13250_s18   ;;  %p10812_p0 = scmp.ge.s32.totalorder %s13250_s18, 1  ;;  %s13250_s18 = sphi %s13283_s18, %s15_s18  }
   0x2   : > { %p187_p1 = scmp.lt.s32.totalorder %s13250_s18, 3 }
   0x4   : > { %p188_p2 = pnand %p10812_p0, %p187_p1 }
   0x6   : > { %191 = sbr.rel (%p188_p2) target bundleno = 1728 (0x6c0), region = 40 }
   0xd   : > { %v10849_v0 = vld [vmem:[%s16761_s1 + $0x4] sm:$0xf]  ;;  %vm1448_vm0 = vcmask 1043456   ;;  %vm226_vm1 = vcmask 60416   ;;  %vm229_vm2 = vcmask 57344   ;;  %v13252_v2 = vmov 0  }
   0xe   : > { %13069 = vmatprep.subr.msk.bf16.mxu0 %vm1448_vm0, %v10849_v0  ;;  %v1450_v1 = vsel %vm1448_vm0, %v10849_v0, 0  ;;  %227 = vst.msk [vmem:[#allocation2] sm:$0xf] %vm226_vm1, %v13252_v2  ;;  %228 = vst.msk [vmem:[#allocation2 + $0x4] sm:$0xf] %vm226_vm1, %v13252_v2  ;;  %v16866_v3 = vmov 0 }
   0xf   : > { %230 = vst.msk [vmem:[#allocation2 + $0x8] sm:$0x1] %vm229_vm2, %v13252_v2  ;;  %vm236_vm3 = vsmask.f32 256  ;;  %vm292_vm4 = vsmask.f32 7938  ;;  %11946 = vmatpush3.bf16.msra.mxu0 %v1450_v1 }
  0x10   : > { %232 = vst.msk [vmem:[#allocation2 + $0xcc] sm:$0xf] %vm226_vm1, %v13252_v2  ;;  %233 = vst.msk [vmem:[#allocation2 + $0xd0] sm:$0xf] %vm226_vm1, %v13252_v2  ;;  %v13311_v4 = vld [vmem:[%s16761_s1] sm:$0xf] }
  0x11   : > { %234 = vst.msk [vmem:[#allocation2 + $0xd4] sm:$0x1] %vm229_vm2, %v13252_v2  ;;  %vm13304_vm5 = vmand %vm229_vm2, %vm236_vm3  ;;  %v16869_v5 = vmov 0  ;;  %13070 = vmatprep.subr.msk.bf16.mxu0 %vm1448_vm0, %v13311_v4  ;;  %p215_p3 = scmp.lt.s32.totalorder %s10808_s19, 1  ;;  %v241_v6 = vld [vmem:[#allocation2 + $0xc] sm:$0x1] }
  0x12   : > { %v16867_v3 = vsel %vm13304_vm5, 4294967295, %v16866_v3  ;;  %vm13315_vm6 = vmand %vm229_vm2, %vm292_vm4  ;;  %v297_v7 = vld [vmem:[#allocation2 + $0x14] sm:$0x1]  ;;  %v242_v8 = vsel %vm13304_vm5, 0, %v241_v6  ;;  %v244_v10 = vld [vmem:[#allocation2 + $0x18] sm:$0x1] }
  0x13   : > { %16868 = vst [vmem:[#allocation3_spill] sm:$0xff] %v16867_v3  ;;  %v16870_v5 = vsel %vm13315_vm6, 4294967295, %v16869_v5  ;;  %v298_v9 = vsel %vm13315_vm6, 0, %v297_v7  ;;  %s17102_s19 = smov (!%p215_p3, %s10808_s19), 1  ;;  %243 = vst [vmem:[#allocation2 + $0xc] sm:$0x1] %v242_v8 }
  0x14   : > { %16871 = vst [vmem:[#allocation4_spill] sm:$0xff] %v16870_v5  ;;  %299 = vst [vmem:[#allocation2 + $0x14] sm:$0x1] %v298_v9  ;;  %v245_v11 = vsel %vm13304_vm5, 0, %v244_v10  ;;  %v300_v12 = vld [vmem:[#allocation2 + $0x20] sm:$0x1] }
  0x15   : > { %v247_v13 = vld [vmem:[#allocation2 + $0x24] sm:$0x1]  ;;  %246 = vst [vmem:[#allocation2 + $0x18] sm:$0x1] %v245_v11  ;;  %v301_v14 = vsel %vm13315_vm6, 0, %v300_v12  ;;  %s11573_s24 = sshll.u32 %s17102_s19, 8  ;;  %vm13366_vm10 = vmand %vm226_vm1, %vm292_vm4 }
  0x16   : > { %v248_v15 = vsel %vm13304_vm5, 0, %v247_v13  ;;  %v303_v16 = vld [vmem:[#allocation2 + $0x2c] sm:$0x1]  ;;  %v250_v17 = vld [vmem:[#allocation2 + $0x30] sm:$0x1]  ;;  %s13347_s27 = scalar_lea.vmem %s16760_s0, %s11573_s24  ;;  %v16872_v52 = vmov 0  ;;  %s16631_s28 = scalar_lea.vmem %s16765_s5, %s11573_s24 }
  0x17   : > { %302 = vst [vmem:[#allocation2 + $0x20] sm:$0x1] %v301_v14  ;;  %249 = vst [vmem:[#allocation2 + $0x24] sm:$0x1] %v248_v15  ;;  %v304_v18 = vsel %vm13315_vm6, 0, %v303_v16  ;;  %v251_v19 = vsel %vm13304_vm5, 0, %v250_v17 }
  0x18   : > { %v306_v20 = vld [vmem:[#allocation2 + $0x38] sm:$0x1]  ;;  %v238_v21 = vld [vmem:[#allocation2] sm:$0x1]  ;;  %v294_v22 = vld [vmem:[#allocation2 + $0x8] sm:$0x1] }
  0x19   : > { %v914_v23 = vld [vmem:[#allocation2 + $0x4] sm:$0xf]  ;;  %vm962_vm7 = vsmask.f32 3328  ;;  %305 = vst [vmem:[#allocation2 + $0x2c] sm:$0x1] %v304_v18 }
  0x1a   : > { %252 = vst [vmem:[#allocation2 + $0x30] sm:$0x1] %v251_v19  ;;  %v239_v24 = vsel %vm13304_vm5, 0, %v238_v21  ;;  %v295_v25 = vsel %vm13315_vm6, 0, %v294_v22  ;;  %v975_v26 = vshll.u32 %v914_v23, 16  ;;  %v979_v27 = vshrl.u32 %v914_v23, 16 }
  0x1b   : > { %v348_v28 = vld [vmem:[%s13347_s27] sm:$0xff]  ;;  %v349_v29 = vld [vmem:[%s13347_s27 + $0x8] sm:$0xff]  ;;  %240 = vst [vmem:[#allocation2] sm:$0x1] %v239_v24  ;;  %296 = vst [vmem:[#allocation2 + $0x8] sm:$0x1] %v295_v25 }
  0x1c   : > { %vm963_vm8 = vsmask.f32 7440  ;;  %v11575_v30 = vpack.c.bf16 %v348_v28, %v348_v28  ;;  %v11576_v31 = vpack.c.bf16 %v349_v29, %v349_v29  ;;  %v350_v32 = vld [vmem:[%s13347_s27 + $0x10] sm:$0xff]  ;;  %v351_v33 = vld [vmem:[%s13347_s27 + $0x18] sm:$0xff]  ;;  %v307_v34 = vsel %vm13315_vm6, 0, %v306_v20  ;;  %v352_v43 = vld [vmem:[%s13347_s27 + $0x20] sm:$0xff] }
  0x1d   : > { %v13359_v35 = vrot.slane %v975_v26, 5  ;;  %v981_v36 = vrot.slane %v979_v27, 4  ;;  %v11577_v37 = vpack.c.bf16 %v350_v32, %v350_v32  ;;  %v11578_v38 = vpack.c.bf16 %v351_v33, %v351_v33  ;;  %308 = vst [vmem:[#allocation2 + $0x38] sm:$0x1] %v307_v34  ;;  %v353_v44 = vld [vmem:[%s13347_s27 + $0x28] sm:$0xff]  ;;  %vm13377_vm13 = vmor %vm962_vm7, %vm963_vm8  ;;  %v354_v20 = vld [vmem:[%s13347_s27 + $0x30] sm:$0xff] }
  0x1e   : > { %v479_v39 = vshrl.u32 %v11575_v30, 16  ;;  %v482_v40 = vshll.u32 %v11575_v30, 16  ;;  %v487_v41 = vshrl.u32 %v11576_v31, 16  ;;  %v490_v42 = vshll.u32 %v11576_v31, 16  ;;  %v801_v53 = vld [vmem:[#allocation2 + $0xc] sm:$0xf] }
  0x1f   : > { %vm476_vm9 = vsmask.f32 4368  ;;  %v496_v45 = vshrl.u32 %v11577_v37, 16  ;;  %v499_v46 = vshll.u32 %v11577_v37, 16  ;;  %v504_v47 = vshrl.u32 %v11578_v38, 16  ;;  %v355_v25 = vld [vmem:[%s13347_s27 + $0x38] sm:$0xff] }
  0x20   : > { %v982_v48 = vor.u32 %v981_v36, %v13359_v35  ;;  %v481_v49 = vrot.slane %v479_v39, 7  ;;  %v489_v50 = vrot.slane %v487_v41, 7  ;;  %v507_v51 = vshll.u32 %v11578_v38, 16  ;;  %vm13371_vm11 = vmor %vm236_vm3, %vm476_vm9  ;;  %v805_v63 = vld [vmem:[#allocation2 + $0x14] sm:$0x1] }
  0x21   : > { %v16873_v52 = vsel %vm13366_vm10, 4294967295, %v16872_v52  ;;  %v498_v54 = vrot.slane %v496_v45, 7  ;;  %v506_v55 = vrot.slane %v504_v47, 7  ;;  %v11579_v56 = vpack.c.bf16 %v352_v43, %v352_v43  ;;  %v808_v0 = vld [vmem:[#allocation2 + $0x18] sm:$0xf] }
  0x22   : > { %16874 = vst [vmem:[#allocation5_spill] sm:$0xff] %v16873_v52  ;;  %v11580_v57 = vpack.c.bf16 %v353_v44, %v353_v44  ;;  %v16875_v58 = vmov 0  ;;  %v484_v59 = vor.u32 %v482_v40, %v481_v49  ;;  %v485_v60 = vrot.slane %v481_v49, 4  ;;  %v913_v1 = vld [vmem:[#allocation2] sm:$0xf] }
  0x23   : > { %v16876_v58 = vsel %vm13371_vm11, 4294967295, %v16875_v58  ;;  %v492_v61 = vor.u32 %v490_v42, %v489_v50  ;;  %v494_v62 = vrot.slane %v489_v50, 4  ;;  %v946_v2 = vld [vmem:[#allocation2 + $0x8] sm:$0x1]  ;;  %v501_v6 = vor.u32 %v499_v46, %v498_v54  ;;  %v812_v14 = vld [vmem:[#allocation2 + $0x20] sm:$0x1] }
  0x24   : > { %16877 = vst [vmem:[#allocation6_spill] sm:$0xff] %v16876_v58  ;;  %v502_v7 = vrot.slane %v498_v54, 4  ;;  %v509_v8 = vor.u32 %v507_v51, %v506_v55  ;;  %v511_v9 = vrot.slane %v506_v55, 4  ;;  %v966_v10 = vshrl.u32 %v913_v1, 16  ;;  %v253_v26 = vld [vmem:[#allocation2 + $0x3c] sm:$0x1] }
  0x25   : > { %v969_v11 = vshll.u32 %v913_v1, 16  ;;  %v983_v12 = vrot.slane %v982_v48, 4  ;;  %v985_v13 = vshll.u32 %v946_v2, 16  ;;  %vm1399_vm12 = vcmask 64512   ;;  %v309_v31 = vld [vmem:[#allocation2 + $0x44] sm:$0x1] }
  0x26   : > { %v493_v16 = vsel %vm13371_vm11, %v485_v60, %v492_v61  ;;  %v802_v17 = vsel %vm13366_vm10, %v484_v59, %v801_v53  ;;  %v806_v18 = vsel %vm13304_vm5, %v494_v62, %v805_v63  ;;  %v510_v19 = vsel %vm13371_vm11, %v502_v7, %v509_v8  ;;  %v815_v39 = vld [vmem:[#allocation2 + $0x24] sm:$0xf]  ;;  %v819_v43 = vld [vmem:[#allocation2 + $0x2c] sm:$0x1] }
  0x27   : > { %v968_v21 = vrot.slane %v966_v10, 4  ;;  %v971_v22 = vrot.slane %v969_v11, 5  ;;  %v987_v23 = vrot.slane %v985_v13, 5  ;;  %803 = vst [vmem:[#allocation2 + $0xc] sm:$0xf] %v802_v17  ;;  %v809_v24 = vsel %vm13366_vm10, %v501_v6, %v808_v0 }
  0x28   : > { %804 = vst.msk [vmem:[#allocation2 + $0x10] sm:$0xf] %vm226_vm1, %v493_v16  ;;  %807 = vst [vmem:[#allocation2 + $0x14] sm:$0x1] %v806_v18  ;;  %v813_v27 = vsel %vm13304_vm5, %v511_v9, %v812_v14  ;;  %v513_v28 = vshrl.u32 %v11579_v56, 16  ;;  %v516_v29 = vshll.u32 %v11579_v56, 16  ;;  %v11581_v36 = vpack.c.bf16 %v354_v20, %v354_v20 }
  0x29   : > { %811 = vst.msk [vmem:[#allocation2 + $0x1c] sm:$0xf] %vm226_vm1, %v510_v19  ;;  %810 = vst [vmem:[#allocation2 + $0x18] sm:$0xf] %v809_v24  ;;  %v521_v30 = vshrl.u32 %v11580_v57, 16  ;;  %v972_v32 = vor.u32 %v971_v22, %v968_v21  ;;  %v988_v33 = vsel %vm13377_vm13, %v983_v12, %v987_v23  ;;  %v524_v34 = vshll.u32 %v11580_v57, 16 }
  0x2a   : > { %814 = vst [vmem:[#allocation2 + $0x20] sm:$0x1] %v813_v27  ;;  %v515_v37 = vrot.slane %v513_v28, 7  ;;  %v13399_v40 = vpack.c.bf16 %v355_v25, %v355_v25  ;;  %v254_v41 = vsel %vm13304_vm5, 0, %v253_v26  ;;  %v530_v44 = vshrl.u32 %v11581_v36, 16  ;;  %v356_v56 = vld [vmem:[%s13347_s27 + $0x40] sm:$0xff] }
  0x2b   : > { %v523_v38 = vrot.slane %v521_v30, 7  ;;  %v973_v42 = vrot.slane %v972_v32, 4  ;;  %v533_v45 = vshll.u32 %v11581_v36, 16  ;;  %255 = vst [vmem:[#allocation2 + $0x3c] sm:$0x1] %v254_v41  ;;  %v310_v46 = vsel %vm13315_vm6, 0, %v309_v31 }
  0x2c   : > { %v518_v47 = vor.u32 %v516_v29, %v515_v37  ;;  %v519_v48 = vrot.slane %v515_v37, 4  ;;  %311 = vst [vmem:[#allocation2 + $0x44] sm:$0x1] %v310_v46  ;;  %v13410_v53 = vsel %vm1448_vm0, %v13311_v4, 0  ;;  %v13412_v54 = vrot.slane %v530_v44, 7  ;;  %v357_v27 = vld [vmem:[%s13347_s27 + $0x48] sm:$0xff] }
  0x2d   : > { %v526_v49 = vor.u32 %v524_v34, %v523_v38  ;;  %v528_v50 = vrot.slane %v523_v38, 4  ;;  %v978_v51 = vsel %vm13377_vm13, %v973_v42, %v13359_v35  ;;  %v538_v55 = vshrl.u32 %v13399_v40, 16  ;;  %v822_v26 = vld [vmem:[#allocation2 + $0x30] sm:$0xf] }
  0x2e   : > { %v10850_v57 = vcombine.low %v978_v51, %v988_v33  ;;  %v915_v59 = vld [vmem:[#allocation2 + $0xc] sm:$0xf]  ;;  %v816_v63 = vsel %vm13366_vm10, %v518_v47, %v815_v39  ;;  %v535_v10 = vor.u32 %v533_v45, %v13412_v54  ;;  %v541_v11 = vshll.u32 %v13399_v40, 16  ;;  %v358_v28 = vld [vmem:[%s13347_s27 + $0x50] sm:$0xff] }
  0x2f   : > { %v916_v60 = vld [vmem:[#allocation2 + $0x10] sm:$0xf]  ;;  %v947_v61 = vld [vmem:[#allocation2 + $0x14] sm:$0x1]  ;;  %v527_v62 = vsel %vm13371_vm11, %v519_v48, %v526_v49  ;;  %v820_v35 = vsel %vm13304_vm5, %v528_v50, %v819_v43  ;;  %v990_v4 = vshrl.u32 %v915_v59, 16  ;;  %v993_v0 = vshll.u32 %v915_v59, 16 }
  0x30   : > { %v999_v1 = vshll.u32 %v916_v60, 16  ;;  %v1003_v2 = vshrl.u32 %v916_v60, 16  ;;  %v917_v6 = vld [vmem:[#allocation2 + $0x18] sm:$0xf]  ;;  %817 = vst [vmem:[#allocation2 + $0x24] sm:$0xf] %v816_v63  ;;  %11947 = vmatprep.mubr.msk.bf16.mxu0 %vm1399_vm12, %v10850_v57  ;;  %v13426_v12 = vpack.c.bf16 %v356_v56, %v356_v56  ;;  %v823_v43 = vsel %vm13366_vm10, %v535_v10, %v822_v26 }
  0x31   : > { %818 = vst.msk [vmem:[#allocation2 + $0x28] sm:$0xf] %vm226_vm1, %v527_v62  ;;  %821 = vst [vmem:[#allocation2 + $0x2c] sm:$0x1] %v820_v35  ;;  %v1009_v7 = vshll.u32 %v947_v61, 16  ;;  %v992_v13 = vrot.slane %v990_v4, 4  ;;  %v13433_v44 = vpack.c.bf16 %v357_v27, %v357_v27  ;;  %v13435_v45 = vpack.c.bf16 %v358_v28, %v358_v28 }
  0x32   : > { %v918_v8 = vld [vmem:[#allocation2 + $0x1c] sm:$0xf]  ;;  %v948_v9 = vld [vmem:[#allocation2 + $0x20] sm:$0x1]  ;;  %v995_v14 = vrot.slane %v993_v0, 5  ;;  %v1001_v16 = vrot.slane %v999_v1, 5 }
  0x33   : > { %v1005_v17 = vrot.slane %v1003_v2, 4  ;;  %v1011_v18 = vrot.slane %v1009_v7, 5  ;;  %v1014_v19 = vshrl.u32 %v917_v6, 16  ;;  %v1017_v20 = vshll.u32 %v917_v6, 16  ;;  %824 = vst [vmem:[#allocation2 + $0x30] sm:$0xf] %v823_v43 }
  0x34   : > { %v1023_v21 = vshll.u32 %v918_v8, 16  ;;  %v996_v22 = vor.u32 %v995_v14, %v992_v13  ;;  %v1027_v24 = vshrl.u32 %v918_v8, 16  ;;  %v1033_v25 = vshll.u32 %v948_v9, 16  ;;  %v826_v6 = vld [vmem:[#allocation2 + $0x38] sm:$0x1] }
  0x35   : > { %v1006_v23 = vor.u32 %v1005_v17, %v1001_v16  ;;  %v1016_v29 = vrot.slane %v1014_v19, 4  ;;  %v1019_v30 = vrot.slane %v1017_v20, 5  ;;  %v536_v32 = vrot.slane %v13412_v54, 4  ;;  %v256_v14 = vld [vmem:[#allocation2 + $0x48] sm:$0x1] }
  0x36   : > { %v1025_v31 = vrot.slane %v1023_v21, 5  ;;  %v997_v33 = vrot.slane %v996_v22, 4  ;;  %v1029_v36 = vrot.slane %v1027_v24, 4  ;;  %v1035_v37 = vrot.slane %v1033_v25, 5  ;;  %v829_v22 = vld [vmem:[#allocation2 + $0x3c] sm:$0xf] }
  0x37   : > { %v1007_v34 = vrot.slane %v1006_v23, 4  ;;  %v1020_v38 = vor.u32 %v1019_v30, %v1016_v29  ;;  %v919_v39 = vld [vmem:[#allocation2 + $0x24] sm:$0xf]  ;;  %v540_v4 = vrot.slane %v538_v55, 7  ;;  %v547_v7 = vshrl.u32 %v13426_v12, 16 }
  0x38   : > { %v920_v41 = vld [vmem:[#allocation2 + $0x28] sm:$0xf]  ;;  %v949_v42 = vld [vmem:[#allocation2 + $0x2c] sm:$0x1]  ;;  %v1002_v46 = vsel %vm13377_vm13, %v997_v33, %v1001_v16  ;;  %v1030_v48 = vor.u32 %v1029_v36, %v1025_v31  ;;  %v1038_v49 = vshrl.u32 %v919_v39, 16  ;;  %v1041_v54 = vshll.u32 %v919_v39, 16 }
  0x39   : > { %v1012_v47 = vsel %vm13377_vm13, %v1007_v34, %v1011_v18  ;;  %v1021_v51 = vrot.slane %v1020_v38, 4  ;;  %v1047_v56 = vshll.u32 %v920_v41, 16  ;;  %v1051_v60 = vshrl.u32 %v920_v41, 16  ;;  %v833_v26 = vld [vmem:[#allocation2 + $0x44] sm:$0x1]  ;;  %v359_v33 = vld [vmem:[%s13347_s27 + $0x58] sm:$0xff] }
  0x3a   : > { %v10851_v50 = vcombine.low %v1002_v46, %v1012_v47  ;;  %v1031_v57 = vrot.slane %v1030_v48, 4  ;;  %v1040_v59 = vrot.slane %v1038_v49, 4  ;;  %v1057_v61 = vshll.u32 %v949_v42, 16  ;;  %v921_v21 = vld [vmem:[#allocation2 + $0x30] sm:$0xf]  ;;  %v360_v41 = vld [vmem:[%s13347_s27 + $0x60] sm:$0xff] }
  0x3b   : > { %v1026_v62 = vsel %vm13377_vm13, %v1021_v51, %v1025_v31  ;;  %v1043_v63 = vrot.slane %v1041_v54, 5  ;;  %v1049_v35 = vrot.slane %v1047_v56, 5  ;;  %v1053_v1 = vrot.slane %v1051_v60, 4  ;;  %v259_v27 = vld [vmem:[#allocation2 + $0x54] sm:$0x1]  ;;  %v361_v42 = vld [vmem:[%s13347_s27 + $0x68] sm:$0xff] }
  0x3c   : > { %11948 = vmatmul.mubr.msk.bf16.vlgmr.msra.gmra.mrb[0].mxu0 %vm1399_vm12, %v10851_v50  ;;  %v1036_v0 = vsel %vm13377_vm13, %v1031_v57, %v1035_v37  ;;  %v1059_v2 = vrot.slane %v1057_v61, 5  ;;  %v543_v10 = vor.u32 %v541_v11, %v540_v4  ;;  %v545_v13 = vrot.slane %v540_v4, 4  ;;  %v315_v28 = vld [vmem:[#allocation2 + $0x5c] sm:$0x1]  ;;  %v10930_v34 = vld [vmem:[%s16761_s1 + $0x8] sm:$0xf] }
  0x3d   : > { %11980 = vmatpush3.bf16.msra.mxu0 %v13410_v53  ;;  %v10852_v8 = vcombine.low %v1026_v62, %v1036_v0  ;;  %v1044_v9 = vor.u32 %v1043_v63, %v1040_v59  ;;  %v1054_v16 = vor.u32 %v1053_v1, %v1049_v35  ;;  %v549_v17 = vrot.slane %v547_v7, 7  ;;  %v312_v53 = vld [vmem:[#allocation2 + $0x50] sm:$0x1]  ;;  %v262_v43 = vld [vmem:[#allocation2 + $0x60] sm:$0x1] }
  0x3e   : > { %v550_v40 = vshll.u32 %v13426_v12, 16  ;;  %v555_v55 = vshrl.u32 %v13433_v44, 16  ;;  %v544_v19 = vsel %vm13371_vm11, %v536_v32, %v543_v10  ;;  %v827_v20 = vsel %vm13304_vm5, %v545_v13, %v826_v6  ;;  %13071 = vmatprep.subr.msk.bf16.mxu0 %vm1448_vm0, %v10930_v34 }
  0x3f   : > { %11951 = vmatprep.mubr.msk.bf16.mxu0 %vm1399_vm12, %v10852_v8  ;;  %v1045_v18 = vrot.slane %v1044_v9, 4  ;;  %v558_v11 = vshll.u32 %v13433_v44, 16  ;;  %v1055_v23 = vrot.slane %v1054_v16, 4  ;;  %825 = vst.msk [vmem:[#allocation2 + $0x34] sm:$0xf] %vm226_vm1, %v544_v19  ;;  %v1062_v12 = vshrl.u32 %v921_v21, 16 }
  0x40   : > { %828 = vst [vmem:[#allocation2 + $0x38] sm:$0x1] %v827_v20  ;;  %v1065_v24 = vshll.u32 %v921_v21, 16  ;;  %v552_v25 = vor.u32 %v550_v40, %v549_v17  ;;  %v553_v30 = vrot.slane %v549_v17, 4  ;;  %v557_v31 = vrot.slane %v555_v55, 7 }
  0x41   : > { %v1050_v29 = vsel %vm13377_vm13, %v1045_v18, %v1049_v35  ;;  %v257_v32 = vsel %vm13304_vm5, 0, %v256_v14  ;;  %v1060_v36 = vsel %vm13377_vm13, %v1055_v23, %v1059_v2  ;;  %v1064_v37 = vrot.slane %v1062_v12, 4  ;;  %v318_v44 = vld [vmem:[#allocation2 + $0x68] sm:$0x1] }
  0x42   : > { %v1067_v38 = vrot.slane %v1065_v24, 5  ;;  %v830_v39 = vsel %vm13366_vm10, %v552_v25, %v829_v22  ;;  %258 = vst [vmem:[#allocation2 + $0x48] sm:$0x1] %v257_v32  ;;  %v10853_v46 = vcombine.low %v1050_v29, %v1060_v36  ;;  %v560_v47 = vor.u32 %v558_v11, %v557_v31 }
  0x43   : > { %v562_v48 = vrot.slane %v557_v31, 4  ;;  %831 = vst [vmem:[#allocation2 + $0x3c] sm:$0xf] %v830_v39  ;;  %v313_v49 = vsel %vm13315_vm6, 0, %v312_v53  ;;  %v11586_v51 = vpack.c.bf16 %v359_v33, %v359_v33  ;;  %v564_v54 = vshrl.u32 %v13435_v45, 16 }
  0x44   : > { %v1068_v50 = vor.u32 %v1067_v38, %v1064_v37  ;;  %314 = vst [vmem:[#allocation2 + $0x50] sm:$0x1] %v313_v49  ;;  %v567_v56 = vshll.u32 %v13435_v45, 16  ;;  %11952 = vmatmul.mubr.msk.bf16.gmra.mrb[4].mxu0 %vm1399_vm12, %v10853_v46  ;;  %v561_v57 = vsel %vm13371_vm11, %v553_v30, %v560_v47  ;;  %v260_v60 = vsel %vm13304_vm5, 0, %v259_v27  ;;  %v362_v47 = vld [vmem:[%s13347_s27 + $0x70] sm:$0xff] }
  0x45   : > { %v834_v59 = vsel %vm13304_vm5, %v562_v48, %v833_v26  ;;  %v316_v61 = vsel %vm13315_vm6, 0, %v315_v28  ;;  %832 = vst.msk [vmem:[#allocation2 + $0x40] sm:$0xf] %vm226_vm1, %v561_v57  ;;  %v566_v45 = vrot.slane %v564_v54, 7  ;;  %v572_v63 = vshrl.u32 %v11586_v51, 16  ;;  %v363_v48 = vld [vmem:[%s13347_s27 + $0x78] sm:$0xff] }
  0x46   : > { %v13487_v62 = vrot.slane %v1068_v50, 4  ;;  %835 = vst [vmem:[#allocation2 + $0x44] sm:$0x1] %v834_v59  ;;  %v575_v35 = vshll.u32 %v11586_v51, 16  ;;  %261 = vst [vmem:[#allocation2 + $0x54] sm:$0x1] %v260_v60  ;;  %v11587_v1 = vpack.c.bf16 %v360_v41, %v360_v41  ;;  %v13490_v2 = vpack.c.bf16 %v361_v42, %v361_v42 }
  0x47   : > { %317 = vst [vmem:[#allocation2 + $0x5c] sm:$0x1] %v316_v61  ;;  %v922_v4 = vld [vmem:[#allocation2 + $0x34] sm:$0xf]  ;;  %v950_v0 = vld [vmem:[#allocation2 + $0x38] sm:$0x1]  ;;  %v569_v13 = vor.u32 %v567_v56, %v566_v45 }
  0x48   : > { %v263_v6 = vsel %vm13304_vm5, 0, %v262_v43  ;;  %v319_v7 = vsel %vm13315_vm6, 0, %v318_v44  ;;  %v1071_v8 = vshll.u32 %v922_v4, 16  ;;  %v1075_v9 = vshrl.u32 %v922_v4, 16 }
  0x49   : > { %v1081_v10 = vshll.u32 %v950_v0, 16  ;;  %264 = vst [vmem:[#allocation2 + $0x60] sm:$0x1] %v263_v6  ;;  %320 = vst [vmem:[#allocation2 + $0x68] sm:$0x1] %v319_v7  ;;  %v570_v14 = vrot.slane %v566_v45, 4  ;;  %v11589_v4 = vpack.c.bf16 %v362_v47, %v362_v47  ;;  %v11590_v0 = vpack.c.bf16 %v363_v48, %v363_v48 }
  0x4a   : > { %v574_v16 = vrot.slane %v572_v63, 7  ;;  %v836_v17 = vld [vmem:[#allocation2 + $0x48] sm:$0xf]  ;;  %v581_v40 = vshrl.u32 %v11587_v1, 16  ;;  %v584_v55 = vshll.u32 %v11587_v1, 16  ;;  %v1073_v53 = vrot.slane %v1071_v8, 5 }
  0x4b   : > { %v1077_v18 = vrot.slane %v1075_v9, 4  ;;  %v1083_v19 = vrot.slane %v1081_v10, 5  ;;  %v923_v20 = vld [vmem:[#allocation2 + $0x3c] sm:$0xf]  ;;  %v837_v21 = vsel %vm13366_vm10, %v569_v13, %v836_v17  ;;  %v840_v24 = vld [vmem:[#allocation2 + $0x50] sm:$0x1] }
  0x4c   : > { %v1086_v11 = vshrl.u32 %v923_v20, 16  ;;  %v1089_v22 = vshll.u32 %v923_v20, 16  ;;  %v577_v23 = vor.u32 %v575_v35, %v574_v16  ;;  %v579_v12 = vrot.slane %v574_v16, 4  ;;  %838 = vst [vmem:[#allocation2 + $0x48] sm:$0xf] %v837_v21 }
  0x4d   : > { %v1074_v25 = vsel %vm13377_vm13, %v13487_v62, %v1073_v53  ;;  %v1078_v26 = vor.u32 %v1077_v18, %v1073_v53  ;;  %v583_v27 = vrot.slane %v581_v40, 7  ;;  %v589_v28 = vshrl.u32 %v13490_v2, 16  ;;  %v924_v29 = vld [vmem:[#allocation2 + $0x40] sm:$0xf]  ;;  %v951_v30 = vld [vmem:[#allocation2 + $0x44] sm:$0x1] }
  0x4e   : > { %v1088_v31 = vrot.slane %v1086_v11, 4  ;;  %v1091_v32 = vrot.slane %v1089_v22, 5  ;;  %v578_v33 = vsel %vm13371_vm11, %v570_v14, %v577_v23  ;;  %v841_v34 = vsel %vm13304_vm5, %v579_v12, %v840_v24  ;;  %v843_v46 = vld [vmem:[#allocation2 + $0x54] sm:$0xf]  ;;  %v847_v56 = vld [vmem:[#allocation2 + $0x5c] sm:$0x1] }
  0x4f   : > { %v1079_v36 = vrot.slane %v1078_v26, 4  ;;  %v1095_v37 = vshll.u32 %v924_v29, 16  ;;  %v1099_v38 = vshrl.u32 %v924_v29, 16  ;;  %v1105_v39 = vshll.u32 %v951_v30, 16  ;;  %839 = vst.msk [vmem:[#allocation2 + $0x4c] sm:$0xf] %vm226_vm1, %v578_v33 }
  0x50   : > { %842 = vst [vmem:[#allocation2 + $0x50] sm:$0x1] %v841_v34  ;;  %v1092_v41 = vor.u32 %v1091_v32, %v1088_v31  ;;  %v586_v42 = vor.u32 %v584_v55, %v583_v27  ;;  %v587_v43 = vrot.slane %v583_v27, 4  ;;  %v591_v44 = vrot.slane %v589_v28, 7  ;;  %v364_v62 = vld [vmem:[%s13347_s27 + $0x80] sm:$0xff]  ;;  %v365_v23 = vld [vmem:[%s13347_s27 + $0x88] sm:$0xff] }
  0x51   : > { %v1084_v49 = vsel %vm13377_vm13, %v1079_v36, %v1083_v19  ;;  %v1097_v50 = vrot.slane %v1095_v37, 5  ;;  %v1101_v51 = vrot.slane %v1099_v38, 4  ;;  %v1107_v54 = vrot.slane %v1105_v39, 5  ;;  %v265_v53 = vld [vmem:[#allocation2 + $0x6c] sm:$0x1] }
  0x52   : > { %v10854_v57 = vcombine.low %v1074_v25, %v1084_v49  ;;  %v1093_v59 = vrot.slane %v1092_v41, 4  ;;  %v592_v60 = vshll.u32 %v13490_v2, 16  ;;  %v596_v61 = vrot.slane %v591_v44, 4  ;;  %v321_v18 = vld [vmem:[#allocation2 + $0x74] sm:$0x1] }
  0x53   : > { %v1102_v45 = vor.u32 %v1101_v51, %v1097_v50  ;;  %v13513_v63 = vld [vmem:[#allocation2 + $0x48] sm:$0xf]  ;;  %v844_v35 = vsel %vm13366_vm10, %v586_v42, %v843_v46  ;;  %v598_v10 = vshrl.u32 %v11589_v4, 16  ;;  %v601_v13 = vshll.u32 %v11589_v4, 16  ;;  %v850_v27 = vld [vmem:[#allocation2 + $0x60] sm:$0xf] }
  0x54   : > { %11955 = vmatprep.mubr.msk.bf16.mxu0 %vm1399_vm12, %v10854_v57  ;;  %v1098_v1 = vsel %vm13377_vm13, %v1093_v59, %v1097_v50  ;;  %v1110_v6 = vshrl.u32 %v13513_v63, 16  ;;  %v1113_v7 = vshll.u32 %v13513_v63, 16  ;;  %v594_v2 = vor.u32 %v592_v60, %v591_v44  ;;  %845 = vst [vmem:[#allocation2 + $0x54] sm:$0xf] %v844_v35  ;;  %v854_v37 = vld [vmem:[#allocation2 + $0x68] sm:$0x1] }
  0x55   : > { %v1103_v8 = vrot.slane %v1102_v45, 4  ;;  %v848_v9 = vsel %vm13304_vm5, %v596_v61, %v847_v56  ;;  %v13528_v19 = vpack.c.bf16 %v364_v62, %v364_v62  ;;  %v600_v25 = vrot.slane %v598_v10, 7  ;;  %v268_v57 = vld [vmem:[#allocation2 + $0x78] sm:$0x1]  ;;  %v366_v10 = vld [vmem:[%s13347_s27 + $0x90] sm:$0xff] }
  0x56   : > { %v13524_v14 = vld [vmem:[#allocation2 + $0x4c] sm:$0xf]  ;;  %v1112_v17 = vrot.slane %v1110_v6, 4  ;;  %v1115_v40 = vrot.slane %v1113_v7, 5  ;;  %v595_v55 = vsel %vm13371_vm11, %v587_v43, %v594_v2  ;;  %849 = vst [vmem:[#allocation2 + $0x5c] sm:$0x1] %v848_v9  ;;  %v11592_v43 = vpack.c.bf16 %v365_v23, %v365_v23 }
  0x57   : > { %v952_v16 = vld [vmem:[#allocation2 + $0x50] sm:$0x1]  ;;  %v1108_v20 = vsel %vm13377_vm13, %v1103_v8, %v1107_v54  ;;  %v1119_v21 = vshll.u32 %v13524_v14, 16  ;;  %v1123_v11 = vshrl.u32 %v13524_v14, 16  ;;  %846 = vst.msk [vmem:[#allocation2 + $0x58] sm:$0xf] %vm226_vm1, %v595_v55  ;;  %v603_v33 = vor.u32 %v601_v13, %v600_v25 }
  0x58   : > { %v1129_v22 = vshll.u32 %v952_v16, 16  ;;  %v10855_v12 = vcombine.low %v1098_v1, %v1108_v20  ;;  %v1116_v24 = vor.u32 %v1115_v40, %v1112_v17  ;;  %v606_v26 = vshrl.u32 %v11590_v0, 16  ;;  %v324_v9 = vld [vmem:[#allocation2 + $0x80] sm:$0x1]  ;;  %v367_v13 = vld [vmem:[%s13347_s27 + $0x98] sm:$0xff] }
  0x59   : > { %v1121_v28 = vrot.slane %v1119_v21, 5  ;;  %v1125_v29 = vrot.slane %v1123_v11, 4  ;;  %v609_v31 = vshll.u32 %v11590_v0, 16  ;;  %v604_v34 = vrot.slane %v600_v25, 4 }
  0x5a   : > { %v1131_v30 = vrot.slane %v1129_v22, 5  ;;  %11956 = vmatmul.mubr.msk.bf16.gmra.mrb[8].mxu0 %vm1399_vm12, %v10855_v12  ;;  %v1117_v32 = vrot.slane %v1116_v24, 4  ;;  %v608_v36 = vrot.slane %v606_v26, 7  ;;  %v266_v41 = vsel %vm13304_vm5, 0, %v265_v53  ;;  %v271_v53 = vld [vmem:[#allocation2 + $0x84] sm:$0x1] }
  0x5b   : > { %v1126_v38 = vor.u32 %v1125_v29, %v1121_v28  ;;  %v13537_v39 = vld [vmem:[#allocation2 + $0x54] sm:$0xf]  ;;  %v322_v42 = vsel %vm13315_vm6, 0, %v321_v18  ;;  %267 = vst [vmem:[#allocation2 + $0x6c] sm:$0x1] %v266_v41  ;;  %v851_v54 = vsel %vm13366_vm10, %v603_v33, %v850_v27  ;;  %v615_v56 = vshrl.u32 %v13528_v19, 16 }
  0x5c   : > { %v1122_v44 = vsel %vm13377_vm13, %v1117_v32, %v1121_v28  ;;  %v1134_v46 = vshrl.u32 %v13537_v39, 16  ;;  %v1137_v47 = vshll.u32 %v13537_v39, 16  ;;  %v611_v48 = vor.u32 %v609_v31, %v608_v36  ;;  %323 = vst [vmem:[#allocation2 + $0x74] sm:$0x1] %v322_v42  ;;  %852 = vst [vmem:[#allocation2 + $0x60] sm:$0xf] %v851_v54 }
  0x5d   : > { %v1127_v49 = vrot.slane %v1126_v38, 4  ;;  %v953_v50 = vld [vmem:[#allocation2 + $0x5c] sm:$0x1]  ;;  %v613_v51 = vrot.slane %v608_v36, 4  ;;  %v617_v8 = vrot.slane %v615_v56, 7  ;;  %v618_v40 = vshll.u32 %v13528_v19, 16 }
  0x5e   : > { %v13550_v59 = vld [vmem:[#allocation2 + $0x58] sm:$0xf]  ;;  %v1136_v60 = vrot.slane %v1134_v46, 4  ;;  %v1139_v61 = vrot.slane %v1137_v47, 5  ;;  %v1153_v62 = vshll.u32 %v953_v50, 16  ;;  %v612_v45 = vsel %vm13371_vm11, %v604_v34, %v611_v48 }
  0x5f   : > { %v1132_v35 = vsel %vm13377_vm13, %v1127_v49, %v1131_v30  ;;  %v1143_v4 = vshll.u32 %v13550_v59, 16  ;;  %v1147_v0 = vshrl.u32 %v13550_v59, 16  ;;  %853 = vst.msk [vmem:[#allocation2 + $0x64] sm:$0xf] %vm226_vm1, %v612_v45  ;;  %v855_v1 = vsel %vm13304_vm5, %v613_v51, %v854_v37 }
  0x60   : > { %v10856_v6 = vcombine.low %v1122_v44, %v1132_v35  ;;  %v1140_v7 = vor.u32 %v1139_v61, %v1136_v60  ;;  %v1155_v2 = vrot.slane %v1153_v62, 5  ;;  %856 = vst [vmem:[#allocation2 + $0x68] sm:$0x1] %v855_v1  ;;  %v623_v55 = vshrl.u32 %v11592_v43, 16  ;;  %v274_v60 = vld [vmem:[#allocation2 + $0x90] sm:$0x1] }
  0x61   : > { %v1145_v16 = vrot.slane %v1143_v4, 5  ;;  %v1149_v17 = vrot.slane %v1147_v0, 4  ;;  %v621_v20 = vrot.slane %v617_v8, 4  ;;  %v626_v21 = vshll.u32 %v11592_v43, 16  ;;  %v327_v43 = vld [vmem:[#allocation2 + $0x8c] sm:$0x1] }
  0x62   : > { %11959 = vmatprep.mubr.msk.bf16.mxu0 %vm1399_vm12, %v10856_v6  ;;  %v1141_v18 = vrot.slane %v1140_v7, 4  ;;  %v269_v11 = vsel %vm13304_vm5, 0, %v268_v57  ;;  %v620_v23 = vor.u32 %v618_v40, %v617_v8  ;;  %v625_v12 = vrot.slane %v623_v55, 7  ;;  %v857_v24 = vld [vmem:[#allocation2 + $0x6c] sm:$0xf]  ;;  %v368_v57 = vld [vmem:[%s13347_s27 + $0xa0] sm:$0xff] }
  0x63   : > { %v1150_v22 = vor.u32 %v1149_v17, %v1145_v16  ;;  %270 = vst [vmem:[#allocation2 + $0x78] sm:$0x1] %v269_v11  ;;  %v325_v25 = vsel %vm13315_vm6, 0, %v324_v9  ;;  %v861_v26 = vld [vmem:[#allocation2 + $0x74] sm:$0x1]  ;;  %v11593_v27 = vpack.c.bf16 %v366_v10, %v366_v10  ;;  %v11594_v28 = vpack.c.bf16 %v367_v13, %v367_v13  ;;  %v369_v0 = vld [vmem:[%s13347_s27 + $0xa8] sm:$0xff] }
  0x64   : > { %v1146_v19 = vsel %vm13377_vm13, %v1141_v18, %v1145_v16  ;;  %326 = vst [vmem:[#allocation2 + $0x80] sm:$0x1] %v325_v25  ;;  %v272_v29 = vsel %vm13304_vm5, 0, %v271_v53  ;;  %v13573_v31 = vld [vmem:[#allocation2 + $0x60] sm:$0xf]  ;;  %v628_v32 = vor.u32 %v626_v21, %v625_v12  ;;  %v630_v33 = vrot.slane %v625_v12, 4 }
  0x65   : > { %v1151_v30 = vrot.slane %v1150_v22, 4  ;;  %v858_v34 = vsel %vm13366_vm10, %v620_v23, %v857_v24  ;;  %273 = vst [vmem:[#allocation2 + $0x84] sm:$0x1] %v272_v29  ;;  %v1158_v37 = vshrl.u32 %v13573_v31, 16  ;;  %v1161_v38 = vshll.u32 %v13573_v31, 16 }
  0x66   : > { %v13577_v36 = vld [vmem:[#allocation2 + $0x64] sm:$0xf]  ;;  %859 = vst [vmem:[#allocation2 + $0x6c] sm:$0xf] %v858_v34  ;;  %v632_v41 = vshrl.u32 %v11593_v27, 16  ;;  %v635_v42 = vshll.u32 %v11593_v27, 16  ;;  %v629_v49 = vsel %vm13371_vm11, %v621_v20, %v628_v32  ;;  %v862_v35 = vsel %vm13304_vm5, %v630_v33, %v861_v26 }
  0x67   : > { %v1156_v44 = vsel %vm13377_vm13, %v1151_v30, %v1155_v2  ;;  %v13583_v46 = vld [vmem:[#allocation2 + $0x68] sm:$0x1]  ;;  %v1167_v47 = vshll.u32 %v13577_v36, 16  ;;  %v1171_v48 = vshrl.u32 %v13577_v36, 16  ;;  %v1160_v51 = vrot.slane %v1158_v37, 4 }
  0x68   : > { %v10857_v50 = vcombine.low %v1146_v19, %v1156_v44  ;;  %v1163_v54 = vrot.slane %v1161_v38, 5  ;;  %v1177_v56 = vshll.u32 %v13583_v46, 16  ;;  %860 = vst.msk [vmem:[#allocation2 + $0x70] sm:$0xf] %vm226_vm1, %v629_v49  ;;  %v330_v61 = vld [vmem:[#allocation2 + $0x98] sm:$0x1]  ;;  %v11595_v55 = vpack.c.bf16 %v368_v57, %v368_v57 }
  0x69   : > { %v1169_v62 = vrot.slane %v1167_v47, 5  ;;  %v1173_v45 = vrot.slane %v1171_v48, 4  ;;  %v634_v4 = vrot.slane %v632_v41, 7  ;;  %863 = vst [vmem:[#allocation2 + $0x74] sm:$0x1] %v862_v35  ;;  %v640_v7 = vshrl.u32 %v11594_v28, 16 }
  0x6a   : > { %11960 = vmatmul.mubr.msk.bf16.gmra.mrb[12].mxu0 %vm1399_vm12, %v10857_v50  ;;  %v1164_v1 = vor.u32 %v1163_v54, %v1160_v51  ;;  %v1179_v6 = vrot.slane %v1177_v56, 5  ;;  %v643_v2 = vshll.u32 %v11594_v28, 16  ;;  %v864_v8 = vld [vmem:[#allocation2 + $0x78] sm:$0xf]  ;;  %v328_v16 = vsel %vm13315_vm6, 0, %v327_v43  ;;  %v370_v38 = vld [vmem:[%s13347_s27 + $0xb0] sm:$0xff] }
  0x6b   : > { %v1174_v9 = vor.u32 %v1173_v45, %v1169_v62  ;;  %v637_v10 = vor.u32 %v635_v42, %v634_v4  ;;  %v638_v13 = vrot.slane %v634_v4, 4  ;;  %v642_v40 = vrot.slane %v640_v7, 7  ;;  %329 = vst [vmem:[#allocation2 + $0x8c] sm:$0x1] %v328_v16  ;;  %v868_v19 = vld [vmem:[#allocation2 + $0x80] sm:$0x1] }
  0x6c   : > { %v1165_v17 = vrot.slane %v1164_v1, 4  ;;  %v11596_v53 = vpack.c.bf16 %v369_v0, %v369_v0  ;;  %v275_v11 = vsel %vm13304_vm5, 0, %v274_v60  ;;  %v331_v22 = vsel %vm13315_vm6, 0, %v330_v61  ;;  %v371_v41 = vld [vmem:[%s13347_s27 + $0xb8] sm:$0xff]  ;;  %v871_v49 = vld [vmem:[#allocation2 + $0x84] sm:$0xf] }
  0x6d   : > { %v1175_v18 = vrot.slane %v1174_v9, 4  ;;  %v13598_v20 = vld [vmem:[#allocation2 + $0x6c] sm:$0xf]  ;;  %v865_v21 = vsel %vm13366_vm10, %v637_v10, %v864_v8  ;;  %v645_v25 = vor.u32 %v643_v2, %v642_v40  ;;  %276 = vst [vmem:[#allocation2 + $0x90] sm:$0x1] %v275_v11  ;;  %v647_v28 = vrot.slane %v642_v40, 4 }
  0x6e   : > { %v1170_v23 = vsel %vm13377_vm13, %v1165_v17, %v1169_v62  ;;  %v1182_v12 = vshrl.u32 %v13598_v20, 16  ;;  %v1185_v24 = vshll.u32 %v13598_v20, 16  ;;  %866 = vst [vmem:[#allocation2 + $0x78] sm:$0xf] %v865_v21  ;;  %332 = vst [vmem:[#allocation2 + $0x98] sm:$0x1] %v331_v22  ;;  %v11597_v1 = vpack.c.bf16 %v370_v38, %v370_v38 }
  0x6f   : > { %v1180_v26 = vsel %vm13377_vm13, %v1175_v18, %v1179_v6  ;;  %v13612_v27 = vld [vmem:[#allocation2 + $0x70] sm:$0xf]  ;;  %v649_v29 = vshrl.u32 %v11595_v55, 16  ;;  %v652_v30 = vshll.u32 %v11595_v55, 16  ;;  %v646_v44 = vsel %vm13371_vm11, %v638_v13, %v645_v25  ;;  %v372_v57 = vld [vmem:[%s13347_s27 + $0xc0] sm:$0xff] }
  0x70   : > { %v10858_v32 = vcombine.low %v1170_v23, %v1180_v26  ;;  %v1184_v33 = vrot.slane %v1182_v12, 4  ;;  %v1187_v34 = vrot.slane %v1185_v24, 5  ;;  %v1191_v37 = vshll.u32 %v13612_v27, 16  ;;  %v13617_v42 = vld [vmem:[#allocation2 + $0x74] sm:$0x1] }
  0x71   : > { %v1195_v43 = vshrl.u32 %v13612_v27, 16  ;;  %v869_v47 = vsel %vm13304_vm5, %v647_v28, %v868_v19  ;;  %v651_v48 = vrot.slane %v649_v29, 7  ;;  %v1201_v54 = vshll.u32 %v13617_v42, 16  ;;  %867 = vst.msk [vmem:[#allocation2 + $0x7c] sm:$0xf] %vm226_vm1, %v646_v44 }
  0x72   : > { %11963 = vmatprep.mubr.msk.bf16.mxu0 %vm1399_vm12, %v10858_v32  ;;  %v1188_v50 = vor.u32 %v1187_v34, %v1184_v33  ;;  %v1193_v51 = vrot.slane %v1191_v37, 5  ;;  %870 = vst [vmem:[#allocation2 + $0x80] sm:$0x1] %v869_v47  ;;  %v657_v56 = vshrl.u32 %v11596_v53, 16  ;;  %v660_v45 = vshll.u32 %v11596_v53, 16 }
  0x73   : > { %v1197_v60 = vrot.slane %v1195_v43, 4  ;;  %v654_v61 = vor.u32 %v652_v30, %v651_v48  ;;  %v655_v62 = vrot.slane %v651_v48, 4  ;;  %v1203_v4 = vrot.slane %v1201_v54, 5  ;;  %v875_v8 = vld [vmem:[#allocation2 + $0x8c] sm:$0x1] }
  0x74   : > { %v1189_v35 = vrot.slane %v1188_v50, 4  ;;  %v659_v0 = vrot.slane %v657_v56, 7  ;;  %v11598_v9 = vpack.c.bf16 %v371_v41, %v371_v41  ;;  %v13632_v10 = vpack.c.bf16 %v372_v57, %v372_v57  ;;  %v277_v11 = vld [vmem:[#allocation2 + $0x9c] sm:$0x1]  ;;  %v878_v25 = vld [vmem:[#allocation2 + $0x90] sm:$0xf] }
  0x75   : > { %v1198_v6 = vor.u32 %v1197_v60, %v1193_v51  ;;  %v13628_v7 = vld [vmem:[#allocation2 + $0x78] sm:$0xf]  ;;  %v872_v2 = vsel %vm13366_vm10, %v654_v61, %v871_v49  ;;  %v666_v18 = vshrl.u32 %v11597_v1, 16  ;;  %v669_v21 = vshll.u32 %v11597_v1, 16  ;;  %v333_v41 = vld [vmem:[#allocation2 + $0xa4] sm:$0x1] }
  0x76   : > { %v1194_v13 = vsel %vm13377_vm13, %v1189_v35, %v1193_v51  ;;  %v1206_v16 = vshrl.u32 %v13628_v7, 16  ;;  %v1209_v17 = vshll.u32 %v13628_v7, 16  ;;  %v662_v40 = vor.u32 %v660_v45, %v659_v0  ;;  %873 = vst [vmem:[#allocation2 + $0x84] sm:$0xf] %v872_v2  ;;  %v373_v49 = vld [vmem:[%s13347_s27 + $0xc8] sm:$0xff] }
  0x77   : > { %v1199_v55 = vrot.slane %v1198_v6, 4  ;;  %v664_v53 = vrot.slane %v659_v0, 4  ;;  %v674_v24 = vshrl.u32 %v11598_v9, 16  ;;  %v668_v30 = vrot.slane %v666_v18, 7  ;;  %v882_v56 = vld [vmem:[#allocation2 + $0x98] sm:$0x1] }
  0x78   : > { %v1208_v22 = vrot.slane %v1206_v16, 4  ;;  %v1211_v23 = vrot.slane %v1209_v17, 5  ;;  %v663_v12 = vsel %vm13371_vm11, %v655_v62, %v662_v40  ;;  %v13642_v26 = vld [vmem:[#allocation2 + $0x7c] sm:$0xf]  ;;  %v677_v32 = vshll.u32 %v11598_v9, 16 }
  0x79   : > { %v1204_v19 = vsel %vm13377_vm13, %v1199_v55, %v1203_v4  ;;  %v13644_v28 = vld [vmem:[#allocation2 + $0x80] sm:$0x1]  ;;  %874 = vst.msk [vmem:[#allocation2 + $0x88] sm:$0xf] %vm226_vm1, %v663_v12  ;;  %v876_v29 = vsel %vm13304_vm5, %v664_v53, %v875_v8  ;;  %v1215_v37 = vshll.u32 %v13642_v26, 16  ;;  %v1219_v38 = vshrl.u32 %v13642_v26, 16 }
  0x7a   : > { %v10859_v33 = vcombine.low %v1194_v13, %v1204_v19  ;;  %v1212_v34 = vor.u32 %v1211_v23, %v1208_v22  ;;  %877 = vst [vmem:[#allocation2 + $0x8c] sm:$0x1] %v876_v29  ;;  %v1225_v43 = vshll.u32 %v13644_v28, 16  ;;  %v671_v44 = vor.u32 %v669_v21, %v668_v30  ;;  %v280_v18 = vld [vmem:[#allocation2 + $0xa8] sm:$0x1] }
  0x7b   : > { %v672_v47 = vrot.slane %v668_v30, 4  ;;  %v676_v48 = vrot.slane %v674_v24, 7  ;;  %v1217_v51 = vrot.slane %v1215_v37, 5  ;;  %v1221_v54 = vrot.slane %v1219_v38, 4  ;;  %v336_v37 = vld [vmem:[#allocation2 + $0xb0] sm:$0x1] }
  0x7c   : > { %11964 = vmatmul.mubr.msk.bf16.gmra.mrb[16].mxu0 %vm1399_vm12, %v10859_v33  ;;  %v1213_v50 = vrot.slane %v1212_v34, 4  ;;  %v278_v57 = vsel %vm13304_vm5, 0, %v277_v11  ;;  %v1227_v60 = vrot.slane %v1225_v43, 5  ;;  %v879_v35 = vsel %vm13366_vm10, %v671_v44, %v878_v25 }
  0x7d   : > { %v13656_v61 = vld [vmem:[#allocation2 + $0x84] sm:$0xf]  ;;  %v679_v62 = vor.u32 %v677_v32, %v676_v48  ;;  %v681_v45 = vrot.slane %v676_v48, 4  ;;  %279 = vst [vmem:[#allocation2 + $0x9c] sm:$0x1] %v278_v57  ;;  %v1222_v0 = vor.u32 %v1221_v54, %v1217_v51  ;;  %v334_v9 = vsel %vm13315_vm6, 0, %v333_v41 }
  0x7e   : > { %v1218_v4 = vsel %vm13377_vm13, %v1213_v50, %v1217_v51  ;;  %v1230_v1 = vshrl.u32 %v13656_v61, 16  ;;  %v1233_v6 = vshll.u32 %v13656_v61, 16  ;;  %880 = vst [vmem:[#allocation2 + $0x90] sm:$0xf] %v879_v35  ;;  %v11600_v13 = vpack.c.bf16 %v373_v49, %v373_v49  ;;  %335 = vst [vmem:[#allocation2 + $0xa4] sm:$0x1] %v334_v9 }
  0x7f   : > { %v680_v2 = vsel %vm13371_vm11, %v672_v47, %v679_v62  ;;  %v883_v8 = vsel %vm13304_vm5, %v681_v45, %v882_v56  ;;  %v1223_v16 = vrot.slane %v1222_v0, 4  ;;  %v683_v53 = vshrl.u32 %v13632_v10, 16  ;;  %v374_v47 = vld [vmem:[%s13347_s27 + $0xd0] sm:$0xff]  ;;  %v375_v45 = vld [vmem:[%s13347_s27 + $0xd8] sm:$0xff] }
  0x80   : > { %v13670_v17 = vld [vmem:[#allocation2 + $0x88] sm:$0xf]  ;;  %v1232_v40 = vrot.slane %v1230_v1, 4  ;;  %v1235_v55 = vrot.slane %v1233_v6, 5  ;;  %881 = vst.msk [vmem:[#allocation2 + $0x94] sm:$0xf] %vm226_vm1, %v680_v2  ;;  %v11601_v2 = vpack.c.bf16 %v374_v47, %v374_v47 }
  0x81   : > { %884 = vst [vmem:[#allocation2 + $0x98] sm:$0x1] %v883_v8  ;;  %v13674_v21 = vld [vmem:[#allocation2 + $0x8c] sm:$0x1]  ;;  %v1239_v11 = vshll.u32 %v13670_v17, 16  ;;  %v1243_v22 = vshrl.u32 %v13670_v17, 16  ;;  %v1228_v24 = vsel %vm13377_vm13, %v1223_v16, %v1227_v60 }
  0x82   : > { %v686_v23 = vshll.u32 %v13632_v10, 16  ;;  %v691_v12 = vshrl.u32 %v11600_v13, 16  ;;  %v1236_v25 = vor.u32 %v1235_v55, %v1232_v40  ;;  %v1249_v19 = vshll.u32 %v13674_v21, 16  ;;  %v283_v8 = vld [vmem:[#allocation2 + $0xb4] sm:$0x1] }
  0x83   : > { %v685_v29 = vrot.slane %v683_v53, 7  ;;  %v10860_v30 = vcombine.low %v1218_v4, %v1228_v24  ;;  %v1241_v32 = vrot.slane %v1239_v11, 5  ;;  %v1245_v33 = vrot.slane %v1243_v22, 4 }
  0x84   : > { %v693_v34 = vrot.slane %v691_v12, 7  ;;  %v1237_v38 = vrot.slane %v1236_v25, 4  ;;  %v1251_v41 = vrot.slane %v1249_v19, 5  ;;  %v885_v10 = vld [vmem:[#allocation2 + $0x9c] sm:$0xf]  ;;  %v694_v50 = vshll.u32 %v11600_v13, 16 }
  0x85   : > { %v688_v43 = vor.u32 %v686_v23, %v685_v29  ;;  %v689_v44 = vrot.slane %v685_v29, 4  ;;  %11967 = vmatprep.mubr.msk.bf16.mxu0 %vm1399_vm12, %v10860_v30  ;;  %v1246_v48 = vor.u32 %v1245_v33, %v1241_v32  ;;  %v13684_v49 = vld [vmem:[#allocation2 + $0x90] sm:$0xf]  ;;  %v281_v54 = vsel %vm13304_vm5, 0, %v280_v18  ;;  %v889_v55 = vld [vmem:[#allocation2 + $0xa4] sm:$0x1] }
  0x86   : > { %v698_v51 = vrot.slane %v693_v34, 4  ;;  %v1242_v56 = vsel %vm13377_vm13, %v1237_v38, %v1241_v32  ;;  %v1254_v57 = vshrl.u32 %v13684_v49, 16  ;;  %v1257_v60 = vshll.u32 %v13684_v49, 16  ;;  %282 = vst [vmem:[#allocation2 + $0xa8] sm:$0x1] %v281_v54  ;;  %v376_v12 = vld [vmem:[%s13347_s27 + $0xe0] sm:$0xff] }
  0x87   : > { %v886_v62 = vsel %vm13366_vm10, %v688_v43, %v885_v10  ;;  %v1247_v35 = vrot.slane %v1246_v48, 4  ;;  %v13695_v4 = vld [vmem:[#allocation2 + $0x94] sm:$0xf]  ;;  %v696_v1 = vor.u32 %v694_v50, %v693_v34  ;;  %v337_v6 = vsel %vm13315_vm6, 0, %v336_v37  ;;  %v339_v23 = vld [vmem:[#allocation2 + $0xbc] sm:$0x1] }
  0x88   : > { %v13697_v0 = vld [vmem:[#allocation2 + $0x98] sm:$0x1]  ;;  %887 = vst [vmem:[#allocation2 + $0x9c] sm:$0xf] %v886_v62  ;;  %v1256_v9 = vrot.slane %v1254_v57, 4  ;;  %v1259_v13 = vrot.slane %v1257_v60, 5  ;;  %v890_v22 = vsel %vm13304_vm5, %v698_v51, %v889_v55  ;;  %v11602_v32 = vpack.c.bf16 %v375_v45, %v375_v45 }
  0x89   : > { %v1263_v16 = vshll.u32 %v13695_v4, 16  ;;  %v1267_v40 = vshrl.u32 %v13695_v4, 16  ;;  %338 = vst [vmem:[#allocation2 + $0xb0] sm:$0x1] %v337_v6  ;;  %v1252_v53 = vsel %vm13377_vm13, %v1247_v35, %v1251_v41  ;;  %v1273_v18 = vshll.u32 %v13697_v0, 16  ;;  %v377_v37 = vld [vmem:[%s13347_s27 + $0xe8] sm:$0xff] }
  0x8a   : > { %v697_v11 = vsel %vm13371_vm11, %v689_v44, %v696_v1  ;;  %v10861_v24 = vcombine.low %v1242_v56, %v1252_v53  ;;  %v1260_v25 = vor.u32 %v1259_v13, %v1256_v9  ;;  %891 = vst [vmem:[#allocation2 + $0xa4] sm:$0x1] %v890_v22  ;;  %v700_v33 = vshrl.u32 %v11601_v2, 16 }
  0x8b   : > { %v1265_v19 = vrot.slane %v1263_v16, 5  ;;  %v1269_v29 = vrot.slane %v1267_v40, 4  ;;  %888 = vst.msk [vmem:[#allocation2 + $0xa0] sm:$0xf] %vm226_vm1, %v697_v11  ;;  %v1275_v30 = vrot.slane %v1273_v18, 5  ;;  %v703_v34 = vshll.u32 %v11601_v2, 16 }
  0x8c   : > { %11968 = vmatmul.mubr.msk.bf16.gmra.mrb[20].mxu0 %vm1399_vm12, %v10861_v24  ;;  %v1261_v38 = vrot.slane %v1260_v25, 4  ;;  %v284_v43 = vsel %vm13304_vm5, 0, %v283_v8  ;;  %v340_v44 = vsel %vm13315_vm6, 0, %v339_v23  ;;  %v702_v10 = vrot.slane %v700_v33, 7 }
  0x8d   : > { %v1270_v41 = vor.u32 %v1269_v29, %v1265_v19  ;;  %v708_v47 = vshrl.u32 %v11602_v32, 16  ;;  %285 = vst [vmem:[#allocation2 + $0xb4] sm:$0x1] %v284_v43  ;;  %341 = vst [vmem:[#allocation2 + $0xbc] sm:$0x1] %v340_v44  ;;  %v11603_v48 = vpack.c.bf16 %v376_v12, %v376_v12  ;;  %v711_v56 = vshll.u32 %v11602_v32, 16 }
  0x8e   : > { %v1266_v50 = vsel %vm13377_vm13, %v1261_v38, %v1265_v19  ;;  %v892_v57 = vld [vmem:[#allocation2 + $0xa8] sm:$0xf]  ;;  %v11604_v60 = vpack.c.bf16 %v377_v37, %v377_v37  ;;  %v705_v35 = vor.u32 %v703_v34, %v702_v10  ;;  %v706_v1 = vrot.slane %v702_v10, 4 }
  0x8f   : > { %v1271_v51 = vrot.slane %v1270_v41, 4  ;;  %v13720_v54 = vld [vmem:[#allocation2 + $0x9c] sm:$0xf]  ;;  %v710_v2 = vrot.slane %v708_v47, 7  ;;  %v717_v9 = vshrl.u32 %v11603_v48, 16  ;;  %v720_v13 = vshll.u32 %v11603_v48, 16 }
  0x90   : > { %v1278_v62 = vshrl.u32 %v13720_v54, 16  ;;  %v1281_v45 = vshll.u32 %v13720_v54, 16  ;;  %v896_v8 = vld [vmem:[#allocation2 + $0xb0] sm:$0x1]  ;;  %v893_v11 = vsel %vm13366_vm10, %v705_v35, %v892_v57  ;;  %vm1953_vm14 = vcmask 1042432  }
  0x91   : > { %v1276_v6 = vsel %vm13377_vm13, %v1271_v51, %v1275_v30  ;;  %v13728_v55 = vld [vmem:[#allocation2 + $0xa4] sm:$0x1]  ;;  %v713_v24 = vor.u32 %v711_v56, %v710_v2  ;;  %894 = vst [vmem:[#allocation2 + $0xa8] sm:$0xf] %v893_v11  ;;  %v715_v19 = vrot.slane %v710_v2, 4  ;;  %v719_v29 = vrot.slane %v717_v9, 7 }
  0x92   : > { %v10862_v16 = vcombine.low %v1266_v50, %v1276_v6  ;;  %v13726_v40 = vld [vmem:[#allocation2 + $0xa0] sm:$0xf]  ;;  %v1280_v53 = vrot.slane %v1278_v62, 4  ;;  %v1283_v18 = vrot.slane %v1281_v45, 5  ;;  %v1297_v12 = vshll.u32 %v13728_v55, 16 }
  0x93   : > { %v1287_v22 = vshll.u32 %v13726_v40, 16  ;;  %v1291_v23 = vshrl.u32 %v13726_v40, 16  ;;  %v725_v30 = vshrl.u32 %v11604_v60, 16  ;;  %v714_v34 = vsel %vm13371_vm11, %v706_v1, %v713_v24 }
  0x94   : > { %11971 = vmatprep.mubr.msk.bf16.mxu0 %vm1399_vm12, %v10862_v16  ;;  %v1284_v25 = vor.u32 %v1283_v18, %v1280_v53  ;;  %v899_v37 = vld [vmem:[#allocation2 + $0xb4] sm:$0xf]  ;;  %v1299_v41 = vrot.slane %v1297_v12, 5  ;;  %895 = vst.msk [vmem:[#allocation2 + $0xac] sm:$0xf] %vm226_vm1, %v714_v34  ;;  %v897_v43 = vsel %vm13304_vm5, %v715_v19, %v896_v8  ;;  %v722_v44 = vor.u32 %v720_v13, %v719_v29 }
  0x95   : > { %v1289_v32 = vrot.slane %v1287_v22, 5  ;;  %v1293_v33 = vrot.slane %v1291_v23, 4  ;;  %898 = vst [vmem:[#allocation2 + $0xb0] sm:$0x1] %v897_v43  ;;  %v723_v47 = vrot.slane %v719_v29, 4  ;;  %v727_v48 = vrot.slane %v725_v30, 7 }
  0x96   : > { %v1285_v38 = vrot.slane %v1284_v25, 4  ;;  %v728_v50 = vshll.u32 %v11604_v60, 16  ;;  %v900_v51 = vsel %vm13366_vm10, %v722_v44, %v899_v37  ;;  %v903_v35 = vld [vmem:[#allocation2 + $0xbc] sm:$0x1]  ;;  %vm1954_vm15 = vcmask 1046532  }
  0x97   : > { %v1294_v10 = vor.u32 %v1293_v33, %v1289_v32  ;;  %v732_v45 = vrot.slane %v727_v48, 4  ;;  %901 = vst [vmem:[#allocation2 + $0xb4] sm:$0xf] %v900_v51  ;;  %vm13857_vm2 = vmor %vm1953_vm14, %vm1954_vm15 }
  0x98   : > { %v1290_v56 = vsel %vm13377_vm13, %v1285_v38, %v1289_v32  ;;  %v730_v62 = vor.u32 %v728_v50, %v727_v48  ;;  %v13745_v1 = vld [vmem:[#allocation2 + $0xa8] sm:$0xf] }
  0x99   : > { %v1295_v57 = vrot.slane %v1294_v10, 4  ;;  %v1302_v2 = vshrl.u32 %v13745_v1, 16  ;;  %v1305_v60 = vshll.u32 %v13745_v1, 16  ;;  %v904_v13 = vsel %vm13304_vm5, %v732_v45, %v903_v35  ;;  %v2759_v58 = vld [vmem:[#allocation2 + $0xa8] sm:$0xf] }
  0x9a   : > { %v731_v8 = vsel %vm13371_vm11, %v723_v47, %v730_v62  ;;  %905 = vst [vmem:[#allocation2 + $0xbc] sm:$0x1] %v904_v13 }
  0x9b   : > { %v1300_v6 = vsel %vm13377_vm13, %v1295_v57, %v1299_v41  ;;  %902 = vst.msk [vmem:[#allocation2 + $0xb8] sm:$0xf] %vm226_vm1, %v731_v8  ;;  %v13756_v16 = vld [vmem:[#allocation2 + $0xac] sm:$0xf]  ;;  %v1304_v53 = vrot.slane %v1302_v2, 4  ;;  %v1307_v18 = vrot.slane %v1305_v60, 5 }
  0x9c   : > { %v10863_v9 = vcombine.low %v1290_v56, %v1300_v6  ;;  %v13759_v11 = vld [vmem:[#allocation2 + $0xb0] sm:$0x1]  ;;  %v1311_v22 = vshll.u32 %v13756_v16, 16  ;;  %v1315_v23 = vshrl.u32 %v13756_v16, 16 }
  0x9d   : > { %v1308_v12 = vor.u32 %v1307_v18, %v1304_v53  ;;  %v1321_v24 = vshll.u32 %v13759_v11, 16  ;;  %v13784_v53 = vld [vmem:[#allocation2 + $0x4] sm:$0xf]  ;;  %v13171_v18 = vld [vmem:[#allocation2] sm:$0xf] }
  0x9e   : > { %11972 = vmatmul.mubr.msk.bf16.gmra.mrb[24].mxu0 %vm1399_vm12, %v10863_v9  ;;  %v1313_v25 = vrot.slane %v1311_v22, 5  ;;  %v1317_v19 = vrot.slane %v1315_v23, 4  ;;  %v13764_v29 = vld [vmem:[#allocation2 + $0xb4] sm:$0xf]  ;;  %v10882_v22 = vcombine.low %v13171_v18, %v13784_v53  ;;  %v14227_v5 = vld [vmem:[#allocation2 + $0xb0] sm:$0x1] }
  0x9f   : > { %v1309_v30 = vrot.slane %v1308_v12, 4  ;;  %v1326_v32 = vshrl.u32 %v13764_v29, 16  ;;  %v1329_v33 = vshll.u32 %v13764_v29, 16  ;;  %v1323_v37 = vrot.slane %v1321_v24, 5  ;;  %v13172_v12 = vld [vmem:[#allocation2 + $0xc] sm:$0xf] }
  0xa0   : > { %v1318_v34 = vor.u32 %v1317_v19, %v1313_v25  ;;  %v13789_v24 = vld [vmem:[#allocation2 + $0x10] sm:$0xf]  ;;  %v13174_v19 = vld [vmem:[#allocation2 + $0x18] sm:$0xf] }
  0xa1   : > { %v1328_v41 = vrot.slane %v1326_v32, 4  ;;  %v1331_v43 = vrot.slane %v1329_v33, 5  ;;  %v1314_v44 = vsel %vm13377_vm13, %v1309_v30, %v1313_v25  ;;  %v13772_v47 = vld [vmem:[#allocation2 + $0xbc] sm:$0x1]  ;;  %v10883_v25 = vcombine.low %v13172_v12, %v13789_v24  ;;  %v13176_v33 = vld [vmem:[%s16761_s1 + $0x8] sm:$0xf] }
  0xa2   : > { %v13768_v38 = vld [vmem:[#allocation2 + $0xb8] sm:$0xf]  ;;  %v1319_v10 = vrot.slane %v1318_v34, 4  ;;  %v1345_v56 = vshll.u32 %v13772_v47, 16  ;;  %v13792_v30 = vld [vmem:[#allocation2 + $0x1c] sm:$0xf] }
  0xa3   : > { %v1335_v48 = vshll.u32 %v13768_v38, 16  ;;  %v1339_v50 = vshrl.u32 %v13768_v38, 16  ;;  %v1332_v51 = vor.u32 %v1331_v43, %v1328_v41  ;;  %v10884_v32 = vcombine.low %v13174_v19, %v13792_v30  ;;  %v13177_v41 = vld [vmem:[#allocation2 + $0x24] sm:$0xf]  ;;  %v13808_v43 = vld [vmem:[#allocation2 + $0x28] sm:$0xf] }
  0xa4   : > { %v1324_v57 = vsel %vm13377_vm13, %v1319_v10, %v1323_v37  ;;  %v1347_v60 = vrot.slane %v1345_v56, 5  ;;  %v2167_v34 = vsel %vm1448_vm0, %v13176_v33, 0  ;;  %v13802_v37 = vld [vmem:[%s16761_s1 + $0xc] sm:$0xf]  ;;  %v13179_v10 = vld [vmem:[#allocation2 + $0x30] sm:$0xf] }
  0xa5   : > { %v1337_v62 = vrot.slane %v1335_v48, 5  ;;  %v1341_v45 = vrot.slane %v1339_v50, 4  ;;  %v10864_v35 = vcombine.low %v1314_v44, %v1324_v57  ;;  %v1333_v6 = vrot.slane %v1332_v51, 4  ;;  %v13811_v48 = vld [vmem:[#allocation2 + $0x34] sm:$0xf] }
  0xa6   : > { %v10885_v44 = vcombine.low %v13177_v41, %v13808_v43  ;;  %v10886_v50 = vcombine.low %v13179_v10, %v13811_v48  ;;  %v13181_v51 = vld [vmem:[#allocation2 + $0x3c] sm:$0xf]  ;;  %v13816_v56 = vld [vmem:[#allocation2 + $0x40] sm:$0xf]  ;;  %v13183_v33 = vld [vmem:[#allocation2 + $0x8] sm:$0x1] }
  0xa7   : > { %v1342_v2 = vor.u32 %v1341_v45, %v1337_v62  ;;  %11975 = vmatprep.mubr.msk.bf16.mxu0 %vm1399_vm12, %v10864_v35  ;;  %v1338_v8 = vsel %vm13377_vm13, %v1333_v6, %v1337_v62  ;;  %v10887_v57 = vcombine.low %v13181_v51, %v13816_v56  ;;  %v10888_v62 = vcombine.low %v13513_v63, %v13524_v14  ;;  %v1905_v12 = vld [vmem:[#allocation2] sm:$0xe] }
  0xa8   : > { %v10889_v45 = vcombine.low %v13537_v39, %v13550_v59  ;;  %v10890_v35 = vcombine.low %v13573_v31, %v13577_v36  ;;  %v10891_v6 = vcombine.low %v13598_v20, %v13612_v27  ;;  %v10892_v63 = vcombine.low %v13628_v7, %v13642_v26  ;;  %v286_v39 = vld [vmem:[#allocation2 + $0xc0] sm:$0x1] }
  0xa9   : > { %v1343_v9 = vrot.slane %v1342_v2, 4  ;;  %v10893_v14 = vcombine.low %v13656_v61, %v13670_v17  ;;  %v10894_v59 = vcombine.low %v13684_v49, %v13695_v4  ;;  %v287_v31 = vsel %vm13304_vm5, 0, %v286_v39  ;;  %v378_v2 = vld [vmem:[%s13347_s27 + $0xf0] sm:$0xff] }
  0xaa   : > { %288 = vst [vmem:[#allocation2 + $0xc0] sm:$0x1] %v287_v31  ;;  %v11605_v20 = vpack.c.bf16 %v378_v2, %v378_v2  ;;  %v1958_v61 = vrot.slane %v13784_v53, 5  ;;  %v10896_v53 = vcombine.low %v13745_v1, %v13756_v16  ;;  %v1965_v1 = vrot.slane %v13789_v24, 5 }
  0xab   : > { %v1348_v13 = vsel %vm13377_vm13, %v1343_v9, %v1347_v60  ;;  %v379_v60 = vld [vmem:[%s13347_s27 + $0xf8] sm:$0xff]  ;;  %v10897_v39 = vcombine.low %v13764_v29, %v13768_v38 }
  0xac   : > { %v10865_v23 = vcombine.low %v1338_v8, %v1348_v13  ;;  %v11606_v8 = vpack.c.bf16 %v379_v60, %v379_v60  ;;  %v734_v7 = vshrl.u32 %v11605_v20, 16  ;;  %v737_v18 = vshll.u32 %v11605_v20, 16  ;;  %v13185_v20 = vld [vmem:[#allocation2 + $0x20] sm:$0x1] }
  0xad   : > { %v1960_v10 = vrot.slane %v1958_v61, 4  ;;  %v1967_v2 = vrot.slane %v1965_v1, 4 }
  0xae   : > { %11976 = vmatmul.mubr.msk.bf16.gmra.mrb[28].mxu0 %vm1399_vm12, %v10865_v23  ;;  %v742_v9 = vshrl.u32 %v11606_v8, 16  ;;  %v736_v13 = vrot.slane %v734_v7, 7  ;;  %v745_v49 = vshll.u32 %v11606_v8, 16  ;;  %v10895_v23 = vcombine.low %v13720_v54, %v13726_v40 }
  0xaf   : > { %11981 = vmatprep.mubr.msk.bf16.mxu0 %vm1399_vm12, %v10882_v22  ;;  %v1975_v8 = vrot.slane %v13185_v20, 5 }
  0xb0   : > { %v13846_v22 = vrot.slane %v742_v9, 7  ;;  %v740_v19 = vrot.slane %v736_v13, 4  ;;  %v1979_v9 = vrot.slane %v13808_v43, 5 }
  0xb1   : > { %v906_v41 = vld [vmem:[#allocation2 + $0xc0] sm:$0xf] }
  0xb6   : > { %11982 = vmatmul.mubr.msk.bf16.vlgmr.msra.gmra.mrb[0].mxu0 %vm1399_vm12, %v10883_v25  ;;  %v739_v25 = vor.u32 %v737_v18, %v736_v13  ;;  %v1908_v13 = vld [vmem:[#allocation2 + $0x24] sm:$0xe]  ;;  %v1986_v18 = vrot.slane %v13811_v48, 5 }
  0xb7   : > { %12014 = vmatpush3.bf16.msra.mxu0 %v2167_v34  ;;  %11985 = vmatprep.mubr.msk.bf16.mxu0 %vm1399_vm12, %v10884_v32  ;;  %v747_v32 = vor.u32 %v745_v49, %v13846_v22  ;;  %v1961_v34 = vrot.slane %v13183_v33, 5  ;;  %v1909_v49 = vld [vmem:[#allocation2 + $0x30] sm:$0xe] }
  0xb8   : > { %13072 = vmatprep.subr.msk.bf16.mxu0 %vm1448_vm0, %v13802_v37  ;;  %v907_v54 = vsel %vm13366_vm10, %v739_v25, %v906_v41  ;;  %v10917_v25 = vrot.slane %v1908_v13, 9  ;;  %v10918_v43 = vrot.slane %v1909_v49, 9  ;;  %v13187_v41 = vld [vmem:[#allocation2 + $0x38] sm:$0x1]  ;;  %v2014_v13 = vrot.slane %v13577_v36, 5 }
  0xb9   : > { %908 = vst [vmem:[#allocation2 + $0xc0] sm:$0xf] %v907_v54 }
  0xba   : > { %v1980_v48 = vsel %vm13857_vm2, %v10917_v25, %v1979_v9  ;;  %v1987_v54 = vsel %vm13857_vm2, %v10918_v43, %v1986_v18  ;;  %v2017_v43 = vrot.slane %v13583_v46, 5  ;;  %v2028_v46 = vrot.slane %v13642_v26, 5 }
  0xbe   : > { %11986 = vmatmul.mubr.msk.bf16.gmra.mrb[4].mxu0 %vm1399_vm12, %v10885_v44  ;;  %v10914_v44 = vrot.slane %v1905_v12, 9 }
  0xbf   : > { %11989 = vmatprep.mubr.msk.bf16.mxu0 %vm1399_vm12, %v10886_v50  ;;  %v748_v50 = vsel %vm13371_vm11, %v740_v19, %v747_v32  ;;  %v1981_v19 = vrot.slane %v1979_v9, 4  ;;  %v13186_v32 = vld [vmem:[#allocation2 + $0x2c] sm:$0x1] }
  0xc0   : > { %909 = vst.msk [vmem:[#allocation2 + $0xc4] sm:$0xf] %vm226_vm1, %v748_v50  ;;  %v1982_v33 = vrot.slane %v13186_v32, 5  ;;  %v1993_v50 = vrot.slane %v13816_v56, 5 }
  0xc6   : > { %11990 = vmatmul.mubr.msk.bf16.gmra.mrb[8].mxu0 %vm1399_vm12, %v10887_v57  ;;  %v1959_v57 = vsel %vm13857_vm2, %v10914_v44, %v1958_v61  ;;  %v1989_v44 = vrot.slane %v13187_v41, 5  ;;  %v2021_v41 = vrot.slane %v13612_v27, 5  ;;  %v2031_v27 = vrot.slane %v13644_v28, 5 }
  0xc7   : > { %11993 = vmatprep.mubr.msk.bf16.mxu0 %vm1399_vm12, %v10888_v62  ;;  %v1962_v62 = vsel %vm13857_vm2, %v1960_v10, %v1961_v34  ;;  %v2525_v34 = vsel %vm1448_vm0, %v13802_v37, 0  ;;  %v13889_v10 = vld [vmem:[%s16761_s1 + $0x10] sm:$0xf]  ;;  %v1983_v37 = vsel %vm13857_vm2, %v1981_v19, %v1982_v33  ;;  %v13192_v19 = vld [vmem:[#allocation2 + $0x5c] sm:$0x1]  ;;  %v2042_v28 = vrot.slane %v13695_v4, 5 }
  0xc8   : > { %v2010_v32 = vrot.slane %v13192_v19, 5 }
  0xce   : > { %11994 = vmatmul.mubr.msk.bf16.gmra.mrb[12].mxu0 %vm1399_vm12, %v10889_v45  ;;  %v1906_v45 = vld [vmem:[#allocation2 + $0xc] sm:$0xe] }
  0xcf   : > { %11997 = vmatprep.mubr.msk.bf16.mxu0 %vm1399_vm12, %v10890_v35  ;;  %v1907_v35 = vld [vmem:[#allocation2 + $0x18] sm:$0xe]  ;;  %v10915_v31 = vrot.slane %v1906_v45, 9 }
  0xd0   : > { %v10916_v60 = vrot.slane %v1907_v35, 9  ;;  %v1911_v35 = vld [vmem:[#allocation2 + $0x48] sm:$0xe] }
  0xd1   : > { %v1966_v7 = vsel %vm13857_vm2, %v10915_v31, %v1965_v1  ;;  %v10920_v56 = vrot.slane %v1911_v35, 9 }
  0xd6   : > { %11998 = vmatmul.mubr.msk.bf16.gmra.mrb[16].mxu0 %vm1399_vm12, %v10891_v6  ;;  %v1972_v6 = vrot.slane %v13792_v30, 5 }
  0xd7   : > { %12001 = vmatprep.mubr.msk.bf16.mxu0 %vm1399_vm12, %v10892_v63  ;;  %v13184_v63 = vld [vmem:[#allocation2 + $0x14] sm:$0x1] }
  0xd8   : > { %v1974_v24 = vrot.slane %v1972_v6, 4  ;;  %v1973_v29 = vsel %vm13857_vm2, %v10916_v60, %v1972_v6  ;;  %v10934_v6 = vcombine.low %v1980_v48, %v1983_v37  ;;  %v13190_v60 = vld [vmem:[#allocation2 + $0x50] sm:$0x1]  ;;  %v1914_v37 = vld [vmem:[#allocation2 + $0x6c] sm:$0xe] }
  0xda   : > { %v1976_v61 = vsel %vm13857_vm2, %v1974_v24, %v1975_v8  ;;  %v2003_v24 = vrot.slane %v13190_v60, 5 }
  0xdb   : > { %v10933_v12 = vcombine.low %v1973_v29, %v1976_v61  ;;  %v1912_v61 = vld [vmem:[#allocation2 + $0x54] sm:$0xe] }
  0xde   : > { %12002 = vmatmul.mubr.msk.bf16.gmra.mrb[20].mxu0 %vm1399_vm12, %v10893_v14  ;;  %v1968_v14 = vrot.slane %v13184_v63, 5 }
  0xdf   : > { %12005 = vmatprep.mubr.msk.bf16.mxu0 %vm1399_vm12, %v10894_v59  ;;  %v10931_v59 = vcombine.low %v1959_v57, %v1962_v62  ;;  %v1910_v57 = vld [vmem:[#allocation2 + $0x3c] sm:$0xe]  ;;  %v13188_v62 = vld [vmem:[#allocation2 + $0x4c] sm:$0xf] }
  0xe0   : > { %v1969_v30 = vsel %vm13857_vm2, %v1967_v2, %v1968_v14  ;;  %v2000_v45 = vrot.slane %v13188_v62, 5  ;;  %v10919_v14 = vrot.slane %v1910_v57, 9  ;;  %v10923_v57 = vrot.slane %v1914_v37, 9  ;;  %v342_v37 = vld [vmem:[#allocation2 + $0xc8] sm:$0x1] }
  0xe1   : > { %v2023_v62 = vrot.slane %v2021_v41, 4 }
  0xe2   : > { %v2002_v2 = vrot.slane %v2000_v45, 4  ;;  %v1994_v20 = vsel %vm13857_vm2, %v10919_v14, %v1993_v50  ;;  %v2001_v9 = vsel %vm13857_vm2, %v10920_v56, %v2000_v45  ;;  %v2024_v45 = vrot.slane %v13617_v42, 5 }
  0xe3   : > { %v2035_v14 = vrot.slane %v13670_v17, 5  ;;  %v2045_v17 = vrot.slane %v13697_v0, 5  ;;  %v2056_v0 = vrot.slane %v13756_v16, 5 }
  0xe4   : > { %v2004_v29 = vsel %vm13857_vm2, %v2002_v2, %v2003_v24  ;;  %v2025_v26 = vsel %vm13857_vm2, %v2023_v62, %v2024_v45  ;;  %v13098_v62 = vld [vmem:[#allocation2 + $0x18] sm:$0xff]  }
  0xe5   : > { %v2037_v24 = vrot.slane %v2035_v14, 4 }
  0xe6   : > { %12006 = vmatmul.mubr.msk.bf16.gmra.mrb[24].mxu0 %vm1399_vm12, %v10895_v23  ;;  %v10932_v23 = vcombine.low %v1966_v7, %v1969_v30  ;;  %v13191_v7 = vld [vmem:[#allocation2 + $0x58] sm:$0xf] }
  0xe7   : > { %12009 = vmatprep.mubr.msk.bf16.mxu0 %vm1399_vm12, %v10896_v53  ;;  %v1988_v53 = vrot.slane %v1986_v18, 4  ;;  %v2007_v30 = vrot.slane %v13191_v7, 5  ;;  %v1913_v18 = vld [vmem:[#allocation2 + $0x60] sm:$0xe]  ;;  %v2044_v7 = vrot.slane %v2042_v28, 4 }
  0xe8   : > { %v10922_v33 = vrot.slane %v1913_v18, 9 }
  0xe9   : > { %v1990_v1 = vsel %vm13857_vm2, %v1988_v53, %v1989_v44  ;;  %v2009_v25 = vrot.slane %v2007_v30, 4 }
  0xea   : > { %v10935_v63 = vcombine.low %v1987_v54, %v1990_v1  ;;  %v2015_v44 = vsel %vm13857_vm2, %v10922_v33, %v2014_v13 }
  0xeb   : > { %v2011_v36 = vsel %vm13857_vm2, %v2009_v25, %v2010_v32  ;;  %v2052_v25 = vrot.slane %v13728_v55, 5  ;;  %v2058_v32 = vrot.slane %v2056_v0, 4 }
  0xee   : > { %12010 = vmatmul.mubr.msk.bf16.gmra.mrb[28].mxu0 %vm1399_vm12, %v10897_v39  ;;  %v1995_v39 = vrot.slane %v1993_v50, 4  ;;  %v1915_v50 = vld [vmem:[#allocation2 + $0x78] sm:$0xe] }
  0xef   : > { %12015 = vmatprep.mubr.msk.bf16.mxu0 %vm1399_vm12, %v10931_v59  ;;  %v13189_v59 = vld [vmem:[#allocation2 + $0x44] sm:$0x1]  ;;  %v10924_v35 = vrot.slane %v1915_v50, 9  ;;  %v343_v50 = vsel %vm13315_vm6, 0, %v342_v37 }
  0xf0   : > { %v1996_v31 = vrot.slane %v13189_v59, 5  ;;  %v1916_v59 = vld [vmem:[#allocation2 + $0x84] sm:$0xe]  ;;  %344 = vst [vmem:[#allocation2 + $0xc8] sm:$0x1] %v343_v50 }
  0xf1   : > { %v10925_v60 = vrot.slane %v1916_v59, 9  ;;  %v14000_v59 = vld [vmem:[#allocation2 + $0x10] sm:$0xf] }
  0xf2   : > { %v1997_v8 = vsel %vm13857_vm2, %v1995_v39, %v1996_v31  ;;  %v2029_v39 = vsel %vm13857_vm2, %v10924_v35, %v2028_v46  ;;  %v1917_v31 = vld [vmem:[#allocation2 + $0x90] sm:$0xe]  ;;  %v13099_v35 = vld [vmem:[#allocation2 + $0x24] sm:$0xff]  }
  0xf3   : > { %v10936_v49 = vcombine.low %v1994_v20, %v1997_v8  ;;  %v2038_v20 = vrot.slane %v13674_v21, 5  ;;  %v10926_v8 = vrot.slane %v1917_v31, 9  ;;  %v2046_v21 = vsel %vm13857_vm2, %v2044_v7, %v2045_v17 }
  0xf5   : > { %v2039_v4 = vsel %vm13857_vm2, %v2037_v24, %v2038_v20  ;;  %v2782_v24 = vshrl.u32 %v14000_v59, 16  ;;  %v2723_v20 = vld [vmem:[#allocation2 + $0x18] sm:$0xf] }
  0xf6   : > { %12016 = vmatmul.mubr.msk.bf16.vlgmr.msra.gmra.mrb[0].mxu0 %vm1399_vm12, %v10932_v23  ;;  %v10937_v23 = vcombine.low %v2001_v9, %v2004_v29  ;;  %v2049_v9 = vrot.slane %v13726_v40, 5  ;;  %v2043_v29 = vsel %vm13857_vm2, %v10926_v8, %v2042_v28  ;;  %v2059_v40 = vrot.slane %v13759_v11, 5  ;;  %v13106_v28 = vld [vmem:[#allocation2 + $0x78] sm:$0xff]  }
  0xf7   : > { %12048 = vmatpush3.bf16.msra.mxu0 %v2525_v34  ;;  %12019 = vmatprep.mubr.msk.bf16.mxu0 %vm1399_vm12, %v10933_v12  ;;  %v10921_v12 = vrot.slane %v1912_v61, 9  ;;  %v2016_v34 = vrot.slane %v2014_v13, 4  ;;  %v1918_v61 = vld [vmem:[#allocation2 + $0x9c] sm:$0xe]  ;;  %v1919_v13 = vld [vmem:[#allocation2 + $0xa8] sm:$0xe] }
  0xf8   : > { %13073 = vmatprep.subr.msk.bf16.mxu0 %vm1448_vm0, %v13889_v10  ;;  %v10928_v19 = vrot.slane %v1919_v13, 9  ;;  %v2060_v55 = vsel %vm13857_vm2, %v2058_v32, %v2059_v40  ;;  %v14004_v8 = vld [vmem:[#allocation2 + $0x1c] sm:$0xf]  ;;  %v2726_v13 = vld [vmem:[#allocation2 + $0x24] sm:$0xf] }
  0xf9   : > { %v2008_v53 = vsel %vm13857_vm2, %v10921_v12, %v2007_v30  ;;  %v2018_v48 = vsel %vm13857_vm2, %v2016_v34, %v2017_v43  ;;  %v2036_v30 = vsel %vm13857_vm2, %v10925_v60, %v2035_v14  ;;  %v2051_v12 = vrot.slane %v2049_v9, 4  ;;  %v13104_v14 = vld [vmem:[#allocation2 + $0x60] sm:$0xff]  }
  0xfa   : > { %v10938_v54 = vcombine.low %v2008_v53, %v2011_v36  ;;  %v10939_v1 = vcombine.low %v2015_v44, %v2018_v48  ;;  %v10942_v18 = vcombine.low %v2036_v30, %v2039_v4  ;;  %v2063_v34 = vrot.slane %v13768_v38, 5  ;;  %v1920_v53 = vld [vmem:[#allocation2 + $0xb4] sm:$0xe] }
  0xfb   : > { %v2053_v16 = vsel %vm13857_vm2, %v2051_v12, %v2052_v25  ;;  %v2057_v43 = vsel %vm13857_vm2, %v10928_v19, %v2056_v0  ;;  %v2066_v48 = vrot.slane %v13772_v47, 5  ;;  %v749_v47 = vrot.slane %v13846_v22, 4  ;;  %v13100_v22 = vld [vmem:[#allocation2 + $0x30] sm:$0xff]   ;;  %v13109_v19 = vld [vmem:[#allocation2 + $0x9c] sm:$0xff]  }
  0xfc   : > { %v10945_v36 = vcombine.low %v2057_v43, %v2060_v55  ;;  %v2065_v44 = vrot.slane %v2063_v34, 4  ;;  %v2778_v60 = vshll.u32 %v14000_v59, 16  ;;  %v2793_v30 = vshrl.u32 %v2723_v20, 16 }
  0xfd   : > { %v2796_v4 = vshll.u32 %v2723_v20, 16  ;;  %v2806_v0 = vshrl.u32 %v14004_v8, 16  ;;  %v2817_v43 = vshrl.u32 %v2726_v13, 16  ;;  %v2820_v55 = vshll.u32 %v2726_v13, 16  ;;  %v2735_v20 = vld [vmem:[#allocation2 + $0x48] sm:$0xf] }
  0xfe   : > { %12020 = vmatmul.mubr.msk.bf16.gmra.mrb[4].mxu0 %vm1399_vm12, %v10934_v6  ;;  %v2030_v6 = vrot.slane %v2028_v46, 4  ;;  %v2067_v46 = vsel %vm13857_vm2, %v2065_v44, %v2066_v48  ;;  %v2795_v12 = vrot.slane %v2793_v30, 4  ;;  %v2729_v44 = vld [vmem:[#allocation2 + $0x30] sm:$0xf]  ;;  %v14026_v48 = vld [vmem:[#allocation2 + $0x34] sm:$0xf] }
  0xff   : > { %12023 = vmatprep.mubr.msk.bf16.mxu0 %vm1399_vm12, %v10935_v63  ;;  %v2022_v63 = vsel %vm13857_vm2, %v10923_v57, %v2021_v41  ;;  %v10929_v41 = vrot.slane %v1920_v53, 9  ;;  %v910_v57 = vld [vmem:[#allocation2 + $0xc8] sm:$0x1]  ;;  %v2798_v25 = vrot.slane %v2796_v4, 5 }
 0x100   : > { %v2032_v42 = vsel %vm13857_vm2, %v2030_v6, %v2031_v27  ;;  %v10940_v56 = vcombine.low %v2022_v63, %v2025_v26  ;;  %v911_v45 = vsel %vm13304_vm5, %v749_v47, %v910_v57  ;;  %v3251_v6 = vsel %vm1448_vm0, %v13889_v10, 0  ;;  %v13988_v27 = vld [vmem:[%s16761_s1 + $0x14] sm:$0xf]  ;;  %v13101_v63 = vld [vmem:[#allocation2 + $0x3c] sm:$0xff]   ;;  %v13102_v10 = vld [vmem:[#allocation2 + $0x48] sm:$0xff]  }
 0x101   : > { %v10941_v2 = vcombine.low %v2029_v39, %v2032_v42  ;;  %v2064_v38 = vsel %vm13857_vm2, %v10929_v41, %v2063_v34  ;;  %912 = vst [vmem:[#allocation2 + $0xc8] sm:$0x1] %v911_v45  ;;  %v13103_v26 = vld [vmem:[#allocation2 + $0x54] sm:$0xff]   ;;  %v13105_v39 = vld [vmem:[#allocation2 + $0x6c] sm:$0xff]   ;;  %v2808_v34 = vrot.slane %v2806_v0, 4  ;;  %v2822_v47 = vrot.slane %v2820_v55, 5 }
 0x102   : > { %v2720_v42 = vld [vmem:[#allocation2 + $0xc] sm:$0xf]  ;;  %v14032_v45 = vld [vmem:[#allocation2 + $0x40] sm:$0xf] }
 0x103   : > { %v2769_v31 = vshrl.u32 %v2720_v42, 16 }
 0x105   : > { %v2771_v7 = vrot.slane %v2769_v31, 4  ;;  %v13111_v31 = vld [vmem:[#allocation2 + $0xb4] sm:$0xff]  }
 0x106   : > { %12024 = vmatmul.mubr.msk.bf16.gmra.mrb[8].mxu0 %vm1399_vm12, %v10936_v49  ;;  %v10943_v49 = vcombine.low %v2043_v29, %v2046_v21  ;;  %v14010_v29 = vrot.slane %v2778_v60, 5  ;;  %v2784_v21 = vrot.slane %v2782_v24, 4  ;;  %v2874_v60 = vshll.u32 %v14032_v45, 16 }
 0x107   : > { %12027 = vmatprep.mubr.msk.bf16.mxu0 %vm1399_vm12, %v10937_v23  ;;  %v10927_v23 = vrot.slane %v1918_v61, 9  ;;  %v2802_v61 = vshll.u32 %v14004_v8, 16  ;;  %v2878_v24 = vshrl.u32 %v14032_v45, 16 }
 0x108   : > { %v2785_v40 = vor.u32 %v2784_v21, %v14010_v29 }
 0x109   : > { %v2050_v33 = vsel %vm13857_vm2, %v10927_v23, %v2049_v9  ;;  %v14008_v9 = vld [vmem:[#allocation2 + $0x14] sm:$0x1] }
 0x10a   : > { %v10944_v11 = vcombine.low %v2050_v33, %v2053_v16  ;;  %v2788_v23 = vshll.u32 %v14008_v9, 16  ;;  %v14018_v33 = vld [vmem:[#allocation2 + $0x20] sm:$0x1]  ;;  %v14020_v16 = vrot.slane %v2802_v61, 5 }
 0x10b   : > { %v2812_v41 = vshll.u32 %v14018_v33, 16 }
 0x10c   : > { %v2809_v50 = vor.u32 %v2808_v34, %v14020_v16  ;;  %v14058_v34 = vrot.slane %v2874_v60, 5 }
 0x10e   : > { %12028 = vmatmul.mubr.msk.bf16.gmra.mrb[12].mxu0 %vm1399_vm12, %v10938_v54  ;;  %v10946_v54 = vcombine.low %v2064_v38, %v2067_v46  ;;  %v2786_v38 = vrot.slane %v2785_v40, 4  ;;  %v2790_v46 = vrot.slane %v2788_v23, 5  ;;  %v14056_v40 = vld [vmem:[#allocation2 + $0x44] sm:$0x1] }
 0x10f   : > { %12031 = vmatprep.mubr.msk.bf16.mxu0 %vm1399_vm12, %v10939_v1  ;;  %v13097_v1 = vld [vmem:[#allocation2 + $0xc] sm:$0xff]  }
 0x116   : > { %12032 = vmatmul.mubr.msk.bf16.gmra.mrb[16].mxu0 %vm1399_vm12, %v10940_v56  ;;  %v2772_v56 = vshll.u32 %v2720_v42, 16 }
 0x117   : > { %12035 = vmatprep.mubr.msk.bf16.mxu0 %vm1399_vm12, %v10941_v2  ;;  %v13107_v2 = vld [vmem:[#allocation2 + $0x84] sm:$0xff]  }
 0x118   : > { %v2774_v17 = vrot.slane %v2772_v56, 5 }
 0x11a   : > { %v2775_v32 = vor.u32 %v2774_v17, %v2771_v7  ;;  %v2810_v7 = vrot.slane %v2809_v50, 4  ;;  %v13112_v50 = vld [vmem:[#allocation2 + $0xc0] sm:$0xff]  }
 0x11c   : > { %v2776_v37 = vrot.slane %v2775_v32, 4 }
 0x11e   : > { %12036 = vmatmul.mubr.msk.bf16.gmra.mrb[20].mxu0 %vm1399_vm12, %v10942_v18  ;;  %v14014_v18 = vld [vmem:[#allocation2 + $0x28] sm:$0xf]  ;;  %v2781_v56 = vsel %vm13377_vm13, %v2776_v37, %v14010_v29  ;;  %v14050_v29 = vld [vmem:[#allocation2 + $0x38] sm:$0x1] }
 0x11f   : > { %12039 = vmatprep.mubr.msk.bf16.mxu0 %vm1399_vm12, %v10943_v49  ;;  %v13108_v49 = vld [vmem:[#allocation2 + $0x90] sm:$0xff]   ;;  %v2826_v53 = vshll.u32 %v14014_v18, 16 }
 0x121   : > { %v14030_v57 = vrot.slane %v2826_v53, 5 }
 0x126   : > { %12040 = vmatmul.mubr.msk.bf16.gmra.mrb[24].mxu0 %vm1399_vm12, %v10944_v11  ;;  %v2830_v11 = vshrl.u32 %v14014_v18, 16 }
 0x127   : > { %12043 = vmatprep.mubr.msk.bf16.mxu0 %vm1399_vm12, %v10945_v36  ;;  %v2799_v36 = vor.u32 %v2798_v25, %v2795_v12  ;;  %v2889_v12 = vshrl.u32 %v2735_v20, 16  ;;  %v2892_v25 = vshll.u32 %v2735_v20, 16 }
 0x12e   : > { %12044 = vmatmul.mubr.msk.bf16.gmra.mrb[28].mxu0 %vm1399_vm12, %v10946_v54  ;;  %v2732_v54 = vld [vmem:[#allocation2 + $0x3c] sm:$0xf] }
 0x12f   : > { %12049 = vmatprep.mubr.msk.bf16.mxu0 %vm1399_vm12, %v13097_v1  ;;  %v2819_v1 = vrot.slane %v2817_v43, 4  ;;  %v2865_v42 = vshrl.u32 %v2732_v54, 16  ;;  %v2880_v43 = vrot.slane %v2878_v24, 4  ;;  %v2741_v24 = vld [vmem:[#allocation2 + $0x60] sm:$0xf] }
 0x131   : > { %v2823_v17 = vor.u32 %v2822_v47, %v2819_v1  ;;  %v2884_v1 = vshll.u32 %v14056_v40, 16  ;;  %v2891_v47 = vrot.slane %v2889_v12, 4  ;;  %v2937_v12 = vshrl.u32 %v2741_v24, 16 }
 0x133   : > { %v2824_v53 = vrot.slane %v2823_v17, 4  ;;  %v2886_v17 = vrot.slane %v2884_v1, 5  ;;  %v2744_v1 = vld [vmem:[#allocation2 + $0x6c] sm:$0xf] }
 0x136   : > { %12050 = vmatmul.mubr.msk.bf16.vlgmr.msra.gmra.mrb[0].mxu0 %vm1399_vm12, %v13098_v62  ;;  %v2832_v62 = vrot.slane %v2830_v11, 4 }
 0x137   : > { %12082 = vmatpush3.bf16.msra.mxu0 %v3251_v6  ;;  %12053 = vmatprep.mubr.msk.bf16.mxu0 %vm1399_vm12, %v13099_v35  ;;  %v14034_v35 = vld [vmem:[#allocation2 + $0x2c] sm:$0x1]  ;;  %v2841_v6 = vshrl.u32 %v2729_v44, 16 }
 0x138   : > { %13074 = vmatprep.subr.msk.bf16.mxu0 %vm1448_vm0, %v13988_v27  ;;  %v2833_v30 = vor.u32 %v2832_v62, %v14030_v57  ;;  %v2836_v4 = vshll.u32 %v14034_v35, 16  ;;  %v2894_v62 = vrot.slane %v2892_v25, 5  ;;  %v2940_v25 = vshll.u32 %v2741_v24, 16 }
 0x139   : > { %v2843_v21 = vrot.slane %v2841_v6, 4  ;;  %v14071_v6 = vld [vmem:[#allocation2 + $0x58] sm:$0xf] }
 0x13a   : > { %v2834_v11 = vrot.slane %v2833_v30, 4  ;;  %v2926_v60 = vshrl.u32 %v14071_v6, 16  ;;  %v14086_v30 = vld [vmem:[#allocation2 + $0x64] sm:$0xf] }
 0x13e   : > { %12054 = vmatmul.mubr.msk.bf16.gmra.mrb[4].mxu0 %vm1399_vm12, %v13100_v22  ;;  %v2844_v22 = vshll.u32 %v2729_v44, 16  ;;  %v14066_v44 = vsel %vm1448_vm0, %v13988_v27, 0 }
 0x13f   : > { %12057 = vmatprep.mubr.msk.bf16.mxu0 %vm1399_vm12, %v13101_v63  ;;  %v2850_v63 = vshll.u32 %v14026_v48, 16 }
 0x140   : > { %v2846_v61 = vrot.slane %v2844_v22, 5 }
 0x141   : > { %v14047_v0 = vrot.slane %v2850_v63, 5  ;;  %v2881_v63 = vor.u32 %v2880_v43, %v14058_v34 }
 0x142   : > { %v2847_v37 = vor.u32 %v2846_v61, %v2843_v21 }
 0x146   : > { %12058 = vmatmul.mubr.msk.bf16.gmra.mrb[8].mxu0 %vm1399_vm12, %v13102_v10  ;;  %v2854_v10 = vshrl.u32 %v14026_v48, 16 }
 0x147   : > { %12061 = vmatprep.mubr.msk.bf16.mxu0 %vm1399_vm12, %v13103_v26  ;;  %v13110_v26 = vld [vmem:[#allocation2 + $0xa8] sm:$0xff]  }
 0x148   : > { %v2856_v13 = vrot.slane %v2854_v10, 4 }
 0x14e   : > { %12062 = vmatmul.mubr.msk.bf16.gmra.mrb[12].mxu0 %vm1399_vm12, %v13104_v14  ;;  %v2800_v14 = vrot.slane %v2799_v36, 4  ;;  %v2838_v36 = vrot.slane %v2836_v4, 5  ;;  %v2882_v4 = vrot.slane %v2881_v63, 4  ;;  %v2939_v63 = vrot.slane %v2937_v12, 4 }
 0x14f   : > { %12065 = vmatprep.mubr.msk.bf16.mxu0 %vm1399_vm12, %v13105_v39  ;;  %v2814_v39 = vrot.slane %v2812_v41, 5  ;;  %v14062_v41 = vld [vmem:[#allocation2 + $0x4c] sm:$0xf] }
 0x150   : > { %v2805_v32 = vsel %vm13377_vm13, %v2800_v14, %v14020_v16  ;;  %v2857_v16 = vor.u32 %v2856_v13, %v14047_v0  ;;  %v2898_v27 = vshll.u32 %v14062_v41, 16  ;;  %v2902_v10 = vshrl.u32 %v14062_v41, 16 }
 0x151   : > { %v2815_v55 = vsel %vm13377_vm13, %v2810_v7, %v2814_v39  ;;  %v2839_v14 = vsel %vm13377_vm13, %v2834_v11, %v2838_v36  ;;  %v14081_v39 = vld [vmem:[#allocation2 + $0x50] sm:$0x1]  ;;  %v2950_v11 = vshrl.u32 %v14086_v30, 16 }
 0x152   : > { %v10998_v22 = vcombine.low %v2805_v32, %v2815_v55  ;;  %v2858_v20 = vrot.slane %v2857_v16, 4  ;;  %v14089_v21 = vrot.slane %v2898_v27, 5  ;;  %v2904_v61 = vrot.slane %v2902_v10, 4  ;;  %v14092_v32 = vld [vmem:[#allocation2 + $0x5c] sm:$0x1] }
 0x153   : > { %v2908_v13 = vshll.u32 %v14081_v39, 16  ;;  %v2928_v55 = vrot.slane %v2926_v60, 4  ;;  %v2942_v27 = vrot.slane %v2940_v25, 5  ;;  %v2747_v10 = vld [vmem:[#allocation2 + $0x78] sm:$0xf]  ;;  %v2964_v60 = vshll.u32 %v2744_v1, 16 }
 0x155   : > { %v2943_v12 = vor.u32 %v2942_v27, %v2939_v63  ;;  %v14154_v27 = vld [vmem:[#allocation2 + $0x88] sm:$0xf] }
 0x156   : > { %12066 = vmatmul.mubr.msk.bf16.gmra.mrb[16].mxu0 %vm1399_vm12, %v13106_v28  ;;  %v2868_v28 = vshll.u32 %v2732_v54, 16 }
 0x157   : > { %12069 = vmatprep.mubr.msk.bf16.mxu0 %vm1399_vm12, %v13107_v2  ;;  %v2791_v2 = vsel %vm13377_vm13, %v2786_v38, %v2790_v46  ;;  %v2860_v38 = vshll.u32 %v14050_v29, 16  ;;  %v2738_v46 = vld [vmem:[#allocation2 + $0x54] sm:$0xf] }
 0x158   : > { %v2870_v23 = vrot.slane %v2868_v28, 5  ;;  %v2916_v28 = vshll.u32 %v2738_v46, 16 }
 0x15e   : > { %12070 = vmatmul.mubr.msk.bf16.gmra.mrb[20].mxu0 %vm1399_vm12, %v13108_v49  ;;  %v2867_v49 = vrot.slane %v2865_v42, 4  ;;  %v2913_v42 = vshrl.u32 %v2738_v46, 16 }
 0x15f   : > { %12073 = vmatprep.mubr.msk.bf16.mxu0 %vm1399_vm12, %v13109_v19  ;;  %v10997_v19 = vcombine.low %v2781_v56, %v2791_v2  ;;  %v2862_v56 = vrot.slane %v2860_v38, 5  ;;  %v2922_v2 = vshll.u32 %v14071_v6, 16  ;;  %v2887_v38 = vsel %vm13377_vm13, %v2882_v4, %v2886_v17 }
 0x160   : > { %v2871_v54 = vor.u32 %v2870_v23, %v2867_v49  ;;  %v2915_v49 = vrot.slane %v2913_v42, 4  ;;  %v2918_v23 = vrot.slane %v2916_v28, 5  ;;  %v2952_v42 = vrot.slane %v2950_v11, 4  ;;  %v14119_v28 = vld [vmem:[#allocation2 + $0x7c] sm:$0xf] }
 0x161   : > { %v14094_v43 = vrot.slane %v2922_v2, 5  ;;  %v2961_v2 = vshrl.u32 %v2744_v1, 16  ;;  %v2988_v4 = vshll.u32 %v2747_v10, 16 }
 0x162   : > { %v2872_v7 = vrot.slane %v2871_v54, 4  ;;  %v14111_v54 = vrot.slane %v2908_v13, 5 }
 0x163   : > { %v2963_v11 = vrot.slane %v2961_v2, 4  ;;  %v2944_v2 = vrot.slane %v2943_v12, 4 }
 0x164   : > { %v2877_v16 = vsel %vm13377_vm13, %v2872_v7, %v14058_v34  ;;  %v2929_v34 = vor.u32 %v2928_v55, %v14094_v43  ;;  %v2750_v55 = vld [vmem:[#allocation2 + $0x84] sm:$0xf] }
 0x165   : > { %v11001_v7 = vcombine.low %v2877_v16, %v2887_v38 }
 0x166   : > { %12074 = vmatmul.mubr.msk.bf16.gmra.mrb[24].mxu0 %vm1399_vm12, %v13110_v26  ;;  %v2829_v26 = vsel %vm13377_vm13, %v2824_v53, %v14030_v57  ;;  %v2895_v57 = vor.u32 %v2894_v62, %v2891_v47  ;;  %v2946_v53 = vshll.u32 %v14086_v30, 16  ;;  %v14113_v47 = vld [vmem:[#allocation2 + $0x70] sm:$0xf]  ;;  %v2932_v62 = vshll.u32 %v14092_v32, 16 }
 0x167   : > { %12077 = vmatprep.mubr.msk.bf16.mxu0 %vm1399_vm12, %v13111_v31  ;;  %v2848_v31 = vrot.slane %v2847_v37, 4  ;;  %v2863_v37 = vsel %vm13377_vm13, %v2858_v20, %v2862_v56  ;;  %v14127_v56 = vld [vmem:[#allocation2 + $0x68] sm:$0x1]  ;;  %v2970_v24 = vshll.u32 %v14113_v47, 16  ;;  %v2974_v20 = vshrl.u32 %v14113_v47, 16 }
 0x168   : > { %v14108_v46 = vrot.slane %v2895_v57, 4  ;;  %v2985_v57 = vshrl.u32 %v2747_v10, 16  ;;  %v2934_v13 = vrot.slane %v2932_v62, 5  ;;  %v3009_v10 = vshrl.u32 %v2750_v55, 16 }
 0x169   : > { %v2853_v36 = vsel %vm13377_vm13, %v2848_v31, %v14047_v0  ;;  %v2919_v0 = vor.u32 %v2918_v23, %v2915_v49  ;;  %v14124_v31 = vld [vmem:[%s16761_s1 + $0x18] sm:$0xf]  ;;  %v2998_v49 = vshrl.u32 %v14119_v28, 16  ;;  %v2930_v23 = vrot.slane %v2929_v34, 4 }
 0x16a   : > { %v2901_v16 = vsel %vm13377_vm13, %v14108_v46, %v14089_v21  ;;  %v2987_v1 = vrot.slane %v2985_v57, 4  ;;  %v3012_v34 = vshll.u32 %v2750_v55, 16  ;;  %v3018_v57 = vshll.u32 %v14154_v27, 16 }
 0x16b   : > { %v3000_v63 = vrot.slane %v2998_v49, 4  ;;  %v2753_v49 = vld [vmem:[#allocation2 + $0x90] sm:$0xf] }
 0x16e   : > { %12078 = vmatmul.mubr.msk.bf16.gmra.mrb[28].mxu0 %vm1399_vm12, %v13112_v50  ;;  %v2905_v50 = vor.u32 %v2904_v61, %v14089_v21  ;;  %v2920_v61 = vrot.slane %v2919_v0, 4  ;;  %v2990_v0 = vrot.slane %v2988_v4, 5  ;;  %v2935_v21 = vsel %vm13377_vm13, %v2930_v23, %v2934_v13 }
 0x16f   : > { %12083 = vmatprep.mubr.msk.bf16.mxu0 %vm1399_vm12, %v10997_v19  ;;  %v10999_v19 = vcombine.low %v2829_v26, %v2839_v14  ;;  %v11000_v26 = vcombine.low %v2853_v36, %v2863_v37  ;;  %v14117_v14 = vrot.slane %v2946_v53, 5  ;;  %v14139_v53 = vld [vmem:[#allocation2 + $0x74] sm:$0x1]  ;;  %v14141_v36 = vrot.slane %v2970_v24, 5 }
 0x170   : > { %v2906_v17 = vrot.slane %v2905_v50, 4  ;;  %v2976_v37 = vrot.slane %v2974_v20, 4  ;;  %v14150_v50 = vld [vmem:[#allocation2 + $0x80] sm:$0x1]  ;;  %v2991_v4 = vor.u32 %v2990_v0, %v2987_v1  ;;  %v3011_v13 = vrot.slane %v3009_v10, 4 }
 0x171   : > { %v2953_v25 = vor.u32 %v2952_v42, %v14117_v14  ;;  %v2925_v42 = vsel %vm13377_vm13, %v2920_v61, %v14094_v43  ;;  %v3022_v43 = vshrl.u32 %v14154_v27, 16  ;;  %v3033_v0 = vshrl.u32 %v2753_v49, 16 }
 0x172   : > { %v2911_v38 = vsel %vm13377_vm13, %v2906_v17, %v14111_v54  ;;  %v2980_v54 = vshll.u32 %v14139_v53, 16  ;;  %v2977_v20 = vor.u32 %v2976_v37, %v14141_v36  ;;  %v3004_v17 = vshll.u32 %v14150_v50, 16 }
 0x173   : > { %v11003_v23 = vcombine.low %v2925_v42, %v2935_v21  ;;  %v14176_v37 = vrot.slane %v3018_v57, 5  ;;  %v3024_v1 = vrot.slane %v3022_v43, 4  ;;  %v14180_v42 = vld [vmem:[#allocation2 + $0x8c] sm:$0x1] }
 0x174   : > { %v2982_v12 = vrot.slane %v2980_v54, 5  ;;  %v2978_v55 = vrot.slane %v2977_v20, 4  ;;  %v3028_v43 = vshll.u32 %v14180_v42, 16 }
 0x175   : > { %v3025_v57 = vor.u32 %v3024_v1, %v14176_v37  ;;  %v14204_v1 = vld [vmem:[#allocation2 + $0xa4] sm:$0x1] }
 0x176   : > { %12084 = vmatmul.mubr.msk.bf16.vlgmr.msra.gmra.mrb[0].mxu0 %vm1399_vm12, %v10998_v22  ;;  %v2994_v22 = vshll.u32 %v14119_v28, 16  ;;  %16883 = vst [vmem:[#allocation8_spill] sm:$0xff] %v14204_v1 }
 0x177   : > { %12116 = vmatpush3.bf16.msra.mxu0 %v14066_v44  ;;  %12087 = vmatprep.mubr.msk.bf16.mxu0 %vm1399_vm12, %v10999_v19  ;;  %v2956_v44 = vshll.u32 %v14127_v56, 16  ;;  %v2966_v19 = vrot.slane %v2964_v60, 5  ;;  %v2954_v60 = vrot.slane %v2953_v25, 4  ;;  %v2949_v25 = vsel %vm13377_vm13, %v2944_v2, %v14117_v14 }
 0x178   : > { %13075 = vmatprep.subr.msk.bf16.mxu0 %vm1448_vm0, %v14124_v31  ;;  %v14152_v62 = vrot.slane %v2994_v22, 5  ;;  %v3014_v22 = vrot.slane %v3012_v34, 5  ;;  %v3006_v34 = vrot.slane %v3004_v17, 5 }
 0x179   : > { %v2958_v46 = vrot.slane %v2956_v44, 5  ;;  %v2967_v24 = vor.u32 %v2966_v19, %v2963_v11  ;;  %v14174_v11 = vld [vmem:[#allocation2 + $0x94] sm:$0xf]  ;;  %v2756_v19 = vld [vmem:[#allocation2 + $0x9c] sm:$0xf] }
 0x17a   : > { %v3001_v61 = vor.u32 %v3000_v63, %v14152_v62  ;;  %v3036_v63 = vshll.u32 %v2753_v49, 16  ;;  %v3015_v14 = vor.u32 %v3014_v22, %v3011_v13  ;;  %v3042_v21 = vshll.u32 %v14174_v11, 16  ;;  %v14200_v49 = vld [vmem:[#allocation2 + $0x98] sm:$0x1] }
 0x17b   : > { %v2968_v44 = vrot.slane %v2967_v24, 4  ;;  %v3057_v54 = vshrl.u32 %v2756_v19, 16  ;;  %v3060_v2 = vshll.u32 %v2756_v19, 16  ;;  %v2983_v24 = vsel %vm13377_vm13, %v2978_v55, %v2982_v12  ;;  %16882 = vst [vmem:[#allocation7_spill] sm:$0xff] %v14200_v49 }
 0x17c   : > { %v3002_v10 = vrot.slane %v3001_v61, 4  ;;  %v3038_v61 = vrot.slane %v3036_v63, 5  ;;  %v3016_v22 = vrot.slane %v3015_v14, 4 }
 0x17e   : > { %12088 = vmatmul.mubr.msk.bf16.gmra.mrb[4].mxu0 %vm1399_vm12, %v11000_v26  ;;  %v11002_v26 = vcombine.low %v2901_v16, %v2911_v38  ;;  %v14178_v16 = vld [vmem:[#allocation2 + $0xa0] sm:$0xf]  ;;  %v2992_v38 = vrot.slane %v2991_v4, 4  ;;  %v3035_v4 = vrot.slane %v3033_v0, 4 }
 0x17f   : > { %12091 = vmatprep.mubr.msk.bf16.mxu0 %vm1399_vm12, %v11001_v7  ;;  %v2959_v7 = vsel %vm13377_vm13, %v2954_v60, %v2958_v46  ;;  %v3046_v46 = vshrl.u32 %v14174_v11, 16  ;;  %v2973_v60 = vsel %vm13377_vm13, %v2968_v44, %v14141_v36  ;;  %v3066_v20 = vshll.u32 %v14178_v16, 16 }
 0x180   : > { %v3070_v17 = vshrl.u32 %v14178_v16, 16  ;;  %v2997_v13 = vsel %vm13377_vm13, %v2992_v38, %v14152_v62  ;;  %v3007_v36 = vsel %vm13377_vm13, %v3002_v10, %v3006_v34  ;;  %v3062_v44 = vrot.slane %v3060_v2, 5  ;;  %v14209_v34 = vld [vmem:[#allocation2 + $0xac] sm:$0xf]  ;;  %v14213_v2 = vld [vmem:[#allocation2 + $0xb8] sm:$0xf] }
 0x181   : > { %v3048_v12 = vrot.slane %v3046_v46, 4  ;;  %v11004_v55 = vcombine.low %v2949_v25, %v2959_v7  ;;  %v11005_v19 = vcombine.low %v2973_v60, %v2983_v24  ;;  %v14206_v0 = vrot.slane %v3066_v20, 5  ;;  %16884 = vst [vmem:[#allocation9_spill] sm:$0xff] %v14209_v34 }
 0x182   : > { %v3072_v63 = vrot.slane %v3070_v17, 4  ;;  %v3026_v62 = vrot.slane %v3025_v57, 4  ;;  %v3030_v38 = vrot.slane %v3028_v43, 5  ;;  %v3039_v52 = vor.u32 %v3038_v61, %v3035_v4 }
 0x183   : > { %v3052_v10 = vshll.u32 %v14200_v49, 16  ;;  %v11006_v14 = vcombine.low %v2997_v13, %v3007_v36  ;;  %v3076_v25 = vshll.u32 %v14204_v1, 16  ;;  %v3081_v7 = vshrl.u32 %v2759_v58, 16  ;;  %v14229_v49 = vld [vmem:[#allocation2 + $0xc4] sm:$0xf] }
 0x184   : > { %v3073_v60 = vor.u32 %v3072_v63, %v14206_v0  ;;  %v3084_v24 = vshll.u32 %v2759_v58, 16  ;;  %v3090_v20 = vshll.u32 %v14209_v34, 16  ;;  %v3094_v17 = vshrl.u32 %v14209_v34, 16 }
 0x185   : > { %v3021_v57 = vsel %vm13377_vm13, %v3016_v22, %v14176_v37  ;;  %v3031_v43 = vsel %vm13377_vm13, %v3026_v62, %v3030_v38  ;;  %v3040_v4 = vrot.slane %v3039_v52, 4  ;;  %v3054_v61 = vrot.slane %v3052_v10, 5  ;;  %v2765_v62 = vld [vmem:[#allocation2 + $0xc0] sm:$0xf] }
 0x186   : > { %12092 = vmatmul.mubr.msk.bf16.gmra.mrb[8].mxu0 %vm1399_vm12, %v11002_v26  ;;  %v14202_v26 = vrot.slane %v3042_v21, 5  ;;  %v3118_v58 = vshrl.u32 %v14213_v2, 16  ;;  %v3083_v63 = vrot.slane %v3081_v7, 4  ;;  %v3086_v34 = vrot.slane %v3084_v24, 5  ;;  %v14237_v7 = vld [vmem:[#allocation2 + $0xbc] sm:$0x1] }
 0x187   : > { %12095 = vmatprep.mubr.msk.bf16.mxu0 %vm1399_vm12, %v11003_v23  ;;  %v3059_v23 = vrot.slane %v3057_v54, 4  ;;  %v2762_v54 = vld [vmem:[#allocation2 + $0xb4] sm:$0xf]  ;;  %v3092_v37 = vrot.slane %v3090_v20, 5  ;;  %v3096_v22 = vrot.slane %v3094_v17, 4  ;;  %v11007_v1 = vcombine.low %v3021_v57, %v3031_v43 }
 0x188   : > { %v3049_v21 = vor.u32 %v3048_v12, %v14202_v26  ;;  %v3105_v13 = vshrl.u32 %v2762_v54, 16  ;;  %v3108_v36 = vshll.u32 %v2762_v54, 16  ;;  %v3114_v12 = vshll.u32 %v14213_v2, 16 }
 0x189   : > { %v3063_v46 = vor.u32 %v3062_v44, %v3059_v23  ;;  %v3120_v54 = vrot.slane %v3118_v58, 4  ;;  %v3087_v20 = vor.u32 %v3086_v34, %v3083_v63  ;;  %v3097_v17 = vor.u32 %v3096_v22, %v3092_v37 }
 0x18a   : > { %v3050_v23 = vrot.slane %v3049_v21, 4  ;;  %v3107_v52 = vrot.slane %v3105_v13, 4  ;;  %v3110_v38 = vrot.slane %v3108_v36, 5  ;;  %v3116_v10 = vrot.slane %v3114_v12, 5 }
 0x18b   : > { %v3064_v44 = vrot.slane %v3063_v46, 4  ;;  %v3045_v21 = vsel %vm13377_vm13, %v3040_v4, %v14202_v26  ;;  %v3129_v26 = vshrl.u32 %v2765_v62, 16  ;;  %v3132_v57 = vshll.u32 %v2765_v62, 16  ;;  %v14249_v62 = vld [vmem:[#allocation2 + $0xc8] sm:$0x1] }
 0x18c   : > { %v3055_v46 = vsel %vm13377_vm13, %v3050_v23, %v3054_v61  ;;  %v3138_v43 = vshll.u32 %v14229_v49, 16  ;;  %v3142_v4 = vshrl.u32 %v14229_v49, 16  ;;  %v3111_v61 = vor.u32 %v3110_v38, %v3107_v52 }
 0x18d   : > { %v3121_v13 = vor.u32 %v3120_v54, %v3116_v10  ;;  %v11008_v36 = vcombine.low %v3045_v21, %v3055_v46  ;;  %v3098_v58 = vrot.slane %v3097_v17, 4  ;;  %v3134_v34 = vrot.slane %v3132_v57, 5 }
 0x18e   : > { %12096 = vmatmul.mubr.msk.bf16.gmra.mrb[12].mxu0 %vm1399_vm12, %v11004_v55  ;;  %v3078_v55 = vrot.slane %v3076_v25, 5  ;;  %v3100_v25 = vshll.u32 %v14227_v5, 16  ;;  %v3144_v63 = vrot.slane %v3142_v4, 4  ;;  %v3148_v46 = vshll.u32 %v14249_v62, 16  ;;  %v289_v4 = vld [vmem:[#allocation2 + $0xcc] sm:$0x1] }
 0x18f   : > { %12099 = vmatprep.mubr.msk.bf16.mxu0 %vm1399_vm12, %v11005_v19  ;;  %v3074_v19 = vrot.slane %v3073_v60, 4  ;;  %v3069_v60 = vsel %vm13377_vm13, %v3064_v44, %v14206_v0  ;;  %v3088_v0 = vrot.slane %v3087_v20, 4  ;;  %v3131_v44 = vrot.slane %v3129_v26, 4  ;;  %v3446_v20 = vld [vmem:[#allocation2 + $0xc] sm:$0xe] }
 0x190   : > { %v3102_v23 = vrot.slane %v3100_v25, 5 }
 0x191   : > { %v3079_v24 = vsel %vm13377_vm13, %v3074_v19, %v3078_v55  ;;  %v3140_v55 = vrot.slane %v3138_v43, 5  ;;  %v3122_v19 = vrot.slane %v3121_v13, 4  ;;  %v3093_v52 = vsel %vm13377_vm13, %v3088_v0, %v3092_v37 }
 0x192   : > { %v11009_v12 = vcombine.low %v3069_v60, %v3079_v24  ;;  %v3103_v38 = vsel %vm13377_vm13, %v3098_v58, %v3102_v23  ;;  %v3135_v54 = vor.u32 %v3134_v34, %v3131_v44  ;;  %v3512_v24 = vrot.slane %v14000_v59, 5  ;;  %v3447_v58 = vld [vmem:[#allocation2 + $0x18] sm:$0xe]  ;;  %v3448_v44 = vld [vmem:[#allocation2 + $0x24] sm:$0xe] }
 0x193   : > { %v3145_v21 = vor.u32 %v3144_v63, %v3140_v55  ;;  %v11010_v17 = vcombine.low %v3093_v52, %v3103_v38  ;;  %v3150_v43 = vrot.slane %v3148_v46, 5  ;;  %v3526_v23 = vrot.slane %v14014_v18, 5  ;;  %v3449_v46 = vld [vmem:[#allocation2 + $0x30] sm:$0xe] }
 0x194   : > { %v3136_v26 = vrot.slane %v3135_v54, 4  ;;  %v3514_v13 = vrot.slane %v3512_v24, 4  ;;  %v3533_v54 = vrot.slane %v14026_v48, 5 }
 0x195   : > { %v3146_v57 = vrot.slane %v3145_v21, 4  ;;  %v3528_v52 = vrot.slane %v3526_v23, 4 }
 0x196   : > { %12100 = vmatmul.mubr.msk.bf16.gmra.mrb[16].mxu0 %vm1399_vm12, %v11006_v14  ;;  %v3124_v14 = vshll.u32 %v14237_v7, 16  ;;  %v3141_v59 = vsel %vm13377_vm13, %v3136_v26, %v3140_v55  ;;  %v3522_v55 = vrot.slane %v14018_v33, 5  ;;  %v4080_v26 = vsel %vm1448_vm0, %v14124_v31, 0 }
 0x197   : > { %12103 = vmatprep.mubr.msk.bf16.mxu0 %vm1399_vm12, %v11007_v1  ;;  %v3112_v1 = vrot.slane %v3111_v61, 4  ;;  %v11029_v61 = vrot.slane %v3446_v20, 9  ;;  %v11032_v20 = vrot.slane %v3449_v46, 9  ;;  %v3547_v31 = vrot.slane %v14062_v41, 5 }
 0x198   : > { %v3126_v22 = vrot.slane %v3124_v14, 5  ;;  %v3515_v14 = vrot.slane %v14008_v9, 5 }
 0x199   : > { %v3117_v25 = vsel %vm13377_vm13, %v3112_v1, %v3116_v10  ;;  %v3151_v10 = vsel %vm13377_vm13, %v3146_v57, %v3150_v43  ;;  %v3513_v0 = vsel %vm13857_vm2, %v11029_v61, %v3512_v24  ;;  %v11030_v1 = vrot.slane %v3447_v58, 9 }
 0x19a   : > { %v3127_v60 = vsel %vm13377_vm13, %v3122_v19, %v3126_v22  ;;  %v3516_v9 = vsel %vm13857_vm2, %v3514_v13, %v3515_v14  ;;  %v11012_v34 = vcombine.low %v3141_v59, %v3151_v10  ;;  %v11031_v22 = vrot.slane %v3448_v44, 9  ;;  %v3451_v13 = vld [vmem:[#allocation2 + $0x48] sm:$0xe] }
 0x19b   : > { %v11011_v37 = vcombine.low %v3117_v25, %v3127_v60  ;;  %v11046_v63 = vcombine.low %v3513_v0, %v3516_v9  ;;  %v3450_v25 = vld [vmem:[#allocation2 + $0x3c] sm:$0xe]  ;;  %v3543_v43 = vrot.slane %v14056_v40, 5  ;;  %v3554_v14 = vrot.slane %v14071_v6, 5 }
 0x19c   : > { %v3527_v21 = vsel %vm13857_vm2, %v11031_v22, %v3526_v23  ;;  %v11033_v48 = vrot.slane %v3450_v25, 9  ;;  %v3549_v0 = vrot.slane %v3547_v31, 4  ;;  %v3550_v9 = vrot.slane %v14081_v39, 5  ;;  %v3456_v25 = vld [vmem:[#allocation2 + $0x84] sm:$0xe] }
 0x19d   : > { %v3556_v58 = vrot.slane %v3554_v14, 4  ;;  %v3557_v23 = vrot.slane %v14092_v32, 5  ;;  %v3568_v32 = vrot.slane %v14113_v47, 5 }
 0x19e   : > { %12104 = vmatmul.mubr.msk.bf16.gmra.mrb[20].mxu0 %vm1399_vm12, %v11008_v36  ;;  %v290_v36 = vsel %vm13304_vm5, 0, %v289_v4  ;;  %v14299_v4 = vld [vmem:[%s16761_s1 + $0x1c] sm:$0xf]  ;;  %v3551_v44 = vsel %vm13857_vm2, %v3549_v0, %v3550_v9  ;;  %v16886_v0 = vld [vmem:[#allocation8_spill] sm:$0xff] }
 0x19f   : > { %12107 = vmatprep.mubr.msk.bf16.mxu0 %vm1399_vm12, %v11009_v12  ;;  %291 = vst [vmem:[#allocation2 + $0xcc] sm:$0x1] %v290_v36  ;;  %v3519_v12 = vrot.slane %v14004_v8, 5  ;;  %v3529_v8 = vrot.slane %v14034_v35, 5  ;;  %v3540_v35 = vrot.slane %v14032_v45, 5  ;;  %v3534_v45 = vsel %vm13857_vm2, %v11032_v20, %v3533_v54 }
 0x1a0   : > { %v3452_v36 = vld [vmem:[#allocation2 + $0x54] sm:$0xe]  ;;  %v3558_v39 = vsel %vm13857_vm2, %v3556_v58, %v3557_v23 }
 0x1a1   : > { %v3521_v19 = vrot.slane %v3519_v12, 4  ;;  %v3520_v38 = vsel %vm13857_vm2, %v11030_v1, %v3519_v12  ;;  %v3530_v33 = vsel %vm13857_vm2, %v3528_v52, %v3529_v8  ;;  %v3542_v57 = vrot.slane %v3540_v35, 4  ;;  %v3453_v1 = vld [vmem:[#allocation2 + $0x60] sm:$0xe] }
 0x1a2   : > { %v11048_v24 = vcombine.low %v3527_v21, %v3530_v33  ;;  %v3541_v40 = vsel %vm13857_vm2, %v11033_v48, %v3540_v35  ;;  %v11034_v12 = vrot.slane %v3451_v13, 9  ;;  %v11035_v41 = vrot.slane %v3452_v36, 9  ;;  %v3455_v35 = vld [vmem:[#allocation2 + $0x78] sm:$0xe] }
 0x1a3   : > { %v3523_v18 = vsel %vm13857_vm2, %v3521_v19, %v3522_v55  ;;  %v3544_v61 = vsel %vm13857_vm2, %v3542_v57, %v3543_v43  ;;  %v3454_v19 = vld [vmem:[#allocation2 + $0x6c] sm:$0xe]  ;;  %v11036_v52 = vrot.slane %v3453_v1, 9  ;;  %v3575_v33 = vrot.slane %v14119_v28, 5  ;;  %v16885_v36 = vld [vmem:[#allocation7_spill] sm:$0xff] }
 0x1a4   : > { %v11047_v60 = vcombine.low %v3520_v38, %v3523_v18  ;;  %v11050_v10 = vcombine.low %v3541_v40, %v3544_v61  ;;  %v3548_v6 = vsel %vm13857_vm2, %v11034_v12, %v3547_v31  ;;  %v3564_v38 = vrot.slane %v14127_v56, 5  ;;  %v3458_v31 = vld [vmem:[#allocation2 + $0x9c] sm:$0xe] }
 0x1a5   : > { %v11051_v55 = vcombine.low %v3548_v6, %v3551_v44  ;;  %v11037_v18 = vrot.slane %v3454_v19, 9  ;;  %v11038_v20 = vrot.slane %v3455_v35, 9  ;;  %v3585_v28 = vrot.slane %v14180_v42, 5  ;;  %v3459_v44 = vld [vmem:[#allocation2 + $0xa8] sm:$0xe] }
 0x1a6   : > { %12108 = vmatmul.mubr.msk.bf16.gmra.mrb[24].mxu0 %vm1399_vm12, %v11010_v17  ;;  %v3535_v17 = vrot.slane %v3533_v54, 4  ;;  %v3570_v54 = vrot.slane %v3568_v32, 4  ;;  %v3589_v43 = vrot.slane %v14174_v11, 5  ;;  %v3596_v42 = vrot.slane %v14178_v16, 5 }
 0x1a7   : > { %12111 = vmatprep.mubr.msk.bf16.mxu0 %vm1399_vm12, %v11011_v37  ;;  %v3536_v37 = vrot.slane %v14050_v29, 5  ;;  %v3569_v46 = vsel %vm13857_vm2, %v11037_v18, %v3568_v32  ;;  %v3576_v57 = vsel %vm13857_vm2, %v11038_v20, %v3575_v33  ;;  %v3599_v11 = vrot.slane %v16886_v0, 5  ;;  %v13115_v20 = vld [vmem:[#allocation2 + $0x30] sm:$0xff]  }
 0x1a8   : > { %v3598_v12 = vrot.slane %v3596_v42, 4  ;;  %v11042_v32 = vrot.slane %v3459_v44, 9  ;;  %v3617_v18 = vrot.slane %v14229_v49, 5 }
 0x1a9   : > { %v3537_v29 = vsel %vm13857_vm2, %v3535_v17, %v3536_v37  ;;  %v3577_v17 = vrot.slane %v3575_v33, 4  ;;  %v3578_v37 = vrot.slane %v14150_v50, 5 }
 0x1aa   : > { %v11049_v59 = vcombine.low %v3534_v45, %v3537_v29  ;;  %v3457_v29 = vld [vmem:[#allocation2 + $0x90] sm:$0xe]  ;;  %v3600_v6 = vsel %vm13857_vm2, %v3598_v12, %v3599_v11  ;;  %v3619_v33 = vrot.slane %v3617_v18, 4 }
 0x1ab   : > { %v11040_v13 = vrot.slane %v3457_v29, 9 }
 0x1ad   : > { %v3590_v9 = vsel %vm13857_vm2, %v11040_v13, %v3589_v43  ;;  %v13122_v13 = vld [vmem:[#allocation2 + $0x84] sm:$0xff]  }
 0x1ae   : > { %12112 = vmatmul.mubr.msk.bf16.gmra.mrb[28].mxu0 %vm1399_vm12, %v11012_v34  ;;  %v3561_v34 = vrot.slane %v14086_v30, 5  ;;  %v3571_v30 = vrot.slane %v14139_v53, 5  ;;  %v3582_v53 = vrot.slane %v14154_v27, 5  ;;  %v3579_v27 = vsel %vm13857_vm2, %v3577_v17, %v3578_v37  ;;  %v14400_v37 = vld [vmem:[%s16761_s1 + $0x20] sm:$0xf] }
 0x1af   : > { %12117 = vmatprep.mubr.msk.bf16.mxu0 %vm1399_vm12, %v11046_v63  ;;  %v3555_v63 = vsel %vm13857_vm2, %v11035_v41, %v3554_v14  ;;  %v11055_v40 = vcombine.low %v3576_v57, %v3579_v27  ;;  %v3591_v14 = vrot.slane %v3589_v43, 4  ;;  %v16887_v41 = vld [vmem:[#allocation9_spill] sm:$0xff]  ;;  %v4806_v17 = vsel %vm1448_vm0, %v14299_v4, 0  ;;  %v13121_v27 = vld [vmem:[#allocation2 + $0x78] sm:$0xff]  }
 0x1b0   : > { %v11052_v22 = vcombine.low %v3555_v63, %v3558_v39  ;;  %v3563_v8 = vrot.slane %v3561_v34, 4  ;;  %v3562_v21 = vsel %vm13857_vm2, %v11036_v52, %v3561_v34  ;;  %v3572_v56 = vsel %vm13857_vm2, %v3570_v54, %v3571_v30  ;;  %v3460_v63 = vld [vmem:[#allocation2 + $0xb4] sm:$0xe]  ;;  %v3461_v30 = vld [vmem:[#allocation2 + $0xc0] sm:$0xe]  ;;  %v13120_v57 = vld [vmem:[#allocation2 + $0x6c] sm:$0xff]  }
 0x1b1   : > { %v3584_v48 = vrot.slane %v3582_v53, 4  ;;  %v3603_v58 = vrot.slane %v16887_v41, 5  ;;  %v3610_v34 = vrot.slane %v14213_v2, 5  ;;  %v4275_v43 = vld [vmem:[#allocation2 + $0x18] sm:$0xf] }
 0x1b2   : > { %v3565_v47 = vsel %vm13857_vm2, %v3563_v8, %v3564_v38  ;;  %v3613_v8 = vrot.slane %v14237_v7, 5  ;;  %v4327_v29 = vshll.u32 %v4275_v43, 16  ;;  %v14420_v41 = vld [vmem:[#allocation2 + $0x20] sm:$0x1] }
 0x1b3   : > { %v3586_v50 = vsel %vm13857_vm2, %v3584_v48, %v3585_v28  ;;  %v3605_v19 = vrot.slane %v3603_v58, 4  ;;  %v3612_v52 = vrot.slane %v3610_v34, 4  ;;  %v3604_v38 = vsel %vm13857_vm2, %v11042_v32, %v3603_v58  ;;  %v13117_v48 = vld [vmem:[#allocation2 + $0x48] sm:$0xff]   ;;  %v13119_v28 = vld [vmem:[#allocation2 + $0x60] sm:$0xff]   ;;  %v4281_v58 = vld [vmem:[#allocation2 + $0x30] sm:$0xf] }
 0x1b6   : > { %12118 = vmatmul.mubr.msk.bf16.vlgmr.msra.gmra.mrb[0].mxu0 %vm1399_vm12, %v11047_v60  ;;  %v11053_v60 = vcombine.low %v3562_v21, %v3565_v47  ;;  %v11044_v47 = vrot.slane %v3461_v30, 9  ;;  %v14434_v30 = vld [vmem:[#allocation2 + $0x40] sm:$0xf] }
 0x1b7   : > { %12150 = vmatpush3.bf16.msra.mxu0 %v4080_v26  ;;  %12121 = vmatprep.mubr.msk.bf16.mxu0 %vm1399_vm12, %v11048_v24  ;;  %v11054_v24 = vcombine.low %v3569_v46, %v3572_v56  ;;  %v11039_v26 = vrot.slane %v3456_v25, 9  ;;  %v3620_v46 = vrot.slane %v14249_v62, 5  ;;  %v345_v56 = vld [vmem:[#allocation2 + $0xd4] sm:$0x1]  ;;  %v13114_v62 = vld [vmem:[#allocation2 + $0x24] sm:$0xff]  }
 0x1b8   : > { %13076 = vmatprep.subr.msk.bf16.mxu0 %vm1448_vm0, %v14299_v4  ;;  %v3618_v49 = vsel %vm13857_vm2, %v11044_v47, %v3617_v18  ;;  %v346_v25 = vsel %vm13315_vm6, 0, %v345_v56  ;;  %v13118_v4 = vld [vmem:[#allocation2 + $0x54] sm:$0xff]   ;;  %v13125_v18 = vld [vmem:[#allocation2 + $0xa8] sm:$0xff]  }
 0x1b9   : > { %v3583_v45 = vsel %vm13857_vm2, %v11039_v26, %v3582_v53  ;;  %v3621_v35 = vsel %vm13857_vm2, %v3619_v33, %v3620_v46  ;;  %347 = vst [vmem:[#allocation2 + $0xd4] sm:$0x1] %v346_v25  ;;  %v13116_v26 = vld [vmem:[#allocation2 + $0x3c] sm:$0xff]   ;;  %v14438_v53 = vld [vmem:[#allocation2 + $0x38] sm:$0x1] }
 0x1ba   : > { %v11056_v61 = vcombine.low %v3583_v45, %v3586_v50  ;;  %v14410_v45 = vld [vmem:[#allocation2 + $0x1c] sm:$0xf]  ;;  %v4324_v50 = vshrl.u32 %v4275_v43, 16 }
 0x1be   : > { %12122 = vmatmul.mubr.msk.bf16.gmra.mrb[4].mxu0 %vm1399_vm12, %v11049_v59  ;;  %v3592_v59 = vrot.slane %v16885_v36, 5  ;;  %v4326_v36 = vrot.slane %v4324_v50, 4 }
 0x1bf   : > { %12125 = vmatprep.mubr.msk.bf16.mxu0 %vm1399_vm12, %v11050_v10  ;;  %v11041_v10 = vrot.slane %v3458_v31, 9  ;;  %v4337_v31 = vshrl.u32 %v14410_v45, 16 }
 0x1c0   : > { %v3593_v16 = vsel %vm13857_vm2, %v3591_v14, %v3592_v59  ;;  %v13123_v14 = vld [vmem:[#allocation2 + $0x90] sm:$0xff]   ;;  %v4329_v59 = vrot.slane %v4327_v29, 5  ;;  %v14456_v29 = vld [vmem:[#allocation2 + $0x4c] sm:$0xf] }
 0x1c1   : > { %v3597_v23 = vsel %vm13857_vm2, %v11041_v10, %v3596_v42  ;;  %v11057_v39 = vcombine.low %v3590_v9, %v3593_v16  ;;  %v4333_v42 = vshll.u32 %v14410_v45, 16  ;;  %v4339_v11 = vrot.slane %v4337_v31, 4 }
 0x1c2   : > { %v11058_v1 = vcombine.low %v3597_v23, %v3600_v6  ;;  %v4330_v23 = vor.u32 %v4329_v59, %v4326_v36  ;;  %v13127_v59 = vld [vmem:[#allocation2 + $0xc0] sm:$0xff]  }
 0x1c3   : > { %v4335_v0 = vrot.slane %v4333_v42, 5  ;;  %v13126_v42 = vld [vmem:[#allocation2 + $0xb4] sm:$0xff]  }
 0x1c6   : > { %12126 = vmatmul.mubr.msk.bf16.gmra.mrb[8].mxu0 %vm1399_vm12, %v11051_v55  ;;  %v3606_v55 = vrot.slane %v14227_v5, 5  ;;  %v3614_v5 = vsel %vm13857_vm2, %v3612_v52, %v3613_v8  ;;  %v13124_v52 = vld [vmem:[#allocation2 + $0x9c] sm:$0xff]  }
 0x1c7   : > { %12129 = vmatprep.mubr.msk.bf16.mxu0 %vm1399_vm12, %v11052_v22  ;;  %v11043_v22 = vrot.slane %v3460_v63, 9  ;;  %v4340_v63 = vor.u32 %v4339_v11, %v4335_v0  ;;  %v4429_v11 = vshll.u32 %v14456_v29, 16 }
 0x1c8   : > { %v3607_v2 = vsel %vm13857_vm2, %v3605_v19, %v3606_v55  ;;  %v4372_v55 = vshrl.u32 %v4281_v58, 16 }
 0x1c9   : > { %v3611_v54 = vsel %vm13857_vm2, %v11043_v22, %v3610_v34  ;;  %v11059_v7 = vcombine.low %v3604_v38, %v3607_v2  ;;  %v14424_v34 = vld [vmem:[#allocation2 + $0x34] sm:$0xf]  ;;  %v4375_v22 = vshll.u32 %v4281_v58, 16  ;;  %v4284_v2 = vld [vmem:[#allocation2 + $0x3c] sm:$0xf] }
 0x1ca   : > { %v11060_v21 = vcombine.low %v3611_v54, %v3614_v5  ;;  %v4381_v8 = vshll.u32 %v14424_v34, 16  ;;  %v4385_v38 = vshrl.u32 %v14424_v34, 16  ;;  %v4374_v46 = vrot.slane %v4372_v55, 4 }
 0x1cb   : > { %v4377_v56 = vrot.slane %v4375_v22, 5  ;;  %v14478_v22 = vld [vmem:[#allocation2 + $0xd0] sm:$0xf] }
 0x1cc   : > { %v14440_v25 = vrot.slane %v4381_v8, 5 }
 0x1ce   : > { %12130 = vmatmul.mubr.msk.bf16.gmra.mrb[12].mxu0 %vm1399_vm12, %v11053_v60  ;;  %v11061_v60 = vcombine.low %v3618_v49, %v3621_v35  ;;  %v4396_v49 = vshrl.u32 %v4284_v2, 16  ;;  %v4399_v35 = vshll.u32 %v4284_v2, 16  ;;  %v5016_v2 = vld [vmem:[#allocation2 + $0xcc] sm:$0xe] }
 0x1cf   : > { %12133 = vmatprep.mubr.msk.bf16.mxu0 %vm1399_vm12, %v11054_v24  ;;  %v13113_v24 = vld [vmem:[#allocation2 + $0x18] sm:$0xff]  }
 0x1d0   : > { %v4398_v43 = vrot.slane %v4396_v49, 4  ;;  %v4401_v50 = vrot.slane %v4399_v35, 5 }
 0x1d6   : > { %12134 = vmatmul.mubr.msk.bf16.gmra.mrb[16].mxu0 %vm1399_vm12, %v11055_v40  ;;  %v4278_v40 = vld [vmem:[#allocation2 + $0x24] sm:$0xf] }
 0x1d7   : > { %12137 = vmatprep.mubr.msk.bf16.mxu0 %vm1399_vm12, %v11056_v61  ;;  %v14416_v61 = vld [vmem:[#allocation2 + $0x28] sm:$0xf]  ;;  %v4348_v10 = vshrl.u32 %v4278_v40, 16  ;;  %v4351_v12 = vshll.u32 %v4278_v40, 16  ;;  %v14459_v40 = vld [vmem:[#allocation2 + $0x44] sm:$0x1] }
 0x1d8   : > { %v4357_v9 = vshll.u32 %v14416_v61, 16  ;;  %v4361_v16 = vshrl.u32 %v14416_v61, 16 }
 0x1d9   : > { %v4350_v6 = vrot.slane %v4348_v10, 4  ;;  %v4353_v44 = vrot.slane %v4351_v12, 5 }
 0x1da   : > { %v14429_v32 = vrot.slane %v4357_v9, 5  ;;  %v4363_v19 = vrot.slane %v4361_v16, 4  ;;  %v4433_v9 = vshrl.u32 %v14456_v29, 16  ;;  %v4290_v16 = vld [vmem:[#allocation2 + $0x54] sm:$0xf] }
 0x1db   : > { %v4354_v54 = vor.u32 %v4353_v44, %v4350_v6  ;;  %v4402_v6 = vor.u32 %v4401_v50, %v4398_v43  ;;  %v4415_v44 = vshll.u32 %v14459_v40, 16 }
 0x1dc   : > { %v4364_v33 = vor.u32 %v4363_v19, %v14429_v32 }
 0x1dd   : > { %v14492_v49 = vrot.slane %v4402_v6, 4  ;;  %v14494_v35 = vrot.slane %v4415_v44, 5 }
 0x1de   : > { %12138 = vmatmul.mubr.msk.bf16.gmra.mrb[20].mxu0 %vm1399_vm12, %v11057_v39  ;;  %v4343_v39 = vshll.u32 %v14420_v41, 16 }
 0x1df   : > { %12141 = vmatprep.mubr.msk.bf16.mxu0 %vm1399_vm12, %v11058_v1  ;;  %v14427_v1 = vld [vmem:[#allocation2 + $0x2c] sm:$0x1] }
 0x1e0   : > { %v4367_v5 = vshll.u32 %v14427_v1, 16  ;;  %v4345_v47 = vrot.slane %v4343_v39, 5 }
 0x1e6   : > { %12142 = vmatmul.mubr.msk.bf16.gmra.mrb[24].mxu0 %vm1399_vm12, %v11059_v7  ;;  %v4331_v7 = vrot.slane %v4330_v23, 4 }
 0x1e7   : > { %12145 = vmatprep.mubr.msk.bf16.mxu0 %vm1399_vm12, %v11060_v21  ;;  %v4341_v21 = vrot.slane %v4340_v63, 4  ;;  %v14470_v63 = vld [vmem:[#allocation2 + $0x58] sm:$0xf] }
 0x1ee   : > { %12146 = vmatmul.mubr.msk.bf16.gmra.mrb[28].mxu0 %vm1399_vm12, %v11061_v60  ;;  %v4387_v60 = vrot.slane %v4385_v38, 4  ;;  %v4444_v38 = vshrl.u32 %v4290_v16, 16 }
 0x1ef   : > { %12151 = vmatprep.mubr.msk.bf16.mxu0 %vm1399_vm12, %v13113_v24  ;;  %v4405_v24 = vshll.u32 %v14434_v30, 16 }
 0x1f0   : > { %v4388_v31 = vor.u32 %v4387_v60, %v14440_v25  ;;  %v4446_v43 = vrot.slane %v4444_v38, 4  ;;  %v4299_v38 = vld [vmem:[#allocation2 + $0x78] sm:$0xf] }
 0x1f6   : > { %12152 = vmatmul.mubr.msk.bf16.vlgmr.msra.gmra.mrb[0].mxu0 %vm1399_vm12, %v13114_v62  ;;  %v4409_v62 = vshrl.u32 %v14434_v30, 16 }
 0x1f7   : > { %12184 = vmatpush3.bf16.msra.mxu0 %v4806_v17  ;;  %12155 = vmatprep.mubr.msk.bf16.mxu0 %vm1399_vm12, %v13115_v20  ;;  %v14445_v20 = vrot.slane %v4354_v54, 4  ;;  %v4287_v17 = vld [vmem:[#allocation2 + $0x48] sm:$0xf] }
 0x1f8   : > { %13077 = vmatprep.subr.msk.bf16.mxu0 %vm1448_vm0, %v14400_v37  ;;  %v4420_v36 = vshrl.u32 %v4287_v17, 16  ;;  %v4423_v10 = vshll.u32 %v4287_v17, 16  ;;  %v4293_v17 = vld [vmem:[#allocation2 + $0x60] sm:$0xf] }
 0x1fa   : > { %v4422_v55 = vrot.slane %v4420_v36, 4  ;;  %v4425_v8 = vrot.slane %v4423_v10, 5  ;;  %v4471_v36 = vshll.u32 %v4293_v17, 16 }
 0x1fe   : > { %12156 = vmatmul.mubr.msk.bf16.gmra.mrb[4].mxu0 %vm1399_vm12, %v13116_v26  ;;  %v4336_v26 = vsel %vm13377_vm13, %v4331_v7, %v4335_v0  ;;  %v4360_v0 = vsel %vm13377_vm13, %v14445_v20, %v14429_v32  ;;  %v4389_v32 = vrot.slane %v4388_v31, 4  ;;  %v14487_v7 = vrot.slane %v4429_v11, 5  ;;  %v14516_v31 = vld [vmem:[#allocation2 + $0x5c] sm:$0x1] }
 0x1ff   : > { %12159 = vmatprep.mubr.msk.bf16.mxu0 %vm1399_vm12, %v13117_v48  ;;  %v4346_v48 = vsel %vm13377_vm13, %v4341_v21, %v4345_v47  ;;  %v4435_v21 = vrot.slane %v4433_v9, 4  ;;  %v4447_v47 = vshll.u32 %v4290_v16, 16  ;;  %v4457_v20 = vshrl.u32 %v14470_v63, 16 }
 0x200   : > { %v11112_v12 = vcombine.low %v4336_v26, %v4346_v48  ;;  %v14500_v26 = vld [vmem:[#allocation2 + $0x64] sm:$0xf]  ;;  %v5276_v9 = vsel %vm1448_vm0, %v14400_v37, 0 }
 0x201   : > { %v4449_v50 = vrot.slane %v4447_v47, 5  ;;  %v4481_v10 = vshrl.u32 %v14500_v26, 16 }
 0x206   : > { %12160 = vmatmul.mubr.msk.bf16.gmra.mrb[8].mxu0 %vm1399_vm12, %v13118_v4  ;;  %v14451_v4 = vrot.slane %v4364_v33, 4  ;;  %v11159_v33 = vrot.slane %v5016_v2, 9 }
 0x207   : > { %12163 = vmatprep.mubr.msk.bf16.mxu0 %vm1399_vm12, %v13119_v28  ;;  %v14453_v28 = vrot.slane %v4367_v5, 5  ;;  %v14485_v5 = vld [vmem:[#allocation2 + $0x50] sm:$0x1] }
 0x209   : > { %v4370_v39 = vsel %vm13377_vm13, %v14451_v4, %v14453_v28  ;;  %v4426_v4 = vor.u32 %v4425_v8, %v4422_v55  ;;  %v4439_v28 = vshll.u32 %v14485_v5, 16  ;;  %v4296_v55 = vld [vmem:[#allocation2 + $0x6c] sm:$0xf]  ;;  %v14537_v8 = vld [vmem:[#allocation2 + $0x70] sm:$0xf] }
 0x20a   : > { %v11113_v11 = vcombine.low %v4360_v0, %v4370_v39  ;;  %v4450_v39 = vor.u32 %v4449_v50, %v4446_v43  ;;  %v4302_v50 = vld [vmem:[#allocation2 + $0x84] sm:$0xf] }
 0x20b   : > { %v4427_v44 = vrot.slane %v4426_v4, 4 }
 0x20e   : > { %12164 = vmatmul.mubr.msk.bf16.gmra.mrb[12].mxu0 %vm1399_vm12, %v13120_v57  ;;  %v4378_v57 = vor.u32 %v4377_v56, %v4374_v46  ;;  %v13128_v46 = vld [vmem:[#allocation2 + $0xcc] sm:$0xff]  }
 0x20f   : > { %12167 = vmatprep.mubr.msk.bf16.mxu0 %vm1399_vm12, %v13121_v27  ;;  %v4391_v27 = vshll.u32 %v14438_v53, 16 }
 0x210   : > { %v4379_v58 = vrot.slane %v4378_v57, 4 }
 0x211   : > { %v4393_v23 = vrot.slane %v4391_v27, 5  ;;  %v4436_v27 = vor.u32 %v4435_v21, %v14487_v7  ;;  %v14541_v21 = vld [vmem:[#allocation2 + $0x7c] sm:$0xf] }
 0x212   : > { %v4384_v56 = vsel %vm13377_vm13, %v4379_v58, %v14440_v25  ;;  %v4459_v58 = vrot.slane %v4457_v20, 4  ;;  %v14550_v20 = vrot.slane %v4450_v39, 4 }
 0x213   : > { %v4437_v0 = vrot.slane %v4436_v27, 4 }
 0x216   : > { %12168 = vmatmul.mubr.msk.bf16.gmra.mrb[16].mxu0 %vm1399_vm12, %v13122_v13  ;;  %v14461_v13 = vrot.slane %v4405_v24, 5  ;;  %v4394_v24 = vsel %vm13377_vm13, %v4389_v32, %v4393_v23  ;;  %v4441_v32 = vrot.slane %v4439_v28, 5 }
 0x217   : > { %12171 = vmatprep.mubr.msk.bf16.mxu0 %vm1399_vm12, %v13123_v14  ;;  %v4411_v14 = vrot.slane %v4409_v62, 4  ;;  %v4453_v62 = vshll.u32 %v14470_v63, 16  ;;  %v11114_v23 = vcombine.low %v4384_v56, %v4394_v24  ;;  %v4495_v56 = vshll.u32 %v4296_v55, 16 }
 0x218   : > { %v4408_v6 = vsel %vm13377_vm13, %v14492_v49, %v14461_v13  ;;  %v4501_v49 = vshll.u32 %v14537_v8, 16  ;;  %v4519_v24 = vshll.u32 %v4299_v38, 16  ;;  %v4442_v4 = vsel %vm13377_vm13, %v4437_v0, %v4441_v32  ;;  %v14563_v0 = vld [vmem:[#allocation2 + $0x74] sm:$0x1] }
 0x219   : > { %v4412_v19 = vor.u32 %v4411_v14, %v14461_v13  ;;  %v4468_v14 = vshrl.u32 %v4293_v17, 16  ;;  %v14523_v16 = vrot.slane %v4453_v62, 5  ;;  %v4432_v62 = vsel %vm13377_vm13, %v4427_v44, %v14487_v7 }
 0x21a   : > { %v4525_v17 = vshll.u32 %v14541_v21, 16  ;;  %v4497_v7 = vrot.slane %v4495_v56, 5 }
 0x21b   : > { %v14506_v25 = vrot.slane %v4412_v19, 4  ;;  %v14530_v19 = vld [vmem:[#allocation2 + $0x68] sm:$0x1]  ;;  %v4470_v2 = vrot.slane %v4468_v14, 4  ;;  %v4460_v47 = vor.u32 %v4459_v58, %v14523_v16  ;;  %v14561_v58 = vrot.slane %v4501_v49, 5 }
 0x21c   : > { %v14565_v39 = vrot.slane %v4525_v17, 5  ;;  %v4305_v17 = vld [vmem:[#allocation2 + $0x90] sm:$0xf] }
 0x21d   : > { %v4418_v37 = vsel %vm13377_vm13, %v14506_v25, %v14494_v35  ;;  %v4505_v35 = vshrl.u32 %v14537_v8, 16  ;;  %v4529_v25 = vshrl.u32 %v14541_v21, 16  ;;  %v4461_v14 = vrot.slane %v4460_v47, 4 }
 0x21e   : > { %12172 = vmatmul.mubr.msk.bf16.gmra.mrb[20].mxu0 %vm1399_vm12, %v13124_v52  ;;  %v14480_v52 = vld [vmem:[#allocation2 + $0xd4] sm:$0x1]  ;;  %v11115_v47 = vcombine.low %v4408_v6, %v4418_v37 }
 0x21f   : > { %12175 = vmatprep.mubr.msk.bf16.mxu0 %vm1399_vm12, %v13125_v18  ;;  %v5172_v18 = vrot.slane %v14478_v22, 5  ;;  %v5175_v54 = vrot.slane %v14480_v52, 5  ;;  %v4507_v44 = vrot.slane %v4505_v35, 4 }
 0x221   : > { %v5174_v60 = vrot.slane %v5172_v18, 4  ;;  %v14504_v48 = vsel %vm13857_vm2, %v11159_v33, %v5172_v18  ;;  %v4473_v18 = vrot.slane %v4471_v36, 5  ;;  %v4487_v33 = vshll.u32 %v14530_v19, 16 }
 0x222   : > { %16889 = vst [vmem:[#allocation7_spill] sm:$0xff] %v14504_v48  ;;  %v4508_v35 = vor.u32 %v4507_v44, %v14561_v58 }
 0x223   : > { %v14511_v57 = vsel %vm13857_vm2, %v5174_v60, %v5175_v54  ;;  %v4483_v54 = vrot.slane %v4481_v10, 4  ;;  %v4516_v60 = vshrl.u32 %v4299_v38, 16  ;;  %v4474_v27 = vor.u32 %v4473_v18, %v4470_v2  ;;  %v14558_v10 = vld [vmem:[#allocation2 + $0x88] sm:$0xf] }
 0x224   : > { %16890 = vst [vmem:[#allocation8_spill] sm:$0xff] %v14511_v57  ;;  %v4489_v36 = vrot.slane %v4487_v33, 5  ;;  %v4543_v38 = vshll.u32 %v4302_v50, 16  ;;  %v11116_v33 = vcombine.low %v4432_v62, %v4442_v4 }
 0x225   : > { %v4518_v32 = vrot.slane %v4516_v60, 4  ;;  %v4475_v2 = vrot.slane %v4474_v27, 4  ;;  %v4511_v60 = vshll.u32 %v14563_v0, 16 }
 0x226   : > { %12176 = vmatmul.mubr.msk.bf16.gmra.mrb[24].mxu0 %vm1399_vm12, %v13126_v42  ;;  %v4545_v4 = vrot.slane %v4543_v38, 5 }
 0x227   : > { %12179 = vmatprep.mubr.msk.bf16.mxu0 %vm1399_vm12, %v13127_v59  ;;  %v4477_v59 = vshll.u32 %v14500_v26, 16 }
 0x229   : > { %v14539_v13 = vrot.slane %v4477_v59, 5 }
 0x22b   : > { %v4484_v43 = vor.u32 %v4483_v54, %v14539_v13  ;;  %v14567_v54 = vld [vmem:[#allocation2 + $0x80] sm:$0x1] }
 0x22c   : > { %v4535_v37 = vshll.u32 %v14567_v54, 16 }
 0x22d   : > { %v4485_v18 = vrot.slane %v4484_v43, 4 }
 0x22e   : > { %12180 = vmatmul.mubr.msk.bf16.gmra.mrb[28].mxu0 %vm1399_vm12, %v13128_v46  ;;  %v4492_v46 = vshrl.u32 %v4296_v55, 16  ;;  %v4521_v55 = vrot.slane %v4519_v24, 5 }
 0x22f   : > { %12185 = vmatprep.mubr.msk.bf16.mxu0 %vm1399_vm12, %v11112_v12  ;;  %v4463_v12 = vshll.u32 %v14516_v31, 16 }
 0x230   : > { %v4494_v59 = vrot.slane %v4492_v46, 4  ;;  %v4456_v46 = vsel %vm13377_vm13, %v14550_v20, %v14523_v16  ;;  %v4522_v24 = vor.u32 %v4521_v55, %v4518_v32  ;;  %v4480_v16 = vsel %vm13377_vm13, %v4475_v2, %v14539_v13  ;;  %v4308_v2 = vld [vmem:[#allocation2 + $0x9c] sm:$0xf] }
 0x231   : > { %v4465_v28 = vrot.slane %v4463_v12, 5  ;;  %v4531_v12 = vrot.slane %v4529_v25, 4  ;;  %v14579_v25 = vld [vmem:[#allocation2 + $0x94] sm:$0xf]  ;;  %v4490_v20 = vsel %vm13377_vm13, %v4485_v18, %v4489_v36  ;;  %v4509_v13 = vrot.slane %v4508_v35, 4 }
 0x232   : > { %v4498_v49 = vor.u32 %v4497_v7, %v4494_v59  ;;  %v4573_v59 = vshll.u32 %v14579_v25, 16  ;;  %v4577_v7 = vshrl.u32 %v14579_v25, 16  ;;  %v4513_v32 = vrot.slane %v4511_v60, 5 }
 0x233   : > { %v4466_v56 = vsel %vm13377_vm13, %v4461_v14, %v4465_v28  ;;  %v4532_v6 = vor.u32 %v4531_v12, %v14565_v39  ;;  %v14588_v28 = vld [vmem:[#allocation2 + $0x8c] sm:$0x1]  ;;  %v4567_v14 = vshll.u32 %v4305_v17, 16  ;;  %v4523_v55 = vrot.slane %v4522_v24, 4 }
 0x234   : > { %v4499_v44 = vrot.slane %v4498_v49, 4  ;;  %v4537_v12 = vrot.slane %v4535_v37, 5  ;;  %v4559_v38 = vshll.u32 %v14588_v28, 16  ;;  %v11117_v18 = vcombine.low %v4456_v46, %v4466_v56  ;;  %v14609_v37 = vld [vmem:[#allocation2 + $0xac] sm:$0xf] }
 0x235   : > { %v4533_v36 = vrot.slane %v4532_v6, 4  ;;  %v14602_v49 = vrot.slane %v4573_v59, 5  ;;  %v4579_v35 = vrot.slane %v4577_v7, 4  ;;  %v4514_v24 = vsel %vm13377_vm13, %v4509_v13, %v4513_v32  ;;  %v4311_v6 = vld [vmem:[#allocation2 + $0xa8] sm:$0xf] }
 0x236   : > { %12186 = vmatmul.mubr.msk.bf16.vlgmr.msra.gmra.mrb[0].mxu0 %vm1399_vm12, %v11113_v11  ;;  %v4540_v11 = vshrl.u32 %v4302_v50, 16  ;;  %v4564_v50 = vshrl.u32 %v4305_v17, 16  ;;  %v14600_v17 = vld [vmem:[#allocation2 + $0x98] sm:$0x1]  ;;  %v4504_v60 = vsel %vm13377_vm13, %v4499_v44, %v14561_v58  ;;  %v4588_v46 = vshrl.u32 %v4308_v2, 16 }
 0x237   : > { %12218 = vmatpush3.bf16.msra.mxu0 %v5276_v9  ;;  %12189 = vmatprep.mubr.msk.bf16.mxu0 %vm1399_vm12, %v11114_v23  ;;  %v4549_v9 = vshll.u32 %v14558_v10, 16  ;;  %v4553_v23 = vshrl.u32 %v14558_v10, 16  ;;  %v4591_v56 = vshll.u32 %v4308_v2, 16  ;;  %v4583_v58 = vshll.u32 %v14600_v17, 16  ;;  %v14627_v2 = vld [vmem:[#allocation2 + $0xa4] sm:$0x1] }
 0x238   : > { %v4542_v62 = vrot.slane %v4540_v11, 4  ;;  %v4566_v42 = vrot.slane %v4564_v50, 4  ;;  %v4612_v59 = vshrl.u32 %v4311_v6, 16  ;;  %v4615_v7 = vshll.u32 %v4311_v6, 16 }
 0x239   : > { %v14590_v27 = vrot.slane %v4549_v9, 5  ;;  %v4555_v43 = vrot.slane %v4553_v23, 4  ;;  %v11118_v9 = vcombine.low %v4480_v16, %v4490_v20  ;;  %v4561_v20 = vrot.slane %v4559_v38, 5 }
 0x23a   : > { %v4546_v11 = vor.u32 %v4545_v4, %v4542_v62  ;;  %v4528_v62 = vsel %vm13377_vm13, %v4523_v55, %v14565_v39  ;;  %v4538_v4 = vsel %vm13377_vm13, %v4533_v36, %v4537_v12  ;;  %v4621_v44 = vshll.u32 %v14609_v37, 16 }
 0x23b   : > { %v4556_v23 = vor.u32 %v4555_v43, %v14590_v27  ;;  %v4625_v39 = vshrl.u32 %v14609_v37, 16  ;;  %v4580_v32 = vor.u32 %v4579_v35, %v14602_v49  ;;  %v4590_v55 = vrot.slane %v4588_v46, 4 }
 0x23c   : > { %v4547_v16 = vrot.slane %v4546_v11, 4  ;;  %v4593_v36 = vrot.slane %v4591_v56, 5  ;;  %v11119_v12 = vcombine.low %v4504_v60, %v4514_v24  ;;  %v11120_v11 = vcombine.low %v4528_v62, %v4538_v4  ;;  %v4314_v24 = vld [vmem:[#allocation2 + $0xb4] sm:$0xf] }
 0x23d   : > { %v4557_v43 = vrot.slane %v4556_v23, 4  ;;  %v4585_v23 = vrot.slane %v4583_v58, 5  ;;  %v4617_v35 = vrot.slane %v4615_v7, 5  ;;  %v14635_v46 = vrot.slane %v4621_v44, 5  ;;  %v14642_v7 = vld [vmem:[#allocation2 + $0xc4] sm:$0xf] }
 0x23e   : > { %12190 = vmatmul.mubr.msk.bf16.gmra.mrb[4].mxu0 %vm1399_vm12, %v11115_v47  ;;  %v14598_v47 = vld [vmem:[#allocation2 + $0xa0] sm:$0xf]  ;;  %v4552_v38 = vsel %vm13377_vm13, %v4547_v16, %v14590_v27  ;;  %v4627_v60 = vrot.slane %v4625_v39, 4  ;;  %v4581_v62 = vrot.slane %v4580_v32, 4  ;;  %v4594_v27 = vor.u32 %v4593_v36, %v4590_v55  ;;  %v14638_v16 = vld [vmem:[#allocation2 + $0xb8] sm:$0xf] }
 0x23f   : > { %12193 = vmatprep.mubr.msk.bf16.mxu0 %vm1399_vm12, %v11116_v33  ;;  %v4569_v33 = vrot.slane %v4567_v14, 5  ;;  %v4597_v50 = vshll.u32 %v14598_v47, 16  ;;  %v4601_v14 = vshrl.u32 %v14598_v47, 16  ;;  %v4607_v4 = vshll.u32 %v14627_v2, 16  ;;  %16892 = vst [vmem:[#allocation4_spill] sm:$0xff] %v14638_v16  ;;  %16893 = vst [vmem:[#allocation10_spill] sm:$0xff] %v14642_v7 }
 0x240   : > { %v4628_v39 = vor.u32 %v4627_v60, %v14635_v46  ;;  %v4649_v32 = vshrl.u32 %v14638_v16, 16  ;;  %v4586_v36 = vsel %vm13377_vm13, %v4581_v62, %v4585_v23 }
 0x241   : > { %v4570_v13 = vor.u32 %v4569_v33, %v4566_v42  ;;  %v14631_v6 = vrot.slane %v4597_v50, 5  ;;  %v14633_v42 = vld [vmem:[#allocation2 + $0xb0] sm:$0x1]  ;;  %v4614_v33 = vrot.slane %v4612_v59, 4  ;;  %v4636_v50 = vshrl.u32 %v4314_v24, 16 }
 0x242   : > { %16891 = vst [vmem:[#allocation9_spill] sm:$0xff] %v14633_v42  ;;  %v4317_v59 = vld [vmem:[#allocation2 + $0xc0] sm:$0xf]  ;;  %v4629_v48 = vrot.slane %v4628_v39, 4 }
 0x243   : > { %v4571_v56 = vrot.slane %v4570_v13, 4  ;;  %v4618_v44 = vor.u32 %v4617_v35, %v4614_v33  ;;  %v4645_v13 = vshll.u32 %v14638_v16, 16  ;;  %v4669_v33 = vshll.u32 %v14642_v7, 16 }
 0x244   : > { %v4673_v35 = vshrl.u32 %v14642_v7, 16  ;;  %v4638_v3 = vrot.slane %v4636_v50, 4  ;;  %v14663_v50 = vld [vmem:[#allocation2 + $0xc8] sm:$0x1] }
 0x245   : > { %v4576_v55 = vsel %vm13377_vm13, %v4571_v56, %v14602_v49  ;;  %v4647_v16 = vrot.slane %v4645_v13, 5  ;;  %v14656_v56 = vld [vmem:[#allocation2 + $0xbc] sm:$0x1] }
 0x246   : > { %12194 = vmatmul.mubr.msk.bf16.gmra.mrb[8].mxu0 %vm1399_vm12, %v11117_v18  ;;  %v4562_v18 = vsel %vm13377_vm13, %v4557_v43, %v4561_v20  ;;  %v4631_v20 = vshll.u32 %v14633_v42, 16  ;;  %v4651_v42 = vrot.slane %v4649_v32, 4  ;;  %v11122_v49 = vcombine.low %v4576_v55, %v4586_v36 }
 0x247   : > { %12197 = vmatprep.mubr.msk.bf16.mxu0 %vm1399_vm12, %v11118_v9  ;;  %v4603_v9 = vrot.slane %v4601_v14, 4  ;;  %v11121_v43 = vcombine.low %v4552_v38, %v4562_v18  ;;  %v4639_v14 = vshll.u32 %v4314_v24, 16  ;;  %v4595_v38 = vrot.slane %v4594_v27, 4 }
 0x248   : > { %v4609_v18 = vrot.slane %v4607_v4, 5  ;;  %v4633_v24 = vrot.slane %v4631_v20, 5  ;;  %v4671_v27 = vrot.slane %v4669_v33, 5  ;;  %v4675_v4 = vrot.slane %v4673_v35, 4 }
 0x249   : > { %v4604_v58 = vor.u32 %v4603_v9, %v14631_v6  ;;  %v4660_v9 = vshrl.u32 %v4317_v59, 16  ;;  %v4641_v57 = vrot.slane %v4639_v14, 5  ;;  %v4600_v7 = vsel %vm13377_vm13, %v4595_v38, %v14631_v6 }
 0x24a   : > { %v4652_v39 = vor.u32 %v4651_v42, %v4647_v16  ;;  %v4655_v13 = vshll.u32 %v14656_v56, 16  ;;  %v4679_v36 = vshll.u32 %v14663_v50, 16 }
 0x24b   : > { %v4605_v60 = vrot.slane %v4604_v58, 4  ;;  %v4662_v23 = vrot.slane %v4660_v9, 4  ;;  %v4642_v58 = vor.u32 %v4641_v57, %v4638_v3  ;;  %v4693_v3 = vshll.u32 %v14478_v22, 16 }
 0x24c   : > { %v4697_v57 = vshrl.u32 %v14478_v22, 16  ;;  %v4653_v9 = vrot.slane %v4652_v39, 4 }
 0x24d   : > { %v4610_v20 = vsel %vm13377_vm13, %v4605_v60, %v4609_v18  ;;  %v4643_v18 = vrot.slane %v4642_v58, 4  ;;  %v4695_v33 = vrot.slane %v4693_v3, 5  ;;  %v5001_v58 = vld [vmem:[#allocation2 + $0x18] sm:$0xe]  ;;  %v5070_v3 = vrot.slane %v14420_v41, 5 }
 0x24e   : > { %12198 = vmatmul.mubr.msk.bf16.gmra.mrb[12].mxu0 %vm1399_vm12, %v11119_v12  ;;  %v4663_v12 = vshll.u32 %v4317_v59, 16  ;;  %v4320_v59 = vld [vmem:[#allocation2 + $0xcc] sm:$0xf]  ;;  %v11123_v38 = vcombine.low %v4600_v7, %v4610_v20  ;;  %v4699_v35 = vrot.slane %v4697_v57, 4  ;;  %v5067_v20 = vrot.slane %v14410_v45, 5 }
 0x24f   : > { %12201 = vmatprep.mubr.msk.bf16.mxu0 %vm1399_vm12, %v11120_v11  ;;  %v4619_v11 = vrot.slane %v4618_v44, 4  ;;  %v4634_v44 = vsel %vm13377_vm13, %v4629_v48, %v4633_v24  ;;  %v4684_v6 = vshrl.u32 %v4320_v59, 16  ;;  %v4687_v32 = vshll.u32 %v4320_v59, 16 }
 0x250   : > { %v4665_v62 = vrot.slane %v4663_v12, 5  ;;  %v4657_v48 = vrot.slane %v4655_v13, 5  ;;  %v4648_v22 = vsel %vm13377_vm13, %v4643_v18, %v4647_v16  ;;  %v5081_v41 = vrot.slane %v14424_v34, 5 }
 0x251   : > { %v4624_v14 = vsel %vm13377_vm13, %v4619_v11, %v14635_v46  ;;  %v4686_v42 = vrot.slane %v4684_v6, 4  ;;  %v4689_v12 = vrot.slane %v4687_v32, 5  ;;  %v4681_v11 = vrot.slane %v4679_v36, 5  ;;  %v5003_v36 = vld [vmem:[#allocation2 + $0x30] sm:$0xe] }
 0x252   : > { %v4666_v55 = vor.u32 %v4665_v62, %v4662_v23  ;;  %v11124_v46 = vcombine.low %v4624_v14, %v4634_v44  ;;  %v4658_v7 = vsel %vm13377_vm13, %v4653_v9, %v4657_v48  ;;  %v4700_v23 = vor.u32 %v4699_v35, %v4695_v33 }
 0x253   : > { %v4703_v62 = vshll.u32 %v14480_v52, 16  ;;  %v11125_v14 = vcombine.low %v4648_v22, %v4658_v7  ;;  %v11144_v6 = vrot.slane %v5001_v58, 9  ;;  %v5069_v32 = vrot.slane %v5067_v20, 4 }
 0x254   : > { %v4667_v60 = vrot.slane %v4666_v55, 4  ;;  %v4701_v39 = vrot.slane %v4700_v23, 4  ;;  %v5077_v48 = vrot.slane %v14427_v1, 5  ;;  %v5088_v35 = vrot.slane %v14434_v30, 5 }
 0x255   : > { %v4705_v13 = vrot.slane %v4703_v62, 5  ;;  %v5068_v57 = vsel %vm13857_vm2, %v11144_v6, %v5067_v20  ;;  %v5071_v55 = vsel %vm13857_vm2, %v5069_v32, %v5070_v3  ;;  %v5091_v62 = vrot.slane %v14459_v40, 5 }
 0x256   : > { %12202 = vmatmul.mubr.msk.bf16.gmra.mrb[16].mxu0 %vm1399_vm12, %v11121_v43  ;;  %v4676_v43 = vor.u32 %v4675_v4, %v4671_v27  ;;  %v4672_v4 = vsel %vm13377_vm13, %v4667_v60, %v4671_v27  ;;  %v5074_v27 = vrot.slane %v14416_v61, 5  ;;  %v5084_v61 = vrot.slane %v14438_v53, 5 }
 0x257   : > { %12205 = vmatprep.mubr.msk.bf16.mxu0 %vm1399_vm12, %v11122_v49  ;;  %v4690_v49 = vor.u32 %v4689_v12, %v4686_v42  ;;  %v4706_v45 = vsel %vm13377_vm13, %v4701_v39, %v4705_v13  ;;  %v11146_v42 = vrot.slane %v5003_v36, 9  ;;  %v5083_v12 = vrot.slane %v5081_v41, 4 }
 0x258   : > { %v4677_v24 = vrot.slane %v4676_v43, 4  ;;  %v5002_v43 = vld [vmem:[#allocation2 + $0x24] sm:$0xe]  ;;  %v5076_v9 = vrot.slane %v5074_v27, 4  ;;  %v5095_v53 = vrot.slane %v14456_v29, 5  ;;  %v5090_v23 = vrot.slane %v5088_v35, 4 }
 0x259   : > { %v4691_v44 = vrot.slane %v4690_v49, 4  ;;  %v11145_v18 = vrot.slane %v5002_v43, 9  ;;  %v5082_v60 = vsel %vm13857_vm2, %v11146_v42, %v5081_v41  ;;  %v5085_v1 = vsel %vm13857_vm2, %v5083_v12, %v5084_v61  ;;  %v5008_v43 = vld [vmem:[#allocation2 + $0x6c] sm:$0xe]  ;;  %v5009_v41 = vld [vmem:[#allocation2 + $0x78] sm:$0xe] }
 0x25a   : > { %v4682_v59 = vsel %vm13377_vm13, %v4677_v24, %v4681_v11  ;;  %v5078_v34 = vsel %vm13857_vm2, %v5076_v9, %v5077_v48  ;;  %v5004_v24 = vld [vmem:[#allocation2 + $0x3c] sm:$0xe]  ;;  %v5005_v11 = vld [vmem:[#allocation2 + $0x48] sm:$0xe]  ;;  %v11163_v7 = vcombine.low %v5082_v60, %v5085_v1  ;;  %v5098_v30 = vrot.slane %v14485_v5, 5 }
 0x25b   : > { %v11126_v16 = vcombine.low %v4672_v4, %v4682_v59  ;;  %v4696_v52 = vsel %vm13377_vm13, %v4691_v44, %v4695_v33  ;;  %v5075_v33 = vsel %vm13857_vm2, %v11145_v18, %v5074_v27  ;;  %v11147_v49 = vrot.slane %v5004_v24, 9  ;;  %v5007_v44 = vld [vmem:[#allocation2 + $0x60] sm:$0xe] }
 0x25c   : > { %v11162_v22 = vcombine.low %v5075_v33, %v5078_v34  ;;  %v11148_v4 = vrot.slane %v5005_v11, 9  ;;  %v5097_v59 = vrot.slane %v5095_v53, 4  ;;  %v5092_v29 = vsel %vm13857_vm2, %v5090_v23, %v5091_v62  ;;  %v5010_v34 = vld [vmem:[#allocation2 + $0x84] sm:$0xe] }
 0x25d   : > { %v5089_v20 = vsel %vm13857_vm2, %v11147_v49, %v5088_v35  ;;  %v5102_v58 = vrot.slane %v14470_v63, 5  ;;  %v5109_v5 = vrot.slane %v14500_v26, 5  ;;  %v5105_v3 = vrot.slane %v14516_v31, 5  ;;  %v5011_v35 = vld [vmem:[#allocation2 + $0x90] sm:$0xe] }
 0x25e   : > { %12206 = vmatmul.mubr.msk.bf16.gmra.mrb[20].mxu0 %vm1399_vm12, %v11123_v38  ;;  %v11127_v38 = vcombine.low %v4696_v52, %v4706_v45  ;;  %v5099_v40 = vsel %vm13857_vm2, %v5097_v59, %v5098_v30  ;;  %v11164_v39 = vcombine.low %v5089_v20, %v5092_v29  ;;  %v11150_v52 = vrot.slane %v5007_v44, 9  ;;  %v5013_v59 = vld [vmem:[#allocation2 + $0xa8] sm:$0xe] }
 0x25f   : > { %12209 = vmatprep.mubr.msk.bf16.mxu0 %vm1399_vm12, %v11124_v46  ;;  %v11161_v46 = vcombine.low %v5068_v57, %v5071_v55  ;;  %v5104_v32 = vrot.slane %v5102_v58, 4  ;;  %v5111_v45 = vrot.slane %v5109_v5, 4  ;;  %v5112_v63 = vrot.slane %v14530_v19, 5 }
 0x260   : > { %v5116_v57 = vrot.slane %v14537_v8, 5  ;;  %v5110_v55 = vsel %vm13857_vm2, %v11150_v52, %v5109_v5  ;;  %v5123_v19 = vrot.slane %v14541_v21, 5  ;;  %v5119_v9 = vrot.slane %v14563_v0, 5  ;;  %v16894_v5 = vld [vmem:[#allocation9_spill] sm:$0xff] }
 0x261   : > { %v5106_v26 = vsel %vm13857_vm2, %v5104_v32, %v5105_v3  ;;  %v5113_v31 = vsel %vm13857_vm2, %v5111_v45, %v5112_v63  ;;  %v11152_v48 = vrot.slane %v5009_v41, 9  ;;  %v5126_v8 = vrot.slane %v14567_v54, 5  ;;  %v5014_v32 = vld [vmem:[#allocation2 + $0xb4] sm:$0xe]  ;;  %v5015_v45 = vld [vmem:[#allocation2 + $0xc0] sm:$0xe] }
 0x262   : > { %v5118_v18 = vrot.slane %v5116_v57, 4  ;;  %v5125_v42 = vrot.slane %v5123_v19, 4  ;;  %v5130_v61 = vrot.slane %v14558_v10, 5  ;;  %v5137_v54 = vrot.slane %v14579_v25, 5  ;;  %v16896_v3 = vld [vmem:[#allocation10_spill] sm:$0xff] }
 0x263   : > { %v5124_v33 = vsel %vm13857_vm2, %v11152_v48, %v5123_v19  ;;  %v11153_v24 = vrot.slane %v5010_v34, 9  ;;  %v5133_v11 = vrot.slane %v14588_v28, 5  ;;  %v5140_v10 = vrot.slane %v14600_v17, 5 }
 0x264   : > { %v5120_v21 = vsel %vm13857_vm2, %v5118_v18, %v5119_v9  ;;  %v5127_v0 = vsel %vm13857_vm2, %v5125_v42, %v5126_v8  ;;  %v5144_v23 = vrot.slane %v14598_v47, 5  ;;  %v5151_v17 = vrot.slane %v14609_v37, 5  ;;  %v16898_v9 = vld [vmem:[#allocation8_spill] sm:$0xff] }
 0x265   : > { %v11169_v1 = vcombine.low %v5124_v33, %v5127_v0  ;;  %v5131_v49 = vsel %vm13857_vm2, %v11153_v24, %v5130_v61  ;;  %v5154_v47 = vrot.slane %v16894_v5, 5  ;;  %v5165_v52 = vrot.slane %v16896_v3, 5  ;;  %v6069_v42 = vld [vmem:[#allocation2] sm:$0xf]  ;;  %v6070_v8 = vld [vmem:[#allocation2 + $0x4] sm:$0xf] }
 0x266   : > { %12210 = vmatmul.mubr.msk.bf16.gmra.mrb[24].mxu0 %vm1399_vm12, %v11125_v14  ;;  %v5096_v14 = vsel %vm13857_vm2, %v11148_v4, %v5095_v53  ;;  %v5132_v53 = vrot.slane %v5130_v61, 4  ;;  %v5012_v4 = vld [vmem:[#allocation2 + $0x9c] sm:$0xe]  ;;  %v5168_v19 = vrot.slane %v14663_v50, 5  ;;  %v6128_v61 = vshll.u32 %v6070_v8, 16 }
 0x267   : > { %12213 = vmatprep.mubr.msk.bf16.mxu0 %vm1399_vm12, %v11126_v16  ;;  %v5006_v16 = vld [vmem:[#allocation2 + $0x54] sm:$0xe]  ;;  %v11165_v13 = vcombine.low %v5096_v14, %v5099_v40  ;;  %v11155_v29 = vrot.slane %v5012_v4, 9  ;;  %v5147_v14 = vrot.slane %v14627_v2, 5  ;;  %v11156_v40 = vrot.slane %v5013_v59, 9  ;;  %v16897_v50 = vld [vmem:[#allocation7_spill] sm:$0xff] }
 0x268   : > { %v11149_v6 = vrot.slane %v5006_v16, 9  ;;  %v5134_v25 = vsel %vm13857_vm2, %v5132_v53, %v5133_v11  ;;  %v5153_v16 = vrot.slane %v5151_v17, 4  ;;  %v16899_v48 = vcombine.low %v16897_v50, %v16898_v9  ;;  %v14823_v4 = vld [vmem:[%s16762_s2] ss:$0 sm:$0xff] }
 0x269   : > { %v11170_v30 = vcombine.low %v5131_v49, %v5134_v25  ;;  %v5145_v44 = vsel %vm13857_vm2, %v11155_v29, %v5144_v23  ;;  %v6132_v33 = vshrl.u32 %v6070_v8, 16  ;;  %v5968_v8 = vld [vmem:[#allocation2 + $0x20] sm:$0x1] }
 0x26a   : > { %v5103_v27 = vsel %vm13857_vm2, %v11149_v6, %v5102_v58  ;;  %v5146_v58 = vrot.slane %v5144_v23, 4  ;;  %v5152_v6 = vsel %vm13857_vm2, %v11156_v40, %v5151_v17  ;;  %v5155_v2 = vsel %vm13857_vm2, %v5153_v16, %v5154_v47 }
 0x26b   : > { %v11166_v36 = vcombine.low %v5103_v27, %v5106_v26  ;;  %v11173_v27 = vcombine.low %v5152_v6, %v5155_v2  ;;  %v11157_v26 = vrot.slane %v5014_v32, 9 }
 0x26c   : > { %v5148_v37 = vsel %vm13857_vm2, %v5146_v58, %v5147_v14 }
 0x26d   : > { %v11172_v63 = vcombine.low %v5145_v44, %v5148_v37 }
 0x26e   : > { %12214 = vmatmul.mubr.msk.bf16.gmra.mrb[28].mxu0 %vm1399_vm12, %v11127_v38  ;;  %v11167_v38 = vcombine.low %v5110_v55, %v5113_v31  ;;  %v5161_v55 = vrot.slane %v14656_v56, 5  ;;  %v11158_v31 = vrot.slane %v5015_v45, 9 }
 0x26f   : > { %12219 = vmatprep.mubr.msk.bf16.mxu0 %vm1399_vm12, %v11161_v46  ;;  %v11151_v46 = vrot.slane %v5008_v43, 9  ;;  %v5167_v43 = vrot.slane %v5165_v52, 4 }
 0x271   : > { %v5117_v12 = vsel %vm13857_vm2, %v11151_v46, %v5116_v57  ;;  %v5169_v56 = vsel %vm13857_vm2, %v5167_v43, %v5168_v19 }
 0x272   : > { %v11168_v60 = vcombine.low %v5117_v12, %v5120_v21  ;;  %v6119_v12 = vshrl.u32 %v6069_v42, 16  ;;  %v6122_v21 = vshll.u32 %v6069_v42, 16 }
 0x274   : > { %v6121_v0 = vrot.slane %v6119_v12, 4  ;;  %v6124_v34 = vrot.slane %v6122_v21, 5 }
 0x276   : > { %12220 = vmatmul.mubr.msk.bf16.vlgmr.msra.gmra.mrb[0].mxu0 %vm1399_vm12, %v11162_v22  ;;  %v11154_v22 = vrot.slane %v5011_v35, 9  ;;  %v6134_v35 = vrot.slane %v6132_v33, 4  ;;  %v6125_v53 = vor.u32 %v6124_v34, %v6121_v0 }
 0x277   : > { %12223 = vmatprep.mubr.msk.bf16.mxu0 %vm1399_vm12, %v11163_v7  ;;  %v5139_v7 = vrot.slane %v5137_v54, 4 }
 0x278   : > { %v5138_v62 = vsel %vm13857_vm2, %v11154_v22, %v5137_v54  ;;  %v6130_v54 = vrot.slane %v6128_v61, 5 }
 0x279   : > { %v5141_v28 = vsel %vm13857_vm2, %v5139_v7, %v5140_v10  ;;  %v6126_v7 = vrot.slane %v6125_v53, 4 }
 0x27a   : > { %v11171_v20 = vcombine.low %v5138_v62, %v5141_v28  ;;  %v6135_v11 = vor.u32 %v6134_v35, %v6130_v54  ;;  %v14816_v28 = vld [vmem:[%s16763_s3] sm:$0xf] }
 0x27b   : > { %v6131_v25 = vsel %vm13377_vm13, %v6126_v7, %v6130_v54  ;;  %v5961_v54 = vld [vmem:[#allocation2 + $0x14] sm:$0x1] }
 0x27c   : > { %v6136_v10 = vrot.slane %v6135_v11, 4 }
 0x27e   : > { %12224 = vmatmul.mubr.msk.bf16.gmra.mrb[4].mxu0 %vm1399_vm12, %v11164_v39  ;;  %v16895_v39 = vld [vmem:[#allocation4_spill] sm:$0xff] }
 0x27f   : > { %12227 = vmatprep.mubr.msk.bf16.mxu0 %vm1399_vm12, %v11165_v13  ;;  %v5158_v13 = vrot.slane %v16895_v39, 5 }
 0x281   : > { %v5160_v57 = vrot.slane %v5158_v13, 4  ;;  %v5159_v41 = vsel %vm13857_vm2, %v11157_v26, %v5158_v13 }
 0x286   : > { %12228 = vmatmul.mubr.msk.bf16.gmra.mrb[8].mxu0 %vm1399_vm12, %v11166_v36  ;;  %v5162_v36 = vsel %vm13857_vm2, %v5160_v57, %v5161_v55 }
 0x287   : > { %12231 = vmatprep.mubr.msk.bf16.mxu0 %vm1399_vm12, %v11167_v38  ;;  %v5166_v38 = vsel %vm13857_vm2, %v11158_v31, %v5165_v52  ;;  %v11174_v46 = vcombine.low %v5159_v41, %v5162_v36  ;;  %v5964_v31 = vld [vmem:[#allocation2 + $0x18] sm:$0xf] }
 0x288   : > { %v11175_v18 = vcombine.low %v5166_v38, %v5169_v56 }
 0x28e   : > { %12232 = vmatmul.mubr.msk.bf16.gmra.mrb[12].mxu0 %vm1399_vm12, %v11168_v60  ;;  %v11226_v60 = vld [vmem:[%s16763_s3 + $0x4] sm:$0xf] }
 0x28f   : > { %12235 = vmatprep.mubr.msk.bf16.mxu0 %vm1399_vm12, %v11169_v1  ;;  %v6102_v1 = vld [vmem:[#allocation2 + $0x8] sm:$0x1]  ;;  %13078 = vmatprep.subr.msk.bf16.mxu1 %vm1448_vm0, %v11226_v60  ;;  %v6601_v24 = vsel %vm1448_vm0, %v11226_v60, 0  ;;  %v13193_v60 = vld [vmem:[#allocation2 + $0xc] sm:$0xf] }
 0x290   : > { %v6138_v22 = vshll.u32 %v6102_v1, 16  ;;  %12252 = vmatpush3.bf16.msra.mxu1 %v6601_v24 }
 0x291   : > { %13079 = vmatprep.subr.msk.bf16.mxu1 %vm1448_vm0, %v14816_v28 }
 0x292   : > { %v6140_v49 = vrot.slane %v6138_v22, 5 }
 0x294   : > { %v6141_v23 = vsel %vm13377_vm13, %v6136_v10, %v6140_v49 }
 0x295   : > { %v11227_v62 = vcombine.low %v6131_v25, %v6141_v23 }
 0x296   : > { %12236 = vmatmul.mubr.msk.bf16.gmra.mrb[16].mxu0 %vm1399_vm12, %v11170_v30 }
 0x297   : > { %12239 = vmatprep.mubr.msk.bf16.mxu0 %vm1399_vm12, %v11171_v20  ;;  %12253 = vmatprep.mubr.msk.bf16.mxu1 %vm1399_vm12, %v11227_v62 }
 0x29e   : > { %12240 = vmatmul.mubr.msk.bf16.gmra.mrb[20].mxu0 %vm1399_vm12, %v11172_v63 }
 0x29f   : > { %12243 = vmatprep.mubr.msk.bf16.mxu0 %vm1399_vm12, %v11173_v27 }
 0x2a6   : > { %12244 = vmatmul.mubr.msk.bf16.gmra.mrb[24].mxu0 %vm1399_vm12, %v11174_v46 }
 0x2a7   : > { %12247 = vmatprep.mubr.msk.bf16.mxu0 %vm1399_vm12, %v11175_v18 }
 0x2ae   : > { %12248 = vmatmul.mubr.msk.bf16.gmra.mrb[28].mxu0 %vm1399_vm12, %v16899_v48 }
 0x349   : > { %v12221_v17 = vpop.f32.mrb[0].mxu0 }
 0x34a   : > { %v5480_v59 = vadd.f32 %v12221_v17, %v14823_v4  ;;  %v5312_v30 = vpop.f32.mrb[1].mxu0 }
 0x34b   : > { %v5478_v20 = vadd.f32 %v14823_v4, %v5312_v30  ;;  %v12222_v29 = vpop.f32.mrb[2].mxu0 }
 0x34c   : > { %v5512_v58 = vmax.f32 %v5480_v59, 0.0  ;;  %v5481_v14 = vadd.f32 %v12222_v29, %v14823_v4  ;;  %v5315_v40 = vpop.f32.mrb[3].mxu0 }
 0x34d   : > { %v5510_v16 = vmax.f32 %v5478_v20, 0.0  ;;  %v5479_v5 = vadd.f32 %v14823_v4, %v5315_v40 }
 0x34e   : > { %v11609_v47 = vpack.c.bf16 %v5512_v58, %v5512_v58  ;;  %v5513_v44 = vmax.f32 %v5481_v14, 0.0 }
 0x34f   : > { %v11607_v37 = vpack.c.bf16 %v5510_v16, %v5510_v16  ;;  %v5511_v39 = vmax.f32 %v5479_v5, 0.0  ;;  %v5978_v16 = vld [vmem:[#allocation2 + $0x30] sm:$0xf] }
 0x350   : > { %v5656_v13 = vshrl.u32 %v11609_v47, 16  ;;  %v11610_v6 = vpack.c.bf16 %v5513_v44, %v5513_v44  ;;  %v5659_v2 = vshll.u32 %v11609_v47, 16 }
 0x351   : > { %v5639_v32 = vshrl.u32 %v11607_v37, 16  ;;  %v5642_v3 = vshll.u32 %v11607_v37, 16  ;;  %v11608_v52 = vpack.c.bf16 %v5511_v39, %v5511_v39  ;;  %v12225_v45 = vpop.f32.mrb[4].mxu0 }
 0x352   : > { %v5658_v63 = vrot.slane %v5656_v13, 7  ;;  %v5664_v27 = vshrl.u32 %v11610_v6, 16  ;;  %v5667_v26 = vshll.u32 %v11610_v6, 16  ;;  %v5484_v57 = vadd.f32 %v12225_v45, %v14823_v4  ;;  %v5328_v55 = vpop.f32.mrb[5].mxu0  ;;  %v5971_v6 = vld [vmem:[#allocation2 + $0x24] sm:$0xf] }
 0x353   : > { %v5641_v43 = vrot.slane %v5639_v32, 7  ;;  %v5647_v19 = vshrl.u32 %v11608_v52, 16  ;;  %v5650_v41 = vshll.u32 %v11608_v52, 16  ;;  %v5482_v36 = vadd.f32 %v14823_v4, %v5328_v55  ;;  %v12226_v38 = vpop.f32.mrb[6].mxu0 }
 0x354   : > { %v5661_v56 = vor.u32 %v5659_v2, %v5658_v63  ;;  %v5662_v46 = vrot.slane %v5658_v63, 4  ;;  %v5666_v18 = vrot.slane %v5664_v27, 7  ;;  %v5516_v50 = vmax.f32 %v5484_v57, 0.0  ;;  %v5331_v9 = vpop.f32.mrb[7].mxu0 }
 0x355   : > { %v5644_v48 = vor.u32 %v5642_v3, %v5641_v43  ;;  %v5645_v42 = vrot.slane %v5641_v43, 4  ;;  %v5649_v12 = vrot.slane %v5647_v19, 7  ;;  %v5514_v21 = vmax.f32 %v5482_v36, 0.0 }
 0x356   : > { %v5965_v33 = vsel %vm13366_vm10, %v5661_v56, %v5964_v31  ;;  %v5669_v0 = vor.u32 %v5667_v26, %v5666_v18  ;;  %v5671_v34 = vrot.slane %v5666_v18, 4  ;;  %v11613_v35 = vpack.c.bf16 %v5516_v50, %v5516_v50  ;;  %v5982_v50 = vld [vmem:[#allocation2 + $0x38] sm:$0x1] }
 0x357   : > { %5966 = vst [vmem:[#allocation2 + $0x18] sm:$0xf] %v5965_v33  ;;  %v5958_v1 = vsel %vm13366_vm10, %v5644_v48, %v13193_v60  ;;  %v5652_v24 = vor.u32 %v5650_v41, %v5649_v12  ;;  %v5654_v53 = vrot.slane %v5649_v12, 4  ;;  %v11611_v11 = vpack.c.bf16 %v5514_v21, %v5514_v21 }
 0x358   : > { %5959 = vst [vmem:[#allocation2 + $0xc] sm:$0xf] %v5958_v1  ;;  %v5670_v7 = vsel %vm13371_vm11, %v5662_v46, %v5669_v0  ;;  %v5969_v49 = vsel %vm13304_vm5, %v5671_v34, %v5968_v8  ;;  %v5690_v25 = vshrl.u32 %v11613_v35, 16  ;;  %v5693_v17 = vshll.u32 %v11613_v35, 16  ;;  %v5992_v1 = vld [vmem:[#allocation2 + $0x48] sm:$0xf] }
 0x359   : > { %5967 = vst.msk [vmem:[#allocation2 + $0x1c] sm:$0xf] %vm226_vm1, %v5670_v7  ;;  %5970 = vst [vmem:[#allocation2 + $0x20] sm:$0x1] %v5969_v49  ;;  %v5653_v23 = vsel %vm13371_vm11, %v5645_v42, %v5652_v24  ;;  %v5962_v62 = vsel %vm13304_vm5, %v5654_v53, %v5961_v54  ;;  %v5673_v59 = vshrl.u32 %v11611_v11, 16  ;;  %v12229_v30 = vpop.f32.mrb[8].mxu0  ;;  %v5485_v29 = vadd.f32 %v12226_v38, %v14823_v4 }
 0x35a   : > { %5960 = vst.msk [vmem:[#allocation2 + $0x10] sm:$0xf] %vm226_vm1, %v5653_v23  ;;  %5963 = vst [vmem:[#allocation2 + $0x14] sm:$0x1] %v5962_v62  ;;  %v14845_v20 = vrot.slane %v5690_v25, 7  ;;  %v5483_v58 = vadd.f32 %v14823_v4, %v5331_v9  ;;  %v5488_v14 = vadd.f32 %v12229_v30, %v14823_v4  ;;  %v5344_v40 = vpop.f32.mrb[9].mxu0 }
 0x35b   : > { %v5675_v5 = vrot.slane %v5673_v59, 7  ;;  %v5676_v47 = vshll.u32 %v11611_v11, 16  ;;  %v5486_v44 = vadd.f32 %v14823_v4, %v5344_v40  ;;  %v12230_v37 = vpop.f32.mrb[10].mxu0  ;;  %v5517_v2 = vmax.f32 %v5485_v29, 0.0  ;;  %v5975_v9 = vld [vmem:[#allocation2 + $0x2c] sm:$0x1] }
 0x35c   : > { %v5695_v39 = vor.u32 %v5693_v17, %v14845_v20  ;;  %v5696_v13 = vrot.slane %v14845_v20, 4  ;;  %v5515_v32 = vmax.f32 %v5483_v58, 0.0  ;;  %v5347_v3 = vpop.f32.mrb[11].mxu0  ;;  %v5520_v63 = vmax.f32 %v5488_v14, 0.0  ;;  %v5985_v17 = vld [vmem:[#allocation2 + $0x3c] sm:$0xf] }
 0x35d   : > { %v5678_v52 = vor.u32 %v5676_v47, %v5675_v5  ;;  %v5679_v45 = vrot.slane %v5675_v5, 4  ;;  %v5518_v27 = vmax.f32 %v5486_v44, 0.0  ;;  %v11614_v57 = vpack.c.bf16 %v5517_v2, %v5517_v2 }
 0x35e   : > { %v5979_v26 = vsel %vm13366_vm10, %v5695_v39, %v5978_v16  ;;  %v11612_v55 = vpack.c.bf16 %v5515_v32, %v5515_v32  ;;  %v5489_v31 = vadd.f32 %v12230_v37, %v14823_v4  ;;  %v11617_v19 = vpack.c.bf16 %v5520_v63, %v5520_v63 }
 0x35f   : > { %5980 = vst [vmem:[#allocation2 + $0x30] sm:$0xf] %v5979_v26  ;;  %v5972_v43 = vsel %vm13366_vm10, %v5678_v52, %v5971_v6  ;;  %v11615_v41 = vpack.c.bf16 %v5518_v27, %v5518_v27  ;;  %v5487_v36 = vadd.f32 %v14823_v4, %v5347_v3  ;;  %v5698_v38 = vshrl.u32 %v11614_v57, 16  ;;  %v5996_v26 = vld [vmem:[#allocation2 + $0x50] sm:$0x1] }
 0x360   : > { %5973 = vst [vmem:[#allocation2 + $0x24] sm:$0xf] %v5972_v43  ;;  %v5701_v56 = vshll.u32 %v11614_v57, 16  ;;  %v5681_v46 = vshrl.u32 %v11612_v55, 16  ;;  %v5684_v18 = vshll.u32 %v11612_v55, 16  ;;  %v5724_v48 = vshrl.u32 %v11617_v19, 16 }
 0x361   : > { %v5727_v42 = vshll.u32 %v11617_v19, 16  ;;  %v5707_v8 = vshrl.u32 %v11615_v41, 16  ;;  %v5710_v12 = vshll.u32 %v11615_v41, 16  ;;  %v12233_v21 = vpop.f32.mrb[12].mxu0  ;;  %v5700_v33 = vrot.slane %v5698_v38, 7 }
 0x362   : > { %v5683_v0 = vrot.slane %v5681_v46, 7  ;;  %v5521_v34 = vmax.f32 %v5489_v31, 0.0  ;;  %v5519_v54 = vmax.f32 %v5487_v36, 0.0  ;;  %v5360_v35 = vpop.f32.mrb[13].mxu0  ;;  %v14859_v60 = vrot.slane %v5724_v48, 7 }
 0x363   : > { %v14861_v24 = vrot.slane %v5707_v8, 7  ;;  %v5492_v53 = vadd.f32 %v12233_v21, %v14823_v4  ;;  %v5490_v11 = vadd.f32 %v14823_v4, %v5360_v35  ;;  %v12234_v7 = vpop.f32.mrb[14].mxu0  ;;  %v5703_v49 = vor.u32 %v5701_v56, %v5700_v33  ;;  %v5989_v38 = vld [vmem:[#allocation2 + $0x44] sm:$0x1] }
 0x364   : > { %v5705_v25 = vrot.slane %v5700_v33, 4  ;;  %v5686_v23 = vor.u32 %v5684_v18, %v5683_v0  ;;  %v5688_v62 = vrot.slane %v5683_v0, 4  ;;  %v5363_v59 = vpop.f32.mrb[15].mxu0  ;;  %v5729_v30 = vor.u32 %v5727_v42, %v14859_v60 }
 0x365   : > { %v5730_v20 = vrot.slane %v14859_v60, 4  ;;  %v5712_v29 = vor.u32 %v5710_v12, %v14861_v24  ;;  %v5713_v58 = vrot.slane %v14861_v24, 4  ;;  %v5704_v14 = vsel %vm13371_vm11, %v5696_v13, %v5703_v49  ;;  %v5999_v49 = vld [vmem:[#allocation2 + $0x54] sm:$0xf] }
 0x366   : > { %v5983_v40 = vsel %vm13304_vm5, %v5705_v25, %v5982_v50  ;;  %v5687_v16 = vsel %vm13371_vm11, %v5679_v45, %v5686_v23  ;;  %v5976_v5 = vsel %vm13304_vm5, %v5688_v62, %v5975_v9  ;;  %5981 = vst.msk [vmem:[#allocation2 + $0x34] sm:$0xf] %vm226_vm1, %v5704_v14  ;;  %v5993_v47 = vsel %vm13366_vm10, %v5729_v30, %v5992_v1 }
 0x367   : > { %5984 = vst [vmem:[#allocation2 + $0x38] sm:$0x1] %v5983_v40  ;;  %5974 = vst.msk [vmem:[#allocation2 + $0x28] sm:$0xf] %vm226_vm1, %v5687_v16  ;;  %v5986_v44 = vsel %vm13366_vm10, %v5712_v29, %v5985_v17  ;;  %v11618_v37 = vpack.c.bf16 %v5521_v34, %v5521_v34  ;;  %v11616_v39 = vpack.c.bf16 %v5519_v54, %v5519_v54  ;;  %v5524_v13 = vmax.f32 %v5492_v53, 0.0 }
 0x368   : > { %5977 = vst [vmem:[#allocation2 + $0x2c] sm:$0x1] %v5976_v5  ;;  %5994 = vst [vmem:[#allocation2 + $0x48] sm:$0xf] %v5993_v47  ;;  %v5522_v6 = vmax.f32 %v5490_v11, 0.0  ;;  %v5493_v2 = vadd.f32 %v12234_v7, %v14823_v4  ;;  %v5491_v32 = vadd.f32 %v14823_v4, %v5363_v59 }
 0x369   : > { %5987 = vst [vmem:[#allocation2 + $0x3c] sm:$0xf] %v5986_v44  ;;  %v5732_v3 = vshrl.u32 %v11618_v37, 16  ;;  %v5735_v52 = vshll.u32 %v11618_v37, 16  ;;  %v5715_v45 = vshrl.u32 %v11616_v39, 16  ;;  %v5718_v63 = vshll.u32 %v11616_v39, 16 }
 0x36a   : > { %v12237_v27 = vpop.f32.mrb[16].mxu0  ;;  %v11621_v57 = vpack.c.bf16 %v5524_v13, %v5524_v13  ;;  %v11619_v55 = vpack.c.bf16 %v5522_v6, %v5522_v6  ;;  %v5525_v31 = vmax.f32 %v5493_v2, 0.0  ;;  %v5523_v43 = vmax.f32 %v5491_v32, 0.0  ;;  %v6006_v7 = vld [vmem:[#allocation2 + $0x60] sm:$0xf] }
 0x36b   : > { %v5376_v19 = vpop.f32.mrb[17].mxu0  ;;  %v5734_v41 = vrot.slane %v5732_v3, 7  ;;  %v5717_v36 = vrot.slane %v5715_v45, 7  ;;  %v5496_v56 = vadd.f32 %v12237_v27, %v14823_v4  ;;  %v6071_v59 = vld [vmem:[#allocation2 + $0xc] sm:$0xf] }
 0x36c   : > { %v5494_v46 = vadd.f32 %v14823_v4, %v5376_v19  ;;  %v12238_v18 = vpop.f32.mrb[18].mxu0  ;;  %v5758_v50 = vshrl.u32 %v11621_v57, 16  ;;  %v5761_v9 = vshll.u32 %v11621_v57, 16  ;;  %v5741_v48 = vshrl.u32 %v11619_v55, 16  ;;  %v6010_v5 = vld [vmem:[#allocation2 + $0x68] sm:$0x1] }
 0x36d   : > { %v5744_v42 = vshll.u32 %v11619_v55, 16  ;;  %v5379_v8 = vpop.f32.mrb[19].mxu0  ;;  %v5737_v12 = vor.u32 %v5735_v52, %v5734_v41  ;;  %v5739_v21 = vrot.slane %v5734_v41, 4  ;;  %v5720_v33 = vor.u32 %v5718_v63, %v5717_v36  ;;  %v6003_v47 = vld [vmem:[#allocation2 + $0x5c] sm:$0x1] }
 0x36e   : > { %v5722_v0 = vrot.slane %v5717_v36, 4  ;;  %v5760_v34 = vrot.slane %v5758_v50, 7  ;;  %v5743_v54 = vrot.slane %v5741_v48, 7  ;;  %v11622_v35 = vpack.c.bf16 %v5525_v31, %v5525_v31  ;;  %v6072_v63 = vld [vmem:[#allocation2 + $0x10] sm:$0xf] }
 0x36f   : > { %v11620_v60 = vpack.c.bf16 %v5523_v43, %v5523_v43  ;;  %v5738_v1 = vsel %vm13371_vm11, %v5730_v20, %v5737_v12  ;;  %v5997_v24 = vsel %vm13304_vm5, %v5739_v21, %v5996_v26  ;;  %v5721_v53 = vsel %vm13371_vm11, %v5713_v58, %v5720_v33  ;;  %v6020_v48 = vld [vmem:[#allocation2 + $0x78] sm:$0xf] }
 0x370   : > { %v5990_v11 = vsel %vm13304_vm5, %v5722_v0, %v5989_v38  ;;  %5995 = vst.msk [vmem:[#allocation2 + $0x4c] sm:$0xf] %vm226_vm1, %v5738_v1  ;;  %5998 = vst [vmem:[#allocation2 + $0x50] sm:$0x1] %v5997_v24  ;;  %v5763_v25 = vor.u32 %v5761_v9, %v5760_v34  ;;  %v5764_v23 = vrot.slane %v5760_v34, 4  ;;  %v5746_v62 = vor.u32 %v5744_v42, %v5743_v54 }
 0x371   : > { %5988 = vst.msk [vmem:[#allocation2 + $0x40] sm:$0xf] %vm226_vm1, %v5721_v53  ;;  %5991 = vst [vmem:[#allocation2 + $0x44] sm:$0x1] %v5990_v11  ;;  %v5747_v17 = vrot.slane %v5743_v54, 4  ;;  %v5766_v30 = vshrl.u32 %v11622_v35, 16  ;;  %v5497_v2 = vadd.f32 %v12238_v18, %v14823_v4  ;;  %v5495_v32 = vadd.f32 %v14823_v4, %v5379_v8 }
 0x372   : > { %v5769_v20 = vshll.u32 %v11622_v35, 16  ;;  %v5749_v29 = vshrl.u32 %v11620_v60, 16  ;;  %v5752_v58 = vshll.u32 %v11620_v60, 16  ;;  %v14897_v14 = vpop.f32.mrb[20].mxu0  ;;  %v6007_v40 = vsel %vm13366_vm10, %v5763_v25, %v6006_v7  ;;  %v6013_v42 = vld [vmem:[#allocation2 + $0x6c] sm:$0xf] }
 0x373   : > { %v6000_v16 = vsel %vm13366_vm10, %v5746_v62, %v5999_v49  ;;  %v5528_v44 = vmax.f32 %v5496_v56, 0.0  ;;  %v5526_v37 = vmax.f32 %v5494_v46, 0.0  ;;  %v14903_v39 = vpop.f32.mrb[21].mxu0  ;;  %6008 = vst [vmem:[#allocation2 + $0x60] sm:$0xf] %v6007_v40  ;;  %v5768_v13 = vrot.slane %v5766_v30, 7 }
 0x374   : > { %6001 = vst [vmem:[#allocation2 + $0x54] sm:$0xf] %v6000_v16  ;;  %v5751_v6 = vrot.slane %v5749_v29, 7  ;;  %v14907_v3 = vpop.f32.mrb[22].mxu0  ;;  %v6143_v27 = vshrl.u32 %v6071_v59, 16  ;;  %v6146_v26 = vshll.u32 %v6071_v59, 16 }
 0x375   : > { %v11625_v52 = vpack.c.bf16 %v5528_v44, %v5528_v44  ;;  %v11623_v45 = vpack.c.bf16 %v5526_v37, %v5526_v37  ;;  %v14909_v57 = vpop.f32.mrb[23].mxu0  ;;  %v5771_v55 = vor.u32 %v5769_v20, %v5768_v13  ;;  %v5773_v31 = vrot.slane %v5768_v13, 4  ;;  %v6103_v0 = vld [vmem:[#allocation2 + $0x14] sm:$0x1]  ;;  %v6074_v40 = vld [vmem:[#allocation2 + $0x1c] sm:$0xf] }
 0x376   : > { %v5754_v43 = vor.u32 %v5752_v58, %v5751_v6  ;;  %v5756_v19 = vrot.slane %v5751_v6, 4  ;;  %v5529_v21 = vmax.f32 %v5497_v2, 0.0  ;;  %v5527_v33 = vmax.f32 %v5495_v32, 0.0 }
 0x377   : > { %v5792_v41 = vshrl.u32 %v11625_v52, 16  ;;  %v5795_v36 = vshll.u32 %v11625_v52, 16  ;;  %v5775_v38 = vshrl.u32 %v11623_v45, 16  ;;  %v5778_v56 = vshll.u32 %v11623_v45, 16  ;;  %v6024_v52 = vld [vmem:[#allocation2 + $0x80] sm:$0x1] }
 0x378   : > { %v5772_v46 = vsel %vm13371_vm11, %v5764_v23, %v5771_v55  ;;  %v6011_v18 = vsel %vm13304_vm5, %v5773_v31, %v6010_v5  ;;  %v5755_v50 = vsel %vm13371_vm11, %v5747_v17, %v5754_v43  ;;  %v6004_v9 = vsel %vm13304_vm5, %v5756_v19, %v6003_v47  ;;  %v6073_v17 = vld [vmem:[#allocation2 + $0x18] sm:$0xf] }
 0x379   : > { %6009 = vst.msk [vmem:[#allocation2 + $0x64] sm:$0xf] %vm226_vm1, %v5772_v46  ;;  %6012 = vst [vmem:[#allocation2 + $0x68] sm:$0x1] %v6011_v18  ;;  %v5794_v8 = vrot.slane %v5792_v41, 7  ;;  %v5777_v12 = vrot.slane %v5775_v38, 7  ;;  %v11626_v49 = vpack.c.bf16 %v5529_v21, %v5529_v21  ;;  %v11624_v25 = vpack.c.bf16 %v5527_v33, %v5527_v33 }
 0x37a   : > { %6002 = vst.msk [vmem:[#allocation2 + $0x58] sm:$0xf] %vm226_vm1, %v5755_v50  ;;  %6005 = vst [vmem:[#allocation2 + $0x5c] sm:$0x1] %v6004_v9  ;;  %v6145_v34 = vrot.slane %v6143_v27, 4  ;;  %v6148_v54 = vrot.slane %v6146_v26, 5 }
 0x37b   : > { %v6152_v35 = vshll.u32 %v6072_v63, 16  ;;  %v6156_v60 = vshrl.u32 %v6072_v63, 16  ;;  %v14921_v1 = vpop.f32.mrb[24].mxu0  ;;  %v5797_v24 = vor.u32 %v5795_v36, %v5794_v8  ;;  %v5780_v53 = vor.u32 %v5778_v56, %v5777_v12  ;;  %v6017_v26 = vld [vmem:[#allocation2 + $0x74] sm:$0x1] }
 0x37c   : > { %v14925_v11 = vsel %vm1448_vm0, %v14816_v28, 0  ;;  %v14927_v7 = vpop.f32.mrb[25].mxu0  ;;  %v6149_v23 = vor.u32 %v6148_v54, %v6145_v34  ;;  %v6162_v58 = vshll.u32 %v6103_v0, 16  ;;  %v5798_v16 = vrot.slane %v5794_v8, 4  ;;  %v6104_v46 = vld [vmem:[#allocation2 + $0x20] sm:$0x1] }
 0x37d   : > { %v6154_v62 = vrot.slane %v6152_v35, 5  ;;  %v14929_v59 = vpop.f32.mrb[26].mxu0  ;;  %v6021_v30 = vsel %vm13366_vm10, %v5797_v24, %v6020_v48  ;;  %v6014_v20 = vsel %vm13366_vm10, %v5780_v53, %v6013_v42  ;;  %v6158_v29 = vrot.slane %v6156_v60, 4  ;;  %v6075_v8 = vld [vmem:[#allocation2 + $0x24] sm:$0xf] }
 0x37e   : > { %v14935_v28 = vpop.f32.mrb[27].mxu0  ;;  %6022 = vst [vmem:[#allocation2 + $0x78] sm:$0xf] %v6021_v30  ;;  %v5781_v5 = vrot.slane %v5777_v12, 4  ;;  %6015 = vst [vmem:[#allocation2 + $0x6c] sm:$0xf] %v6014_v20 }
 0x37f   : > { %v5800_v47 = vshrl.u32 %v11626_v49, 16  ;;  %v5783_v44 = vshrl.u32 %v11624_v25, 16  ;;  %v5803_v37 = vshll.u32 %v11626_v49, 16  ;;  %v5786_v13 = vshll.u32 %v11624_v25, 16  ;;  %v14967_v30 = vld [vmem:[#allocation2 + $0x28] sm:$0xf] }
 0x380   : > { %v6150_v6 = vrot.slane %v6149_v23, 4  ;;  %v6159_v2 = vor.u32 %v6158_v29, %v6154_v62  ;;  %v6164_v63 = vrot.slane %v6162_v58, 5  ;;  %v6167_v27 = vshrl.u32 %v6073_v17, 16  ;;  %v14972_v20 = vld [vmem:[%s16763_s3 + $0x8] sm:$0xf] }
 0x381   : > { %v5802_v32 = vrot.slane %v5800_v47, 7  ;;  %v5785_v45 = vrot.slane %v5783_v44, 7  ;;  %v6170_v43 = vshll.u32 %v6073_v17, 16  ;;  %v6176_v19 = vshll.u32 %v6074_v40, 16  ;;  %v14939_v18 = vpop.f32.mrb[28].mxu0 }
 0x382   : > { %v6155_v55 = vsel %vm13377_vm13, %v6150_v6, %v6154_v62  ;;  %v6160_v31 = vrot.slane %v6159_v2, 4  ;;  %v6169_v9 = vrot.slane %v6167_v27, 4  ;;  %v14943_v12 = vpop.f32.mrb[29].mxu0  ;;  %v6180_v24 = vshrl.u32 %v6074_v40, 16 }
 0x383   : > { %v5805_v41 = vor.u32 %v5803_v37, %v5802_v32  ;;  %v5807_v36 = vrot.slane %v5802_v32, 4  ;;  %v5788_v38 = vor.u32 %v5786_v13, %v5785_v45  ;;  %v5790_v56 = vrot.slane %v5785_v45, 4  ;;  %v14953_v54 = vpop.f32.mrb[30].mxu0 }
 0x384   : > { %v6165_v50 = vsel %vm13377_vm13, %v6160_v31, %v6164_v63  ;;  %v6172_v48 = vrot.slane %v6170_v43, 5  ;;  %v6178_v42 = vrot.slane %v6176_v19, 5  ;;  %v6186_v53 = vshll.u32 %v6104_v46, 16  ;;  %v14957_v49 = vpop.f32.mrb[31].mxu0  ;;  %v6034_v19 = vld [vmem:[#allocation2 + $0x90] sm:$0xf] }
 0x385   : > { %v5806_v21 = vsel %vm13371_vm11, %v5798_v16, %v5805_v41  ;;  %v6025_v33 = vsel %vm13304_vm5, %v5807_v36, %v6024_v52  ;;  %v5789_v0 = vsel %vm13371_vm11, %v5781_v5, %v5788_v38  ;;  %v6018_v34 = vsel %vm13304_vm5, %v5790_v56, %v6017_v26  ;;  %v6027_v41 = vld [vmem:[#allocation2 + $0x84] sm:$0xf]  ;;  %v15107_v61 = vld [vmem:[#allocation2 + $0x6c] sm:$0xf] }
 0x386   : > { %6023 = vst.msk [vmem:[#allocation2 + $0x7c] sm:$0xf] %vm226_vm1, %v5806_v21  ;;  %6026 = vst [vmem:[#allocation2 + $0x80] sm:$0x1] %v6025_v33  ;;  %v11228_v35 = vcombine.low %v6155_v55, %v6165_v50  ;;  %v6173_v60 = vor.u32 %v6172_v48, %v6169_v9  ;;  %v5500_v25 = vadd.f32 %v14897_v14, %v14823_v4  ;;  %v6182_v14 = vrot.slane %v6180_v24, 4 }
 0x387   : > { %6016 = vst.msk [vmem:[#allocation2 + $0x70] sm:$0xf] %vm226_vm1, %v5789_v0  ;;  %6019 = vst [vmem:[#allocation2 + $0x74] sm:$0x1] %v6018_v34  ;;  %v5498_v23 = vadd.f32 %v14823_v4, %v14903_v39  ;;  %v5501_v62 = vadd.f32 %v14907_v3, %v14823_v4  ;;  %v5499_v17 = vadd.f32 %v14823_v4, %v14909_v57  ;;  %v6188_v58 = vrot.slane %v6186_v53, 5 }
 0x388   : > { %12254 = vmatmul.mubr.msk.bf16.vlgmr.msra.gmra.mrb[0].mxu1 %vm1399_vm12, %v11228_v35  ;;  %v6174_v29 = vrot.slane %v6173_v60, 4  ;;  %v6191_v40 = vshrl.u32 %v6075_v8, 16  ;;  %v5532_v39 = vmax.f32 %v5500_v25, 0.0  ;;  %v6183_v47 = vor.u32 %v6182_v14, %v6178_v42  ;;  %v6038_v48 = vld [vmem:[#allocation2 + $0x98] sm:$0x1] }
 0x389   : > { %12286 = vmatpush3.bf16.msra.mxu1 %v14925_v11  ;;  %v5530_v3 = vmax.f32 %v5498_v23, 0.0  ;;  %v5533_v16 = vmax.f32 %v5501_v62, 0.0  ;;  %v5531_v5 = vmax.f32 %v5499_v17, 0.0  ;;  %v6194_v37 = vshll.u32 %v6075_v8, 16  ;;  %v6031_v33 = vld [vmem:[#allocation2 + $0x8c] sm:$0x1] }
 0x38a   : > { %v6179_v57 = vsel %vm13377_vm13, %v6174_v29, %v6178_v42  ;;  %v6193_v44 = vrot.slane %v6191_v40, 4  ;;  %13080 = vmatprep.subr.msk.bf16.mxu1 %vm1448_vm0, %v14972_v20  ;;  %v11629_v13 = vpack.c.bf16 %v5532_v39, %v5532_v39  ;;  %v6184_v52 = vrot.slane %v6183_v47, 4  ;;  %v6105_v29 = vld [vmem:[#allocation2 + $0x2c] sm:$0x1]  ;;  %v14985_v14 = vld [vmem:[#allocation2 + $0x30] sm:$0xf] }
 0x38b   : > { %v11627_v6 = vpack.c.bf16 %v5530_v3, %v5530_v3  ;;  %v11630_v2 = vpack.c.bf16 %v5533_v16, %v5533_v16  ;;  %v11628_v32 = vpack.c.bf16 %v5531_v5, %v5531_v5  ;;  %v6196_v45 = vrot.slane %v6194_v37, 5  ;;  %v14991_v16 = vld [vmem:[#allocation2 + $0x34] sm:$0xf]  ;;  %v6106_v5 = vld [vmem:[#allocation2 + $0x38] sm:$0x1] }
 0x38c   : > { %v6200_v11 = vshll.u32 %v14967_v30, 16  ;;  %v6204_v63 = vshrl.u32 %v14967_v30, 16  ;;  %v5826_v27 = vshrl.u32 %v11629_v13, 16  ;;  %v5829_v26 = vshll.u32 %v11629_v13, 16 }
 0x38d   : > { %v5809_v55 = vshrl.u32 %v11627_v6, 16  ;;  %v5812_v31 = vshll.u32 %v11627_v6, 16  ;;  %v6189_v43 = vsel %vm13377_vm13, %v6184_v52, %v6188_v58  ;;  %v5834_v36 = vshrl.u32 %v11630_v2, 16 }
 0x38e   : > { %v5837_v38 = vshll.u32 %v11630_v2, 16  ;;  %v5817_v56 = vshrl.u32 %v11628_v32, 16  ;;  %v11229_v46 = vcombine.low %v6179_v57, %v6189_v43  ;;  %v5828_v50 = vrot.slane %v5826_v27, 7 }
 0x38f   : > { %v5811_v9 = vrot.slane %v5809_v55, 7  ;;  %v5820_v42 = vshll.u32 %v11628_v32, 16  ;;  %v5836_v8 = vrot.slane %v5834_v36, 7  ;;  %v6197_v0 = vor.u32 %v6196_v45, %v6193_v44 }
 0x390   : > { %v5819_v21 = vrot.slane %v5817_v56, 7  ;;  %v6202_v34 = vrot.slane %v6200_v11, 5  ;;  %12257 = vmatprep.mubr.msk.bf16.mxu1 %vm1399_vm12, %v11229_v46  ;;  %v5831_v35 = vor.u32 %v5829_v26, %v5828_v50  ;;  %v5832_v60 = vrot.slane %v5828_v50, 4 }
 0x391   : > { %v5814_v24 = vor.u32 %v5812_v31, %v5811_v9  ;;  %v5815_v53 = vrot.slane %v5811_v9, 4  ;;  %v5839_v25 = vor.u32 %v5837_v38, %v5836_v8  ;;  %v5841_v23 = vrot.slane %v5836_v8, 4  ;;  %v15011_v38 = vld [vmem:[#allocation2 + $0x3c] sm:$0xf] }
 0x392   : > { %v5822_v62 = vor.u32 %v5820_v42, %v5819_v21  ;;  %v5824_v17 = vrot.slane %v5819_v21, 4  ;;  %v6035_v58 = vsel %vm13366_vm10, %v5831_v35, %v6034_v19  ;;  %v6198_v39 = vrot.slane %v6197_v0, 4 }
 0x393   : > { %v6028_v40 = vsel %vm13366_vm10, %v5814_v24, %v6027_v41  ;;  %v6206_v3 = vrot.slane %v6204_v63, 4  ;;  %6036 = vst [vmem:[#allocation2 + $0x90] sm:$0xf] %v6035_v58  ;;  %v5840_v57 = vsel %vm13371_vm11, %v5832_v60, %v5839_v25  ;;  %v6039_v47 = vsel %vm13304_vm5, %v5841_v23, %v6038_v48 }
 0x394   : > { %6029 = vst [vmem:[#allocation2 + $0x84] sm:$0xf] %v6028_v40  ;;  %v5823_v44 = vsel %vm13371_vm11, %v5815_v53, %v5822_v62  ;;  %v6032_v37 = vsel %vm13304_vm5, %v5824_v17, %v6031_v33  ;;  %6037 = vst.msk [vmem:[#allocation2 + $0x94] sm:$0xf] %vm226_vm1, %v5840_v57  ;;  %v6203_v13 = vsel %vm13377_vm13, %v6198_v39, %v6202_v34  ;;  %v6210_v2 = vshll.u32 %v6105_v29, 16 }
 0x395   : > { %6040 = vst [vmem:[#allocation2 + $0x98] sm:$0x1] %v6039_v47  ;;  %6030 = vst.msk [vmem:[#allocation2 + $0x88] sm:$0xf] %vm226_vm1, %v5823_v44  ;;  %v6207_v6 = vor.u32 %v6206_v3, %v6202_v34  ;;  %v6215_v32 = vshrl.u32 %v14985_v14, 16  ;;  %v6218_v52 = vshll.u32 %v14985_v14, 16  ;;  %v5504_v31 = vadd.f32 %v14921_v1, %v14823_v4 }
 0x396   : > { %6033 = vst [vmem:[#allocation2 + $0x8c] sm:$0x1] %v6032_v37  ;;  %v6224_v45 = vshll.u32 %v14991_v16, 16  ;;  %v6228_v11 = vshrl.u32 %v14991_v16, 16  ;;  %v6234_v63 = vshll.u32 %v6106_v5, 16  ;;  %v6212_v26 = vrot.slane %v6210_v2, 5 }
 0x397   : > { %v6208_v27 = vrot.slane %v6207_v6, 4  ;;  %v6217_v55 = vrot.slane %v6215_v32, 4  ;;  %v6220_v43 = vrot.slane %v6218_v52, 5  ;;  %v5536_v46 = vmax.f32 %v5504_v31, 0.0  ;;  %v6048_v17 = vld [vmem:[#allocation2 + $0xa8] sm:$0xf] }
 0x398   : > { %v6226_v19 = vrot.slane %v6224_v45, 5  ;;  %v6230_v41 = vrot.slane %v6228_v11, 4  ;;  %v6236_v36 = vrot.slane %v6234_v63, 5  ;;  %v5502_v50 = vadd.f32 %v14823_v4, %v14927_v7  ;;  %v15028_v57 = vld [vmem:[#allocation2 + $0x40] sm:$0xf] }
 0x399   : > { %v6213_v56 = vsel %vm13377_vm13, %v6208_v27, %v6212_v26  ;;  %v5505_v9 = vadd.f32 %v14929_v59, %v14823_v4  ;;  %v6221_v42 = vor.u32 %v6220_v43, %v6217_v55  ;;  %v5503_v1 = vadd.f32 %v14823_v4, %v14935_v28  ;;  %v6041_v47 = vld [vmem:[#allocation2 + $0x9c] sm:$0xf]  ;;  %v6052_v45 = vld [vmem:[#allocation2 + $0xb0] sm:$0x1]  ;;  %v6045_v11 = vld [vmem:[#allocation2 + $0xa4] sm:$0x1] }
 0x39a   : > { %v11230_v48 = vcombine.low %v6203_v13, %v6213_v56  ;;  %v6231_v8 = vor.u32 %v6230_v41, %v6226_v19  ;;  %v11633_v21 = vpack.c.bf16 %v5536_v46, %v5536_v46  ;;  %v5534_v33 = vmax.f32 %v5502_v50, 0.0  ;;  %v15033_v43 = vld [vmem:[#allocation2 + $0x48] sm:$0xf]  ;;  %v15037_v56 = vld [vmem:[#allocation2 + $0x44] sm:$0x1] }
 0x39b   : > { %v5537_v0 = vmax.f32 %v5505_v9, 0.0  ;;  %v6239_v34 = vshrl.u32 %v15011_v38, 16  ;;  %v6222_v35 = vrot.slane %v6221_v42, 4  ;;  %v5535_v24 = vmax.f32 %v5503_v1, 0.0 }
 0x39c   : > { %12258 = vmatmul.mubr.msk.bf16.gmra.mrb[4].mxu1 %vm1399_vm12, %v11230_v48  ;;  %v6232_v60 = vrot.slane %v6231_v8, 4  ;;  %v6242_v7 = vshll.u32 %v15011_v38, 16  ;;  %v5860_v53 = vshrl.u32 %v11633_v21, 16  ;;  %v5863_v59 = vshll.u32 %v11633_v21, 16  ;;  %v15039_v8 = vld [vmem:[#allocation2 + $0x4c] sm:$0xf] }
 0x39d   : > { %v11631_v25 = vpack.c.bf16 %v5534_v33, %v5534_v33  ;;  %v11634_v23 = vpack.c.bf16 %v5537_v0, %v5537_v0  ;;  %v6227_v62 = vsel %vm13377_vm13, %v6222_v35, %v6226_v19  ;;  %v11632_v29 = vpack.c.bf16 %v5535_v24, %v5535_v24 }
 0x39e   : > { %v6237_v28 = vsel %vm13377_vm13, %v6232_v60, %v6236_v36  ;;  %v6241_v58 = vrot.slane %v6239_v34, 4  ;;  %v5862_v39 = vrot.slane %v5860_v53, 7  ;;  %v6244_v63 = vrot.slane %v6242_v7, 5  ;;  %v15043_v34 = vld [vmem:[#allocation2 + $0x50] sm:$0x1] }
 0x39f   : > { %v11231_v40 = vcombine.low %v6227_v62, %v6237_v28  ;;  %v5843_v3 = vshrl.u32 %v11631_v25, 16  ;;  %v5846_v5 = vshll.u32 %v11631_v25, 16  ;;  %v5868_v44 = vshrl.u32 %v11634_v23, 16 }
 0x3a0   : > { %v5871_v37 = vshll.u32 %v11634_v23, 16  ;;  %v5851_v13 = vshrl.u32 %v11632_v29, 16  ;;  %v5854_v6 = vshll.u32 %v11632_v29, 16  ;;  %v5865_v2 = vor.u32 %v5863_v59, %v5862_v39 }
 0x3a1   : > { %12261 = vmatprep.mubr.msk.bf16.mxu1 %vm1399_vm12, %v11231_v40  ;;  %v5866_v32 = vrot.slane %v5862_v39, 4  ;;  %v5845_v52 = vrot.slane %v5843_v3, 7  ;;  %v5870_v27 = vrot.slane %v5868_v44, 7  ;;  %v6248_v55 = vshll.u32 %v15028_v57, 16 }
 0x3a2   : > { %v5853_v26 = vrot.slane %v5851_v13, 7  ;;  %v6252_v31 = vshrl.u32 %v15028_v57, 16  ;;  %v6049_v19 = vsel %vm13366_vm10, %v5865_v2, %v6048_v17  ;;  %v6245_v46 = vor.u32 %v6244_v63, %v6241_v58  ;;  %v15065_v13 = vld [vmem:[#allocation2 + $0x54] sm:$0xf] }
 0x3a3   : > { %v5848_v41 = vor.u32 %v5846_v5, %v5845_v52  ;;  %v5849_v36 = vrot.slane %v5845_v52, 4  ;;  %6050 = vst [vmem:[#allocation2 + $0xa8] sm:$0xf] %v6049_v19  ;;  %v5873_v50 = vor.u32 %v5871_v37, %v5870_v27  ;;  %v5875_v9 = vrot.slane %v5870_v27, 4 }
 0x3a4   : > { %v5856_v48 = vor.u32 %v5854_v6, %v5853_v26  ;;  %v5858_v42 = vrot.slane %v5853_v26, 4  ;;  %v6246_v21 = vrot.slane %v6245_v46, 4  ;;  %v6250_v33 = vrot.slane %v6248_v55, 5 }
 0x3a5   : > { %v6042_v1 = vsel %vm13366_vm10, %v5848_v41, %v6041_v47  ;;  %v6254_v0 = vrot.slane %v6252_v31, 4  ;;  %v5874_v35 = vsel %vm13371_vm11, %v5866_v32, %v5873_v50  ;;  %v6053_v60 = vsel %vm13304_vm5, %v5875_v9, %v6052_v45  ;;  %v13194_v32 = vld [vmem:[%s16762_s2] ss:$0 sm:$0xff] }
 0x3a6   : > { %6043 = vst [vmem:[#allocation2 + $0x9c] sm:$0xf] %v6042_v1  ;;  %v5857_v24 = vsel %vm13371_vm11, %v5849_v36, %v5856_v48  ;;  %v6046_v7 = vsel %vm13304_vm5, %v5858_v42, %v6045_v11  ;;  %6051 = vst.msk [vmem:[#allocation2 + $0xac] sm:$0xf] %vm226_vm1, %v5874_v35  ;;  %v6251_v53 = vsel %vm13377_vm13, %v6246_v21, %v6250_v33  ;;  %v6258_v25 = vshll.u32 %v15037_v56, 16 }
 0x3a7   : > { %6054 = vst [vmem:[#allocation2 + $0xb0] sm:$0x1] %v6053_v60  ;;  %6044 = vst.msk [vmem:[#allocation2 + $0xa0] sm:$0xf] %vm226_vm1, %v5857_v24  ;;  %v6255_v59 = vor.u32 %v6254_v0, %v6250_v33  ;;  %v6263_v23 = vshrl.u32 %v15033_v43, 16  ;;  %v6266_v62 = vshll.u32 %v15033_v43, 16  ;;  %v5508_v3 = vadd.f32 %v14939_v18, %v14823_v4 }
 0x3a8   : > { %6047 = vst [vmem:[#allocation2 + $0xa4] sm:$0x1] %v6046_v7  ;;  %v6272_v28 = vshll.u32 %v15039_v8, 16  ;;  %v6276_v17 = vshrl.u32 %v15039_v8, 16  ;;  %v6282_v29 = vshll.u32 %v15043_v34, 16  ;;  %v6260_v40 = vrot.slane %v6258_v25, 5 }
 0x3a9   : > { %v6256_v58 = vrot.slane %v6255_v59, 4  ;;  %v6265_v39 = vrot.slane %v6263_v23, 4  ;;  %v6268_v5 = vrot.slane %v6266_v62, 5  ;;  %v5540_v2 = vmax.f32 %v5508_v3, 0.0  ;;  %v6062_v42 = vld [vmem:[#allocation2 + $0xc0] sm:$0xf] }
 0x3aa   : > { %v6274_v47 = vrot.slane %v6272_v28, 5  ;;  %v6278_v44 = vrot.slane %v6276_v17, 4  ;;  %v6284_v37 = vrot.slane %v6282_v29, 5  ;;  %v5506_v52 = vadd.f32 %v13194_v32, %v14943_v12  ;;  %v15082_v21 = vld [vmem:[#allocation2 + $0x58] sm:$0xf] }
 0x3ab   : > { %v6261_v6 = vsel %vm13377_vm13, %v6256_v58, %v6260_v40  ;;  %v5509_v45 = vadd.f32 %v13194_v32, %v14953_v54  ;;  %v6269_v4 = vor.u32 %v6268_v5, %v6265_v39  ;;  %v5507_v63 = vadd.f32 %v13194_v32, %v14957_v49  ;;  %v6055_v7 = vld [vmem:[#allocation2 + $0xb4] sm:$0xf]  ;;  %v6066_v40 = vld [vmem:[#allocation2 + $0xc8] sm:$0x1]  ;;  %v15089_v32 = vld [vmem:[#allocation2 + $0x60] sm:$0xf] }
 0x3ac   : > { %v11232_v11 = vcombine.low %v6251_v53, %v6261_v6  ;;  %v6279_v18 = vor.u32 %v6278_v44, %v6274_v47  ;;  %v11637_v27 = vpack.c.bf16 %v5540_v2, %v5540_v2  ;;  %v5538_v26 = vmax.f32 %v5506_v52, 0.0  ;;  %v6059_v6 = vld [vmem:[#allocation2 + $0xbc] sm:$0x1] }
 0x3ad   : > { %v5541_v55 = vmax.f32 %v5509_v45, 0.0  ;;  %v6287_v31 = vshrl.u32 %v15065_v13, 16  ;;  %v6270_v19 = vrot.slane %v6269_v4, 4  ;;  %v5539_v36 = vmax.f32 %v5507_v63, 0.0  ;;  %v15093_v63 = vld [vmem:[#allocation2 + $0x64] sm:$0xf] }
 0x3ae   : > { %12262 = vmatmul.mubr.msk.bf16.gmra.mrb[8].mxu1 %vm1399_vm12, %v11232_v11  ;;  %v6280_v41 = vrot.slane %v6279_v18, 4  ;;  %v6290_v46 = vshll.u32 %v15065_v13, 16  ;;  %v5894_v12 = vshrl.u32 %v11637_v27, 16  ;;  %v5897_v50 = vshll.u32 %v11637_v27, 16  ;;  %v15091_v18 = vld [vmem:[#allocation2 + $0x5c] sm:$0x1] }
 0x3af   : > { %v11635_v54 = vpack.c.bf16 %v5538_v26, %v5538_v26  ;;  %v11638_v9 = vpack.c.bf16 %v5541_v55, %v5541_v55  ;;  %v6275_v48 = vsel %vm13377_vm13, %v6270_v19, %v6274_v47  ;;  %v11636_v1 = vpack.c.bf16 %v5539_v36, %v5539_v36  ;;  %v15097_v19 = vld [vmem:[#allocation2 + $0x68] sm:$0x1] }
 0x3b0   : > { %v6285_v49 = vsel %vm13377_vm13, %v6280_v41, %v6284_v37  ;;  %v6289_v33 = vrot.slane %v6287_v31, 4  ;;  %v5896_v35 = vrot.slane %v5894_v12, 7  ;;  %v6292_v29 = vrot.slane %v6290_v46, 5 }
 0x3b1   : > { %v11233_v0 = vcombine.low %v6275_v48, %v6285_v49  ;;  %v5877_v60 = vshrl.u32 %v11635_v54, 16  ;;  %v5880_v24 = vshll.u32 %v11635_v54, 16  ;;  %v5902_v53 = vshrl.u32 %v11638_v9, 16 }
 0x3b2   : > { %v5905_v59 = vshll.u32 %v11638_v9, 16  ;;  %v5885_v25 = vshrl.u32 %v11636_v1, 16  ;;  %v5888_v23 = vshll.u32 %v11636_v1, 16  ;;  %v5899_v62 = vor.u32 %v5897_v50, %v5896_v35  ;;  %v15109_v50 = vld [vmem:[#allocation2 + $0x70] sm:$0xf] }
 0x3b3   : > { %12265 = vmatprep.mubr.msk.bf16.mxu1 %vm1399_vm12, %v11233_v0  ;;  %v5900_v28 = vrot.slane %v5896_v35, 4  ;;  %v5879_v17 = vrot.slane %v5877_v60, 7  ;;  %v5904_v58 = vrot.slane %v5902_v53, 7  ;;  %v6296_v3 = vshll.u32 %v15082_v21, 16 }
 0x3b4   : > { %v5887_v39 = vrot.slane %v5885_v25, 7  ;;  %v6300_v5 = vshrl.u32 %v15082_v21, 16  ;;  %v6063_v47 = vsel %vm13366_vm10, %v5899_v62, %v6062_v42  ;;  %v6293_v2 = vor.u32 %v6292_v29, %v6289_v33  ;;  %v15121_v33 = vld [vmem:[#allocation2 + $0x78] sm:$0xf] }
 0x3b5   : > { %v5882_v44 = vor.u32 %v5880_v24, %v5879_v17  ;;  %v5883_v37 = vrot.slane %v5879_v17, 4  ;;  %6064 = vst [vmem:[#allocation2 + $0xc0] sm:$0xf] %v6063_v47  ;;  %v5907_v52 = vor.u32 %v5905_v59, %v5904_v58  ;;  %v5909_v45 = vrot.slane %v5904_v58, 4 }
 0x3b6   : > { %v5890_v11 = vor.u32 %v5888_v23, %v5887_v39  ;;  %v5892_v4 = vrot.slane %v5887_v39, 4  ;;  %v6294_v26 = vrot.slane %v6293_v2, 4  ;;  %v6298_v55 = vrot.slane %v6296_v3, 5  ;;  %v15124_v23 = vld [vmem:[#allocation2 + $0x74] sm:$0x1] }
 0x3b7   : > { %v6056_v27 = vsel %vm13366_vm10, %v5882_v44, %v6055_v7  ;;  %v6302_v31 = vrot.slane %v6300_v5, 4  ;;  %v5908_v41 = vsel %vm13371_vm11, %v5900_v28, %v5907_v52  ;;  %v6067_v36 = vsel %vm13304_vm5, %v5909_v45, %v6066_v40  ;;  %v15131_v5 = vld [vmem:[#allocation2 + $0x7c] sm:$0xf] }
 0x3b8   : > { %6057 = vst [vmem:[#allocation2 + $0xb4] sm:$0xf] %v6056_v27  ;;  %v5891_v46 = vsel %vm13371_vm11, %v5883_v37, %v5890_v11  ;;  %v6060_v12 = vsel %vm13304_vm5, %v5892_v4, %v6059_v6  ;;  %6065 = vst.msk [vmem:[#allocation2 + $0xc4] sm:$0xf] %vm226_vm1, %v5908_v41  ;;  %v6299_v54 = vsel %vm13377_vm13, %v6294_v26, %v6298_v55  ;;  %v6306_v22 = vshll.u32 %v15091_v18, 16 }
 0x3b9   : > { %6068 = vst [vmem:[#allocation2 + $0xc8] sm:$0x1] %v6067_v36  ;;  %6058 = vst.msk [vmem:[#allocation2 + $0xb8] sm:$0xf] %vm226_vm1, %v5891_v46  ;;  %v6303_v9 = vor.u32 %v6302_v31, %v6298_v55  ;;  %v6311_v48 = vshrl.u32 %v15089_v32, 16  ;;  %v6314_v10 = vshll.u32 %v15089_v32, 16 }
 0x3ba   : > { %6061 = vst [vmem:[#allocation2 + $0xbc] sm:$0x1] %v6060_v12  ;;  %v6320_v49 = vshll.u32 %v15093_v63, 16  ;;  %v6324_v42 = vshrl.u32 %v15093_v63, 16  ;;  %v6330_v1 = vshll.u32 %v15097_v19, 16  ;;  %v6308_v35 = vrot.slane %v6306_v22, 5 }
 0x3bb   : > { %v6304_v0 = vrot.slane %v6303_v9, 4  ;;  %v6313_v60 = vrot.slane %v6311_v48, 4  ;;  %v6335_v24 = vshrl.u32 %v15107_v61, 16  ;;  %v6316_v7 = vrot.slane %v6314_v10, 5  ;;  %v15136_v11 = vld [vmem:[#allocation2 + $0x80] sm:$0x1] }
 0x3bc   : > { %v6322_v53 = vrot.slane %v6320_v49, 5  ;;  %v6326_v59 = vrot.slane %v6324_v42, 4  ;;  %v6332_v25 = vrot.slane %v6330_v1, 5  ;;  %v6338_v17 = vshll.u32 %v15107_v61, 16  ;;  %v15140_v41 = vld [vmem:[#allocation2 + $0x84] sm:$0xf] }
 0x3bd   : > { %v6309_v62 = vsel %vm13377_vm13, %v6304_v0, %v6308_v35  ;;  %v6337_v28 = vrot.slane %v6335_v24, 4  ;;  %v6344_v29 = vshll.u32 %v15109_v50, 16  ;;  %v6317_v40 = vor.u32 %v6316_v7, %v6313_v60  ;;  %v15146_v9 = vld [vmem:[#allocation2 + $0x88] sm:$0xf]  ;;  %v15149_v42 = vld [vmem:[#allocation2 + $0x8c] sm:$0x1] }
 0x3be   : > { %v11234_v58 = vcombine.low %v6299_v54, %v6309_v62  ;;  %v6327_v39 = vor.u32 %v6326_v59, %v6322_v53  ;;  %v6348_v3 = vshrl.u32 %v15109_v50, 16  ;;  %v6340_v47 = vrot.slane %v6338_v17, 5 }
 0x3bf   : > { %v6346_v44 = vrot.slane %v6344_v29, 5  ;;  %v6354_v37 = vshll.u32 %v15124_v23, 16  ;;  %v6359_v6 = vshrl.u32 %v15121_v33, 16  ;;  %v6318_v2 = vrot.slane %v6317_v40, 4 }
 0x3c0   : > { %12266 = vmatmul.mubr.msk.bf16.gmra.mrb[12].mxu1 %vm1399_vm12, %v11234_v58  ;;  %v6328_v52 = vrot.slane %v6327_v39, 4  ;;  %v6350_v45 = vrot.slane %v6348_v3, 4  ;;  %v6362_v4 = vshll.u32 %v15121_v33, 16  ;;  %v6341_v27 = vor.u32 %v6340_v47, %v6337_v28  ;;  %v15162_v58 = vld [vmem:[#allocation2 + $0x94] sm:$0xf] }
 0x3c1   : > { %v6356_v26 = vrot.slane %v6354_v37, 5  ;;  %v6361_v55 = vrot.slane %v6359_v6, 4  ;;  %v6368_v31 = vshll.u32 %v15131_v5, 16  ;;  %v6323_v36 = vsel %vm13377_vm13, %v6318_v2, %v6322_v53  ;;  %v15168_v2 = vld [vmem:[#allocation2 + $0x98] sm:$0x1] }
 0x3c2   : > { %v6333_v46 = vsel %vm13377_vm13, %v6328_v52, %v6332_v25  ;;  %v6351_v12 = vor.u32 %v6350_v45, %v6346_v44  ;;  %v6364_v54 = vrot.slane %v6362_v4, 5  ;;  %v6342_v48 = vrot.slane %v6341_v27, 4  ;;  %v15158_v25 = vld [vmem:[#allocation2 + $0x90] sm:$0xf] }
 0x3c3   : > { %v11235_v22 = vcombine.low %v6323_v36, %v6333_v46  ;;  %v6370_v10 = vrot.slane %v6368_v31, 5  ;;  %v6372_v49 = vshrl.u32 %v15131_v5, 16  ;;  %v6378_v35 = vshll.u32 %v15136_v11, 16 }
 0x3c4   : > { %v6352_v1 = vrot.slane %v6351_v12, 4  ;;  %v6365_v0 = vor.u32 %v6364_v54, %v6361_v55  ;;  %v6383_v60 = vshrl.u32 %v15140_v41, 16  ;;  %v6347_v24 = vsel %vm13377_vm13, %v6342_v48, %v6346_v44  ;;  %v15174_v55 = vld [vmem:[#allocation2 + $0x9c] sm:$0xf]  ;;  %v15177_v54 = vld [vmem:[#allocation2 + $0xa0] sm:$0xf] }
 0x3c5   : > { %12269 = vmatprep.mubr.msk.bf16.mxu1 %vm1399_vm12, %v11235_v22  ;;  %v6374_v7 = vrot.slane %v6372_v49, 4  ;;  %v6386_v53 = vshll.u32 %v15140_v41, 16  ;;  %v6392_v59 = vshll.u32 %v15146_v9, 16  ;;  %v6380_v17 = vrot.slane %v6378_v35, 5 }
 0x3c6   : > { %v6357_v62 = vsel %vm13377_vm13, %v6352_v1, %v6356_v26  ;;  %v6366_v28 = vrot.slane %v6365_v0, 4  ;;  %v6385_v29 = vrot.slane %v6383_v60, 4  ;;  %v6396_v37 = vshrl.u32 %v15146_v9, 16  ;;  %v15181_v1 = vld [vmem:[#allocation2 + $0xa4] sm:$0x1] }
 0x3c7   : > { %v11236_v40 = vcombine.low %v6347_v24, %v6357_v62  ;;  %v6375_v39 = vor.u32 %v6374_v7, %v6370_v10  ;;  %v6388_v3 = vrot.slane %v6386_v53, 5  ;;  %v6394_v47 = vrot.slane %v6392_v59, 5 }
 0x3c8   : > { %v6371_v44 = vsel %vm13377_vm13, %v6366_v28, %v6370_v10  ;;  %v6402_v6 = vshll.u32 %v15149_v42, 16  ;;  %v6407_v52 = vshrl.u32 %v15158_v25, 16  ;;  %v6410_v27 = vshll.u32 %v15158_v25, 16  ;;  %v15188_v28 = vld [vmem:[#allocation2 + $0xa8] sm:$0xf] }
 0x3c9   : > { %12270 = vmatmul.mubr.msk.bf16.gmra.mrb[16].mxu1 %vm1399_vm12, %v11236_v40  ;;  %v6376_v45 = vrot.slane %v6375_v39, 4  ;;  %v6389_v4 = vor.u32 %v6388_v3, %v6385_v29  ;;  %v6416_v26 = vshll.u32 %v15162_v58, 16  ;;  %v6398_v31 = vrot.slane %v6396_v37, 4 }
 0x3ca   : > { %v6404_v36 = vrot.slane %v6402_v6, 5  ;;  %v6409_v46 = vrot.slane %v6407_v52, 4  ;;  %v6420_v12 = vshrl.u32 %v15162_v58, 16  ;;  %v6412_v10 = vrot.slane %v6410_v27, 5 }
 0x3cb   : > { %v6381_v22 = vsel %vm13377_vm13, %v6376_v45, %v6380_v17  ;;  %v6390_v48 = vrot.slane %v6389_v4, 4  ;;  %v6418_v49 = vrot.slane %v6416_v26, 5  ;;  %v6399_v35 = vor.u32 %v6398_v31, %v6394_v47  ;;  %v15198_v26 = vld [vmem:[#allocation2 + $0xb0] sm:$0x1]  ;;  %v15200_v31 = vld [vmem:[#allocation2 + $0xb4] sm:$0xf] }
 0x3cc   : > { %v11237_v0 = vcombine.low %v6371_v44, %v6381_v22  ;;  %v6422_v60 = vrot.slane %v6420_v12, 4  ;;  %v6426_v24 = vshll.u32 %v15168_v2, 16  ;;  %v6413_v53 = vor.u32 %v6412_v10, %v6409_v46 }
 0x3cd   : > { %v6395_v7 = vsel %vm13377_vm13, %v6390_v48, %v6394_v47  ;;  %v6431_v59 = vshrl.u32 %v15174_v55, 16  ;;  %v6434_v62 = vshll.u32 %v15174_v55, 16  ;;  %v6400_v17 = vrot.slane %v6399_v35, 4  ;;  %v15193_v47 = vld [vmem:[#allocation2 + $0xac] sm:$0xf] }
 0x3ce   : > { %12273 = vmatprep.mubr.msk.bf16.mxu1 %vm1399_vm12, %v11237_v0  ;;  %v6423_v29 = vor.u32 %v6422_v60, %v6418_v49  ;;  %v6428_v40 = vrot.slane %v6426_v24, 5  ;;  %v6440_v39 = vshll.u32 %v15177_v54, 16  ;;  %v6414_v3 = vrot.slane %v6413_v53, 4  ;;  %v15208_v35 = vld [vmem:[#allocation2 + $0xb8] sm:$0xf] }
 0x3cf   : > { %v6433_v44 = vrot.slane %v6431_v59, 4  ;;  %v6436_v37 = vrot.slane %v6434_v62, 5  ;;  %v6444_v6 = vshrl.u32 %v15177_v54, 16  ;;  %v6405_v52 = vsel %vm13377_vm13, %v6400_v17, %v6404_v36 }
 0x3d0   : > { %v6424_v45 = vrot.slane %v6423_v29, 4  ;;  %v6442_v4 = vrot.slane %v6440_v39, 5  ;;  %v6450_v27 = vshll.u32 %v15181_v1, 16  ;;  %v11238_v46 = vcombine.low %v6395_v7, %v6405_v52  ;;  %v15218_v52 = vld [vmem:[#allocation2 + $0xbc] sm:$0x1] }
 0x3d1   : > { %v6437_v12 = vor.u32 %v6436_v37, %v6433_v44  ;;  %v6446_v22 = vrot.slane %v6444_v6, 4  ;;  %v6419_v48 = vsel %vm13377_vm13, %v6414_v3, %v6418_v49  ;;  %v6455_v0 = vshrl.u32 %v15188_v28, 16 }
 0x3d2   : > { %v6429_v10 = vsel %vm13377_vm13, %v6424_v45, %v6428_v40  ;;  %v6458_v36 = vshll.u32 %v15188_v28, 16  ;;  %12274 = vmatmul.mubr.msk.bf16.gmra.mrb[20].mxu1 %vm1399_vm12, %v11238_v46  ;;  %v6464_v7 = vshll.u32 %v15193_v47, 16  ;;  %v6452_v59 = vrot.slane %v6450_v27, 5 }
 0x3d3   : > { %v11239_v60 = vcombine.low %v6419_v48, %v6429_v10  ;;  %v6438_v24 = vrot.slane %v6437_v12, 4  ;;  %v6447_v53 = vor.u32 %v6446_v22, %v6442_v4  ;;  %v6457_v62 = vrot.slane %v6455_v0, 4 }
 0x3d4   : > { %v6460_v17 = vrot.slane %v6458_v36, 5  ;;  %v6468_v49 = vshrl.u32 %v15193_v47, 16  ;;  %v6466_v40 = vrot.slane %v6464_v7, 5  ;;  %v6474_v39 = vshll.u32 %v15198_v26, 16 }
 0x3d5   : > { %12277 = vmatprep.mubr.msk.bf16.mxu1 %vm1399_vm12, %v11239_v60  ;;  %v6448_v29 = vrot.slane %v6447_v53, 4  ;;  %v6479_v3 = vshrl.u32 %v15200_v31, 16  ;;  %v6443_v44 = vsel %vm13377_vm13, %v6438_v24, %v6442_v4  ;;  %v6482_v45 = vshll.u32 %v15200_v31, 16 }
 0x3d6   : > { %v6461_v37 = vor.u32 %v6460_v17, %v6457_v62  ;;  %v6470_v6 = vrot.slane %v6468_v49, 4  ;;  %v6488_v12 = vshll.u32 %v15208_v35, 16  ;;  %v6492_v22 = vshrl.u32 %v15208_v35, 16 }
 0x3d7   : > { %v6453_v27 = vsel %vm13377_vm13, %v6448_v29, %v6452_v59  ;;  %v6481_v46 = vrot.slane %v6479_v3, 4  ;;  %v6484_v36 = vrot.slane %v6482_v45, 5  ;;  %v6498_v24 = vshll.u32 %v15218_v52, 16  ;;  %v15231_v45 = vld [vmem:[#allocation2 + $0x4] sm:$0xf] }
 0x3d8   : > { %v11240_v48 = vcombine.low %v6443_v44, %v6453_v27  ;;  %v6462_v10 = vrot.slane %v6461_v37, 4  ;;  %v6471_v0 = vor.u32 %v6470_v6, %v6466_v40  ;;  %v6490_v60 = vrot.slane %v6488_v12, 5  ;;  %v13195_v6 = vld [vmem:[#allocation2] sm:$0xf] }
 0x3d9   : > { %v6494_v4 = vrot.slane %v6492_v22, 4  ;;  %v6476_v7 = vrot.slane %v6474_v39, 5  ;;  %v6485_v62 = vor.u32 %v6484_v36, %v6481_v46  ;;  %v6500_v37 = vrot.slane %v6498_v24, 5  ;;  %v7066_v24 = vld [vmem:[#allocation2 + $0x78] sm:$0xe] }
 0x3da   : > { %v6472_v53 = vrot.slane %v6471_v0, 4  ;;  %12278 = vmatmul.mubr.msk.bf16.gmra.mrb[24].mxu1 %vm1399_vm12, %v11240_v48  ;;  %v6467_v59 = vsel %vm13377_vm13, %v6462_v10, %v6466_v40  ;;  %v11259_v27 = vcombine.low %v13195_v6, %v15231_v45  ;;  %v11266_v46 = vcombine.low %v15065_v13, %v15082_v21 }
 0x3db   : > { %v6495_v17 = vor.u32 %v6494_v4, %v6490_v60  ;;  %v6486_v29 = vrot.slane %v6485_v62, 4  ;;  %v11267_v40 = vcombine.low %v15089_v32, %v15093_v63  ;;  %v11268_v12 = vcombine.low %v15107_v61, %v15109_v50  ;;  %v13202_v61 = vld [vmem:[#allocation2 + $0x8] sm:$0x1] }
 0x3dc   : > { %v6477_v49 = vsel %vm13377_vm13, %v6472_v53, %v6476_v7  ;;  %v11269_v48 = vcombine.low %v15121_v33, %v15131_v5  ;;  %v13197_v53 = vld [vmem:[#allocation2 + $0xc] sm:$0xf]  ;;  %v15259_v7 = vld [vmem:[#allocation2 + $0x10] sm:$0xf]  ;;  %v7155_v6 = vrot.slane %v15082_v21, 5  ;;  %v7200_v0 = vrot.slane %v15181_v1, 5 }
 0x3dd   : > { %v11241_v3 = vcombine.low %v6467_v59, %v6477_v49  ;;  %v6496_v44 = vrot.slane %v6495_v17, 4  ;;  %v6491_v39 = vsel %vm13377_vm13, %v6486_v29, %v6490_v60  ;;  %v11260_v62 = vcombine.low %v13197_v53, %v15259_v7  ;;  %v13199_v59 = vld [vmem:[#allocation2 + $0x18] sm:$0xf]  ;;  %v15264_v49 = vld [vmem:[#allocation2 + $0x1c] sm:$0xf] }
 0x3de   : > { %v7315_v17 = vsel %vm1448_vm0, %v14972_v20, 0  ;;  %v11261_v29 = vcombine.low %v13199_v59, %v15264_v49  ;;  %v7065_v20 = vld [vmem:[#allocation2 + $0x6c] sm:$0xe]  ;;  %v7162_v53 = vrot.slane %v15093_v63, 5  ;;  %v7067_v60 = vld [vmem:[#allocation2 + $0x84] sm:$0xe]  ;;  %v16903_v13 = vcombine.low %v15140_v41, %v15146_v9 }
 0x3df   : > { %12281 = vmatprep.mubr.msk.bf16.mxu1 %vm1399_vm12, %v11241_v3  ;;  %v6501_v22 = vsel %vm13377_vm13, %v6496_v44, %v6500_v37  ;;  %v15270_v3 = vld [vmem:[%s16763_s3 + $0xc] sm:$0xf]  ;;  %v7063_v44 = vld [vmem:[#allocation2 + $0x54] sm:$0xe]  ;;  %v7064_v37 = vld [vmem:[#allocation2 + $0x60] sm:$0xe]  ;;  %v16904_v21 = vcombine.low %v15158_v25, %v15162_v58  ;;  %v16905_v33 = vcombine.low %v15174_v55, %v15177_v54  ;;  %v16907_v55 = vcombine.low %v15200_v31, %v15208_v35 }
 0x3e0   : > { %v11242_v36 = vcombine.low %v6491_v39, %v6501_v22  ;;  %v11263_v22 = vcombine.low %v14985_v14, %v14991_v16  ;;  %v11299_v59 = vrot.slane %v7064_v37, 9  ;;  %v7169_v14 = vrot.slane %v15109_v50, 5  ;;  %v7056_v63 = vld [vmem:[#allocation2] sm:$0xe] }
 0x3e1   : > { %v7211_v1 = vrot.slane %v15208_v35, 5  ;;  %v7106_v32 = vrot.slane %v15231_v45, 5  ;;  %v7109_v50 = vrot.slane %v13202_v61, 5  ;;  %v7113_v25 = vrot.slane %v15259_v7, 5  ;;  %v13206_v35 = vld [vmem:[#allocation2 + $0x34] sm:$0xf] }
 0x3e2   : > { %12282 = vmatmul.mubr.msk.bf16.gmra.mrb[28].mxu1 %vm1399_vm12, %v11242_v36  ;;  %v11298_v36 = vrot.slane %v7063_v44, 9  ;;  %v15294_v44 = vsel %vm13857_vm2, %v11299_v59, %v7162_v53  ;;  %v7068_v59 = vld [vmem:[#allocation2 + $0x90] sm:$0xe]  ;;  %v7059_v61 = vld [vmem:[#allocation2 + $0x24] sm:$0xe] }
 0x3e3   : > { %12287 = vmatprep.mubr.msk.bf16.mxu1 %vm1399_vm12, %v11259_v27  ;;  %v13201_v27 = vld [vmem:[#allocation2 + $0x24] sm:$0xf] }
 0x3e4   : > { %v11262_v39 = vcombine.low %v13201_v27, %v14967_v30  ;;  %v15285_v4 = vsel %vm13857_vm2, %v11298_v36, %v7155_v6  ;;  %v7164_v30 = vrot.slane %v7162_v53, 4  ;;  %v11300_v27 = vrot.slane %v7065_v20, 9 }
 0x3e5   : > { %v7171_v20 = vrot.slane %v7169_v14, 4  ;;  %v11301_v36 = vrot.slane %v7066_v24, 9  ;;  %v7193_v53 = vrot.slane %v15168_v2, 5 }
 0x3e6   : > { %v15312_v37 = vsel %vm13857_vm2, %v11300_v27, %v7169_v14  ;;  %v7190_v27 = vrot.slane %v15162_v58, 5  ;;  %v7069_v14 = vld [vmem:[#allocation2 + $0x9c] sm:$0xe]  ;;  %v7120_v58 = vrot.slane %v15264_v49, 5  ;;  %v13205_v49 = vld [vmem:[#allocation2 + $0x28] sm:$0xf] }
 0x3ea   : > { %12288 = vmatmul.mubr.msk.bf16.vlgmr.msra.gmra.mrb[0].mxu1 %vm1399_vm12, %v11260_v62  ;;  %v7157_v62 = vrot.slane %v7155_v6, 4 }
 0x3eb   : > { %12320 = vmatpush3.bf16.msra.mxu1 %v7315_v17  ;;  %12291 = vmatprep.mubr.msk.bf16.mxu1 %vm1399_vm12, %v11261_v29  ;;  %v7158_v17 = vrot.slane %v15091_v18, 5  ;;  %v7165_v29 = vrot.slane %v15097_v19, 5  ;;  %v7172_v18 = vrot.slane %v15124_v23, 5  ;;  %v7176_v19 = vrot.slane %v15131_v5, 5 }
 0x3ec   : > { %13081 = vmatprep.subr.msk.bf16.mxu1 %vm1448_vm0, %v15270_v3  ;;  %v7179_v23 = vrot.slane %v15136_v11, 5  ;;  %v7192_v11 = vrot.slane %v7190_v27, 4  ;;  %v16906_v5 = vcombine.low %v15188_v28, %v15193_v47  ;;  %v7122_v28 = vrot.slane %v7120_v58, 4 }
 0x3ed   : > { %v15290_v16 = vsel %vm13857_vm2, %v7157_v62, %v7158_v17  ;;  %v15302_v6 = vsel %vm13857_vm2, %v7164_v30, %v7165_v29  ;;  %v11264_v62 = vcombine.low %v15011_v38, %v15028_v57  ;;  %v7178_v17 = vrot.slane %v7176_v19, 4 }
 0x3ee   : > { %v15316_v24 = vsel %vm13857_vm2, %v7171_v20, %v7172_v18  ;;  %v15320_v38 = vsel %vm13857_vm2, %v11301_v36, %v7176_v19  ;;  %v7183_v29 = vrot.slane %v15146_v9, 5  ;;  %v11302_v30 = vrot.slane %v7067_v60, 9  ;;  %v7070_v60 = vld [vmem:[#allocation2 + $0xa8] sm:$0xe] }
 0x3ef   : > { %v7186_v20 = vrot.slane %v15149_v42, 5  ;;  %v11303_v36 = vrot.slane %v7068_v59, 9  ;;  %v11304_v42 = vrot.slane %v7069_v14, 9  ;;  %v7204_v59 = vrot.slane %v15193_v47, 5  ;;  %v7071_v14 = vld [vmem:[#allocation2 + $0xb4] sm:$0xe] }
 0x3f0   : > { %v7185_v19 = vrot.slane %v7183_v29, 4  ;;  %v15353_v2 = vsel %vm13857_vm2, %v7192_v11, %v7193_v53  ;;  %v13203_v47 = vld [vmem:[#allocation2 + $0x14] sm:$0x1] }
 0x3f1   : > { %v15346_v18 = vsel %vm13857_vm2, %v11303_v36, %v7190_v27  ;;  %v7206_v10 = vrot.slane %v7204_v59, 4  ;;  %v7207_v27 = vrot.slane %v15198_v26, 5  ;;  %v11265_v36 = vcombine.low %v15033_v43, %v15039_v8 }
 0x3f2   : > { %12292 = vmatmul.mubr.msk.bf16.gmra.mrb[4].mxu1 %vm1399_vm12, %v11262_v39  ;;  %v15328_v39 = vsel %vm13857_vm2, %v7178_v17, %v7179_v23  ;;  %v7197_v17 = vrot.slane %v15177_v54, 5  ;;  %v15342_v23 = vsel %vm13857_vm2, %v7185_v19, %v7186_v20  ;;  %v11305_v20 = vrot.slane %v7070_v60, 9  ;;  %v7057_v54 = vld [vmem:[#allocation2 + $0xc] sm:$0xe] }
 0x3f3   : > { %12295 = vmatprep.mubr.msk.bf16.mxu1 %vm1399_vm12, %v11263_v22  ;;  %v15336_v22 = vsel %vm13857_vm2, %v11302_v30, %v7183_v29  ;;  %v15379_v43 = vsel %vm13857_vm2, %v7206_v10, %v7207_v27  ;;  %v7213_v60 = vrot.slane %v7211_v1, 4  ;;  %v11292_v27 = vrot.slane %v7057_v54, 9 }
 0x3f4   : > { %v7199_v30 = vrot.slane %v7197_v17, 4  ;;  %v15363_v29 = vsel %vm13857_vm2, %v11304_v42, %v7197_v17  ;;  %v15375_v26 = vsel %vm13857_vm2, %v11305_v20, %v7204_v59  ;;  %v11306_v17 = vrot.slane %v7071_v14, 9 }
 0x3f5   : > { %v7127_v14 = vrot.slane %v13205_v49, 5  ;;  %v16926_v11 = vcombine.low %v15336_v22, %v15342_v23 }
 0x3f6   : > { %v15367_v53 = vsel %vm13857_vm2, %v7199_v30, %v7200_v0  ;;  %v15387_v42 = vsel %vm13857_vm2, %v11306_v17, %v7211_v1  ;;  %v13204_v30 = vld [vmem:[#allocation2 + $0x20] sm:$0x1]  ;;  %v7134_v1 = vrot.slane %v13206_v35, 5  ;;  %v7114_v17 = vsel %vm13857_vm2, %v11292_v27, %v7113_v25  ;;  %v8606_v0 = vld [vmem:[#allocation2 + $0x9c] sm:$0xe] }
 0x3f7   : > { %v7123_v20 = vrot.slane %v13204_v30, 5 }
 0x3f9   : > { %v7124_v31 = vsel %vm13857_vm2, %v7122_v28, %v7123_v20  ;;  %v7062_v20 = vld [vmem:[#allocation2 + $0x48] sm:$0xe] }
 0x3fa   : > { %12296 = vmatmul.mubr.msk.bf16.gmra.mrb[8].mxu1 %vm1399_vm12, %v11264_v62  ;;  %v7214_v62 = vrot.slane %v15218_v52, 5  ;;  %v11291_v52 = vrot.slane %v7056_v63, 9  ;;  %v15452_v63 = vld [vmem:[%s16763_s3 + $0x10] sm:$0xf]  ;;  %v11297_v49 = vrot.slane %v7062_v20, 9 }
 0x3fb   : > { %12299 = vmatprep.mubr.msk.bf16.mxu1 %vm1399_vm12, %v11265_v36  ;;  %v15530_v20 = vld [vmem:[#allocation2 + $0x64] sm:$0xf] }
 0x3fc   : > { %v15391_v59 = vsel %vm13857_vm2, %v7213_v60, %v7214_v62  ;;  %v7107_v41 = vsel %vm13857_vm2, %v11291_v52, %v7106_v32  ;;  %v7673_v62 = vsel %vm1448_vm0, %v15270_v3, 0  ;;  %v13207_v52 = vld [vmem:[#allocation2 + $0x2c] sm:$0x1]  ;;  %v7060_v3 = vld [vmem:[#allocation2 + $0x30] sm:$0xe] }
 0x402   : > { %12300 = vmatmul.mubr.msk.bf16.gmra.mrb[12].mxu1 %vm1399_vm12, %v11266_v46  ;;  %v7108_v46 = vrot.slane %v7106_v32, 4  ;;  %v7129_v32 = vrot.slane %v7127_v14, 4 }
 0x403   : > { %12303 = vmatprep.mubr.msk.bf16.mxu1 %vm1399_vm12, %v11267_v40  ;;  %v7115_v40 = vrot.slane %v7113_v25, 4  ;;  %v7141_v25 = vrot.slane %v15028_v57, 5  ;;  %v7144_v57 = vrot.slane %v15037_v56, 5  ;;  %v15482_v56 = vld [vmem:[#allocation2 + $0x28] sm:$0xf] }
 0x404   : > { %v7110_v9 = vsel %vm13857_vm2, %v7108_v46, %v7109_v50  ;;  %v7136_v50 = vrot.slane %v7134_v1, 4  ;;  %v7130_v46 = vrot.slane %v13207_v52, 5 }
 0x405   : > { %v11308_v45 = vcombine.low %v7107_v41, %v7110_v9  ;;  %v11294_v41 = vrot.slane %v7059_v61, 9  ;;  %v16909_v61 = vcombine.low %v15294_v44, %v15302_v6 }
 0x406   : > { %v7131_v9 = vsel %vm13857_vm2, %v7129_v32, %v7130_v46  ;;  %v8597_v32 = vld [vmem:[#allocation2 + $0x30] sm:$0xe] }
 0x407   : > { %v11409_v6 = vrot.slane %v8597_v32, 9  ;;  %v8605_v32 = vld [vmem:[#allocation2 + $0x90] sm:$0xe] }
 0x408   : > { %v11417_v19 = vrot.slane %v8605_v32, 9 }
 0x40a   : > { %12304 = vmatmul.mubr.msk.bf16.gmra.mrb[16].mxu1 %vm1399_vm12, %v11268_v12  ;;  %v7116_v12 = vrot.slane %v13203_v47, 5 }
 0x40b   : > { %12307 = vmatprep.mubr.msk.bf16.mxu1 %vm1399_vm12, %v11269_v48  ;;  %v7058_v48 = vld [vmem:[#allocation2 + $0x18] sm:$0xe] }
 0x40c   : > { %v7117_v7 = vsel %vm13857_vm2, %v7115_v40, %v7116_v12  ;;  %v11293_v36 = vrot.slane %v7058_v48, 9  ;;  %v7148_v40 = vrot.slane %v15039_v8, 5  ;;  %v7143_v12 = vrot.slane %v7141_v25, 4  ;;  %v7061_v48 = vld [vmem:[#allocation2 + $0x3c] sm:$0xe] }
 0x40d   : > { %v11309_v60 = vcombine.low %v7114_v17, %v7117_v7  ;;  %v7151_v8 = vrot.slane %v15043_v34, 5  ;;  %v11296_v27 = vrot.slane %v7061_v48, 9  ;;  %v8596_v34 = vld [vmem:[#allocation2 + $0x24] sm:$0xe]  ;;  %v15484_v17 = vld [vmem:[#allocation2 + $0x2c] sm:$0x1] }
 0x40e   : > { %v7150_v30 = vrot.slane %v7148_v40, 4  ;;  %v7145_v7 = vsel %vm13857_vm2, %v7143_v12, %v7144_v57  ;;  %v7149_v35 = vsel %vm13857_vm2, %v11297_v49, %v7148_v40  ;;  %v11408_v52 = vrot.slane %v8596_v34, 9  ;;  %v8600_v57 = vld [vmem:[#allocation2 + $0x54] sm:$0xe] }
 0x412   : > { %12308 = vmatmul.mubr.msk.bf16.gmra.mrb[20].mxu1 %vm1399_vm12, %v16903_v13  ;;  %v7121_v13 = vsel %vm13857_vm2, %v11293_v36, %v7120_v58  ;;  %v11295_v58 = vrot.slane %v7060_v3, 9  ;;  %v7142_v36 = vsel %vm13857_vm2, %v11296_v27, %v7141_v25  ;;  %v8598_v3 = vld [vmem:[#allocation2 + $0x3c] sm:$0xe]  ;;  %v8599_v25 = vld [vmem:[#allocation2 + $0x48] sm:$0xe] }
 0x413   : > { %12311 = vmatprep.mubr.msk.bf16.mxu1 %vm1399_vm12, %v16904_v21  ;;  %v11310_v21 = vcombine.low %v7121_v13, %v7124_v31  ;;  %v11313_v31 = vcombine.low %v7142_v36, %v7145_v7  ;;  %v16908_v13 = vcombine.low %v15285_v4, %v15290_v16  ;;  %v8677_v4 = vrot.slane %v15484_v17, 5  ;;  %v15541_v36 = vld [vmem:[#allocation2 + $0x68] sm:$0x1] }
 0x414   : > { %v7135_v28 = vsel %vm13857_vm2, %v11295_v58, %v7134_v1  ;;  %v15514_v58 = vld [vmem:[#allocation2 + $0x58] sm:$0xf]  ;;  %v11411_v7 = vrot.slane %v8599_v25, 9  ;;  %v15571_v25 = vld [vmem:[#allocation2 + $0x7c] sm:$0xf] }
 0x41a   : > { %12312 = vmatmul.mubr.msk.bf16.gmra.mrb[24].mxu1 %vm1399_vm12, %v16905_v33  ;;  %v13208_v33 = vld [vmem:[#allocation2 + $0x38] sm:$0x1] }
 0x41b   : > { %12315 = vmatprep.mubr.msk.bf16.mxu1 %vm1399_vm12, %v16906_v5  ;;  %v7137_v5 = vrot.slane %v13208_v33, 5  ;;  %v15501_v33 = vld [vmem:[#allocation2 + $0x44] sm:$0x1] }
 0x422   : > { %12316 = vmatmul.mubr.msk.bf16.gmra.mrb[28].mxu1 %vm1399_vm12, %v16907_v55  ;;  %v7128_v55 = vsel %vm13857_vm2, %v11294_v41, %v7127_v14  ;;  %v7152_v14 = vsel %vm13857_vm2, %v7150_v30, %v7151_v8  ;;  %v15507_v41 = vld [vmem:[#allocation2 + $0x50] sm:$0x1]  ;;  %v8691_v30 = vrot.slane %v15501_v33, 5 }
 0x423   : > { %12321 = vmatprep.mubr.msk.bf16.mxu1 %vm1399_vm12, %v11308_v45  ;;  %v7138_v45 = vsel %vm13857_vm2, %v7136_v50, %v7137_v5  ;;  %v11311_v54 = vcombine.low %v7128_v55, %v7131_v9  ;;  %v11314_v1 = vcombine.low %v7149_v35, %v7152_v14  ;;  %v15499_v50 = vld [vmem:[#allocation2 + $0x38] sm:$0x1]  ;;  %v15503_v5 = vld [vmem:[#allocation2 + $0x4c] sm:$0xf]  ;;  %v8601_v14 = vld [vmem:[#allocation2 + $0x60] sm:$0xe] }
 0x424   : > { %v11312_v47 = vcombine.low %v7135_v28, %v7138_v45  ;;  %v8684_v55 = vrot.slane %v15499_v50, 5  ;;  %v15521_v28 = vld [vmem:[#allocation2 + $0x5c] sm:$0x1]  ;;  %v8695_v49 = vrot.slane %v15503_v5, 5  ;;  %v8698_v34 = vrot.slane %v15507_v41, 5 }
 0x425   : > { %v15632_v35 = vld [vmem:[#allocation2 + $0xa4] sm:$0x1] }
 0x42a   : > { %12322 = vmatmul.mubr.msk.bf16.vlgmr.msra.gmra.mrb[0].mxu1 %vm1399_vm12, %v11309_v60  ;;  %v15486_v60 = vld [vmem:[#allocation2 + $0x34] sm:$0xf] }
 0x42b   : > { %12354 = vmatpush3.bf16.msra.mxu1 %v7673_v62  ;;  %12325 = vmatprep.mubr.msk.bf16.mxu1 %vm1399_vm12, %v11310_v21  ;;  %v8674_v62 = vrot.slane %v15482_v56, 5  ;;  %v15493_v21 = vld [vmem:[#allocation2 + $0x40] sm:$0xf]  ;;  %v8681_v16 = vrot.slane %v15486_v60, 5 }
 0x42c   : > { %13082 = vmatprep.subr.msk.bf16.mxu1 %vm1448_vm0, %v15452_v63  ;;  %v8688_v9 = vrot.slane %v15493_v21, 5 }
 0x42d   : > { %v8676_v46 = vrot.slane %v8674_v62, 4  ;;  %v15511_v44 = vsel %vm13857_vm2, %v11408_v52, %v8674_v62  ;;  %v8683_v40 = vrot.slane %v8681_v16, 4  ;;  %v15527_v12 = vsel %vm13857_vm2, %v11409_v6, %v8681_v16  ;;  %v15564_v16 = vld [vmem:[#allocation2 + $0x74] sm:$0x1] }
 0x42e   : > { %16910 = vst [vmem:[#allocation9_spill] sm:$0xff] %v15511_v44  ;;  %16912 = vst [vmem:[#allocation10_spill] sm:$0xff] %v15527_v12  ;;  %v8690_v48 = vrot.slane %v8688_v9, 4  ;;  %v8702_v62 = vrot.slane %v15514_v58, 5  ;;  %v11412_v52 = vrot.slane %v8600_v57, 9  ;;  %v11413_v6 = vrot.slane %v8601_v14, 9 }
 0x42f   : > { %v15518_v45 = vsel %vm13857_vm2, %v8676_v46, %v8677_v4  ;;  %v15534_v8 = vsel %vm13857_vm2, %v8683_v40, %v8684_v55  ;;  %v8705_v46 = vrot.slane %v15521_v28, 5  ;;  %v16917_v4 = vcombine.low %v15320_v38, %v15328_v39  ;;  %v15602_v57 = vld [vmem:[#allocation2 + $0x94] sm:$0xf]  ;;  %v13147_v44 = vld [vmem:[#allocation2 + $0x78] sm:$0xff]  }
 0x430   : > { %16911 = vst [vmem:[#allocation4_spill] sm:$0xff] %v15518_v45  ;;  %16913 = vst [vmem:[#allocation7_spill] sm:$0xff] %v15534_v8  ;;  %v15579_v38 = vsel %vm13857_vm2, %v11412_v52, %v8702_v62  ;;  %v8712_v39 = vrot.slane %v15541_v36, 5  ;;  %v8719_v52 = vrot.slane %v15564_v16, 5 }
 0x431   : > { %16920 = vst [vmem:[#allocation11_spill] sm:$0xff] %v15579_v38  ;;  %v7974_v38 = vshll.u32 %v15482_v56, 16 }
 0x432   : > { %12326 = vmatmul.mubr.msk.bf16.gmra.mrb[4].mxu1 %vm1399_vm12, %v11311_v54  ;;  %v11410_v54 = vrot.slane %v8598_v3, 9  ;;  %v8602_v3 = vld [vmem:[#allocation2 + $0x6c] sm:$0xe] }
 0x433   : > { %12329 = vmatprep.mubr.msk.bf16.mxu1 %vm1399_vm12, %v11312_v47  ;;  %v11414_v14 = vrot.slane %v8602_v3, 9 }
 0x434   : > { %v15538_v27 = vsel %vm13857_vm2, %v11410_v54, %v8688_v9  ;;  %v8709_v9 = vrot.slane %v15530_v20, 5  ;;  %v8603_v54 = vld [vmem:[#allocation2 + $0x78] sm:$0xe] }
 0x435   : > { %16914 = vst [vmem:[#allocation8_spill] sm:$0xff] %v15538_v27 }
 0x43a   : > { %12330 = vmatmul.mubr.msk.bf16.gmra.mrb[8].mxu1 %vm1399_vm12, %v11313_v31  ;;  %v15543_v31 = vld [vmem:[#allocation2 + $0x70] sm:$0xf] }
 0x43b   : > { %12333 = vmatprep.mubr.msk.bf16.mxu1 %vm1399_vm12, %v11314_v1  ;;  %v15549_v1 = vsel %vm13857_vm2, %v8690_v48, %v8691_v30  ;;  %v8716_v55 = vrot.slane %v15543_v31, 5  ;;  %v15583_v48 = vld [vmem:[#allocation2 + $0x80] sm:$0x1]  ;;  %v15585_v30 = vld [vmem:[#allocation2 + $0x88] sm:$0xf] }
 0x43c   : > { %16915 = vst [vmem:[#allocation5_spill] sm:$0xff] %v15549_v1  ;;  %v15777_v1 = vrot.slane %v7974_v38, 5 }
 0x43d   : > { %v15610_v3 = vsel %vm13857_vm2, %v11414_v14, %v8716_v55 }
 0x43e   : > { %16924 = vst [vmem:[#allocation15_spill] sm:$0xff] %v15610_v3  ;;  %v8747_v3 = vrot.slane %v15632_v35, 5 }
 0x442   : > { %12334 = vmatmul.mubr.msk.bf16.gmra.mrb[12].mxu1 %vm1399_vm12, %v16908_v13  ;;  %v16916_v13 = vcombine.low %v15312_v37, %v15316_v24  ;;  %v15568_v37 = vsel %vm13857_vm2, %v11411_v7, %v8695_v49  ;;  %v8704_v24 = vrot.slane %v8702_v62, 4  ;;  %v8723_v62 = vrot.slane %v15571_v25, 5 }
 0x443   : > { %12337 = vmatprep.mubr.msk.bf16.mxu1 %vm1399_vm12, %v16909_v61  ;;  %v8697_v61 = vrot.slane %v8695_v49, 4  ;;  %16918 = vst [vmem:[#allocation6_spill] sm:$0xff] %v15568_v37  ;;  %v8711_v49 = vrot.slane %v8709_v9, 4 }
 0x444   : > { %v15591_v7 = vsel %vm13857_vm2, %v8704_v24, %v8705_v46  ;;  %v11415_v24 = vrot.slane %v8603_v54, 9  ;;  %v8737_v54 = vrot.slane %v15602_v57, 5 }
 0x445   : > { %v15575_v40 = vsel %vm13857_vm2, %v8697_v61, %v8698_v34  ;;  %16921 = vst [vmem:[#allocation12_spill] sm:$0xff] %v15591_v7  ;;  %v15593_v34 = vld [vmem:[#allocation2 + $0x8c] sm:$0x1]  ;;  %v8718_v61 = vrot.slane %v8716_v55, 4  ;;  %v15606_v46 = vsel %vm13857_vm2, %v8711_v49, %v8712_v39  ;;  %v8726_v39 = vrot.slane %v15583_v48, 5 }
 0x446   : > { %16919 = vst [vmem:[#allocation3_spill] sm:$0xff] %v15575_v40  ;;  %16923 = vst [vmem:[#allocation14_spill] sm:$0xff] %v15606_v46  ;;  %v8730_v55 = vrot.slane %v15585_v30, 5  ;;  %v8725_v49 = vrot.slane %v8723_v62, 4  ;;  %v8733_v10 = vrot.slane %v15593_v34, 5 }
 0x447   : > { %v15621_v47 = vsel %vm13857_vm2, %v8718_v61, %v8719_v52  ;;  %v15636_v61 = vsel %vm13857_vm2, %v11415_v24, %v8723_v62  ;;  %v15655_v62 = vld [vmem:[#allocation2 + $0xb8] sm:$0xf]  ;;  %v8739_v24 = vrot.slane %v8737_v54, 4  ;;  %v8608_v46 = vld [vmem:[#allocation2 + $0xb4] sm:$0xe] }
 0x448   : > { %16925 = vst [vmem:[#allocation16_spill] sm:$0xff] %v15621_v47  ;;  %16927 = vst [vmem:[#allocation17_spill] sm:$0xff] %v15636_v61  ;;  %v8732_v52 = vrot.slane %v8730_v55, 4  ;;  %v15643_v47 = vld [vmem:[#allocation2 + $0xac] sm:$0xf]  ;;  %v15647_v22 = vsel %vm13857_vm2, %v8725_v49, %v8726_v39  ;;  %v11418_v39 = vrot.slane %v8606_v0, 9 }
 0x449   : > { %16929 = vst [vmem:[#allocation18_spill] sm:$0xff] %v15647_v22  ;;  %v8607_v49 = vld [vmem:[#allocation2 + $0xa8] sm:$0xe]  ;;  %v15670_v7 = vld [vmem:[#allocation2 + $0xc4] sm:$0xf] }
 0x44a   : > { %12338 = vmatmul.mubr.msk.bf16.gmra.mrb[16].mxu1 %vm1399_vm12, %v16916_v13  ;;  %v15599_v13 = vsel %vm13857_vm2, %v11413_v6, %v8709_v9  ;;  %v15613_v6 = vld [vmem:[#allocation2 + $0x98] sm:$0x1]  ;;  %v15615_v9 = vld [vmem:[#allocation2 + $0xa0] sm:$0xf]  ;;  %v15692_v22 = vld [vmem:[#allocation2 + $0xc8] sm:$0x1] }
 0x44b   : > { %12341 = vmatprep.mubr.msk.bf16.mxu1 %vm1399_vm12, %v16917_v4  ;;  %16922 = vst [vmem:[#allocation13_spill] sm:$0xff] %v15599_v13  ;;  %v8604_v4 = vld [vmem:[#allocation2 + $0x84] sm:$0xe]  ;;  %v8744_v32 = vrot.slane %v15615_v9, 5  ;;  %v15668_v13 = vld [vmem:[#allocation2 + $0xbc] sm:$0x1] }
 0x44c   : > { %v11416_v14 = vrot.slane %v8604_v4, 9  ;;  %v16928_v4 = vcombine.low %v15346_v18, %v15353_v2  ;;  %v15661_v2 = vsel %vm13857_vm2, %v8732_v52, %v8733_v10  ;;  %v15674_v10 = vsel %vm13857_vm2, %v11417_v19, %v8737_v54  ;;  %v8609_v54 = vld [vmem:[#allocation2 + $0xc0] sm:$0xe]  ;;  %16936 = vst [vmem:[#allocation25_spill] sm:$0xff] %v15692_v22 }
 0x44d   : > { %16931 = vst [vmem:[#allocation20_spill] sm:$0xff] %v15661_v2  ;;  %16932 = vst [vmem:[#allocation21_spill] sm:$0xff] %v15674_v10  ;;  %v15682_v52 = vsel %vm13857_vm2, %v11418_v39, %v8744_v32  ;;  %v8758_v19 = vrot.slane %v15655_v62, 5  ;;  %v11420_v39 = vrot.slane %v8608_v46, 9  ;;  %v8761_v18 = vrot.slane %v15668_v13, 5 }
 0x44e   : > { %v15651_v23 = vsel %vm13857_vm2, %v11416_v14, %v8730_v55  ;;  %v8746_v14 = vrot.slane %v8744_v32, 4  ;;  %16934 = vst [vmem:[#allocation23_spill] sm:$0xff] %v15682_v52  ;;  %v8751_v55 = vrot.slane %v15643_v47, 5  ;;  %v13144_v52 = vld [vmem:[#allocation2 + $0x54] sm:$0xff]  }
 0x44f   : > { %16930 = vst [vmem:[#allocation19_spill] sm:$0xff] %v15651_v23  ;;  %v11419_v23 = vrot.slane %v8607_v49, 9  ;;  %v8760_v61 = vrot.slane %v8758_v19, 4  ;;  %v15713_v46 = vsel %vm13857_vm2, %v11420_v39, %v8758_v19  ;;  %v13141_v39 = vld [vmem:[#allocation2 + $0x30] sm:$0xff]  }
 0x450   : > { %v15689_v2 = vsel %vm13857_vm2, %v8746_v14, %v8747_v3  ;;  %v8753_v32 = vrot.slane %v8751_v55, 4  ;;  %v16937_v3 = vcombine.low %v15363_v29, %v15367_v53  ;;  %16940 = vst [vmem:[#allocation28_spill] sm:$0xff] %v15713_v46 }
 0x451   : > { %16935 = vst [vmem:[#allocation24_spill] sm:$0xff] %v15689_v2  ;;  %v15705_v49 = vsel %vm13857_vm2, %v11419_v23, %v8751_v55  ;;  %v16941_v2 = vcombine.low %v15375_v26, %v15379_v43  ;;  %v15723_v53 = vsel %vm13857_vm2, %v8760_v61, %v8761_v18  ;;  %v8768_v55 = vrot.slane %v15692_v22, 5  ;;  %v13139_v18 = vld [vmem:[#allocation2 + $0x18] sm:$0xff]   ;;  %v10153_v22 = vld [vmem:[#allocation2 + $0x54] sm:$0xe] }
 0x452   : > { %12342 = vmatmul.mubr.msk.bf16.gmra.mrb[20].mxu1 %vm1399_vm12, %v16926_v11  ;;  %v8740_v11 = vrot.slane %v15613_v6, 5  ;;  %16938 = vst [vmem:[#allocation26_spill] sm:$0xff] %v15705_v49  ;;  %16942 = vst [vmem:[#allocation29_spill] sm:$0xff] %v15723_v53  ;;  %v16945_v61 = vcombine.low %v15387_v42, %v15391_v59  ;;  %v15752_v42 = vld [vmem:[#allocation2 + $0x10] sm:$0xf]  ;;  %v13143_v49 = vld [vmem:[#allocation2 + $0x48] sm:$0xff]  }
 0x453   : > { %12345 = vmatprep.mubr.msk.bf16.mxu1 %vm1399_vm12, %v16928_v4  ;;  %v15663_v4 = vld [vmem:[#allocation2 + $0xb0] sm:$0x1]  ;;  %v7868_v59 = vld [vmem:[#allocation2 + $0xc] sm:$0xf]  ;;  %v7874_v53 = vld [vmem:[#allocation2 + $0x24] sm:$0xf] }
 0x454   : > { %v15678_v0 = vsel %vm13857_vm2, %v8739_v24, %v8740_v11  ;;  %v8754_v24 = vrot.slane %v15663_v4, 5  ;;  %v11421_v11 = vrot.slane %v8609_v54, 9 }
 0x455   : > { %16933 = vst [vmem:[#allocation22_spill] sm:$0xff] %v15678_v0  ;;  %v8765_v0 = vrot.slane %v15670_v7, 5 }
 0x456   : > { %v15709_v14 = vsel %vm13857_vm2, %v8753_v32, %v8754_v24  ;;  %v15748_v32 = vld [vmem:[%s16763_s3 + $0x14] sm:$0xf]  ;;  %v7926_v24 = vshll.u32 %v15752_v42, 16 }
 0x457   : > { %16939 = vst [vmem:[#allocation27_spill] sm:$0xff] %v15709_v14  ;;  %v8767_v23 = vrot.slane %v8765_v0, 4  ;;  %v15730_v54 = vsel %vm13857_vm2, %v11421_v11, %v8765_v0  ;;  %v8399_v0 = vsel %vm1448_vm0, %v15452_v63, 0  ;;  %v13140_v11 = vld [vmem:[#allocation2 + $0x24] sm:$0xff]   ;;  %v7930_v63 = vshrl.u32 %v15752_v42, 16 }
 0x458   : > { %16943 = vst [vmem:[#allocation30_spill] sm:$0xff] %v15730_v54 }
 0x459   : > { %v15734_v26 = vsel %vm13857_vm2, %v8767_v23, %v8768_v55  ;;  %v7920_v23 = vshll.u32 %v7868_v59, 16  ;;  %v7871_v55 = vld [vmem:[#allocation2 + $0x18] sm:$0xf] }
 0x45a   : > { %12346 = vmatmul.mubr.msk.bf16.gmra.mrb[24].mxu1 %vm1399_vm12, %v16937_v3  ;;  %16944 = vst [vmem:[#allocation31_spill] sm:$0xff] %v15734_v26  ;;  %v7917_v3 = vshrl.u32 %v7868_v59, 16  ;;  %v7944_v43 = vshll.u32 %v7871_v55, 16  ;;  %v15762_v26 = vld [vmem:[#allocation2 + $0x14] sm:$0x1] }
 0x45b   : > { %12349 = vmatprep.mubr.msk.bf16.mxu1 %vm1399_vm12, %v16941_v2  ;;  %v13138_v2 = vld [vmem:[#allocation2 + $0xc] sm:$0xff]   ;;  %v7922_v29 = vrot.slane %v7920_v23, 5  ;;  %16947 = vst [vmem:[#allocation33_spill] sm:$0xff] %v15762_v26  ;;  %v7965_v23 = vshrl.u32 %v7874_v53, 16 }
 0x45c   : > { %v7919_v19 = vrot.slane %v7917_v3, 4 }
 0x45d   : > { %v7967_v37 = vrot.slane %v7965_v23, 4 }
 0x45e   : > { %v7923_v10 = vor.u32 %v7922_v29, %v7919_v19 }
 0x460   : > { %v7924_v29 = vrot.slane %v7923_v10, 4  ;;  %v7880_v10 = vld [vmem:[#allocation2 + $0x3c] sm:$0xf] }
 0x462   : > { %12350 = vmatmul.mubr.msk.bf16.gmra.mrb[28].mxu1 %vm1399_vm12, %v16945_v61  ;;  %v15759_v61 = vld [vmem:[#allocation2 + $0x1c] sm:$0xf] }
 0x463   : > { %12355 = vmatprep.mubr.msk.bf16.mxu1 %vm1399_vm12, %v13138_v2  ;;  %v13142_v2 = vld [vmem:[#allocation2 + $0x3c] sm:$0xff]   ;;  %16946 = vst [vmem:[#allocation32_spill] sm:$0xff] %v15759_v61  ;;  %v7950_v54 = vshll.u32 %v15759_v61, 16  ;;  %v7954_v59 = vshrl.u32 %v15759_v61, 16 }
 0x465   : > { %v7956_v3 = vrot.slane %v7954_v59, 4 }
 0x46a   : > { %12356 = vmatmul.mubr.msk.bf16.vlgmr.msra.gmra.mrb[0].mxu1 %vm1399_vm12, %v13139_v18  ;;  %v7928_v18 = vrot.slane %v7926_v24, 5  ;;  %v7936_v24 = vshll.u32 %v15762_v26, 16 }
 0x46b   : > { %12388 = vmatpush3.bf16.msra.mxu1 %v8399_v0  ;;  %12359 = vmatprep.mubr.msk.bf16.mxu1 %vm1399_vm12, %v13140_v11  ;;  %v7932_v0 = vrot.slane %v7930_v63, 4  ;;  %v7941_v11 = vshrl.u32 %v7871_v55, 16  ;;  %v15767_v63 = vld [vmem:[#allocation2 + $0x20] sm:$0x1]  ;;  %v15769_v55 = vrot.slane %v7950_v54, 5 }
 0x46c   : > { %13083 = vmatprep.subr.msk.bf16.mxu1 %vm1448_vm0, %v15748_v32  ;;  %16948 = vst [vmem:[#allocation34_spill] sm:$0xff] %v15767_v63  ;;  %v7960_v19 = vshll.u32 %v15767_v63, 16  ;;  %v7938_v40 = vrot.slane %v7936_v24, 5 }
 0x46d   : > { %v7933_v46 = vor.u32 %v7932_v0, %v7928_v18  ;;  %v7943_v14 = vrot.slane %v7941_v11, 4  ;;  %v7978_v0 = vshrl.u32 %v15482_v56, 16  ;;  %v7957_v54 = vor.u32 %v7956_v3, %v15769_v55  ;;  %v13146_v3 = vld [vmem:[#allocation2 + $0x6c] sm:$0xff]  }
 0x46e   : > { %v7962_v24 = vrot.slane %v7960_v19, 5  ;;  %v8016_v19 = vshll.u32 %v7880_v10, 16 }
 0x46f   : > { %v7958_v23 = vrot.slane %v7957_v54, 4  ;;  %v8026_v54 = vshrl.u32 %v15493_v21, 16 }
 0x472   : > { %12360 = vmatmul.mubr.msk.bf16.gmra.mrb[4].mxu1 %vm1399_vm12, %v13141_v39  ;;  %v7946_v39 = vrot.slane %v7944_v43, 5  ;;  %v7934_v43 = vrot.slane %v7933_v46, 4  ;;  %v13145_v46 = vld [vmem:[#allocation2 + $0x60] sm:$0xff]  }
 0x473   : > { %12363 = vmatprep.mubr.msk.bf16.mxu1 %vm1399_vm12, %v13142_v2  ;;  %v7968_v2 = vshll.u32 %v7874_v53, 16  ;;  %v7980_v53 = vrot.slane %v7978_v0, 4 }
 0x474   : > { %v7947_v11 = vor.u32 %v7946_v39, %v7943_v14  ;;  %v7939_v27 = vsel %vm13377_vm13, %v7934_v43, %v7938_v40  ;;  %v8002_v14 = vshrl.u32 %v15486_v60, 16  ;;  %v7929_v39 = vsel %vm13377_vm13, %v7924_v29, %v7928_v18 }
 0x475   : > { %v7970_v59 = vrot.slane %v7968_v2, 5  ;;  %v7984_v2 = vshll.u32 %v15484_v17, 16  ;;  %v15787_v40 = vcombine.low %v7929_v39, %v7939_v27  ;;  %v7981_v43 = vor.u32 %v7980_v53, %v15777_v1  ;;  %v7883_v27 = vld [vmem:[#allocation2 + $0x48] sm:$0xf] }
 0x476   : > { %v7948_v56 = vrot.slane %v7947_v11, 4  ;;  %v8022_v17 = vshll.u32 %v15493_v21, 16  ;;  %v8050_v53 = vshrl.u32 %v15503_v5, 16  ;;  %v8018_v21 = vrot.slane %v8016_v19, 5  ;;  %v7889_v19 = vld [vmem:[#allocation2 + $0x60] sm:$0xf] }
 0x477   : > { %v7971_v38 = vor.u32 %v7970_v59, %v7967_v37  ;;  %v8004_v37 = vrot.slane %v8002_v14, 4  ;;  %v8046_v59 = vshll.u32 %v15503_v5, 16  ;;  %v7986_v39 = vrot.slane %v7984_v2, 5 }
 0x478   : > { %v7953_v18 = vsel %vm13377_vm13, %v7948_v56, %v15769_v55  ;;  %v7982_v55 = vrot.slane %v7981_v43, 4  ;;  %v8037_v12 = vshrl.u32 %v7883_v27, 16  ;;  %v8040_v45 = vshll.u32 %v7883_v27, 16 }
 0x479   : > { %v15804_v63 = vrot.slane %v8022_v17, 5  ;;  %v8028_v5 = vrot.slane %v8026_v54, 4  ;;  %v15806_v61 = vrot.slane %v8046_v59, 5  ;;  %v8032_v17 = vshll.u32 %v15501_v33, 16 }
 0x47a   : > { %12364 = vmatmul.mubr.msk.bf16.gmra.mrb[8].mxu1 %vm1399_vm12, %v13143_v49  ;;  %v7877_v49 = vld [vmem:[#allocation2 + $0x30] sm:$0xf]  ;;  %v8039_v54 = vrot.slane %v8037_v12, 4 }
 0x47b   : > { %12367 = vmatprep.mubr.msk.bf16.mxu1 %vm1399_vm12, %v13144_v52  ;;  %v7998_v52 = vshll.u32 %v15486_v60, 16  ;;  %v7989_v0 = vshrl.u32 %v7877_v49, 16  ;;  %v7992_v11 = vshll.u32 %v7877_v49, 16  ;;  %v8013_v60 = vshrl.u32 %v7880_v10, 16  ;;  %v7886_v10 = vld [vmem:[#allocation2 + $0x54] sm:$0xf] }
 0x47c   : > { %v7963_v49 = vsel %vm13377_vm13, %v7958_v23, %v7962_v24  ;;  %v8052_v24 = vrot.slane %v8050_v53, 4  ;;  %v13148_v23 = vld [vmem:[#allocation2 + $0x84] sm:$0xff]   ;;  %v8061_v2 = vshrl.u32 %v7886_v10, 16 }
 0x47d   : > { %v15794_v29 = vrot.slane %v7998_v52, 5  ;;  %v7994_v56 = vrot.slane %v7992_v11, 5  ;;  %v8008_v52 = vshll.u32 %v15499_v50, 16  ;;  %v8015_v14 = vrot.slane %v8013_v60, 4 }
 0x47e   : > { %v8070_v60 = vshll.u32 %v15514_v58, 16  ;;  %v8053_v53 = vor.u32 %v8052_v24, %v15806_v61 }
 0x47f   : > { %v8005_v8 = vor.u32 %v8004_v37, %v15794_v29  ;;  %v8010_v11 = vrot.slane %v8008_v52, 5  ;;  %v8074_v37 = vshrl.u32 %v15514_v58, 16  ;;  %v8019_v59 = vor.u32 %v8018_v21, %v8015_v14  ;;  %v13149_v14 = vld [vmem:[#allocation2 + $0x90] sm:$0xff]  }
 0x480   : > { %v8088_v58 = vshll.u32 %v7889_v19, 16  ;;  %v8056_v52 = vshll.u32 %v15507_v41, 16 }
 0x481   : > { %v8006_v27 = vrot.slane %v8005_v8, 4  ;;  %v8098_v8 = vshrl.u32 %v15530_v20, 16 }
 0x482   : > { %12368 = vmatmul.mubr.msk.bf16.gmra.mrb[12].mxu1 %vm1399_vm12, %v13145_v46  ;;  %v7972_v46 = vrot.slane %v7971_v38, 4  ;;  %v15808_v38 = vcombine.low %v7953_v18, %v7963_v49  ;;  %v7987_v18 = vsel %vm13377_vm13, %v7982_v55, %v7986_v39  ;;  %v8063_v49 = vrot.slane %v8061_v2, 4  ;;  %v7892_v55 = vld [vmem:[#allocation2 + $0x6c] sm:$0xf] }
 0x483   : > { %12371 = vmatprep.mubr.msk.bf16.mxu1 %vm1399_vm12, %v13146_v3  ;;  %v7991_v3 = vrot.slane %v7989_v0, 4  ;;  %v8064_v0 = vshll.u32 %v7886_v10, 16  ;;  %v15825_v10 = vrot.slane %v8070_v60, 5  ;;  %v8076_v39 = vrot.slane %v8074_v37, 4 }
 0x484   : > { %v7977_v50 = vsel %vm13377_vm13, %v7972_v46, %v15777_v1  ;;  %v8042_v1 = vrot.slane %v8040_v45, 5  ;;  %v8094_v45 = vshll.u32 %v15530_v20, 16  ;;  %v8011_v21 = vsel %vm13377_vm13, %v8006_v27, %v8010_v11 }
 0x485   : > { %v7995_v43 = vor.u32 %v7994_v56, %v7991_v3  ;;  %v8066_v46 = vrot.slane %v8064_v0, 5  ;;  %v8085_v3 = vshrl.u32 %v7889_v19, 16  ;;  %v15822_v56 = vcombine.low %v7977_v50, %v7987_v18  ;;  %v13150_v50 = vld [vmem:[#allocation2 + $0x9c] sm:$0xff]  }
 0x486   : > { %v8043_v12 = vor.u32 %v8042_v1, %v8039_v54  ;;  %v8054_v2 = vrot.slane %v8053_v53, 4  ;;  %v8090_v60 = vrot.slane %v8088_v58, 5  ;;  %v8077_v37 = vor.u32 %v8076_v39, %v15825_v10 }
 0x487   : > { %v7996_v33 = vrot.slane %v7995_v43, 4  ;;  %v8067_v41 = vor.u32 %v8066_v46, %v8063_v49  ;;  %v8087_v0 = vrot.slane %v8085_v3, 4  ;;  %v8058_v43 = vrot.slane %v8056_v52, 5  ;;  %v7895_v3 = vld [vmem:[#allocation2 + $0x78] sm:$0xf] }
 0x488   : > { %v8109_v19 = vshrl.u32 %v7892_v55, 16  ;;  %v8112_v20 = vshll.u32 %v7892_v55, 16  ;;  %v8044_v18 = vrot.slane %v8043_v12, 4  ;;  %v8080_v11 = vshll.u32 %v15521_v28, 16  ;;  %v15869_v55 = vld [vmem:[#allocation2 + $0x20] sm:$0x1] }
 0x489   : > { %v15835_v54 = vrot.slane %v8094_v45, 5  ;;  %v8001_v1 = vsel %vm13377_vm13, %v7996_v33, %v15794_v29  ;;  %v8059_v49 = vsel %vm13377_vm13, %v8054_v2, %v8058_v43  ;;  %v15848_v28 = vrot.slane %v8067_v41, 4  ;;  %16950 = vst [vmem:[#allocation36_spill] sm:$0xff] %v15869_v55  ;;  %v13152_v2 = vld [vmem:[#allocation2 + $0xb4] sm:$0xff]  }
 0x48a   : > { %12372 = vmatmul.mubr.msk.bf16.gmra.mrb[16].mxu1 %vm1399_vm12, %v13147_v44  ;;  %v8029_v44 = vor.u32 %v8028_v5, %v15804_v63  ;;  %v8020_v5 = vrot.slane %v8019_v59, 4  ;;  %v8118_v59 = vshll.u32 %v15543_v31, 16  ;;  %v15844_v53 = vcombine.low %v8001_v1, %v8011_v21 }
 0x48b   : > { %12375 = vmatprep.mubr.msk.bf16.mxu1 %vm1399_vm12, %v13148_v23  ;;  %v8034_v23 = vrot.slane %v8032_v17, 5  ;;  %v8100_v17 = vrot.slane %v8098_v8, 4  ;;  %v8091_v46 = vor.u32 %v8090_v60, %v8087_v0  ;;  %v15853_v58 = vrot.slane %v8077_v37, 4  ;;  %v15886_v60 = vld [vmem:[#allocation2 + $0x28] sm:$0xf] }
 0x48c   : > { %v8030_v24 = vrot.slane %v8029_v44, 4  ;;  %v8122_v44 = vshrl.u32 %v15543_v31, 16  ;;  %v8025_v29 = vsel %vm13377_vm13, %v8020_v5, %v15804_v63  ;;  %v15855_v52 = vrot.slane %v8109_v19, 4  ;;  %v15859_v31 = vld [vmem:[#allocation2 + $0x1c] sm:$0xf]  ;;  %16952 = vst [vmem:[#allocation38_spill] sm:$0xff] %v15886_v60 }
 0x48d   : > { %v15857_v39 = vrot.slane %v8112_v20, 5  ;;  %16949 = vst [vmem:[#allocation35_spill] sm:$0xff] %v15859_v31  ;;  %v8049_v12 = vsel %vm13377_vm13, %v8044_v18, %v15806_v61  ;;  %v15866_v45 = vrot.slane %v8080_v11, 5  ;;  %v8101_v8 = vor.u32 %v8100_v17, %v15835_v54  ;;  %v10148_v63 = vld [vmem:[#allocation2 + $0x18] sm:$0xe] }
 0x48e   : > { %v8035_v27 = vsel %vm13377_vm13, %v8030_v24, %v8034_v23  ;;  %v15871_v21 = vcombine.low %v8049_v12, %v8059_v49  ;;  %v15874_v24 = vrot.slane %v8118_v59, 5  ;;  %v15876_v23 = vrot.slane %v8122_v44, 4  ;;  %v15897_v11 = vld [vmem:[#allocation2 + $0x2c] sm:$0x1]  ;;  %v10150_v17 = vld [vmem:[#allocation2 + $0x30] sm:$0xe] }
 0x48f   : > { %v15861_v33 = vcombine.low %v8025_v29, %v8035_v27  ;;  %v15884_v41 = vrot.slane %v8091_v46, 4  ;;  %v8133_v0 = vshrl.u32 %v7895_v3, 16  ;;  %v10214_v43 = vrot.slane %v15859_v31, 5  ;;  %16953 = vst [vmem:[#allocation39_spill] sm:$0xff] %v15897_v11  ;;  %v15902_v27 = vld [vmem:[#allocation2 + $0x38] sm:$0x1] }
 0x490   : > { %v8136_v18 = vshll.u32 %v7895_v3, 16  ;;  %v15900_v1 = vrot.slane %v8101_v8, 4  ;;  %16954 = vst [vmem:[#allocation40_spill] sm:$0xff] %v15902_v27  ;;  %v11521_v59 = vrot.slane %v10148_v63, 9  ;;  %v10217_v49 = vrot.slane %v15869_v55, 5  ;;  %v13153_v29 = vld [vmem:[#allocation2 + $0xc0] sm:$0xff]  }
 0x491   : > { %v10216_v44 = vrot.slane %v10214_v43, 4  ;;  %v10149_v46 = vld [vmem:[#allocation2 + $0x24] sm:$0xe]  ;;  %v15912_v8 = vrot.slane %v8133_v0, 4  ;;  %v15914_v20 = vld [vmem:[#allocation2 + $0x40] sm:$0xf] }
 0x492   : > { %12376 = vmatmul.mubr.msk.bf16.gmra.mrb[20].mxu1 %vm1399_vm12, %v13149_v14  ;;  %v13151_v14 = vld [vmem:[#allocation2 + $0xa8] sm:$0xff]   ;;  %v15916_v63 = vld [vmem:[#allocation2 + $0x44] sm:$0x1]  ;;  %v15920_v5 = vsel %vm13857_vm2, %v11521_v59, %v10214_v43  ;;  %v15927_v19 = vrot.slane %v8136_v18, 5  ;;  %v15929_v3 = vld [vmem:[#allocation2 + $0x50] sm:$0x1] }
 0x493   : > { %12379 = vmatprep.mubr.msk.bf16.mxu1 %vm1399_vm12, %v13150_v50  ;;  %v15878_v50 = vld [vmem:[#allocation2 + $0x34] sm:$0xf]  ;;  %16956 = vst [vmem:[#allocation42_spill] sm:$0xff] %v15916_v63  ;;  %16957 = vst [vmem:[#allocation43_spill] sm:$0xff] %v15920_v5  ;;  %v15924_v61 = vsel %vm13857_vm2, %v10216_v44, %v10217_v49  ;;  %v11522_v12 = vrot.slane %v10149_v46, 9  ;;  %v11523_v55 = vrot.slane %v10150_v17, 9 }
 0x494   : > { %16951 = vst [vmem:[#allocation37_spill] sm:$0xff] %v15878_v50  ;;  %16958 = vst [vmem:[#allocation44_spill] sm:$0xff] %v15924_v61  ;;  %v10228_v37 = vrot.slane %v15878_v50, 5  ;;  %v15935_v43 = vsel %vm1448_vm0, %v15748_v32, 0  ;;  %v10224_v44 = vrot.slane %v15897_v11, 5  ;;  %v10231_v32 = vrot.slane %v15902_v27, 5 }
 0x495   : > { %16959 = vst [vmem:[#allocation45_spill] sm:$0xff] %v15929_v3  ;;  %v10152_v50 = vld [vmem:[#allocation2 + $0x48] sm:$0xe]  ;;  %v15938_v31 = vld [vmem:[#allocation2 + $0x58] sm:$0xf]  ;;  %v10235_v46 = vrot.slane %v15914_v20, 5 }
 0x496   : > { %v10230_v49 = vrot.slane %v10228_v37, 4  ;;  %16960 = vst [vmem:[#allocation46_spill] sm:$0xff] %v15938_v31  ;;  %v15940_v18 = vld [vmem:[#allocation2 + $0x64] sm:$0xf]  ;;  %v15948_v17 = vsel %vm13857_vm2, %v11523_v55, %v10228_v37  ;;  %v10238_v5 = vrot.slane %v15916_v63, 5  ;;  %v10245_v37 = vrot.slane %v15929_v3, 5 }
 0x497   : > { %16962 = vst [vmem:[#allocation48_spill] sm:$0xff] %v15948_v17  ;;  %v15961_v55 = vld [vmem:[#allocation2 + $0x68] sm:$0x1]  ;;  %v16006_v27 = vld [vmem:[#allocation2 + $0x94] sm:$0xf] }
 0x498   : > { %16965 = vst [vmem:[#allocation51_spill] sm:$0xff] %v15961_v55  ;;  %v10259_v3 = vrot.slane %v15961_v55, 5  ;;  %16975 = vst [vmem:[#allocation61_spill] sm:$0xff] %v16006_v27 }
 0x49a   : > { %12380 = vmatmul.mubr.msk.bf16.gmra.mrb[24].mxu1 %vm1399_vm12, %v13151_v14  ;;  %v15909_v14 = vld [vmem:[#allocation2 + $0x4c] sm:$0xf] }
 0x49b   : > { %12383 = vmatprep.mubr.msk.bf16.mxu1 %vm1399_vm12, %v13152_v2  ;;  %16955 = vst [vmem:[#allocation41_spill] sm:$0xff] %v15909_v14  ;;  %v10221_v2 = vrot.slane %v15886_v60, 5  ;;  %v10151_v60 = vld [vmem:[#allocation2 + $0x3c] sm:$0xe]  ;;  %v10242_v11 = vrot.slane %v15909_v14, 5 }
 0x49c   : > { %v11524_v61 = vrot.slane %v10151_v60, 9  ;;  %v11525_v60 = vrot.slane %v10152_v50, 9 }
 0x49d   : > { %v10223_v59 = vrot.slane %v10221_v2, 4  ;;  %v15944_v26 = vsel %vm13857_vm2, %v11522_v12, %v10221_v2  ;;  %v15959_v12 = vld [vmem:[#allocation2 + $0x5c] sm:$0x1]  ;;  %v15967_v2 = vsel %vm13857_vm2, %v10230_v49, %v10231_v32  ;;  %v10244_v14 = vrot.slane %v10242_v11, 4  ;;  %v15980_v49 = vld [vmem:[#allocation2 + $0x70] sm:$0xf] }
 0x49e   : > { %16961 = vst [vmem:[#allocation47_spill] sm:$0xff] %v15944_v26  ;;  %16964 = vst [vmem:[#allocation50_spill] sm:$0xff] %v15959_v12  ;;  %v15977_v63 = vsel %vm13857_vm2, %v11524_v61, %v10235_v46  ;;  %v11526_v32 = vrot.slane %v10153_v22, 9  ;;  %v15991_v61 = vld [vmem:[#allocation2 + $0x74] sm:$0x1] }
 0x49f   : > { %v15954_v0 = vsel %vm13857_vm2, %v10223_v59, %v10224_v44  ;;  %16966 = vst [vmem:[#allocation52_spill] sm:$0xff] %v15967_v2  ;;  %v10237_v59 = vrot.slane %v10235_v46, 4  ;;  %v15971_v44 = vld [vmem:[#allocation2 + $0x7c] sm:$0xf]  ;;  %16968 = vst [vmem:[#allocation54_spill] sm:$0xff] %v15977_v63  ;;  %v15999_v26 = vsel %vm13857_vm2, %v10244_v14, %v10245_v37 }
 0x4a0   : > { %16963 = vst [vmem:[#allocation49_spill] sm:$0xff] %v15954_v0  ;;  %16967 = vst [vmem:[#allocation53_spill] sm:$0xff] %v15971_v44  ;;  %v10154_v0 = vld [vmem:[#allocation2 + $0x60] sm:$0xe]  ;;  %v10155_v2 = vld [vmem:[#allocation2 + $0x6c] sm:$0xe] }
 0x4a1   : > { %16969 = vst [vmem:[#allocation55_spill] sm:$0xff] %v15980_v49  ;;  %v15984_v50 = vsel %vm13857_vm2, %v10237_v59, %v10238_v5  ;;  %16972 = vst [vmem:[#allocation58_spill] sm:$0xff] %v15991_v61  ;;  %v15993_v46 = vld [vmem:[#allocation2 + $0x80] sm:$0x1]  ;;  %v10252_v5 = vrot.slane %v15959_v12, 5  ;;  %v11528_v37 = vrot.slane %v10155_v2, 9 }
 0x4a2   : > { %12384 = vmatmul.mubr.msk.bf16.gmra.mrb[28].mxu1 %vm1399_vm12, %v13153_v29  ;;  %16970 = vst [vmem:[#allocation56_spill] sm:$0xff] %v15984_v50  ;;  %v10249_v29 = vrot.slane %v15938_v31, 5  ;;  %16973 = vst [vmem:[#allocation59_spill] sm:$0xff] %v15993_v46  ;;  %v10156_v31 = vld [vmem:[#allocation2 + $0x78] sm:$0xe]  ;;  %v10263_v50 = vrot.slane %v15980_v49, 5 }
 0x4a3   : > { %12389 = vmatprep.mubr.msk.bf16.mxu1 %vm1399_vm12, %v15787_v40  ;;  %v15988_v40 = vsel %vm13857_vm2, %v11525_v60, %v10242_v11  ;;  %16974 = vst [vmem:[#allocation60_spill] sm:$0xff] %v15999_v26  ;;  %v10256_v11 = vrot.slane %v15940_v18, 5  ;;  %v11527_v60 = vrot.slane %v10154_v0, 9  ;;  %v16013_v63 = vld [vmem:[#allocation2 + $0x88] sm:$0xf]  ;;  %v10266_v26 = vrot.slane %v15991_v61, 5 }
 0x4a4   : > { %16971 = vst [vmem:[#allocation57_spill] sm:$0xff] %v15988_v40  ;;  %v10251_v59 = vrot.slane %v10249_v29, 4  ;;  %v16010_v17 = vsel %vm13857_vm2, %v11526_v32, %v10249_v29  ;;  %v16015_v12 = vld [vmem:[#allocation2 + $0x8c] sm:$0x1]  ;;  %v10270_v29 = vrot.slane %v15971_v44, 5  ;;  %v16982_v61 = vshll.u32 %v15571_v25, 16 }
 0x4a5   : > { %16976 = vst [vmem:[#allocation62_spill] sm:$0xff] %v16010_v17  ;;  %v10258_v14 = vrot.slane %v10256_v11, 4  ;;  %16977 = vst [vmem:[#allocation63_spill] sm:$0xff] %v16015_v12  ;;  %v16023_v22 = vsel %vm13857_vm2, %v11527_v60, %v10256_v11  ;;  %v16030_v2 = vld [vmem:[%s16763_s3 + $0x18] sm:$0xf]  ;;  %v10265_v11 = vrot.slane %v10263_v50, 4 }
 0x4a6   : > { %v16019_v0 = vsel %vm13857_vm2, %v10251_v59, %v10252_v5  ;;  %16979 = vst [vmem:[#allocation65_spill] sm:$0xff] %v16023_v22  ;;  %v16032_v32 = vld [vmem:[#allocation2 + $0x98] sm:$0x1]  ;;  %v11529_v59 = vrot.slane %v10156_v31, 9  ;;  %v10157_v60 = vld [vmem:[#allocation2 + $0x84] sm:$0xe] }
 0x4a7   : > { %16978 = vst [vmem:[#allocation64_spill] sm:$0xff] %v16019_v0  ;;  %16980 = vst [vmem:[#allocation66_spill] sm:$0xff] %v16032_v32  ;;  %v16038_v5 = vsel %vm13857_vm2, %v10258_v14, %v10259_v3  ;;  %v16044_v55 = vrot.slane %v16982_v61, 5  ;;  %v10272_v49 = vrot.slane %v10270_v29, 4  ;;  %v10273_v40 = vrot.slane %v15993_v46, 5  ;;  %v17076_v15 = vld [vmem:[#allocation54_spill] sm:$0xff] }
 0x4a8   : > { %16981 = vst [vmem:[#allocation67_spill] sm:$0xff] %v16038_v5  ;;  %v10158_v0 = vld [vmem:[#allocation2 + $0x90] sm:$0xe]  ;;  %v16052_v31 = vld [vmem:[#allocation2 + $0xa0] sm:$0xf]  ;;  %v16062_v61 = vsel %vm13857_vm2, %v10265_v11, %v10266_v26  ;;  %v16066_v14 = vsel %vm13857_vm2, %v11529_v59, %v10270_v29  ;;  %v11530_v26 = vrot.slane %v10157_v60, 9 }
 0x4a9   : > { %16983 = vst [vmem:[#allocation68_spill] sm:$0xff] %v16052_v31  ;;  %v16054_v3 = vld [vmem:[#allocation2 + $0xac] sm:$0xf]  ;;  %16986 = vst [vmem:[#allocation71_spill] sm:$0xff] %v16062_v61  ;;  %v10159_v11 = vld [vmem:[#allocation2 + $0x9c] sm:$0xe] }
 0x4aa   : > { %12390 = vmatmul.mubr.msk.bf16.vlgmr.msra.gmra.mrb[0].mxu1 %vm1399_vm12, %v15808_v38  ;;  %16984 = vst [vmem:[#allocation69_spill] sm:$0xff] %v16054_v3  ;;  %v16058_v38 = vsel %vm13857_vm2, %v11528_v37, %v10263_v50  ;;  %16987 = vst [vmem:[#allocation72_spill] sm:$0xff] %v16066_v14  ;;  %v16077_v50 = vsel %vm13857_vm2, %v10272_v49, %v10273_v40  ;;  %v10284_v37 = vrot.slane %v16006_v27, 5  ;;  %v9460_v29 = vld [vmem:[#allocation2 + $0xb0] sm:$0x1]  ;;  %v10280_v22 = vrot.slane %v16015_v12, 5 }
 0x4ab   : > { %12422 = vmatpush3.bf16.msra.mxu1 %v15935_v43  ;;  %12393 = vmatprep.mubr.msk.bf16.mxu1 %vm1399_vm12, %v15822_v56  ;;  %16985 = vst [vmem:[#allocation70_spill] sm:$0xff] %v16058_v38  ;;  %v10277_v43 = vrot.slane %v16013_v63, 5  ;;  %v16071_v56 = vld [vmem:[#allocation2 + $0xa4] sm:$0x1]  ;;  %16988 = vst [vmem:[#allocation73_spill] sm:$0xff] %v16077_v50  ;;  %v11531_v17 = vrot.slane %v10158_v0, 9 }
 0x4ac   : > { %13084 = vmatprep.subr.msk.bf16.mxu1 %vm1448_vm0, %v16030_v2  ;;  %v10286_v44 = vrot.slane %v10284_v37, 4  ;;  %v10287_v49 = vrot.slane %v16032_v32, 5  ;;  %v10291_v40 = vrot.slane %v16052_v31, 5  ;;  %v10160_v60 = vld [vmem:[#allocation2 + $0xa8] sm:$0xe]  ;;  %v11532_v0 = vrot.slane %v10159_v11, 9 }
 0x4ad   : > { %v10279_v5 = vrot.slane %v10277_v43, 4  ;;  %v16085_v46 = vsel %vm13857_vm2, %v11530_v26, %v10277_v43  ;;  %v16089_v61 = vld [vmem:[#allocation2 + $0xb8] sm:$0xf]  ;;  %v16097_v59 = vsel %vm13857_vm2, %v11531_v17, %v10284_v37  ;;  %v10298_v43 = vrot.slane %v16054_v3, 5  ;;  %v7898_v26 = vld [vmem:[#allocation2 + $0x84] sm:$0xf] }
 0x4ae   : > { %16990 = vst [vmem:[#allocation75_spill] sm:$0xff] %v16097_v59  ;;  %v9463_v50 = vld [vmem:[#allocation2 + $0xbc] sm:$0x1]  ;;  %v16100_v14 = vld [vmem:[#allocation2 + $0xc4] sm:$0xf]  ;;  %v16106_v31 = vsel %vm13857_vm2, %v10286_v44, %v10287_v49  ;;  %v11533_v37 = vrot.slane %v10160_v60, 9  ;;  %v16117_v44 = vsel %vm13857_vm2, %v11532_v0, %v10291_v40 }
 0x4af   : > { %v16093_v38 = vsel %vm13857_vm2, %v10279_v5, %v10280_v22  ;;  %16991 = vst [vmem:[#allocation76_spill] sm:$0xff] %v16106_v31  ;;  %v10293_v22 = vrot.slane %v10291_v40, 4  ;;  %v10294_v5 = vrot.slane %v16071_v56, 5  ;;  %v10300_v11 = vrot.slane %v10298_v43, 4  ;;  %v10161_v12 = vld [vmem:[#allocation2 + $0xb4] sm:$0xe] }
 0x4b0   : > { %16989 = vst [vmem:[#allocation74_spill] sm:$0xff] %v16093_v38  ;;  %v10301_v3 = vrot.slane %v9460_v29, 5  ;;  %v16992_v27 = vshrl.u32 %v15571_v25, 16  ;;  %v9466_v38 = vld [vmem:[#allocation2 + $0xc8] sm:$0x1]  ;;  %v10305_v60 = vrot.slane %v16089_v61, 5  ;;  %v16130_v25 = vsel %vm13857_vm2, %v11533_v37, %v10298_v43 }
 0x4b1   : > { %v16121_v49 = vsel %vm13857_vm2, %v10293_v22, %v10294_v5  ;;  %v10162_v17 = vld [vmem:[#allocation2 + $0xc0] sm:$0xe]  ;;  %v10312_v29 = vrot.slane %v16100_v14, 5  ;;  %v11534_v0 = vrot.slane %v10161_v12, 9  ;;  %v10308_v5 = vrot.slane %v9463_v50, 5 }
 0x4b2   : > { %12394 = vmatmul.mubr.msk.bf16.gmra.mrb[4].mxu1 %vm1399_vm12, %v15844_v53  ;;  %v8148_v32 = vrot.slane %v16992_v27, 4  ;;  %16993 = vst [vmem:[#allocation77_spill] sm:$0xff] %v16121_v49  ;;  %v16134_v27 = vsel %vm13857_vm2, %v10300_v11, %v10301_v3  ;;  %v10307_v22 = vrot.slane %v10305_v60, 4  ;;  %v11535_v31 = vrot.slane %v10162_v17, 9 }
 0x4b3   : > { %12397 = vmatprep.mubr.msk.bf16.mxu1 %vm1399_vm12, %v15861_v33  ;;  %v11550_v40 = vcombine.low %v16130_v25, %v16134_v27  ;;  %v8157_v33 = vshrl.u32 %v7898_v26, 16  ;;  %v10314_v59 = vrot.slane %v10312_v29, 4  ;;  %v10315_v53 = vrot.slane %v9466_v38, 5 }
 0x4b4   : > { %v8166_v49 = vshll.u32 %v15585_v30, 16  ;;  %v8170_v43 = vshrl.u32 %v15585_v30, 16  ;;  %v16143_v3 = vsel %vm13857_vm2, %v11534_v0, %v10305_v60  ;;  %v16147_v37 = vsel %vm13857_vm2, %v10307_v22, %v10308_v5 }
 0x4b5   : > { %v8160_v11 = vshll.u32 %v7898_v26, 16  ;;  %v11551_v12 = vcombine.low %v16143_v3, %v16147_v37  ;;  %v16153_v50 = vsel %vm13857_vm2, %v11535_v31, %v10312_v29  ;;  %v16157_v38 = vsel %vm13857_vm2, %v10314_v59, %v10315_v53  ;;  %v13212_v37 = vld [vmem:[%s13347_s27 + $0x10] sm:$0xff] }
 0x4b6   : > { %v16994_v30 = vor.u32 %v15857_v39, %v15855_v52  ;;  %v16995_v60 = vor.u32 %v15876_v23, %v15874_v24  ;;  %v8149_v26 = vor.u32 %v8148_v32, %v16044_v55  ;;  %v11552_v22 = vcombine.low %v16153_v50, %v16157_v38 }
 0x4b7   : > { %v16996_v31 = vsel %vm13377_vm13, %v15853_v58, %v15866_v45  ;;  %v16997_v52 = vsel %vm13377_vm13, %v15848_v28, %v15825_v10  ;;  %v16998_v59 = vshll.u32 %v15541_v36, 16  ;;  %v16999_v32 = vshll.u32 %v15564_v16, 16  ;;  %v7901_v45 = vld [vmem:[#allocation2 + $0x90] sm:$0xf] }
 0x4b8   : > { %v8116_v17 = vrot.slane %v16994_v30, 4  ;;  %v8126_v0 = vrot.slane %v16995_v60, 4  ;;  %v11380_v39 = vcombine.low %v16997_v52, %v16996_v31  ;;  %v8152_v29 = vshll.u32 %v15583_v48, 16 }
 0x4b9   : > { %v8106_v23 = vrot.slane %v16998_v59, 5  ;;  %v8130_v53 = vrot.slane %v16999_v32, 5  ;;  %v16185_v5 = vrot.slane %v8166_v49, 5  ;;  %v8172_v58 = vrot.slane %v8170_v43, 4 }
 0x4ba   : > { %12398 = vmatmul.mubr.msk.bf16.gmra.mrb[8].mxu1 %vm1399_vm12, %v15871_v21  ;;  %v8097_v36 = vsel %vm13377_vm13, %v15884_v41, %v15835_v54  ;;  %v8139_v10 = vor.u32 %v15927_v19, %v15912_v8  ;;  %v8159_v28 = vrot.slane %v8157_v33, 4  ;;  %v8162_v21 = vrot.slane %v8160_v11, 5  ;;  %v7904_v19 = vld [vmem:[#allocation2 + $0x9c] sm:$0xf] }
 0x4bb   : > { %12401 = vmatprep.mubr.msk.bf16.mxu1 %vm1399_vm12, %v11380_v39  ;;  %v8107_v16 = vsel %vm13377_vm13, %v15900_v1, %v8106_v23  ;;  %v8121_v48 = vsel %vm13377_vm13, %v8116_v17, %v15874_v24  ;;  %v8131_v49 = vsel %vm13377_vm13, %v8126_v0, %v8130_v53  ;;  %v8150_v43 = vrot.slane %v8149_v26, 4 }
 0x4bc   : > { %v8181_v30 = vshrl.u32 %v7901_v45, 16  ;;  %v8184_v60 = vshll.u32 %v7901_v45, 16  ;;  %v8190_v54 = vshll.u32 %v15602_v57, 16  ;;  %v8194_v41 = vshrl.u32 %v15602_v57, 16 }
 0x4bd   : > { %v8154_v8 = vrot.slane %v8152_v29, 5  ;;  %v8173_v33 = vor.u32 %v8172_v58, %v16185_v5  ;;  %v8214_v1 = vshll.u32 %v15615_v9, 16  ;;  %v8218_v11 = vshrl.u32 %v15615_v9, 16 }
 0x4be   : > { %v11381_v31 = vcombine.low %v8097_v36, %v8107_v16  ;;  %v11382_v24 = vcombine.low %v8121_v48, %v8131_v49  ;;  %v8140_v17 = vrot.slane %v8139_v10, 4  ;;  %v8163_v52 = vor.u32 %v8162_v21, %v8159_v28  ;;  %v7907_v16 = vld [vmem:[#allocation2 + $0xa8] sm:$0xf] }
 0x4bf   : > { %v8155_v0 = vsel %vm13377_vm13, %v8150_v43, %v8154_v8  ;;  %v8176_v26 = vshll.u32 %v15593_v34, 16  ;;  %v8205_v39 = vshrl.u32 %v7904_v19, 16  ;;  %v8208_v59 = vshll.u32 %v7904_v19, 16 }
 0x4c0   : > { %v8183_v57 = vrot.slane %v8181_v30, 4  ;;  %v8186_v23 = vrot.slane %v8184_v60, 5  ;;  %v8192_v32 = vrot.slane %v8190_v54, 5  ;;  %v8196_v53 = vrot.slane %v8194_v41, 4  ;;  %v7910_v60 = vld [vmem:[#allocation2 + $0xb4] sm:$0xf] }
 0x4c1   : > { %v8174_v29 = vrot.slane %v8173_v33, 4  ;;  %v8216_v58 = vrot.slane %v8214_v1, 5  ;;  %v8220_v9 = vrot.slane %v8218_v11, 4  ;;  %v8145_v45 = vsel %vm13377_vm13, %v8140_v17, %v16044_v55 }
 0x4c2   : > { %12402 = vmatmul.mubr.msk.bf16.gmra.mrb[12].mxu1 %vm1399_vm12, %v11381_v31  ;;  %v8164_v36 = vrot.slane %v8163_v52, 4  ;;  %v11383_v10 = vcombine.low %v8145_v45, %v8155_v0  ;;  %v8178_v34 = vrot.slane %v8176_v26, 5  ;;  %v8207_v28 = vrot.slane %v8205_v39, 4 }
 0x4c3   : > { %12405 = vmatprep.mubr.msk.bf16.mxu1 %vm1399_vm12, %v11382_v24  ;;  %v8210_v21 = vrot.slane %v8208_v59, 5  ;;  %v8187_v48 = vor.u32 %v8186_v23, %v8183_v57  ;;  %v8197_v49 = vor.u32 %v8196_v53, %v8192_v32  ;;  %v8238_v43 = vshll.u32 %v15643_v47, 16 }
 0x4c4   : > { %v8242_v30 = vshrl.u32 %v15643_v47, 16  ;;  %v8179_v54 = vsel %vm13377_vm13, %v8174_v29, %v8178_v34  ;;  %v8221_v41 = vor.u32 %v8220_v9, %v8216_v58  ;;  %v8262_v19 = vshll.u32 %v15655_v62, 16 }
 0x4c5   : > { %v8266_v55 = vshrl.u32 %v15655_v62, 16  ;;  %v8169_v8 = vsel %vm13377_vm13, %v8164_v36, %v16185_v5  ;;  %v8200_v33 = vshll.u32 %v15613_v6, 16  ;;  %v8229_v1 = vshrl.u32 %v7907_v16, 16  ;;  %v7913_v36 = vld [vmem:[#allocation2 + $0xc0] sm:$0xf] }
 0x4c6   : > { %v8232_v11 = vshll.u32 %v7907_v16, 16  ;;  %v8211_v31 = vor.u32 %v8210_v21, %v8207_v28  ;;  %v8224_v47 = vshll.u32 %v15632_v35, 16  ;;  %v8253_v24 = vshrl.u32 %v7910_v60, 16 }
 0x4c7   : > { %v8256_v17 = vshll.u32 %v7910_v60, 16  ;;  %v11384_v52 = vcombine.low %v8169_v8, %v8179_v54  ;;  %v8198_v0 = vrot.slane %v8197_v49, 4  ;;  %v8240_v26 = vrot.slane %v8238_v43, 5 }
 0x4c8   : > { %v8244_v39 = vrot.slane %v8242_v30, 4  ;;  %v8188_v62 = vrot.slane %v8187_v48, 4  ;;  %v8222_v59 = vrot.slane %v8221_v41, 4  ;;  %v8264_v57 = vrot.slane %v8262_v19, 5 }
 0x4c9   : > { %v8268_v23 = vrot.slane %v8266_v55, 4  ;;  %v8202_v6 = vrot.slane %v8200_v33, 5  ;;  %v8231_v5 = vrot.slane %v8229_v1, 4  ;;  %v8234_v53 = vrot.slane %v8232_v11, 5 }
 0x4ca   : > { %12406 = vmatmul.mubr.msk.bf16.gmra.mrb[16].mxu1 %vm1399_vm12, %v11383_v10  ;;  %v8212_v29 = vrot.slane %v8211_v31, 4  ;;  %v8226_v9 = vrot.slane %v8224_v47, 5  ;;  %v8255_v35 = vrot.slane %v8253_v24, 4  ;;  %v8258_v45 = vrot.slane %v8256_v17, 5 }
 0x4cb   : > { %12409 = vmatprep.mubr.msk.bf16.mxu1 %vm1399_vm12, %v11384_v52  ;;  %v8203_v34 = vsel %vm13377_vm13, %v8198_v0, %v8202_v6  ;;  %v8245_v28 = vor.u32 %v8244_v39, %v8240_v26  ;;  %v8286_v10 = vshll.u32 %v15670_v7, 16  ;;  %v8290_v21 = vshrl.u32 %v15670_v7, 16 }
 0x4cc   : > { %v8193_v16 = vsel %vm13377_vm13, %v8188_v62, %v8192_v32  ;;  %v8227_v48 = vsel %vm13377_vm13, %v8222_v59, %v8226_v9  ;;  %v8269_v49 = vor.u32 %v8268_v23, %v8264_v57  ;;  %v8235_v43 = vor.u32 %v8234_v53, %v8231_v5  ;;  %v17000_v23 = vld [vmem:[#allocation25_spill] sm:$0xff] }
 0x4cd   : > { %v8248_v30 = vshll.u32 %v15663_v4, 16  ;;  %v8277_v60 = vshrl.u32 %v7913_v36, 16  ;;  %v8280_v54 = vshll.u32 %v7913_v36, 16  ;;  %v11385_v41 = vcombine.low %v8193_v16, %v8203_v34  ;;  %v17001_v34 = vld [vmem:[#allocation33_spill] sm:$0xff] }
 0x4ce   : > { %v8217_v19 = vsel %vm13377_vm13, %v8212_v29, %v8216_v58  ;;  %v8259_v55 = vor.u32 %v8258_v45, %v8255_v35  ;;  %v8272_v8 = vshll.u32 %v15668_v13, 16  ;;  %v8246_v33 = vrot.slane %v8245_v28, 4 }
 0x4cf   : > { %v11386_v7 = vcombine.low %v8217_v19, %v8227_v48  ;;  %v8288_v1 = vrot.slane %v8286_v10, 5  ;;  %v8292_v32 = vrot.slane %v8290_v21, 4  ;;  %v8270_v11 = vrot.slane %v8269_v49, 4  ;;  %v17002_v10 = vld [vmem:[#allocation32_spill] sm:$0xff] }
 0x4d0   : > { %v8236_v31 = vrot.slane %v8235_v43, 4  ;;  %v8250_v4 = vrot.slane %v8248_v30, 5  ;;  %v8279_v47 = vrot.slane %v8277_v60, 4  ;;  %v8282_v24 = vrot.slane %v8280_v54, 5  ;;  %v8595_v54 = vld [vmem:[#allocation2 + $0x18] sm:$0xe] }
 0x4d1   : > { %v8260_v17 = vrot.slane %v8259_v55, 4  ;;  %v8274_v52 = vrot.slane %v8272_v8, 5  ;;  %v8293_v0 = vor.u32 %v8292_v32, %v8288_v1  ;;  %v8660_v39 = vrot.slane %v15752_v42, 5  ;;  %v8594_v42 = vld [vmem:[#allocation2 + $0xc] sm:$0xe] }
 0x4d2   : > { %12410 = vmatmul.mubr.msk.bf16.gmra.mrb[20].mxu1 %vm1399_vm12, %v11385_v41  ;;  %v8251_v58 = vsel %vm13377_vm13, %v8246_v33, %v8250_v4  ;;  %v8241_v62 = vsel %vm13377_vm13, %v8236_v31, %v8240_v26  ;;  %v8283_v59 = vor.u32 %v8282_v24, %v8279_v47  ;;  %v8296_v6 = vshll.u32 %v17000_v23, 16  ;;  %v17003_v41 = vld [vmem:[#allocation34_spill] sm:$0xff]  ;;  %v11488_v32 = vld [vmem:[%s16763_s3 + $0x1c] sm:$0xf]  ;;  %v17005_v31 = vld [vmem:[#allocation4_spill] sm:$0xff] }
 0x4d3   : > { %12413 = vmatprep.mubr.msk.bf16.mxu1 %vm1399_vm12, %v11386_v7  ;;  %v8275_v13 = vsel %vm13377_vm13, %v8270_v11, %v8274_v52  ;;  %v11387_v5 = vcombine.low %v8241_v62, %v8251_v58  ;;  %v8265_v53 = vsel %vm13377_vm13, %v8260_v17, %v8264_v57  ;;  %v8294_v9 = vrot.slane %v8293_v0, 4  ;;  %v17004_v11 = vld [vmem:[#allocation9_spill] sm:$0xff]  ;;  %v17007_v47 = vld [vmem:[#allocation10_spill] sm:$0xff]  ;;  %v17008_v24 = vld [vmem:[#allocation7_spill] sm:$0xff] }
 0x4d4   : > { %v11388_v29 = vcombine.low %v8265_v53, %v8275_v13  ;;  %v8662_v35 = vrot.slane %v8660_v39, 4  ;;  %v8284_v45 = vrot.slane %v8283_v59, 4  ;;  %v8298_v36 = vrot.slane %v8296_v6, 5  ;;  %v17011_v52 = vld [vmem:[#allocation5_spill] sm:$0xff]  ;;  %v17013_v0 = vld [vmem:[#allocation6_spill] sm:$0xff]  ;;  %v17014_v13 = vld [vmem:[#allocation3_spill] sm:$0xff] }
 0x4d5   : > { %v8663_v28 = vrot.slane %v17001_v34, 5  ;;  %v8667_v21 = vrot.slane %v17002_v10, 5  ;;  %v11406_v16 = vrot.slane %v8594_v42, 9  ;;  %v8670_v19 = vrot.slane %v17003_v41, 5  ;;  %v17016_v62 = vld [vmem:[#allocation11_spill] sm:$0xff]  ;;  %v17017_v59 = vld [vmem:[#allocation12_spill] sm:$0xff] }
 0x4d6   : > { %v8299_v26 = vsel %vm13377_vm13, %v8294_v9, %v8298_v36  ;;  %v8289_v48 = vsel %vm13377_vm13, %v8284_v45, %v8288_v1  ;;  %v11407_v55 = vrot.slane %v8595_v54, 9  ;;  %v9227_v1 = vsel %vm1448_vm0, %v16030_v2, 0  ;;  %v17010_v2 = vld [vmem:[#allocation8_spill] sm:$0xff]  ;;  %v17019_v6 = vld [vmem:[#allocation13_spill] sm:$0xff]  ;;  %v17026_v36 = vld [vmem:[#allocation18_spill] sm:$0xff] }
 0x4d7   : > { %v8664_v57 = vsel %vm13857_vm2, %v8662_v35, %v8663_v28  ;;  %v11389_v49 = vcombine.low %v8289_v48, %v8299_v26  ;;  %v8661_v43 = vsel %vm13857_vm2, %v11406_v16, %v8660_v39  ;;  %v8669_v60 = vrot.slane %v8667_v21, 4  ;;  %v17023_v9 = vld [vmem:[#allocation16_spill] sm:$0xff]  ;;  %v17025_v45 = vld [vmem:[#allocation17_spill] sm:$0xff]  ;;  %v17028_v34 = vld [vmem:[#allocation19_spill] sm:$0xff] }
 0x4d8   : > { %v11423_v30 = vcombine.low %v8661_v43, %v8664_v57  ;;  %v8668_v7 = vsel %vm13857_vm2, %v11407_v55, %v8667_v21  ;;  %v17006_v4 = vcombine.low %v17004_v11, %v17005_v31  ;;  %v17009_v17 = vcombine.low %v17007_v47, %v17008_v24  ;;  %v17029_v28 = vld [vmem:[#allocation20_spill] sm:$0xff]  ;;  %v17031_v10 = vld [vmem:[#allocation21_spill] sm:$0xff]  ;;  %v17032_v21 = vld [vmem:[#allocation22_spill] sm:$0xff] }
 0x4d9   : > { %v8671_v8 = vsel %vm13857_vm2, %v8669_v60, %v8670_v19  ;;  %v17012_v58 = vcombine.low %v17010_v2, %v17011_v52  ;;  %v17015_v39 = vcombine.low %v17013_v0, %v17014_v13  ;;  %v17018_v23 = vcombine.low %v17016_v62, %v17017_v59  ;;  %v17034_v57 = vld [vmem:[#allocation23_spill] sm:$0xff]  ;;  %v17035_v48 = vld [vmem:[#allocation24_spill] sm:$0xff]  ;;  %v17037_v43 = vld [vmem:[#allocation26_spill] sm:$0xff] }
 0x4da   : > { %12414 = vmatmul.mubr.msk.bf16.gmra.mrb[24].mxu1 %vm1399_vm12, %v11387_v5  ;;  %v11424_v33 = vcombine.low %v8668_v7, %v8671_v8  ;;  %v17020_v5 = vld [vmem:[#allocation14_spill] sm:$0xff]  ;;  %v17027_v42 = vcombine.low %v17025_v45, %v17026_v36  ;;  %v17030_v26 = vcombine.low %v17028_v34, %v17029_v28  ;;  %v17033_v16 = vcombine.low %v17031_v10, %v17032_v21  ;;  %v17040_v54 = vld [vmem:[#allocation28_spill] sm:$0xff]  ;;  %v17041_v41 = vld [vmem:[#allocation29_spill] sm:$0xff] }
 0x4db   : > { %12417 = vmatprep.mubr.msk.bf16.mxu1 %vm1399_vm12, %v11388_v29  ;;  %v17021_v53 = vcombine.low %v17019_v6, %v17020_v5  ;;  %v17022_v29 = vld [vmem:[#allocation15_spill] sm:$0xff]  ;;  %v17042_v19 = vcombine.low %v17040_v54, %v17041_v41  ;;  %v17043_v8 = vld [vmem:[#allocation30_spill] sm:$0xff]  ;;  %v9953_v11 = vsel %vm1448_vm0, %v11488_v32, 0  ;;  %v13158_v24 = vld [vmem:[#allocation2 + $0x48] sm:$0xff]  }
 0x4dc   : > { %v17024_v35 = vcombine.low %v17022_v29, %v17023_v9  ;;  %v13154_v55 = vld [vmem:[#allocation2 + $0x18] sm:$0xff]   ;;  %v13156_v31 = vld [vmem:[#allocation2 + $0x30] sm:$0xff]   ;;  %v9425_v5 = vld [vmem:[#allocation2 + $0x24] sm:$0xf] }
 0x4dd   : > { %v17044_v7 = vld [vmem:[#allocation31_spill] sm:$0xff]  ;;  %v13161_v2 = vld [vmem:[#allocation2 + $0x6c] sm:$0xff]   ;;  %v9495_v45 = vshrl.u32 %v9425_v5, 16  ;;  %v9498_v36 = vshll.u32 %v9425_v5, 16  ;;  %v9552_v5 = vshll.u32 %v15914_v20, 16 }
 0x4de   : > { %v13157_v47 = vld [vmem:[#allocation2 + $0x3c] sm:$0xff]   ;;  %v13164_v62 = vld [vmem:[#allocation2 + $0x90] sm:$0xff]  }
 0x4df   : > { %v13162_v52 = vld [vmem:[#allocation2 + $0x78] sm:$0xff]   ;;  %v9428_v10 = vld [vmem:[#allocation2 + $0x30] sm:$0xf] }
 0x4e0   : > { %v17046_v59 = vld [vmem:[#allocation35_spill] sm:$0xff] }
 0x4e1   : > { %v9484_v6 = vshrl.u32 %v17046_v59, 16  ;;  %v13165_v21 = vld [vmem:[#allocation2 + $0x9c] sm:$0xff]  }
 0x4e2   : > { %12418 = vmatmul.mubr.msk.bf16.gmra.mrb[28].mxu1 %vm1399_vm12, %v11389_v49  ;;  %v17036_v49 = vcombine.low %v17034_v57, %v17035_v48 }
 0x4e3   : > { %12423 = vmatprep.mubr.msk.bf16.mxu1 %vm1399_vm12, %v11423_v30  ;;  %v17038_v30 = vld [vmem:[#allocation27_spill] sm:$0xff] }
 0x4e4   : > { %v17039_v60 = vcombine.low %v17037_v43, %v17038_v30  ;;  %v9497_v30 = vrot.slane %v9495_v45, 4 }
 0x4ea   : > { %12424 = vmatmul.mubr.msk.bf16.vlgmr.msra.gmra.mrb[0].mxu1 %vm1399_vm12, %v11424_v33  ;;  %v17045_v33 = vcombine.low %v17043_v8, %v17044_v7  ;;  %v17049_v7 = vld [vmem:[#allocation36_spill] sm:$0xff] }
 0x4eb   : > { %12456 = vmatpush3.bf16.msra.mxu1 %v9227_v1  ;;  %12427 = vmatprep.mubr.msk.bf16.mxu1 %vm1399_vm12, %v17006_v4  ;;  %v13155_v1 = vld [vmem:[#allocation2 + $0x24] sm:$0xff]   ;;  %v16339_v4 = vld [vmem:[%s16763_s3 + $0x20] sm:$0xf] }
 0x4ec   : > { %13085 = vmatprep.subr.msk.bf16.mxu1 %vm1448_vm0, %v11488_v32  ;;  %v13159_v32 = vld [vmem:[#allocation2 + $0x54] sm:$0xff]  }
 0x4f2   : > { %12428 = vmatmul.mubr.msk.bf16.gmra.mrb[4].mxu1 %vm1399_vm12, %v17009_v17  ;;  %v13160_v17 = vld [vmem:[#allocation2 + $0x60] sm:$0xff]  }
 0x4f3   : > { %12431 = vmatprep.mubr.msk.bf16.mxu1 %vm1399_vm12, %v17012_v58  ;;  %v9422_v58 = vld [vmem:[#allocation2 + $0x18] sm:$0xf] }
 0x4f4   : > { %v9471_v0 = vshrl.u32 %v9422_v58, 16  ;;  %v9474_v13 = vshll.u32 %v9422_v58, 16 }
 0x4f6   : > { %v9476_v29 = vrot.slane %v9474_v13, 5 }
 0x4fa   : > { %12432 = vmatmul.mubr.msk.bf16.gmra.mrb[8].mxu1 %vm1399_vm12, %v17015_v39  ;;  %v13163_v39 = vld [vmem:[#allocation2 + $0x84] sm:$0xff]  }
 0x4fb   : > { %12435 = vmatprep.mubr.msk.bf16.mxu1 %vm1399_vm12, %v17018_v23  ;;  %v9480_v23 = vshll.u32 %v17046_v59, 16  ;;  %v13167_v59 = vld [vmem:[#allocation2 + $0xb4] sm:$0xff]  }
 0x4fd   : > { %v16355_v9 = vrot.slane %v9480_v23, 5 }
 0x502   : > { %12436 = vmatmul.mubr.msk.bf16.gmra.mrb[12].mxu1 %vm1399_vm12, %v17021_v53  ;;  %v9473_v53 = vrot.slane %v9471_v0, 4 }
 0x503   : > { %12439 = vmatprep.mubr.msk.bf16.mxu1 %vm1399_vm12, %v17024_v35  ;;  %v9486_v35 = vrot.slane %v9484_v6, 4 }
 0x505   : > { %v9487_v43 = vor.u32 %v9486_v35, %v16355_v9  ;;  %v13168_v35 = vld [vmem:[#allocation2 + $0xc0] sm:$0xff]  }
 0x50a   : > { %12440 = vmatmul.mubr.msk.bf16.gmra.mrb[16].mxu1 %vm1399_vm12, %v17027_v42  ;;  %v17047_v42 = vld [vmem:[#allocation38_spill] sm:$0xff] }
 0x50b   : > { %12443 = vmatprep.mubr.msk.bf16.mxu1 %vm1399_vm12, %v17030_v26  ;;  %v9504_v34 = vshll.u32 %v17047_v42, 16  ;;  %v9508_v28 = vshrl.u32 %v17047_v42, 16  ;;  %v9477_v26 = vor.u32 %v9476_v29, %v9473_v53  ;;  %v9556_v53 = vshrl.u32 %v15914_v20, 16  ;;  %v9434_v29 = vld [vmem:[#allocation2 + $0x48] sm:$0xf] }
 0x50c   : > { %v16385_v20 = vld [vmem:[#allocation2 + $0xd4] sm:$0x1] }
 0x50d   : > { %v16363_v54 = vrot.slane %v9504_v34, 5  ;;  %v9510_v41 = vrot.slane %v9508_v28, 4  ;;  %v9478_v8 = vrot.slane %v9477_v26, 4  ;;  %v17052_v34 = vld [vmem:[#allocation41_spill] sm:$0xff] }
 0x50e   : > { %v9576_v28 = vshll.u32 %v17052_v34, 16  ;;  %v9580_v26 = vshrl.u32 %v17052_v34, 16 }
 0x50f   : > { %v9483_v13 = vsel %vm13377_vm13, %v9478_v8, %v16355_v9 }
 0x512   : > { %12444 = vmatmul.mubr.msk.bf16.gmra.mrb[20].mxu1 %vm1399_vm12, %v17033_v16  ;;  %v17048_v16 = vld [vmem:[#allocation37_spill] sm:$0xff] }
 0x513   : > { %12447 = vmatprep.mubr.msk.bf16.mxu1 %vm1399_vm12, %v17036_v49  ;;  %v9528_v57 = vshll.u32 %v17048_v16, 16  ;;  %v9532_v48 = vshrl.u32 %v17048_v16, 16  ;;  %v13166_v49 = vld [vmem:[#allocation2 + $0xa8] sm:$0xff]  }
 0x51a   : > { %12448 = vmatmul.mubr.msk.bf16.gmra.mrb[24].mxu1 %vm1399_vm12, %v17039_v60  ;;  %v9500_v60 = vrot.slane %v9498_v36, 5  ;;  %v17051_v36 = vld [vmem:[#allocation40_spill] sm:$0xff] }
 0x51b   : > { %12451 = vmatprep.mubr.msk.bf16.mxu1 %vm1399_vm12, %v17042_v19  ;;  %v9519_v19 = vshrl.u32 %v9428_v10, 16  ;;  %v9538_v42 = vshll.u32 %v17051_v36, 16 }
 0x522   : > { %12452 = vmatmul.mubr.msk.bf16.gmra.mrb[28].mxu1 %vm1399_vm12, %v17045_v33  ;;  %v9490_v33 = vshll.u32 %v17049_v7, 16  ;;  %v9570_v7 = vshll.u32 %v9434_v29, 16 }
 0x523   : > { %12457 = vmatprep.mubr.msk.bf16.mxu1 %vm1399_vm12, %v13154_v55  ;;  %v9522_v55 = vshll.u32 %v9428_v10, 16 }
 0x525   : > { %v9524_v58 = vrot.slane %v9522_v55, 5  ;;  %v9558_v55 = vrot.slane %v9556_v53, 4 }
 0x52a   : > { %12458 = vmatmul.mubr.msk.bf16.vlgmr.msra.gmra.mrb[0].mxu1 %vm1399_vm12, %v13155_v1  ;;  %v9431_v1 = vld [vmem:[#allocation2 + $0x3c] sm:$0xf] }
 0x52b   : > { %12490 = vmatpush3.bf16.msra.mxu1 %v9953_v11  ;;  %12461 = vmatprep.mubr.msk.bf16.mxu1 %vm1399_vm12, %v13156_v31  ;;  %v17050_v11 = vld [vmem:[#allocation39_spill] sm:$0xff]  ;;  %v9543_v0 = vshrl.u32 %v9431_v1, 16 }
 0x52c   : > { %13086 = vmatprep.subr.msk.bf16.mxu1 %vm1448_vm0, %v16339_v4  ;;  %v9514_v31 = vshll.u32 %v17050_v11, 16  ;;  %v9437_v11 = vld [vmem:[#allocation2 + $0x54] sm:$0xf] }
 0x52d   : > { %v9545_v16 = vrot.slane %v9543_v0, 4  ;;  %v9594_v53 = vshll.u32 %v9437_v11, 16 }
 0x52e   : > { %v9516_v23 = vrot.slane %v9514_v31, 5 }
 0x532   : > { %12462 = vmatmul.mubr.msk.bf16.gmra.mrb[4].mxu1 %vm1399_vm12, %v13157_v47  ;;  %v16368_v47 = vrot.slane %v9528_v57, 5  ;;  %v16383_v57 = vld [vmem:[#allocation2 + $0xd0] sm:$0xf] }
 0x533   : > { %12465 = vmatprep.mubr.msk.bf16.mxu1 %vm1399_vm12, %v13158_v24  ;;  %v9534_v24 = vrot.slane %v9532_v48, 4 }
 0x535   : > { %v9535_v6 = vor.u32 %v9534_v24, %v16368_v47  ;;  %v13169_v24 = vld [vmem:[#allocation2 + $0xcc] sm:$0xff]  }
 0x53a   : > { %12466 = vmatmul.mubr.msk.bf16.gmra.mrb[8].mxu1 %vm1399_vm12, %v13159_v32  ;;  %v9488_v32 = vrot.slane %v9487_v43, 4  ;;  %v10163_v43 = vld [vmem:[#allocation2 + $0xcc] sm:$0xe] }
 0x53b   : > { %12469 = vmatprep.mubr.msk.bf16.mxu1 %vm1399_vm12, %v13160_v17  ;;  %v9501_v17 = vor.u32 %v9500_v60, %v9497_v30  ;;  %v10319_v30 = vrot.slane %v16383_v57, 5  ;;  %v10322_v60 = vrot.slane %v16385_v20, 5  ;;  %v11536_v8 = vrot.slane %v10163_v43, 9 }
 0x53c   : > { %v9596_v43 = vrot.slane %v9594_v53, 5  ;;  %v17057_v53 = vld [vmem:[#allocation50_spill] sm:$0xff] }
 0x53d   : > { %v9502_v45 = vrot.slane %v9501_v17, 4  ;;  %v10321_v31 = vrot.slane %v10319_v30, 4 }
 0x53f   : > { %v9507_v51 = vsel %vm13377_vm13, %v9502_v45, %v16363_v54 }
 0x542   : > { %12470 = vmatmul.mubr.msk.bf16.gmra.mrb[12].mxu1 %vm1399_vm12, %v13161_v2  ;;  %v9511_v2 = vor.u32 %v9510_v41, %v16363_v54  ;;  %v9536_v41 = vrot.slane %v9535_v6, 4 }
 0x543   : > { %12473 = vmatprep.mubr.msk.bf16.mxu1 %vm1399_vm12, %v13162_v52  ;;  %v9521_v52 = vrot.slane %v9519_v19, 4  ;;  %v16390_v19 = vrot.slane %v9552_v5, 5  ;;  %v9591_v5 = vshrl.u32 %v9437_v11, 16 }
 0x544   : > { %v9512_v10 = vrot.slane %v9511_v2, 4  ;;  %v9540_v2 = vrot.slane %v9538_v42, 5  ;;  %v17054_v42 = vld [vmem:[#allocation46_spill] sm:$0xff] }
 0x545   : > { %v9600_v34 = vshll.u32 %v17054_v42, 16 }
 0x546   : > { %v9517_v17 = vsel %vm13377_vm13, %v9512_v10, %v9516_v23  ;;  %v9541_v23 = vsel %vm13377_vm13, %v9536_v41, %v9540_v2  ;;  %v9604_v10 = vshrl.u32 %v17054_v42, 16  ;;  %v17055_v41 = vld [vmem:[#allocation45_spill] sm:$0xff] }
 0x548   : > { %v9606_v11 = vrot.slane %v9604_v10, 4 }
 0x54a   : > { %12474 = vmatmul.mubr.msk.bf16.gmra.mrb[16].mxu1 %vm1399_vm12, %v13163_v39  ;;  %v9492_v39 = vrot.slane %v9490_v33, 5  ;;  %v16392_v33 = vrot.slane %v9576_v28, 5  ;;  %v11490_v28 = vcombine.low %v9507_v51, %v9517_v17  ;;  %v10423_v17 = vsel %vm1448_vm0, %v16339_v4, 0 }
 0x54b   : > { %12477 = vmatprep.mubr.msk.bf16.mxu1 %vm1399_vm12, %v13164_v62  ;;  %v9546_v62 = vshll.u32 %v9431_v1, 16  ;;  %v9582_v1 = vrot.slane %v9580_v26, 4 }
 0x54c   : > { %v9493_v9 = vsel %vm13377_vm13, %v9488_v32, %v9492_v39  ;;  %v17053_v39 = vld [vmem:[#allocation42_spill] sm:$0xff] }
 0x54d   : > { %v9548_v48 = vrot.slane %v9546_v62, 5  ;;  %v11489_v32 = vcombine.low %v9483_v13, %v9493_v9  ;;  %v9562_v62 = vshll.u32 %v17053_v39, 16  ;;  %v9583_v36 = vor.u32 %v9582_v1, %v16392_v33 }
 0x54e   : > { %v9624_v1 = vshll.u32 %v15940_v18, 16 }
 0x54f   : > { %v9549_v0 = vor.u32 %v9548_v48, %v9545_v16  ;;  %v9564_v9 = vrot.slane %v9562_v62, 5  ;;  %v9584_v45 = vrot.slane %v9583_v36, 4 }
 0x550   : > { %v16437_v4 = vrot.slane %v9624_v1, 5 }
 0x551   : > { %v9550_v48 = vrot.slane %v9549_v0, 4 }
 0x552   : > { %12478 = vmatmul.mubr.msk.bf16.gmra.mrb[20].mxu1 %vm1399_vm12, %v13165_v21  ;;  %v9525_v21 = vor.u32 %v9524_v58, %v9521_v52  ;;  %v16398_v52 = vsel %vm13857_vm2, %v11536_v8, %v10319_v30  ;;  %v9443_v30 = vld [vmem:[#allocation2 + $0x6c] sm:$0xf]  ;;  %v16422_v8 = vrot.slane %v9600_v34, 5 }
 0x553   : > { %12481 = vmatprep.mubr.msk.bf16.mxu1 %vm1399_vm12, %v13166_v49  ;;  %v9567_v49 = vshrl.u32 %v9434_v29, 16  ;;  %v9559_v29 = vor.u32 %v9558_v55, %v16390_v19  ;;  %v9586_v55 = vshll.u32 %v17055_v41, 16  ;;  %v9555_v62 = vsel %vm13377_vm13, %v9550_v48, %v16390_v19  ;;  %v17058_v48 = vld [vmem:[#allocation53_spill] sm:$0xff] }
 0x554   : > { %v9526_v58 = vrot.slane %v9525_v21, 4  ;;  %v9440_v21 = vld [vmem:[#allocation2 + $0x60] sm:$0xf]  ;;  %v9607_v36 = vor.u32 %v9606_v11, %v16422_v8 }
 0x555   : > { %v9569_v6 = vrot.slane %v9567_v49, 4  ;;  %v9593_v49 = vrot.slane %v9591_v5, 4  ;;  %v9588_v5 = vrot.slane %v9586_v55, 5 }
 0x556   : > { %v9531_v26 = vsel %vm13377_vm13, %v9526_v58, %v16368_v47  ;;  %v9628_v47 = vshrl.u32 %v15940_v18, 16  ;;  %v17056_v58 = vld [vmem:[#allocation55_spill] sm:$0xff]  ;;  %v9608_v55 = vrot.slane %v9607_v36, 4  ;;  %v9452_v36 = vld [vmem:[#allocation2 + $0x90] sm:$0xf] }
 0x557   : > { %v11491_v16 = vcombine.low %v9531_v26, %v9541_v23  ;;  %v9597_v2 = vor.u32 %v9596_v43, %v9593_v49  ;;  %v9648_v0 = vshll.u32 %v17056_v58, 16  ;;  %v9652_v39 = vshrl.u32 %v17056_v58, 16 }
 0x558   : > { %v9610_v23 = vshll.u32 %v17057_v53, 16  ;;  %v9589_v34 = vsel %vm13377_vm13, %v9584_v45, %v9588_v5  ;;  %v9672_v49 = vshll.u32 %v17058_v48, 16  ;;  %v9676_v43 = vshrl.u32 %v17058_v48, 16  ;;  %v17060_v53 = vld [vmem:[#allocation58_spill] sm:$0xff] }
 0x559   : > { %v9598_v26 = vrot.slane %v9597_v2, 4  ;;  %v9696_v2 = vshll.u32 %v16013_v63, 16  ;;  %v9700_v58 = vshrl.u32 %v16013_v63, 16 }
 0x55a   : > { %12482 = vmatmul.mubr.msk.bf16.gmra.mrb[24].mxu1 %vm1399_vm12, %v13167_v59  ;;  %v16403_v59 = vsel %vm13857_vm2, %v10321_v31, %v10322_v60  ;;  %v9560_v60 = vrot.slane %v9559_v29, 4  ;;  %v9618_v31 = vshll.u32 %v9440_v21, 16 }
 0x55b   : > { %12485 = vmatprep.mubr.msk.bf16.mxu1 %vm1399_vm12, %v13168_v35  ;;  %v11553_v13 = vcombine.low %v16398_v52, %v16403_v59  ;;  %v9572_v35 = vrot.slane %v9570_v7, 5  ;;  %v9615_v7 = vshrl.u32 %v9440_v21, 16  ;;  %v9446_v21 = vld [vmem:[#allocation2 + $0x78] sm:$0xf]  ;;  %v9603_v11 = vsel %vm13377_vm13, %v9598_v26, %v16422_v8 }
 0x55c   : > { %v9620_v51 = vrot.slane %v9618_v31, 5  ;;  %v16468_v26 = vrot.slane %v9696_v2, 5  ;;  %v17063_v2 = vld [vmem:[#allocation63_spill] sm:$0xff] }
 0x55d   : > { %v9573_v54 = vor.u32 %v9572_v35, %v9569_v6  ;;  %v9565_v6 = vsel %vm13377_vm13, %v9560_v60, %v9564_v9  ;;  %v9617_v29 = vrot.slane %v9615_v7, 4  ;;  %v9630_v35 = vrot.slane %v9628_v47, 4  ;;  %v9449_v47 = vld [vmem:[#allocation2 + $0x84] sm:$0xf] }
 0x55e   : > { %v16443_v9 = vrot.slane %v9648_v0, 5  ;;  %v11492_v10 = vcombine.low %v9555_v62, %v9565_v6  ;;  %v9687_v62 = vshrl.u32 %v9449_v47, 16  ;;  %v9690_v6 = vshll.u32 %v9449_v47, 16 }
 0x55f   : > { %v9574_v18 = vrot.slane %v9573_v54, 4  ;;  %v9631_v60 = vor.u32 %v9630_v35, %v16437_v4  ;;  %v17059_v54 = vld [vmem:[#allocation51_spill] sm:$0xff]  ;;  %v9621_v7 = vor.u32 %v9620_v51, %v9617_v29  ;;  %v17061_v51 = vld [vmem:[#allocation61_spill] sm:$0xff] }
 0x560   : > { %v9634_v41 = vshll.u32 %v17059_v54, 16  ;;  %v9720_v63 = vshll.u32 %v17061_v51, 16  ;;  %v9714_v54 = vshll.u32 %v9452_v36, 16 }
 0x561   : > { %v9632_v0 = vrot.slane %v9631_v60, 4  ;;  %v9711_v60 = vshrl.u32 %v9452_v36, 16  ;;  %v9458_v36 = vld [vmem:[#allocation2 + $0xa8] sm:$0xf] }
 0x562   : > { %12486 = vmatmul.mubr.msk.bf16.gmra.mrb[28].mxu1 %vm1399_vm12, %v13169_v24  ;;  %v9639_v24 = vshrl.u32 %v9443_v30, 16 }
 0x563   : > { %12491 = vmatprep.mubr.msk.bf16.mxu1 %vm1399_vm12, %v11489_v32  ;;  %v9642_v32 = vshll.u32 %v9443_v30, 16  ;;  %v9612_v30 = vrot.slane %v9610_v23, 5  ;;  %v9658_v23 = vshll.u32 %v17060_v53, 16 }
 0x564   : > { %v9641_v19 = vrot.slane %v9639_v24, 4  ;;  %v9663_v24 = vshrl.u32 %v9446_v21, 16 }
 0x565   : > { %v9644_v42 = vrot.slane %v9642_v32, 5  ;;  %v9666_v32 = vshll.u32 %v9446_v21, 16  ;;  %v9613_v8 = vsel %vm13377_vm13, %v9608_v55, %v9612_v30  ;;  %v17062_v21 = vld [vmem:[#allocation59_spill] sm:$0xff]  ;;  %v9660_v30 = vrot.slane %v9658_v23, 5 }
 0x566   : > { %v9665_v29 = vrot.slane %v9663_v24, 4  ;;  %v9682_v48 = vshll.u32 %v17062_v21, 16  ;;  %v16476_v55 = vrot.slane %v9720_v63, 5  ;;  %v17065_v63 = vld [vmem:[#allocation66_spill] sm:$0xff] }
 0x567   : > { %v9645_v1 = vor.u32 %v9644_v42, %v9641_v19  ;;  %v9668_v35 = vrot.slane %v9666_v32, 5  ;;  %v9724_v19 = vshrl.u32 %v17061_v51, 16 }
 0x569   : > { %v9646_v5 = vrot.slane %v9645_v1, 4  ;;  %v9455_v1 = vld [vmem:[#allocation2 + $0x9c] sm:$0xf] }
 0x56a   : > { %12492 = vmatmul.mubr.msk.bf16.vlgmr.msra.gmra.mrb[0].mxu1 %vm1399_vm12, %v11490_v28  ;;  %v9654_v28 = vrot.slane %v9652_v39, 4  ;;  %v9636_v39 = vrot.slane %v9634_v41, 5 }
 0x56b   : > { %12524 = vmatpush3.bf16.msra.mxu1 %v10423_v17  ;;  %12495 = vmatprep.mubr.msk.bf16.mxu1 %vm1399_vm12, %v11491_v16  ;;  %v9579_v16 = vsel %vm13377_vm13, %v9574_v18, %v16392_v33  ;;  %v16456_v17 = vrot.slane %v9672_v49, 5  ;;  %v9678_v33 = vrot.slane %v9676_v43, 4  ;;  %v9622_v18 = vrot.slane %v9621_v7, 4 }
 0x56c   : > { %v11493_v45 = vcombine.low %v9579_v16, %v9589_v34  ;;  %v9655_v31 = vor.u32 %v9654_v28, %v16443_v9  ;;  %v9702_v28 = vrot.slane %v9700_v58, 4  ;;  %v9689_v49 = vrot.slane %v9687_v62, 4 }
 0x56d   : > { %v9679_v34 = vor.u32 %v9678_v33, %v16456_v17  ;;  %v9692_v43 = vrot.slane %v9690_v6, 5  ;;  %v11494_v16 = vcombine.low %v9603_v11, %v9613_v8  ;;  %v9627_v41 = vsel %vm13377_vm13, %v9622_v18, %v16437_v4 }
 0x56e   : > { %v9656_v42 = vrot.slane %v9655_v31, 4  ;;  %v9726_v7 = vrot.slane %v9724_v19, 4  ;;  %v9703_v32 = vor.u32 %v9702_v28, %v16468_v26  ;;  %v9651_v11 = vsel %vm13377_vm13, %v9646_v5, %v16443_v9 }
 0x56f   : > { %v9680_v24 = vrot.slane %v9679_v34, 4  ;;  %v9684_v33 = vrot.slane %v9682_v48, 5  ;;  %v9693_v4 = vor.u32 %v9692_v43, %v9689_v49  ;;  %v9706_v58 = vshll.u32 %v17063_v2, 16 }
 0x570   : > { %v9661_v31 = vsel %vm13377_vm13, %v9656_v42, %v9660_v30  ;;  %v9735_v62 = vshrl.u32 %v9455_v1, 16  ;;  %v9738_v6 = vshll.u32 %v9455_v1, 16  ;;  %v9727_v53 = vor.u32 %v9726_v7, %v16476_v55  ;;  %v17066_v42 = vld [vmem:[#allocation69_spill] sm:$0xff] }
 0x571   : > { %v11496_v8 = vcombine.low %v9651_v11, %v9661_v31  ;;  %v9685_v23 = vsel %vm13377_vm13, %v9680_v24, %v9684_v33  ;;  %v9708_v51 = vrot.slane %v9706_v58, 5  ;;  %v9730_v19 = vshll.u32 %v17065_v63, 16  ;;  %v9461_v24 = vld [vmem:[#allocation2 + $0xb4] sm:$0xf] }
 0x572   : > { %12496 = vmatmul.mubr.msk.bf16.gmra.mrb[4].mxu1 %vm1399_vm12, %v11492_v10  ;;  %v9637_v10 = vsel %vm13377_vm13, %v9632_v0, %v9636_v39  ;;  %v9713_v0 = vrot.slane %v9711_v60, 4  ;;  %v9716_v39 = vrot.slane %v9714_v54, 5  ;;  %v9768_v34 = vshll.u32 %v17066_v42, 16 }
 0x573   : > { %12499 = vmatprep.mubr.msk.bf16.mxu1 %vm1399_vm12, %v11493_v45  ;;  %v9669_v45 = vor.u32 %v9668_v35, %v9665_v29  ;;  %v11495_v47 = vcombine.low %v9627_v41, %v9637_v10  ;;  %v9704_v29 = vrot.slane %v9703_v32, 4  ;;  %v17064_v35 = vld [vmem:[#allocation68_spill] sm:$0xff]  ;;  %v9772_v28 = vshrl.u32 %v17066_v42, 16  ;;  %v9467_v42 = vld [vmem:[#allocation2 + $0xcc] sm:$0xf] }
 0x574   : > { %v9744_v9 = vshll.u32 %v17064_v35, 16  ;;  %v9748_v5 = vshrl.u32 %v17064_v35, 16  ;;  %v9694_v10 = vrot.slane %v9693_v4, 4  ;;  %v9717_v21 = vor.u32 %v9716_v39, %v9713_v0 }
 0x575   : > { %v9670_v18 = vrot.slane %v9669_v45, 4  ;;  %v9737_v48 = vrot.slane %v9735_v62, 4  ;;  %v9740_v49 = vrot.slane %v9738_v6, 5  ;;  %v9759_v30 = vshrl.u32 %v9458_v36, 16 }
 0x576   : > { %v9762_v60 = vshll.u32 %v9458_v36, 16  ;;  %v9709_v41 = vsel %vm13377_vm13, %v9704_v29, %v9708_v51  ;;  %v16500_v45 = vrot.slane %v9744_v9, 5  ;;  %v9750_v7 = vrot.slane %v9748_v5, 4  ;;  %v13209_v5 = vld [vmem:[#allocation2 + $0xb0] sm:$0x1] }
 0x577   : > { %v9675_v43 = vsel %vm13377_vm13, %v9670_v18, %v16456_v17  ;;  %v9732_v1 = vrot.slane %v9730_v19, 5  ;;  %v9774_v31 = vrot.slane %v9772_v28, 4  ;;  %v9699_v17 = vsel %vm13377_vm13, %v9694_v10, %v16468_v26  ;;  %v9464_v18 = vld [vmem:[#allocation2 + $0xc0] sm:$0xf] }
 0x578   : > { %v11497_v54 = vcombine.low %v9675_v43, %v9685_v23  ;;  %v9718_v32 = vrot.slane %v9717_v21, 4  ;;  %v9741_v11 = vor.u32 %v9740_v49, %v9737_v48  ;;  %v9754_v33 = vshll.u32 %v16071_v56, 16 }
 0x579   : > { %v11498_v4 = vcombine.low %v9699_v17, %v9709_v41  ;;  %v9761_v58 = vrot.slane %v9759_v30, 4  ;;  %v9764_v0 = vrot.slane %v9762_v60, 5  ;;  %v9751_v39 = vor.u32 %v9750_v7, %v16500_v45 }
 0x57a   : > { %12500 = vmatmul.mubr.msk.bf16.gmra.mrb[8].mxu1 %vm1399_vm12, %v11494_v16  ;;  %v9728_v16 = vrot.slane %v9727_v53, 4  ;;  %v9783_v62 = vshrl.u32 %v9461_v24, 16  ;;  %v9792_v6 = vshll.u32 %v16089_v61, 16  ;;  %v9786_v53 = vshll.u32 %v9461_v24, 16 }
 0x57b   : > { %12503 = vmatprep.mubr.msk.bf16.mxu1 %vm1399_vm12, %v11495_v47  ;;  %v16503_v47 = vrot.slane %v9768_v34, 5  ;;  %v9816_v23 = vshll.u32 %v16100_v14, 16  ;;  %v9820_v56 = vshrl.u32 %v16100_v14, 16  ;;  %v9723_v29 = vsel %vm13377_vm13, %v9718_v32, %v16476_v55 }
 0x57c   : > { %v9733_v2 = vsel %vm13377_vm13, %v9728_v16, %v9732_v1  ;;  %v9742_v35 = vrot.slane %v9741_v11, 4  ;;  %v9756_v9 = vrot.slane %v9754_v33, 5  ;;  %v9778_v36 = vshll.u32 %v13209_v5, 16  ;;  %v13210_v33 = vld [vmem:[#allocation2 + $0xbc] sm:$0x1] }
 0x57d   : > { %v9775_v26 = vor.u32 %v9774_v31, %v16503_v47  ;;  %v11499_v51 = vcombine.low %v9723_v29, %v9733_v2  ;;  %v9765_v63 = vor.u32 %v9764_v0, %v9761_v58  ;;  %v9807_v19 = vshrl.u32 %v9464_v18, 16 }
 0x57e   : > { %v9752_v34 = vrot.slane %v9751_v39, 4  ;;  %v9785_v28 = vrot.slane %v9783_v62, 4  ;;  %v9794_v10 = vrot.slane %v9792_v6, 5  ;;  %v9788_v48 = vrot.slane %v9786_v53, 5 }
 0x57f   : > { %v9776_v14 = vrot.slane %v9775_v26, 4  ;;  %v9818_v49 = vrot.slane %v9816_v23, 5  ;;  %v9822_v43 = vrot.slane %v9820_v56, 4  ;;  %v9831_v55 = vshrl.u32 %v9467_v42, 16 }
 0x580   : > { %v9834_v16 = vshll.u32 %v9467_v42, 16  ;;  %v9840_v30 = vshll.u32 %v16383_v57, 16  ;;  %v9844_v60 = vshrl.u32 %v16383_v57, 16  ;;  %v9780_v41 = vrot.slane %v9778_v36, 5 }
 0x581   : > { %v9809_v7 = vrot.slane %v9807_v19, 4  ;;  %v9747_v31 = vsel %vm13377_vm13, %v9742_v35, %v16500_v45  ;;  %v9757_v24 = vsel %vm13377_vm13, %v9752_v34, %v9756_v9  ;;  %v9789_v11 = vor.u32 %v9788_v48, %v9785_v28 }
 0x582   : > { %12504 = vmatmul.mubr.msk.bf16.gmra.mrb[12].mxu1 %vm1399_vm12, %v11496_v8  ;;  %v9796_v8 = vshrl.u32 %v16089_v61, 16  ;;  %v9810_v61 = vshll.u32 %v9464_v18, 16  ;;  %v9781_v32 = vsel %vm13377_vm13, %v9776_v14, %v9780_v41  ;;  %v9823_v2 = vor.u32 %v9822_v43, %v9818_v49  ;;  %v17074_v41 = vld [vmem:[#allocation52_spill] sm:$0xff] }
 0x583   : > { %12507 = vmatprep.mubr.msk.bf16.mxu1 %vm1399_vm12, %v11497_v54  ;;  %v9766_v54 = vrot.slane %v9765_v63, 4  ;;  %v9833_v57 = vrot.slane %v9831_v55, 4  ;;  %v9836_v58 = vrot.slane %v9834_v16, 5  ;;  %v9842_v0 = vrot.slane %v9840_v30, 5  ;;  %v17068_v55 = vld [vmem:[#allocation44_spill] sm:$0xff]  ;;  %v17071_v30 = vld [vmem:[#allocation49_spill] sm:$0xff] }
 0x584   : > { %v9798_v21 = vrot.slane %v9796_v8, 4  ;;  %v9812_v1 = vrot.slane %v9810_v61, 5  ;;  %v9846_v39 = vrot.slane %v9844_v60, 4  ;;  %v11500_v62 = vcombine.low %v9747_v31, %v9757_v24  ;;  %v13211_v8 = vld [vmem:[#allocation2 + $0xc8] sm:$0x1] }
 0x585   : > { %v9771_v45 = vsel %vm13377_vm13, %v9766_v54, %v16503_v47  ;;  %v9826_v18 = vshll.u32 %v13211_v8, 16  ;;  %v9824_v56 = vrot.slane %v9823_v2, 4  ;;  %v9790_v29 = vrot.slane %v9789_v11, 4  ;;  %v17073_v54 = vld [vmem:[#allocation48_spill] sm:$0xff]  ;;  %v17079_v24 = vld [vmem:[#allocation57_spill] sm:$0xff]  ;;  %v17082_v11 = vld [vmem:[#allocation62_spill] sm:$0xff] }
 0x586   : > { %v9799_v17 = vor.u32 %v9798_v21, %v9794_v10  ;;  %v9813_v6 = vor.u32 %v9812_v1, %v9809_v7  ;;  %v11501_v26 = vcombine.low %v9771_v45, %v9781_v32  ;;  %v9837_v35 = vor.u32 %v9836_v58, %v9833_v57  ;;  %v17077_v1 = vld [vmem:[#allocation56_spill] sm:$0xff]  ;;  %v17085_v2 = vld [vmem:[#allocation65_spill] sm:$0xff]  ;;  %v17086_v57 = vld [vmem:[#allocation67_spill] sm:$0xff] }
 0x587   : > { %v9847_v9 = vor.u32 %v9846_v39, %v9842_v0  ;;  %v9850_v5 = vshll.u32 %v16385_v20, 16  ;;  %v9795_v19 = vsel %vm13377_vm13, %v9790_v29, %v9794_v10  ;;  %v17067_v10 = vld [vmem:[#allocation43_spill] sm:$0xff]  ;;  %v17075_v7 = vcombine.low %v17073_v54, %v17074_v41  ;;  %v17091_v45 = vld [vmem:[#allocation72_spill] sm:$0xff]  ;;  %v17099_v29 = vld [vmem:[#allocation77_spill] sm:$0xff] }
 0x588   : > { %v9800_v53 = vrot.slane %v9799_v17, 4  ;;  %v9814_v36 = vrot.slane %v9813_v6, 4  ;;  %v9838_v61 = vrot.slane %v9837_v35, 4  ;;  %v17069_v16 = vcombine.low %v17067_v10, %v17068_v55  ;;  %v17080_v17 = vld [vmem:[#allocation60_spill] sm:$0xff]  ;;  %v17089_v39 = vld [vmem:[#allocation71_spill] sm:$0xff]  ;;  %v17092_v6 = vld [vmem:[#allocation73_spill] sm:$0xff] }
 0x589   : > { %v9848_v42 = vrot.slane %v9847_v9, 4  ;;  %v9852_v34 = vrot.slane %v9850_v5, 5  ;;  %v17078_v31 = vcombine.low %v17076_v15, %v17077_v1  ;;  %v17081_v32 = vcombine.low %v17079_v24, %v17080_v17  ;;  %v13214_v9 = vld [vmem:[%s13347_s27 + $0x18] sm:$0xff]  ;;  %v13217_v10 = vld [vmem:[%s13347_s27 + $0x20] sm:$0xff]  ;;  %v13219_v41 = vld [vmem:[%s13347_s27 + $0x28] sm:$0xff] }
 0x58a   : > { %12508 = vmatmul.mubr.msk.bf16.gmra.mrb[16].mxu1 %vm1399_vm12, %v11498_v4  ;;  %v9802_v4 = vshll.u32 %v13210_v33, 16  ;;  %v9819_v21 = vsel %vm13377_vm13, %v9814_v36, %v9818_v49  ;;  %v9843_v20 = vsel %vm13377_vm13, %v9838_v61, %v9842_v0  ;;  %v17070_v49 = vld [vmem:[#allocation47_spill] sm:$0xff]  ;;  %v17083_v33 = vld [vmem:[#allocation64_spill] sm:$0xff]  ;;  %v17087_v58 = vcombine.low %v17085_v2, %v17086_v57  ;;  %v17088_v0 = vld [vmem:[#allocation70_spill] sm:$0xff] }
 0x58b   : > { %12511 = vmatprep.mubr.msk.bf16.mxu1 %vm1399_vm12, %v11499_v51  ;;  %v9828_v51 = vrot.slane %v9826_v18, 5  ;;  %v9853_v48 = vsel %vm13377_vm13, %v9848_v42, %v9852_v34  ;;  %v17072_v60 = vcombine.low %v17070_v49, %v17071_v30  ;;  %v17093_v8 = vcombine.low %v17091_v45, %v17092_v6  ;;  %v17094_v18 = vld [vmem:[#allocation74_spill] sm:$0xff]  ;;  %v13218_v30 = vld [vmem:[%s13347_s27 + $0x38] sm:$0xff] }
 0x58c   : > { %v9804_v23 = vrot.slane %v9802_v4, 5  ;;  %v11504_v43 = vcombine.low %v9843_v20, %v9853_v48  ;;  %v17084_v4 = vcombine.low %v17082_v11, %v17083_v33  ;;  %v17100_v35 = vcombine.low %v16117_v44, %v17099_v29  ;;  %v13220_v33 = vld [vmem:[%s13347_s27 + $0x50] sm:$0xff]  ;;  %v13222_v45 = vld [vmem:[%s13347_s27 + $0x58] sm:$0xff] }
 0x58d   : > { %v9829_v63 = vsel %vm13377_vm13, %v9824_v56, %v9828_v51  ;;  %v13215_v51 = vld [vmem:[%s13347_s27 + $0x8] sm:$0xff] }
 0x58e   : > { %v9805_v47 = vsel %vm13377_vm13, %v9800_v53, %v9804_v23  ;;  %v11503_v14 = vcombine.low %v9819_v21, %v9829_v63  ;;  %v17096_v53 = vld [vmem:[#allocation75_spill] sm:$0xff]  ;;  %v17097_v23 = vld [vmem:[#allocation76_spill] sm:$0xff] }
 0x58f   : > { %v11502_v28 = vcombine.low %v9795_v19, %v9805_v47  ;;  %v17098_v56 = vcombine.low %v17096_v53, %v17097_v23 }
 0x592   : > { %12512 = vmatmul.mubr.msk.bf16.gmra.mrb[20].mxu1 %vm1399_vm12, %v11500_v62  ;;  %v17090_v62 = vcombine.low %v17088_v0, %v17089_v39 }
 0x593   : > { %12515 = vmatprep.mubr.msk.bf16.mxu1 %vm1399_vm12, %v11501_v26  ;;  %v17095_v26 = vcombine.low %v16085_v46, %v17094_v18  ;;  %v16620_v46 = vld [vmem:[%s16764_s4] ss:$0 sm:$0xff]  ;;  %v13223_v18 = vld [vmem:[%s13347_s27 + $0x48] sm:$0xff] }
 0x59a   : > { %12516 = vmatmul.mubr.msk.bf16.gmra.mrb[24].mxu1 %vm1399_vm12, %v11502_v28 }
 0x59b   : > { %12519 = vmatprep.mubr.msk.bf16.mxu1 %vm1399_vm12, %v11503_v14  ;;  %v13216_v14 = vld [vmem:[%s13347_s27 + $0x30] sm:$0xff] }
 0x5a2   : > { %12520 = vmatmul.mubr.msk.bf16.gmra.mrb[28].mxu1 %vm1399_vm12, %v11504_v43 }
 0x5a3   : > { %12525 = vmatprep.mubr.msk.bf16.mxu1 %vm1399_vm12, %v17069_v16 }
 0x5aa   : > { %12526 = vmatmul.mubr.msk.bf16.vlgmr.msra.gmra.mrb[0].mxu1 %vm1399_vm12, %v17072_v60 }
 0x5ab   : > { %12529 = vmatprep.mubr.msk.bf16.mxu1 %vm1399_vm12, %v17075_v7 }
 0x5b2   : > { %12530 = vmatmul.mubr.msk.bf16.gmra.mrb[4].mxu1 %vm1399_vm12, %v17078_v31 }
 0x5b3   : > { %12533 = vmatprep.mubr.msk.bf16.mxu1 %vm1399_vm12, %v17081_v32 }
 0x5ba   : > { %12534 = vmatmul.mubr.msk.bf16.gmra.mrb[8].mxu1 %vm1399_vm12, %v17084_v4 }
 0x5bb   : > { %12537 = vmatprep.mubr.msk.bf16.mxu1 %vm1399_vm12, %v17087_v58  ;;  %v13221_v58 = vld [vmem:[%s13347_s27 + $0x40] sm:$0xff] }
 0x5c2   : > { %12538 = vmatmul.mubr.msk.bf16.gmra.mrb[12].mxu1 %vm1399_vm12, %v17090_v62 }
 0x5c3   : > { %12541 = vmatprep.mubr.msk.bf16.mxu1 %vm1399_vm12, %v17093_v8 }
 0x5ca   : > { %12542 = vmatmul.mubr.msk.bf16.gmra.mrb[16].mxu1 %vm1399_vm12, %v17095_v26 }
 0x5cb   : > { %12545 = vmatprep.mubr.msk.bf16.mxu1 %vm1399_vm12, %v17098_v56 }
 0x5d2   : > { %12546 = vmatmul.mubr.msk.bf16.gmra.mrb[20].mxu1 %vm1399_vm12, %v17100_v35 }
 0x5d3   : > { %12549 = vmatprep.mubr.msk.bf16.mxu1 %vm1399_vm12, %v11550_v40 }
 0x5da   : > { %12550 = vmatmul.mubr.msk.bf16.gmra.mrb[24].mxu1 %vm1399_vm12, %v11551_v12 }
 0x5db   : > { %12553 = vmatprep.mubr.msk.bf16.mxu1 %vm1399_vm12, %v11552_v22  ;;  %v13213_v22 = vld [vmem:[%s13347_s27] sm:$0xff] }
 0x5e2   : > { %12554 = vmatmul.mubr.msk.bf16.gmra.mrb[28].mxu1 %vm1399_vm12, %v11553_v13 }
 0x67d   : > { %v12527_v44 = vpop.f32.mrb[0].mxu1 }
 0x67e   : > { %v10627_v25 = vadd.f32 %v12527_v44, %v16620_v46  ;;  %v10459_v27 = vpop.f32.mrb[1].mxu1 }
 0x67f   : > { %v10625_v40 = vadd.f32 %v16620_v46, %v10459_v27  ;;  %v12528_v3 = vpop.f32.mrb[2].mxu1  ;;  %v13224_v27 = vld [vmem:[%s13347_s27 + $0x70] sm:$0xff] }
 0x680   : > { %v10659_v12 = vadd.f32 %v13212_v37, %v10627_v25  ;;  %v10628_v50 = vadd.f32 %v12528_v3, %v16620_v46  ;;  %v10462_v38 = vpop.f32.mrb[3].mxu1 }
 0x681   : > { %v10657_v52 = vadd.f32 %v13213_v22, %v10625_v40  ;;  %v10626_v59 = vadd.f32 %v16620_v46, %v10462_v38 }
 0x682   : > { %v10691_v13 = vmax.f32 %v10659_v12, 0.0  ;;  %v10660_v5 = vadd.f32 %v13214_v9, %v10628_v50  ;;  %v13225_v12 = vld [vmem:[%s13347_s27 + $0x60] sm:$0xff]  ;;  %v13227_v9 = vld [vmem:[%s13347_s27 + $0x68] sm:$0xff] }
 0x683   : > { %v10689_v36 = vmax.f32 %v10657_v52, 0.0  ;;  %v10658_v47 = vadd.f32 %v13215_v51, %v10626_v59  ;;  %v13226_v52 = vld [vmem:[%s13347_s27 + $0x78] sm:$0xff] }
 0x684   : > { %10723 = vst.msk [vmem:[%s16631_s28 + $0x10] sm:$0xff] %vm1399_vm12, %v10691_v13  ;;  %v10692_v63 = vmax.f32 %v10660_v5, 0.0 }
 0x685   : > { %10721 = vst.msk [vmem:[%s16631_s28] sm:$0xff] %vm1399_vm12, %v10689_v36  ;;  %v10690_v19 = vmax.f32 %v10658_v47, 0.0  ;;  %v12531_v61 = vpop.f32.mrb[4].mxu1 }
 0x686   : > { %10724 = vst.msk [vmem:[%s16631_s28 + $0x18] sm:$0xff] %vm1399_vm12, %v10692_v63  ;;  %v10631_v42 = vadd.f32 %v12531_v61, %v16620_v46  ;;  %v10475_v34 = vpop.f32.mrb[5].mxu1 }
 0x687   : > { %10722 = vst.msk [vmem:[%s16631_s28 + $0x8] sm:$0xff] %vm1399_vm12, %v10690_v19  ;;  %v10629_v28 = vadd.f32 %v16620_v46, %v10475_v34  ;;  %v12532_v21 = vpop.f32.mrb[6].mxu1  ;;  %v13228_v34 = vld [vmem:[%s13347_s27 + $0x90] sm:$0xff] }
 0x688   : > { %v10663_v20 = vadd.f32 %v13216_v14, %v10631_v42  ;;  %v10632_v48 = vadd.f32 %v12532_v21, %v16620_v46  ;;  %v10478_v43 = vpop.f32.mrb[7].mxu1 }
 0x689   : > { %v10661_v55 = vadd.f32 %v13217_v10, %v10629_v28  ;;  %v10630_v16 = vadd.f32 %v16620_v46, %v10478_v43 }
 0x68a   : > { %v10695_v49 = vmax.f32 %v10663_v20, 0.0  ;;  %v10664_v60 = vadd.f32 %v13218_v30, %v10632_v48  ;;  %v13229_v20 = vld [vmem:[%s13347_s27 + $0x80] sm:$0xff]  ;;  %v13231_v30 = vld [vmem:[%s13347_s27 + $0x88] sm:$0xff] }
 0x68b   : > { %v10693_v54 = vmax.f32 %v10661_v55, 0.0  ;;  %v10662_v7 = vadd.f32 %v13219_v41, %v10630_v16  ;;  %v13230_v55 = vld [vmem:[%s13347_s27 + $0x98] sm:$0xff] }
 0x68c   : > { %10727 = vst.msk [vmem:[%s16631_s28 + $0x30] sm:$0xff] %vm1399_vm12, %v10695_v49  ;;  %v10696_v15 = vmax.f32 %v10664_v60, 0.0 }
 0x68d   : > { %10725 = vst.msk [vmem:[%s16631_s28 + $0x20] sm:$0xff] %vm1399_vm12, %v10693_v54  ;;  %v10694_v1 = vmax.f32 %v10662_v7, 0.0  ;;  %v12535_v31 = vpop.f32.mrb[8].mxu1 }
 0x68e   : > { %10728 = vst.msk [vmem:[%s16631_s28 + $0x38] sm:$0xff] %vm1399_vm12, %v10696_v15  ;;  %v10635_v24 = vadd.f32 %v12535_v31, %v16620_v46  ;;  %v10491_v17 = vpop.f32.mrb[9].mxu1 }
 0x68f   : > { %10726 = vst.msk [vmem:[%s16631_s28 + $0x28] sm:$0xff] %vm1399_vm12, %v10694_v1  ;;  %v10633_v32 = vadd.f32 %v16620_v46, %v10491_v17  ;;  %v12536_v11 = vpop.f32.mrb[10].mxu1  ;;  %v13232_v17 = vld [vmem:[%s13347_s27 + $0xb0] sm:$0xff] }
 0x690   : > { %v10667_v4 = vadd.f32 %v13220_v33, %v10635_v24  ;;  %v10636_v2 = vadd.f32 %v12536_v11, %v16620_v46  ;;  %v10494_v57 = vpop.f32.mrb[11].mxu1 }
 0x691   : > { %v10665_v0 = vadd.f32 %v13221_v58, %v10633_v32  ;;  %v10634_v39 = vadd.f32 %v16620_v46, %v10494_v57 }
 0x692   : > { %v10699_v62 = vmax.f32 %v10667_v4, 0.0  ;;  %v10668_v6 = vadd.f32 %v13222_v45, %v10636_v2  ;;  %v13233_v4 = vld [vmem:[%s13347_s27 + $0xa0] sm:$0xff]  ;;  %v13235_v45 = vld [vmem:[%s13347_s27 + $0xa8] sm:$0xff] }
 0x693   : > { %v10697_v8 = vmax.f32 %v10665_v0, 0.0  ;;  %v10666_v26 = vadd.f32 %v13223_v18, %v10634_v39  ;;  %v13234_v0 = vld [vmem:[%s13347_s27 + $0xb8] sm:$0xff] }
 0x694   : > { %10731 = vst.msk [vmem:[%s16631_s28 + $0x50] sm:$0xff] %vm1399_vm12, %v10699_v62  ;;  %v10700_v53 = vmax.f32 %v10668_v6, 0.0 }
 0x695   : > { %10729 = vst.msk [vmem:[%s16631_s28 + $0x40] sm:$0xff] %vm1399_vm12, %v10697_v8  ;;  %v10698_v23 = vmax.f32 %v10666_v26, 0.0  ;;  %v12539_v56 = vpop.f32.mrb[12].mxu1 }
 0x696   : > { %10732 = vst.msk [vmem:[%s16631_s28 + $0x58] sm:$0xff] %vm1399_vm12, %v10700_v53  ;;  %v10639_v29 = vadd.f32 %v12539_v56, %v16620_v46  ;;  %v10507_v35 = vpop.f32.mrb[13].mxu1 }
 0x697   : > { %10730 = vst.msk [vmem:[%s16631_s28 + $0x48] sm:$0xff] %vm1399_vm12, %v10698_v23  ;;  %v10637_v44 = vadd.f32 %v16620_v46, %v10507_v35  ;;  %v12540_v25 = vpop.f32.mrb[14].mxu1  ;;  %v13236_v35 = vld [vmem:[%s13347_s27 + $0xd0] sm:$0xff] }
 0x698   : > { %v10671_v40 = vadd.f32 %v13224_v27, %v10639_v29  ;;  %v10640_v3 = vadd.f32 %v12540_v25, %v16620_v46  ;;  %v10510_v37 = vpop.f32.mrb[15].mxu1 }
 0x699   : > { %v10669_v50 = vadd.f32 %v13225_v12, %v10637_v44  ;;  %v10638_v38 = vadd.f32 %v16620_v46, %v10510_v37 }
 0x69a   : > { %v10703_v22 = vmax.f32 %v10671_v40, 0.0  ;;  %v10672_v59 = vadd.f32 %v13226_v52, %v10640_v3  ;;  %v13237_v40 = vld [vmem:[%s13347_s27 + $0xc0] sm:$0xff]  ;;  %v13239_v52 = vld [vmem:[%s13347_s27 + $0xc8] sm:$0xff] }
 0x69b   : > { %v10701_v13 = vmax.f32 %v10669_v50, 0.0  ;;  %v10670_v5 = vadd.f32 %v13227_v9, %v10638_v38  ;;  %v13238_v50 = vld [vmem:[%s13347_s27 + $0xd8] sm:$0xff] }
 0x69c   : > { %10735 = vst.msk [vmem:[%s16631_s28 + $0x70] sm:$0xff] %vm1399_vm12, %v10703_v22  ;;  %v10704_v36 = vmax.f32 %v10672_v59, 0.0 }
 0x69d   : > { %10733 = vst.msk [vmem:[%s16631_s28 + $0x60] sm:$0xff] %vm1399_vm12, %v10701_v13  ;;  %v10702_v51 = vmax.f32 %v10670_v5, 0.0  ;;  %v12543_v47 = vpop.f32.mrb[16].mxu1 }
 0x69e   : > { %10736 = vst.msk [vmem:[%s16631_s28 + $0x78] sm:$0xff] %vm1399_vm12, %v10704_v36  ;;  %v10643_v63 = vadd.f32 %v12543_v47, %v16620_v46  ;;  %v10523_v19 = vpop.f32.mrb[17].mxu1 }
 0x69f   : > { %10734 = vst.msk [vmem:[%s16631_s28 + $0x68] sm:$0xff] %vm1399_vm12, %v10702_v51  ;;  %v10641_v61 = vadd.f32 %v16620_v46, %v10523_v19  ;;  %v12544_v42 = vpop.f32.mrb[18].mxu1  ;;  %v13240_v19 = vld [vmem:[%s13347_s27 + $0xf0] sm:$0xff] }
 0x6a0   : > { %v10675_v28 = vadd.f32 %v13228_v34, %v10643_v63  ;;  %v10644_v21 = vadd.f32 %v12544_v42, %v16620_v46  ;;  %v10526_v14 = vpop.f32.mrb[19].mxu1 }
 0x6a1   : > { %v10673_v48 = vadd.f32 %v13229_v20, %v10641_v61  ;;  %v10642_v43 = vadd.f32 %v16620_v46, %v10526_v14 }
 0x6a2   : > { %v10707_v10 = vmax.f32 %v10675_v28, 0.0  ;;  %v10676_v16 = vadd.f32 %v13230_v55, %v10644_v21  ;;  %v13241_v28 = vld [vmem:[%s13347_s27 + $0xe0] sm:$0xff]  ;;  %v13243_v55 = vld [vmem:[%s13347_s27 + $0xe8] sm:$0xff] }
 0x6a3   : > { %v10705_v49 = vmax.f32 %v10673_v48, 0.0  ;;  %v10674_v60 = vadd.f32 %v13231_v30, %v10642_v43  ;;  %v13242_v48 = vld [vmem:[%s13347_s27 + $0xf8] sm:$0xff] }
 0x6a4   : > { %10739 = vst.msk [vmem:[%s16631_s28 + $0x90] sm:$0xff] %vm1399_vm12, %v10707_v10  ;;  %v10708_v54 = vmax.f32 %v10676_v16, 0.0 }
 0x6a5   : > { %10737 = vst.msk [vmem:[%s16631_s28 + $0x80] sm:$0xff] %vm1399_vm12, %v10705_v49  ;;  %v10706_v41 = vmax.f32 %v10674_v60, 0.0  ;;  %v12547_v7 = vpop.f32.mrb[20].mxu1 }
 0x6a6   : > { %10740 = vst.msk [vmem:[%s16631_s28 + $0x98] sm:$0xff] %vm1399_vm12, %v10708_v54  ;;  %v10647_v15 = vadd.f32 %v12547_v7, %v16620_v46  ;;  %v10539_v1 = vpop.f32.mrb[21].mxu1 }
 0x6a7   : > { %10738 = vst.msk [vmem:[%s16631_s28 + $0x88] sm:$0xff] %vm1399_vm12, %v10706_v41  ;;  %v10645_v31 = vadd.f32 %v16620_v46, %v10539_v1  ;;  %v12548_v24 = vpop.f32.mrb[22].mxu1 }
 0x6a8   : > { %v10679_v32 = vadd.f32 %v13232_v17, %v10647_v15  ;;  %v10648_v11 = vadd.f32 %v12548_v24, %v16620_v46  ;;  %v10542_v33 = vpop.f32.mrb[23].mxu1 }
 0x6a9   : > { %v10677_v2 = vadd.f32 %v13233_v4, %v10645_v31  ;;  %v10646_v57 = vadd.f32 %v16620_v46, %v10542_v33 }
 0x6aa   : > { %v10711_v58 = vmax.f32 %v10679_v32, 0.0  ;;  %v10680_v39 = vadd.f32 %v13234_v0, %v10648_v11 }
 0x6ab   : > { %v10709_v62 = vmax.f32 %v10677_v2, 0.0  ;;  %v10678_v6 = vadd.f32 %v13235_v45, %v10646_v57 }
 0x6ac   : > { %10743 = vst.msk [vmem:[%s16631_s28 + $0xb0] sm:$0xff] %vm1399_vm12, %v10711_v58  ;;  %v10712_v8 = vmax.f32 %v10680_v39, 0.0 }
 0x6ad   : > { %10741 = vst.msk [vmem:[%s16631_s28 + $0xa0] sm:$0xff] %vm1399_vm12, %v10709_v62  ;;  %v10710_v18 = vmax.f32 %v10678_v6, 0.0  ;;  %v12551_v26 = vpop.f32.mrb[24].mxu1 }
 0x6ae   : > { %10744 = vst.msk [vmem:[%s16631_s28 + $0xb8] sm:$0xff] %vm1399_vm12, %v10712_v8  ;;  %v10651_v53 = vadd.f32 %v12551_v26, %v16620_v46  ;;  %v10555_v23 = vpop.f32.mrb[25].mxu1 }
 0x6af   : > { %10742 = vst.msk [vmem:[%s16631_s28 + $0xa8] sm:$0xff] %vm1399_vm12, %v10710_v18  ;;  %v10649_v56 = vadd.f32 %v16620_v46, %v10555_v23  ;;  %v12552_v29 = vpop.f32.mrb[26].mxu1 }
 0x6b0   : > { %v10683_v44 = vadd.f32 %v13236_v35, %v10651_v53  ;;  %v10652_v25 = vadd.f32 %v12552_v29, %v16620_v46  ;;  %v10558_v27 = vpop.f32.mrb[27].mxu1 }
 0x6b1   : > { %v10681_v3 = vadd.f32 %v13237_v40, %v10649_v56  ;;  %v10650_v37 = vadd.f32 %v16620_v46, %v10558_v27 }
 0x6b2   : > { %v10715_v12 = vmax.f32 %v10683_v44, 0.0  ;;  %v10684_v38 = vadd.f32 %v13238_v50, %v10652_v25 }
 0x6b3   : > { %v10713_v22 = vmax.f32 %v10681_v3, 0.0  ;;  %v10682_v59 = vadd.f32 %v13239_v52, %v10650_v37 }
 0x6b4   : > { %10747 = vst.msk [vmem:[%s16631_s28 + $0xd0] sm:$0xff] %vm1399_vm12, %v10715_v12  ;;  %v10716_v13 = vmax.f32 %v10684_v38, 0.0 }
 0x6b5   : > { %10745 = vst.msk [vmem:[%s16631_s28 + $0xc0] sm:$0xff] %vm1399_vm12, %v10713_v22  ;;  %v10714_v9 = vmax.f32 %v10682_v59, 0.0  ;;  %v12555_v5 = vpop.f32.mrb[28].mxu1 }
 0x6b6   : > { %10748 = vst.msk [vmem:[%s16631_s28 + $0xd8] sm:$0xff] %vm1399_vm12, %v10716_v13  ;;  %v10655_v36 = vadd.f32 %v12555_v5, %v16620_v46  ;;  %v10571_v51 = vpop.f32.mrb[29].mxu1 }
 0x6b7   : > { %10746 = vst.msk [vmem:[%s16631_s28 + $0xc8] sm:$0xff] %vm1399_vm12, %v10714_v9  ;;  %v10653_v47 = vadd.f32 %v16620_v46, %v10571_v51  ;;  %v12556_v63 = vpop.f32.mrb[30].mxu1 }
 0x6b8   : > { %v10687_v61 = vadd.f32 %v13240_v19, %v10655_v36  ;;  %v10656_v42 = vadd.f32 %v12556_v63, %v16620_v46  ;;  %v10574_v34 = vpop.f32.mrb[31].mxu1 }
 0x6b9   : > { %v10685_v21 = vadd.f32 %v13241_v28, %v10653_v47  ;;  %v10654_v14 = vadd.f32 %v16620_v46, %v10574_v34 }
 0x6ba   : > { %v10719_v20 = vmax.f32 %v10687_v61, 0.0  ;;  %v10688_v43 = vadd.f32 %v13242_v48, %v10656_v42 }
 0x6bb   : > { %v10717_v10 = vmax.f32 %v10685_v21, 0.0  ;;  %v10686_v16 = vadd.f32 %v13243_v55, %v10654_v14 }
 0x6bc   : > { %10751 = vst.msk [vmem:[%s16631_s28 + $0xf0] sm:$0xff] %vm1399_vm12, %v10719_v20  ;;  %v10720_v49 = vmax.f32 %v10688_v43, 0.0 }
 0x6bd   : > { %10749 = vst.msk [vmem:[%s16631_s28 + $0xe0] sm:$0xff] %vm1399_vm12, %v10717_v10  ;;  %v10718_v30 = vmax.f32 %v10686_v16, 0.0 }
 0x6be   : > { %10752 = vst.msk [vmem:[%s16631_s28 + $0xf8] sm:$0xff] %vm1399_vm12, %v10720_v49 }
 0x6bf   : > { %10750 = vst.msk [vmem:[%s16631_s28 + $0xe8] sm:$0xff] %vm1399_vm12, %v10718_v30 }
 0x6c0 PF: > { %s15_s18 = sadd.s32 1, %s13250_s18  }
 0x6c1   : > { %p12_p4 = scmp.ge.s32.totalorder %s15_s18, 4  }
 0x6c3   :  { %14 = sbr.rel (!%p12_p4) target bundleno = 1 (0x1), region = 89 }

</bundles_post_ra>
